<compile_context>
chip_gen: v7x
topology: tpu7x:2x2x1
jax: 0.10.0
libtpu: 0.0.40
codegen_flags: <defaults>
</compile_context>

<pallas_src>
import functools
import math

import jax
import jax.numpy as jnp
import numpy as np
from jax.experimental import pallas as pl
from jax.experimental.pallas import tpu as pltpu

MAX_VAL = 255.0
C1 = (0.01 * MAX_VAL) ** 2
C2 = (0.03 * MAX_VAL) ** 2
MS_SSIM_WEIGHTS = (0.0448, 0.2856, 0.3001, 0.2363, 0.1333)


# --------------------------------------------------------------------------
# Host-side (numpy) constant matrices — become compile-time constants under jit
# --------------------------------------------------------------------------
def _gaussian_1d(window_size, sigma):
    g = np.array([math.exp(-((x - window_size // 2) ** 2) / (2.0 * sigma ** 2))
                  for x in range(window_size)], dtype=np.float64)
    return (g / g.sum()).astype(np.float32)


def _gauss_band(g1d, out_dim, in_dim, pad):
    """Banded matrix B with B[i, k] = g[k - i + pad]; B @ x == 1-D Gaussian
    conv of x with zero padding `pad` (same semantics as F.conv2d per axis)."""
    ws = g1d.shape[0]
    m = np.zeros((out_dim, in_dim), dtype=np.float32)
    for i in range(out_dim):
        for k in range(in_dim):
            t = k - i + pad
            if 0 <= t < ws:
                m[i, k] = g1d[t]
    return m


def _pool_band(in_dim):
    """P with P[i, 2i] = P[i, 2i+1] = 0.5;  P @ x == 1-D avg-pool(k=2, s=2)."""
    out_dim = in_dim // 2
    m = np.zeros((out_dim, in_dim), dtype=np.float32)
    for i in range(out_dim):
        m[i, 2 * i] = 0.5
        m[i, 2 * i + 1] = 0.5
    return m


def _block_diag(m, b):
    r, c = m.shape
    out = np.zeros((b * r, b * c), dtype=np.float32)
    for p in range(b):
        out[p * r:(p + 1) * r, p * c:(p + 1) * c] = m
    return out


def _pick_chunk_planes(nc, h, w, hout, wout):
    """Largest divisor of nc whose per-chunk working set stays well under the
    default scoped VMEM limit (16 MiB on v5e)."""
    budget = 6 * 1024 * 1024
    for b in range(nc, 0, -1):
        if nc % b:
            continue
        if b != nc and (b * h) % 16:
            continue  # keep blocked sublane dims tile-friendly when chunking
        band_bytes = 4 * (b * hout) * (b * h) + 4 * (b * (h // 2)) * (b * h)
        work_bytes = 4 * 14 * b * max(h, hout) * max(w, wout)
        if band_bytes + work_bytes <= budget:
            return b
    # TODO(synk): for very large images, tile along H with a (ws-1) halo
    # instead of whole planes per grid step.
    return nc


# --------------------------------------------------------------------------
# Fused per-level kernel: Gaussian SSIM/MCS sums (+ optional 2x2 avg pooling)
# --------------------------------------------------------------------------
def _level_kernel(*refs, do_pool):
    if do_pool:
        (x1_ref, x2_ref, grb_ref, gct_ref, prb_ref, pct_ref,
         ssim_ref, mcs_ref, p1_ref, p2_ref) = refs
    else:
        x1_ref, x2_ref, grb_ref, gct_ref, ssim_ref, mcs_ref = refs

    x1 = x1_ref[...]            # (b*h, w) — b planes stacked along rows
    x2 = x2_ref[...]
    grb = grb_ref[...]          # (b*hout, b*h) block-diag row filter (with pad)
    gct = gct_ref[...]          # (w, wout)      column filter (with pad)

    def gauss_filter(m):
        # separable Gaussian conv as two MXU matmuls: rows via block-diag band,
        # columns via shared band; zero padding is encoded in the bands.
        t = jnp.dot(m, gct, preferred_element_type=jnp.float32)      # (b*h, wout)
        return jnp.dot(grb, t, preferred_element_type=jnp.float32)   # (b*hout, wout)

    mu1 = gauss_filter(x1)
    mu2 = gauss_filter(x2)
    s11 = gauss_filter(x1 * x1)
    s22 = gauss_filter(x2 * x2)
    s12 = gauss_filter(x1 * x2)

    mu1_sq = mu1 * mu1
    mu2_sq = mu2 * mu2
    mu1_mu2 = mu1 * mu2
    sigma1_sq = s11 - mu1_sq
    sigma2_sq = s22 - mu2_sq
    sigma12 = s12 - mu1_mu2

    v1 = 2.0 * sigma12 + C2
    v2 = sigma1_sq + sigma2_sq + C2
    ssim_map = (2.0 * mu1_mu2 + C1) * v1 / ((mu1_sq + mu2_sq + C1) * v2)
    mcs_map = v1 / v2

    # One reduction per chunk; store as a lane-dense broadcast block so the
    # output store is an unmasked full-width vst and the grid stays 'parallel'.
    ssim_ref[...] = jnp.zeros((1, 1, 128), jnp.float32) + jnp.sum(ssim_map)
    mcs_ref[...] = jnp.zeros((1, 1, 128), jnp.float32) + jnp.sum(mcs_map)

    if do_pool:
        prb = prb_ref[...]      # (b*ho, b*h) block-diag 2x row pool
        pct = pct_ref[...]      # (w, wo)     2x column pool
        p1_ref[...] = jnp.dot(prb, jnp.dot(x1, pct, preferred_element_type=jnp.float32),
                              preferred_element_type=jnp.float32)
        p2_ref[...] = jnp.dot(prb, jnp.dot(x2, pct, preferred_element_type=jnp.float32),
                              preferred_element_type=jnp.float32)


def _ssim_pool_level(img1, img2, do_pool):
    """One pyramid level. Returns (ssim_mean, mcs_mean, pooled1, pooled2)."""
    n, c, h, w = img1.shape
    nc = n * c
    ws = min(h, w, 7)                      # matches the reference module
    sigma = 1.5 * ws / 7.0
    pad = ws // 2
    hout = h + 2 * pad - ws + 1            # F.conv2d output size (can exceed h)
    wout = w + 2 * pad - ws + 1

    b = _pick_chunk_planes(nc, h, w, hout, wout)   # planes per grid step
    g = nc // b

    g1d = _gaussian_1d(ws, sigma)
    grb = _block_diag(_gauss_band(g1d, hout, h, pad), b)   # (b*hout, b*h)
    gct = _gauss_band(g1d, wout, w, pad).T                  # (w, wout)

    x1 = img1.reshape(nc * h, w)
    x2 = img2.reshape(nc * h, w)

    in_specs = [
        pl.BlockSpec((b * h, w), lambda i: (i, 0)),
        pl.BlockSpec((b * h, w), lambda i: (i, 0)),
        pl.BlockSpec((b * hout, b * h), lambda i: (0, 0)),
        pl.BlockSpec((w, wout), lambda i: (0, 0)),
    ]
    args = [x1, x2, grb, gct]
    out_shape = [
        jax.ShapeDtypeStruct((g, 1, 128), jnp.float32),
        jax.ShapeDtypeStruct((g, 1, 128), jnp.float32),
    ]
    out_specs = [
        pl.BlockSpec((1, 1, 128), lambda i: (i, 0, 0)),
        pl.BlockSpec((1, 1, 128), lambda i: (i, 0, 0)),
    ]

    if do_pool:
        ho, wo = h // 2, w // 2
        prb = _block_diag(_pool_band(h), b)     # (b*ho, b*h)
        pct = _pool_band(w).T                   # (w, wo)
        in_specs += [
            pl.BlockSpec((b * ho, b * h), lambda i: (0, 0)),
            pl.BlockSpec((w, wo), lambda i: (0, 0)),
        ]
        args += [prb, pct]
        out_shape += [
            jax.ShapeDtypeStruct((nc * ho, wo), jnp.float32),
            jax.ShapeDtypeStruct((nc * ho, wo), jnp.float32),
        ]
        out_specs += [
            pl.BlockSpec((b * ho, wo), lambda i: (i, 0)),
            pl.BlockSpec((b * ho, wo), lambda i: (i, 0)),
        ]

    kernel = functools.partial(_level_kernel, do_pool=do_pool)
    outs = pl.pallas_call(
        kernel,
        out_shape=tuple(out_shape),
        grid_spec=pltpu.PrefetchScalarGridSpec(
            num_scalar_prefetch=0,
            grid=(g,),
            in_specs=in_specs,
            out_specs=tuple(out_specs)),
        compiler_params=pltpu.CompilerParams(
            dimension_semantics=("parallel",)),
    )(*args)

    denom = float(nc * hout * wout)
    ssim_mean = jnp.sum(outs[0][:, 0, 0]) / denom
    mcs_mean = jnp.sum(outs[1][:, 0, 0]) / denom
    if do_pool:
        pooled1 = outs[2].reshape(n, c, h // 2, w // 2)
        pooled2 = outs[3].reshape(n, c, h // 2, w // 2)
        return ssim_mean, mcs_mean, pooled1, pooled2
    return ssim_mean, mcs_mean, None, None


# --------------------------------------------------------------------------
# MS-SSIM forward (matches MS_SSIM.forward / ms_ssim with levels=5)
# --------------------------------------------------------------------------
def ms_ssim(img1, img2, levels=5):
    weight = jnp.asarray(MS_SSIM_WEIGHTS[:levels], jnp.float32)
    msssim_vals, mcs_vals = [], []
    for lvl in range(levels):
        do_pool = lvl < levels - 1           # last level's pooled output is unused
        s, m, p1, p2 = _ssim_pool_level(img1, img2, do_pool)
        msssim_vals.append(s)
        mcs_vals.append(m)
        if do_pool:
            img1, img2 = p1, p2
    msssim = jnp.stack(msssim_vals)
    mcs = jnp.stack(mcs_vals)
    # NOTE: no clamping of mcs, exactly as in the reference module (negative
    # mcs raised to a fractional weight would NaN there too).
    value = (jnp.prod(mcs[:levels - 1] ** weight[:levels - 1])
             * msssim[levels - 1] ** weight[levels - 1])
    return value


if __name__ == "__main__":
    key = jax.random.PRNGKey(0)
    k1, k2 = jax.random.split(key)
    # NCHW; channels = 3 (module hardcodes self.channel = 3); spatial 32 so
    # all 5 pyramid levels (32, 16, 8, 4, 2) are valid.
    img1 = jax.random.uniform(k1, (2, 3, 32, 32), jnp.float32) * 255.0
    img2 = jnp.clip(img1 + 5.0 * jax.random.normal(k2, (2, 3, 32, 32), jnp.float32),
                    0.0, 255.0)

    value = jax.jit(ms_ssim)(img1, img2)
    jax.block_until_ready(value)
    print("KERNEL_OK")
</pallas_src>

<mosaic_0001>
module attributes {stable_mosaic.version = 11 : i64} {
  func.func @_level_kernel(%arg0: i32, %arg1: memref<96x16xf32, #tpu.memory_space<vmem>>, %arg2: memref<96x16xf32, #tpu.memory_space<vmem>>, %arg3: memref<96x96xf32, #tpu.memory_space<vmem>>, %arg4: memref<16x16xf32, #tpu.memory_space<vmem>>, %arg5: memref<48x96xf32, #tpu.memory_space<vmem>>, %arg6: memref<16x8xf32, #tpu.memory_space<vmem>>, %arg7: memref<1x1x128xf32, #tpu.memory_space<vmem>>, %arg8: memref<1x1x128xf32, #tpu.memory_space<vmem>>, %arg9: memref<48x8xf32, #tpu.memory_space<vmem>>, %arg10: memref<48x8xf32, #tpu.memory_space<vmem>>) attributes {dimension_semantics = [#tpu.dimension_semantics<parallel>], iteration_bounds = array<i64: 1>, scalar_prefetch = 0 : i64, scratch_operands = 0 : i64, tpu.core_type = #tpu.core_type<tc>, window_params = [{transform_indices = @transform_0, window_bounds = array<i64: 96, 16>}, {transform_indices = @transform_1, window_bounds = array<i64: 96, 16>}, {pipeline_mode = #tpu.pipeline_mode<synchronous>, transform_indices = @transform_2, window_bounds = array<i64: 96, 96>}, {pipeline_mode = #tpu.pipeline_mode<synchronous>, transform_indices = @transform_3, window_bounds = array<i64: 16, 16>}, {pipeline_mode = #tpu.pipeline_mode<synchronous>, transform_indices = @transform_4, window_bounds = array<i64: 48, 96>}, {pipeline_mode = #tpu.pipeline_mode<synchronous>, transform_indices = @transform_5, window_bounds = array<i64: 16, 8>}, {transform_indices = @transform_6, window_bounds = array<i64: 1, 1, 128>}, {transform_indices = @transform_7, window_bounds = array<i64: 1, 1, 128>}, {transform_indices = @transform_8, window_bounds = array<i64: 48, 8>}, {transform_indices = @transform_9, window_bounds = array<i64: 48, 8>}]} {
    %c0 = arith.constant 0 : index
    %c0_0 = arith.constant 0 : index
    %0 = vector.load %arg1[%c0, %c0_0] : memref<96x16xf32, #tpu.memory_space<vmem>>, vector<96x16xf32>
    %c0_1 = arith.constant 0 : index
    %c0_2 = arith.constant 0 : index
    %1 = vector.load %arg2[%c0_1, %c0_2] : memref<96x16xf32, #tpu.memory_space<vmem>>, vector<96x16xf32>
    %c0_3 = arith.constant 0 : index
    %c0_4 = arith.constant 0 : index
    %2 = vector.load %arg3[%c0_3, %c0_4] : memref<96x96xf32, #tpu.memory_space<vmem>>, vector<96x96xf32>
    %c0_5 = arith.constant 0 : index
    %c0_6 = arith.constant 0 : index
    %3 = vector.load %arg4[%c0_5, %c0_6] : memref<16x16xf32, #tpu.memory_space<vmem>>, vector<16x16xf32>
    %cst = arith.constant dense<0.000000e+00> : vector<96x16xf32>
    %4 = tpu.matmul %0, %3, %cst {dimension_numbers = #tpu.dot_dimension_numbers<[1], [0], [0], [1], [0, 0, 1, 1], [], []>} : vector<96x16xf32>, vector<16x16xf32>, vector<96x16xf32> -> vector<96x16xf32>
    %cst_7 = arith.constant dense<0.000000e+00> : vector<96x16xf32>
    %5 = tpu.matmul %2, %4, %cst_7 {dimension_numbers = #tpu.dot_dimension_numbers<[1], [0], [0], [1], [0, 0, 1, 1], [], []>} : vector<96x96xf32>, vector<96x16xf32>, vector<96x16xf32> -> vector<96x16xf32>
    %cst_8 = arith.constant dense<0.000000e+00> : vector<96x16xf32>
    %6 = tpu.matmul %1, %3, %cst_8 {dimension_numbers = #tpu.dot_dimension_numbers<[1], [0], [0], [1], [0, 0, 1, 1], [], []>} : vector<96x16xf32>, vector<16x16xf32>, vector<96x16xf32> -> vector<96x16xf32>
    %cst_9 = arith.constant dense<0.000000e+00> : vector<96x16xf32>
    %7 = tpu.matmul %2, %6, %cst_9 {dimension_numbers = #tpu.dot_dimension_numbers<[1], [0], [0], [1], [0, 0, 1, 1], [], []>} : vector<96x96xf32>, vector<96x16xf32>, vector<96x16xf32> -> vector<96x16xf32>
    %8 = arith.mulf %0, %0 : vector<96x16xf32>
    %cst_10 = arith.constant dense<0.000000e+00> : vector<96x16xf32>
    %9 = tpu.matmul %8, %3, %cst_10 {dimension_numbers = #tpu.dot_dimension_numbers<[1], [0], [0], [1], [0, 0, 1, 1], [], []>} : vector<96x16xf32>, vector<16x16xf32>, vector<96x16xf32> -> vector<96x16xf32>
    %cst_11 = arith.constant dense<0.000000e+00> : vector<96x16xf32>
    %10 = tpu.matmul %2, %9, %cst_11 {dimension_numbers = #tpu.dot_dimension_numbers<[1], [0], [0], [1], [0, 0, 1, 1], [], []>} : vector<96x96xf32>, vector<96x16xf32>, vector<96x16xf32> -> vector<96x16xf32>
    %11 = arith.mulf %1, %1 : vector<96x16xf32>
    %cst_12 = arith.constant dense<0.000000e+00> : vector<96x16xf32>
    %12 = tpu.matmul %11, %3, %cst_12 {dimension_numbers = #tpu.dot_dimension_numbers<[1], [0], [0], [1], [0, 0, 1, 1], [], []>} : vector<96x16xf32>, vector<16x16xf32>, vector<96x16xf32> -> vector<96x16xf32>
    %cst_13 = arith.constant dense<0.000000e+00> : vector<96x16xf32>
    %13 = tpu.matmul %2, %12, %cst_13 {dimension_numbers = #tpu.dot_dimension_numbers<[1], [0], [0], [1], [0, 0, 1, 1], [], []>} : vector<96x96xf32>, vector<96x16xf32>, vector<96x16xf32> -> vector<96x16xf32>
    %14 = arith.mulf %0, %1 : vector<96x16xf32>
    %cst_14 = arith.constant dense<0.000000e+00> : vector<96x16xf32>
    %15 = tpu.matmul %14, %3, %cst_14 {dimension_numbers = #tpu.dot_dimension_numbers<[1], [0], [0], [1], [0, 0, 1, 1], [], []>} : vector<96x16xf32>, vector<16x16xf32>, vector<96x16xf32> -> vector<96x16xf32>
    %cst_15 = arith.constant dense<0.000000e+00> : vector<96x16xf32>
    %16 = tpu.matmul %2, %15, %cst_15 {dimension_numbers = #tpu.dot_dimension_numbers<[1], [0], [0], [1], [0, 0, 1, 1], [], []>} : vector<96x96xf32>, vector<96x16xf32>, vector<96x16xf32> -> vector<96x16xf32>
    %17 = arith.mulf %5, %5 : vector<96x16xf32>
    %18 = arith.mulf %7, %7 : vector<96x16xf32>
    %19 = arith.mulf %5, %7 : vector<96x16xf32>
    %20 = arith.subf %10, %17 : vector<96x16xf32>
    %21 = arith.subf %13, %18 : vector<96x16xf32>
    %22 = arith.subf %16, %19 : vector<96x16xf32>
    %cst_16 = arith.constant 2.000000e+00 : f32
    %23 = vector.broadcast %cst_16 : f32 to vector<96x16xf32>
    %24 = arith.mulf %23, %22 : vector<96x16xf32>
    %cst_17 = arith.constant 5.852250e+01 : f32
    %25 = vector.broadcast %cst_17 : f32 to vector<96x16xf32>
    %26 = arith.addf %24, %25 : vector<96x16xf32>
    %27 = arith.addf %20, %21 : vector<96x16xf32>
    %cst_18 = arith.constant 5.852250e+01 : f32
    %28 = vector.broadcast %cst_18 : f32 to vector<96x16xf32>
    %29 = arith.addf %27, %28 : vector<96x16xf32>
    %cst_19 = arith.constant 2.000000e+00 : f32
    %30 = vector.broadcast %cst_19 : f32 to vector<96x16xf32>
    %31 = arith.mulf %30, %19 : vector<96x16xf32>
    %cst_20 = arith.constant 6.502500e+00 : f32
    %32 = vector.broadcast %cst_20 : f32 to vector<96x16xf32>
    %33 = arith.addf %31, %32 : vector<96x16xf32>
    %34 = arith.mulf %33, %26 : vector<96x16xf32>
    %35 = arith.addf %17, %18 : vector<96x16xf32>
    %cst_21 = arith.constant 6.502500e+00 : f32
    %36 = vector.broadcast %cst_21 : f32 to vector<96x16xf32>
    %37 = arith.addf %35, %36 : vector<96x16xf32>
    %38 = arith.mulf %37, %29 : vector<96x16xf32>
    %39 = arith.divf %34, %38 : vector<96x16xf32>
    %40 = arith.divf %26, %29 : vector<96x16xf32>
    %cst_22 = arith.constant 0.000000e+00 : f32
    %41 = vector.broadcast %cst_22 : f32 to vector<1x1x128xf32>
    %42 = vector.shape_cast %39 : vector<96x16xf32> to vector<1x96x16xf32>
    %cst_23 = arith.constant dense<0.000000e+00> : vector<1xf32>
    %43 = vector.multi_reduction <add>, %42, %cst_23 [1, 2] : vector<1x96x16xf32> to vector<1xf32>
    %44 = vector.shape_cast %43 : vector<1xf32> to vector<1x1x1xf32>
    %45 = vector.extract %44[0, 0, 0] : f32 from vector<1x1x1xf32>
    %46 = vector.broadcast %45 : f32 to vector<1x1x128xf32>
    %47 = arith.addf %41, %46 : vector<1x1x128xf32>
    %c0_24 = arith.constant 0 : index
    %c0_25 = arith.constant 0 : index
    %c0_26 = arith.constant 0 : index
    %48 = vector.load %arg7[%c0_24, %c0_25, %c0_26] : memref<1x1x128xf32, #tpu.memory_space<vmem>>, vector<1x1x128xf32>
    tpu.vector_store %arg7[%c0_24, %c0_25, %c0_26], %47 {strides = array<i32>} : memref<1x1x128xf32, #tpu.memory_space<vmem>>, vector<1x1x128xf32>,
    %cst_27 = arith.constant 0.000000e+00 : f32
    %49 = vector.broadcast %cst_27 : f32 to vector<1x1x128xf32>
    %50 = vector.shape_cast %40 : vector<96x16xf32> to vector<1x96x16xf32>
    %cst_28 = arith.constant dense<0.000000e+00> : vector<1xf32>
    %51 = vector.multi_reduction <add>, %50, %cst_28 [1, 2] : vector<1x96x16xf32> to vector<1xf32>
    %52 = vector.shape_cast %51 : vector<1xf32> to vector<1x1x1xf32>
    %53 = vector.extract %52[0, 0, 0] : f32 from vector<1x1x1xf32>
    %54 = vector.broadcast %53 : f32 to vector<1x1x128xf32>
    %55 = arith.addf %49, %54 : vector<1x1x128xf32>
    %c0_29 = arith.constant 0 : index
    %c0_30 = arith.constant 0 : index
    %c0_31 = arith.constant 0 : index
    %56 = vector.load %arg8[%c0_29, %c0_30, %c0_31] : memref<1x1x128xf32, #tpu.memory_space<vmem>>, vector<1x1x128xf32>
    tpu.vector_store %arg8[%c0_29, %c0_30, %c0_31], %55 {strides = array<i32>} : memref<1x1x128xf32, #tpu.memory_space<vmem>>, vector<1x1x128xf32>,
    %c0_32 = arith.constant 0 : index
    %c0_33 = arith.constant 0 : index
    %57 = vector.load %arg5[%c0_32, %c0_33] : memref<48x96xf32, #tpu.memory_space<vmem>>, vector<48x96xf32>
    %c0_34 = arith.constant 0 : index
    %c0_35 = arith.constant 0 : index
    %58 = vector.load %arg6[%c0_34, %c0_35] : memref<16x8xf32, #tpu.memory_space<vmem>>, vector<16x8xf32>
    %cst_36 = arith.constant dense<0.000000e+00> : vector<96x8xf32>
    %59 = tpu.matmul %0, %58, %cst_36 {dimension_numbers = #tpu.dot_dimension_numbers<[1], [0], [0], [1], [0, 0, 1, 1], [], []>} : vector<96x16xf32>, vector<16x8xf32>, vector<96x8xf32> -> vector<96x8xf32>
    %cst_37 = arith.constant dense<0.000000e+00> : vector<48x8xf32>
    %60 = tpu.matmul %57, %59, %cst_37 {dimension_numbers = #tpu.dot_dimension_numbers<[1], [0], [0], [1], [0, 0, 1, 1], [], []>} : vector<48x96xf32>, vector<96x8xf32>, vector<48x8xf32> -> vector<48x8xf32>
    %c0_38 = arith.constant 0 : index
    %c0_39 = arith.constant 0 : index
    %61 = vector.load %arg9[%c0_38, %c0_39] : memref<48x8xf32, #tpu.memory_space<vmem>>, vector<48x8xf32>
    tpu.vector_store %arg9[%c0_38, %c0_39], %60 {strides = array<i32>} : memref<48x8xf32, #tpu.memory_space<vmem>>, vector<48x8xf32>,
    %cst_40 = arith.constant dense<0.000000e+00> : vector<96x8xf32>
    %62 = tpu.matmul %1, %58, %cst_40 {dimension_numbers = #tpu.dot_dimension_numbers<[1], [0], [0], [1], [0, 0, 1, 1], [], []>} : vector<96x16xf32>, vector<16x8xf32>, vector<96x8xf32> -> vector<96x8xf32>
    %cst_41 = arith.constant dense<0.000000e+00> : vector<48x8xf32>
    %63 = tpu.matmul %57, %62, %cst_41 {dimension_numbers = #tpu.dot_dimension_numbers<[1], [0], [0], [1], [0, 0, 1, 1], [], []>} : vector<48x96xf32>, vector<96x8xf32>, vector<48x8xf32> -> vector<48x8xf32>
    %c0_42 = arith.constant 0 : index
    %c0_43 = arith.constant 0 : index
    %64 = vector.load %arg10[%c0_42, %c0_43] : memref<48x8xf32, #tpu.memory_space<vmem>>, vector<48x8xf32>
    tpu.vector_store %arg10[%c0_42, %c0_43], %63 {strides = array<i32>} : memref<48x8xf32, #tpu.memory_space<vmem>>, vector<48x8xf32>,
    return
  }
  func.func @transform_0(%arg0: i32) -> (i32, i32) {
    %c0_i32 = arith.constant 0 : i32
    %c0_i32_0 = arith.constant 0 : i32
    return %arg0, %c0_i32 : i32, i32
  }
  func.func @transform_1(%arg0: i32) -> (i32, i32) {
    %c0_i32 = arith.constant 0 : i32
    %c0_i32_0 = arith.constant 0 : i32
    return %arg0, %c0_i32 : i32, i32
  }
  func.func @transform_2(%arg0: i32) -> (i32, i32) {
    %c0_i32 = arith.constant 0 : i32
    %c0_i32_0 = arith.constant 0 : i32
    %c0_i32_1 = arith.constant 0 : i32
    return %c0_i32, %c0_i32_0 : i32, i32
  }
  func.func @transform_3(%arg0: i32) -> (i32, i32) {
    %c0_i32 = arith.constant 0 : i32
    %c0_i32_0 = arith.constant 0 : i32
    %c0_i32_1 = arith.constant 0 : i32
    return %c0_i32, %c0_i32_0 : i32, i32
  }
  func.func @transform_4(%arg0: i32) -> (i32, i32) {
    %c0_i32 = arith.constant 0 : i32
    %c0_i32_0 = arith.constant 0 : i32
    %c0_i32_1 = arith.constant 0 : i32
    return %c0_i32, %c0_i32_0 : i32, i32
  }
  func.func @transform_5(%arg0: i32) -> (i32, i32) {
    %c0_i32 = arith.constant 0 : i32
    %c0_i32_0 = arith.constant 0 : i32
    %c0_i32_1 = arith.constant 0 : i32
    return %c0_i32, %c0_i32_0 : i32, i32
  }
  func.func @transform_6(%arg0: i32) -> (i32, i32, i32) {
    %c0_i32 = arith.constant 0 : i32
    %c0_i32_0 = arith.constant 0 : i32
    %c0_i32_1 = arith.constant 0 : i32
    return %arg0, %c0_i32, %c0_i32_0 : i32, i32, i32
  }
  func.func @transform_7(%arg0: i32) -> (i32, i32, i32) {
    %c0_i32 = arith.constant 0 : i32
    %c0_i32_0 = arith.constant 0 : i32
    %c0_i32_1 = arith.constant 0 : i32
    return %arg0, %c0_i32, %c0_i32_0 : i32, i32, i32
  }
  func.func @transform_8(%arg0: i32) -> (i32, i32) {
    %c0_i32 = arith.constant 0 : i32
    %c0_i32_0 = arith.constant 0 : i32
    return %arg0, %c0_i32 : i32, i32
  }
  func.func @transform_9(%arg0: i32) -> (i32, i32) {
    %c0_i32 = arith.constant 0 : i32
    %c0_i32_0 = arith.constant 0 : i32
    return %arg0, %c0_i32 : i32, i32
  }
}

module attributes {stable_mosaic.version = 11 : i64} {
  func.func @_level_kernel(%arg0: i32, %arg1: memref<24x4xf32, #tpu.memory_space<vmem>>, %arg2: memref<24x4xf32, #tpu.memory_space<vmem>>, %arg3: memref<30x24xf32, #tpu.memory_space<vmem>>, %arg4: memref<4x5xf32, #tpu.memory_space<vmem>>, %arg5: memref<12x24xf32, #tpu.memory_space<vmem>>, %arg6: memref<4x2xf32, #tpu.memory_space<vmem>>, %arg7: memref<1x1x128xf32, #tpu.memory_space<vmem>>, %arg8: memref<1x1x128xf32, #tpu.memory_space<vmem>>, %arg9: memref<12x2xf32, #tpu.memory_space<vmem>>, %arg10: memref<12x2xf32, #tpu.memory_space<vmem>>) attributes {dimension_semantics = [#tpu.dimension_semantics<parallel>], iteration_bounds = array<i64: 1>, scalar_prefetch = 0 : i64, scratch_operands = 0 : i64, tpu.core_type = #tpu.core_type<tc>, window_params = [{transform_indices = @transform_0, window_bounds = array<i64: 24, 4>}, {transform_indices = @transform_1, window_bounds = array<i64: 24, 4>}, {pipeline_mode = #tpu.pipeline_mode<synchronous>, transform_indices = @transform_2, window_bounds = array<i64: 30, 24>}, {pipeline_mode = #tpu.pipeline_mode<synchronous>, transform_indices = @transform_3, window_bounds = array<i64: 4, 5>}, {pipeline_mode = #tpu.pipeline_mode<synchronous>, transform_indices = @transform_4, window_bounds = array<i64: 12, 24>}, {pipeline_mode = #tpu.pipeline_mode<synchronous>, transform_indices = @transform_5, window_bounds = array<i64: 4, 2>}, {transform_indices = @transform_6, window_bounds = array<i64: 1, 1, 128>}, {transform_indices = @transform_7, window_bounds = array<i64: 1, 1, 128>}, {transform_indices = @transform_8, window_bounds = array<i64: 12, 2>}, {transform_indices = @transform_9, window_bounds = array<i64: 12, 2>}]} {
    %c0 = arith.constant 0 : index
    %c0_0 = arith.constant 0 : index
    %0 = vector.load %arg1[%c0, %c0_0] : memref<24x4xf32, #tpu.memory_space<vmem>>, vector<24x4xf32>
    %c0_1 = arith.constant 0 : index
    %c0_2 = arith.constant 0 : index
    %1 = vector.load %arg2[%c0_1, %c0_2] : memref<24x4xf32, #tpu.memory_space<vmem>>, vector<24x4xf32>
    %c0_3 = arith.constant 0 : index
    %c0_4 = arith.constant 0 : index
    %2 = vector.load %arg3[%c0_3, %c0_4] : memref<30x24xf32, #tpu.memory_space<vmem>>, vector<30x24xf32>
    %c0_5 = arith.constant 0 : index
    %c0_6 = arith.constant 0 : index
    %3 = vector.load %arg4[%c0_5, %c0_6] : memref<4x5xf32, #tpu.memory_space<vmem>>, vector<4x5xf32>
    %cst = arith.constant dense<0.000000e+00> : vector<24x5xf32>
    %4 = tpu.matmul %0, %3, %cst {dimension_numbers = #tpu.dot_dimension_numbers<[1], [0], [0], [1], [0, 0, 1, 1], [], []>} : vector<24x4xf32>, vector<4x5xf32>, vector<24x5xf32> -> vector<24x5xf32>
    %cst_7 = arith.constant dense<0.000000e+00> : vector<30x5xf32>
    %5 = tpu.matmul %2, %4, %cst_7 {dimension_numbers = #tpu.dot_dimension_numbers<[1], [0], [0], [1], [0, 0, 1, 1], [], []>} : vector<30x24xf32>, vector<24x5xf32>, vector<30x5xf32> -> vector<30x5xf32>
    %cst_8 = arith.constant dense<0.000000e+00> : vector<24x5xf32>
    %6 = tpu.matmul %1, %3, %cst_8 {dimension_numbers = #tpu.dot_dimension_numbers<[1], [0], [0], [1], [0, 0, 1, 1], [], []>} : vector<24x4xf32>, vector<4x5xf32>, vector<24x5xf32> -> vector<24x5xf32>
    %cst_9 = arith.constant dense<0.000000e+00> : vector<30x5xf32>
    %7 = tpu.matmul %2, %6, %cst_9 {dimension_numbers = #tpu.dot_dimension_numbers<[1], [0], [0], [1], [0, 0, 1, 1], [], []>} : vector<30x24xf32>, vector<24x5xf32>, vector<30x5xf32> -> vector<30x5xf32>
    %8 = arith.mulf %0, %0 : vector<24x4xf32>
    %cst_10 = arith.constant dense<0.000000e+00> : vector<24x5xf32>
    %9 = tpu.matmul %8, %3, %cst_10 {dimension_numbers = #tpu.dot_dimension_numbers<[1], [0], [0], [1], [0, 0, 1, 1], [], []>} : vector<24x4xf32>, vector<4x5xf32>, vector<24x5xf32> -> vector<24x5xf32>
    %cst_11 = arith.constant dense<0.000000e+00> : vector<30x5xf32>
    %10 = tpu.matmul %2, %9, %cst_11 {dimension_numbers = #tpu.dot_dimension_numbers<[1], [0], [0], [1], [0, 0, 1, 1], [], []>} : vector<30x24xf32>, vector<24x5xf32>, vector<30x5xf32> -> vector<30x5xf32>
    %11 = arith.mulf %1, %1 : vector<24x4xf32>
    %cst_12 = arith.constant dense<0.000000e+00> : vector<24x5xf32>
    %12 = tpu.matmul %11, %3, %cst_12 {dimension_numbers = #tpu.dot_dimension_numbers<[1], [0], [0], [1], [0, 0, 1, 1], [], []>} : vector<24x4xf32>, vector<4x5xf32>, vector<24x5xf32> -> vector<24x5xf32>
    %cst_13 = arith.constant dense<0.000000e+00> : vector<30x5xf32>
    %13 = tpu.matmul %2, %12, %cst_13 {dimension_numbers = #tpu.dot_dimension_numbers<[1], [0], [0], [1], [0, 0, 1, 1], [], []>} : vector<30x24xf32>, vector<24x5xf32>, vector<30x5xf32> -> vector<30x5xf32>
    %14 = arith.mulf %0, %1 : vector<24x4xf32>
    %cst_14 = arith.constant dense<0.000000e+00> : vector<24x5xf32>
    %15 = tpu.matmul %14, %3, %cst_14 {dimension_numbers = #tpu.dot_dimension_numbers<[1], [0], [0], [1], [0, 0, 1, 1], [], []>} : vector<24x4xf32>, vector<4x5xf32>, vector<24x5xf32> -> vector<24x5xf32>
    %cst_15 = arith.constant dense<0.000000e+00> : vector<30x5xf32>
    %16 = tpu.matmul %2, %15, %cst_15 {dimension_numbers = #tpu.dot_dimension_numbers<[1], [0], [0], [1], [0, 0, 1, 1], [], []>} : vector<30x24xf32>, vector<24x5xf32>, vector<30x5xf32> -> vector<30x5xf32>
    %17 = arith.mulf %5, %5 : vector<30x5xf32>
    %18 = arith.mulf %7, %7 : vector<30x5xf32>
    %19 = arith.mulf %5, %7 : vector<30x5xf32>
    %20 = arith.subf %10, %17 : vector<30x5xf32>
    %21 = arith.subf %13, %18 : vector<30x5xf32>
    %22 = arith.subf %16, %19 : vector<30x5xf32>
    %cst_16 = arith.constant 2.000000e+00 : f32
    %23 = vector.broadcast %cst_16 : f32 to vector<30x5xf32>
    %24 = arith.mulf %23, %22 : vector<30x5xf32>
    %cst_17 = arith.constant 5.852250e+01 : f32
    %25 = vector.broadcast %cst_17 : f32 to vector<30x5xf32>
    %26 = arith.addf %24, %25 : vector<30x5xf32>
    %27 = arith.addf %20, %21 : vector<30x5xf32>
    %cst_18 = arith.constant 5.852250e+01 : f32
    %28 = vector.broadcast %cst_18 : f32 to vector<30x5xf32>
    %29 = arith.addf %27, %28 : vector<30x5xf32>
    %cst_19 = arith.constant 2.000000e+00 : f32
    %30 = vector.broadcast %cst_19 : f32 to vector<30x5xf32>
    %31 = arith.mulf %30, %19 : vector<30x5xf32>
    %cst_20 = arith.constant 6.502500e+00 : f32
    %32 = vector.broadcast %cst_20 : f32 to vector<30x5xf32>
    %33 = arith.addf %31, %32 : vector<30x5xf32>
    %34 = arith.mulf %33, %26 : vector<30x5xf32>
    %35 = arith.addf %17, %18 : vector<30x5xf32>
    %cst_21 = arith.constant 6.502500e+00 : f32
    %36 = vector.broadcast %cst_21 : f32 to vector<30x5xf32>
    %37 = arith.addf %35, %36 : vector<30x5xf32>
    %38 = arith.mulf %37, %29 : vector<30x5xf32>
    %39 = arith.divf %34, %38 : vector<30x5xf32>
    %40 = arith.divf %26, %29 : vector<30x5xf32>
    %cst_22 = arith.constant 0.000000e+00 : f32
    %41 = vector.broadcast %cst_22 : f32 to vector<1x1x128xf32>
    %42 = vector.shape_cast %39 : vector<30x5xf32> to vector<1x30x5xf32>
    %cst_23 = arith.constant dense<0.000000e+00> : vector<1xf32>
    %43 = vector.multi_reduction <add>, %42, %cst_23 [1, 2] : vector<1x30x5xf32> to vector<1xf32>
    %44 = vector.shape_cast %43 : vector<1xf32> to vector<1x1x1xf32>
    %45 = vector.extract %44[0, 0, 0] : f32 from vector<1x1x1xf32>
    %46 = vector.broadcast %45 : f32 to vector<1x1x128xf32>
    %47 = arith.addf %41, %46 : vector<1x1x128xf32>
    %c0_24 = arith.constant 0 : index
    %c0_25 = arith.constant 0 : index
    %c0_26 = arith.constant 0 : index
    %48 = vector.load %arg7[%c0_24, %c0_25, %c0_26] : memref<1x1x128xf32, #tpu.memory_space<vmem>>, vector<1x1x128xf32>
    tpu.vector_store %arg7[%c0_24, %c0_25, %c0_26], %47 {strides = array<i32>} : memref<1x1x128xf32, #tpu.memory_space<vmem>>, vector<1x1x128xf32>,
    %cst_27 = arith.constant 0.000000e+00 : f32
    %49 = vector.broadcast %cst_27 : f32 to vector<1x1x128xf32>
    %50 = vector.shape_cast %40 : vector<30x5xf32> to vector<1x30x5xf32>
    %cst_28 = arith.constant dense<0.000000e+00> : vector<1xf32>
    %51 = vector.multi_reduction <add>, %50, %cst_28 [1, 2] : vector<1x30x5xf32> to vector<1xf32>
    %52 = vector.shape_cast %51 : vector<1xf32> to vector<1x1x1xf32>
    %53 = vector.extract %52[0, 0, 0] : f32 from vector<1x1x1xf32>
    %54 = vector.broadcast %53 : f32 to vector<1x1x128xf32>
    %55 = arith.addf %49, %54 : vector<1x1x128xf32>
    %c0_29 = arith.constant 0 : index
    %c0_30 = arith.constant 0 : index
    %c0_31 = arith.constant 0 : index
    %56 = vector.load %arg8[%c0_29, %c0_30, %c0_31] : memref<1x1x128xf32, #tpu.memory_space<vmem>>, vector<1x1x128xf32>
    tpu.vector_store %arg8[%c0_29, %c0_30, %c0_31], %55 {strides = array<i32>} : memref<1x1x128xf32, #tpu.memory_space<vmem>>, vector<1x1x128xf32>,
    %c0_32 = arith.constant 0 : index
    %c0_33 = arith.constant 0 : index
    %57 = vector.load %arg5[%c0_32, %c0_33] : memref<12x24xf32, #tpu.memory_space<vmem>>, vector<12x24xf32>
    %c0_34 = arith.constant 0 : index
    %c0_35 = arith.constant 0 : index
    %58 = vector.load %arg6[%c0_34, %c0_35] : memref<4x2xf32, #tpu.memory_space<vmem>>, vector<4x2xf32>
    %cst_36 = arith.constant dense<0.000000e+00> : vector<24x2xf32>
    %59 = tpu.matmul %0, %58, %cst_36 {dimension_numbers = #tpu.dot_dimension_numbers<[1], [0], [0], [1], [0, 0, 1, 1], [], []>} : vector<24x4xf32>, vector<4x2xf32>, vector<24x2xf32> -> vector<24x2xf32>
    %cst_37 = arith.constant dense<0.000000e+00> : vector<12x2xf32>
    %60 = tpu.matmul %57, %59, %cst_37 {dimension_numbers = #tpu.dot_dimension_numbers<[1], [0], [0], [1], [0, 0, 1, 1], [], []>} : vector<12x24xf32>, vector<24x2xf32>, vector<12x2xf32> -> vector<12x2xf32>
    %c0_38 = arith.constant 0 : index
    %c0_39 = arith.constant 0 : index
    %61 = vector.load %arg9[%c0_38, %c0_39] : memref<12x2xf32, #tpu.memory_space<vmem>>, vector<12x2xf32>
    tpu.vector_store %arg9[%c0_38, %c0_39], %60 {strides = array<i32>} : memref<12x2xf32, #tpu.memory_space<vmem>>, vector<12x2xf32>,
    %cst_40 = arith.constant dense<0.000000e+00> : vector<24x2xf32>
    %62 = tpu.matmul %1, %58, %cst_40 {dimension_numbers = #tpu.dot_dimension_numbers<[1], [0], [0], [1], [0, 0, 1, 1], [], []>} : vector<24x4xf32>, vector<4x2xf32>, vector<24x2xf32> -> vector<24x2xf32>
    %cst_41 = arith.constant dense<0.000000e+00> : vector<12x2xf32>
    %63 = tpu.matmul %57, %62, %cst_41 {dimension_numbers = #tpu.dot_dimension_numbers<[1], [0], [0], [1], [0, 0, 1, 1], [], []>} : vector<12x24xf32>, vector<24x2xf32>, vector<12x2xf32> -> vector<12x2xf32>
    %c0_42 = arith.constant 0 : index
    %c0_43 = arith.constant 0 : index
    %64 = vector.load %arg10[%c0_42, %c0_43] : memref<12x2xf32, #tpu.memory_space<vmem>>, vector<12x2xf32>
    tpu.vector_store %arg10[%c0_42, %c0_43], %63 {strides = array<i32>} : memref<12x2xf32, #tpu.memory_space<vmem>>, vector<12x2xf32>,
    return
  }
  func.func @transform_0(%arg0: i32) -> (i32, i32) {
    %c0_i32 = arith.constant 0 : i32
    %c0_i32_0 = arith.constant 0 : i32
    return %arg0, %c0_i32 : i32, i32
  }
  func.func @transform_1(%arg0: i32) -> (i32, i32) {
    %c0_i32 = arith.constant 0 : i32
    %c0_i32_0 = arith.constant 0 : i32
    return %arg0, %c0_i32 : i32, i32
  }
  func.func @transform_2(%arg0: i32) -> (i32, i32) {
    %c0_i32 = arith.constant 0 : i32
    %c0_i32_0 = arith.constant 0 : i32
    %c0_i32_1 = arith.constant 0 : i32
    return %c0_i32, %c0_i32_0 : i32, i32
  }
  func.func @transform_3(%arg0: i32) -> (i32, i32) {
    %c0_i32 = arith.constant 0 : i32
    %c0_i32_0 = arith.constant 0 : i32
    %c0_i32_1 = arith.constant 0 : i32
    return %c0_i32, %c0_i32_0 : i32, i32
  }
  func.func @transform_4(%arg0: i32) -> (i32, i32) {
    %c0_i32 = arith.constant 0 : i32
    %c0_i32_0 = arith.constant 0 : i32
    %c0_i32_1 = arith.constant 0 : i32
    return %c0_i32, %c0_i32_0 : i32, i32
  }
  func.func @transform_5(%arg0: i32) -> (i32, i32) {
    %c0_i32 = arith.constant 0 : i32
    %c0_i32_0 = arith.constant 0 : i32
    %c0_i32_1 = arith.constant 0 : i32
    return %c0_i32, %c0_i32_0 : i32, i32
  }
  func.func @transform_6(%arg0: i32) -> (i32, i32, i32) {
    %c0_i32 = arith.constant 0 : i32
    %c0_i32_0 = arith.constant 0 : i32
    %c0_i32_1 = arith.constant 0 : i32
    return %arg0, %c0_i32, %c0_i32_0 : i32, i32, i32
  }
  func.func @transform_7(%arg0: i32) -> (i32, i32, i32) {
    %c0_i32 = arith.constant 0 : i32
    %c0_i32_0 = arith.constant 0 : i32
    %c0_i32_1 = arith.constant 0 : i32
    return %arg0, %c0_i32, %c0_i32_0 : i32, i32, i32
  }
  func.func @transform_8(%arg0: i32) -> (i32, i32) {
    %c0_i32 = arith.constant 0 : i32
    %c0_i32_0 = arith.constant 0 : i32
    return %arg0, %c0_i32 : i32, i32
  }
  func.func @transform_9(%arg0: i32) -> (i32, i32) {
    %c0_i32 = arith.constant 0 : i32
    %c0_i32_0 = arith.constant 0 : i32
    return %arg0, %c0_i32 : i32, i32
  }
}

module attributes {stable_mosaic.version = 11 : i64} {
  func.func @_level_kernel(%arg0: i32, %arg1: memref<192x32xf32, #tpu.memory_space<vmem>>, %arg2: memref<192x32xf32, #tpu.memory_space<vmem>>, %arg3: memref<192x192xf32, #tpu.memory_space<vmem>>, %arg4: memref<32x32xf32, #tpu.memory_space<vmem>>, %arg5: memref<96x192xf32, #tpu.memory_space<vmem>>, %arg6: memref<32x16xf32, #tpu.memory_space<vmem>>, %arg7: memref<1x1x128xf32, #tpu.memory_space<vmem>>, %arg8: memref<1x1x128xf32, #tpu.memory_space<vmem>>, %arg9: memref<96x16xf32, #tpu.memory_space<vmem>>, %arg10: memref<96x16xf32, #tpu.memory_space<vmem>>) attributes {dimension_semantics = [#tpu.dimension_semantics<parallel>], iteration_bounds = array<i64: 1>, scalar_prefetch = 0 : i64, scratch_operands = 0 : i64, tpu.core_type = #tpu.core_type<tc>, window_params = [{transform_indices = @transform_0, window_bounds = array<i64: 192, 32>}, {transform_indices = @transform_1, window_bounds = array<i64: 192, 32>}, {pipeline_mode = #tpu.pipeline_mode<synchronous>, transform_indices = @transform_2, window_bounds = array<i64: 192, 192>}, {pipeline_mode = #tpu.pipeline_mode<synchronous>, transform_indices = @transform_3, window_bounds = array<i64: 32, 32>}, {pipeline_mode = #tpu.pipeline_mode<synchronous>, transform_indices = @transform_4, window_bounds = array<i64: 96, 192>}, {pipeline_mode = #tpu.pipeline_mode<synchronous>, transform_indices = @transform_5, window_bounds = array<i64: 32, 16>}, {transform_indices = @transform_6, window_bounds = array<i64: 1, 1, 128>}, {transform_indices = @transform_7, window_bounds = array<i64: 1, 1, 128>}, {transform_indices = @transform_8, window_bounds = array<i64: 96, 16>}, {transform_indices = @transform_9, window_bounds = array<i64: 96, 16>}]} {
    %c0 = arith.constant 0 : index
    %c0_0 = arith.constant 0 : index
    %0 = vector.load %arg1[%c0, %c0_0] : memref<192x32xf32, #tpu.memory_space<vmem>>, vector<192x32xf32>
    %c0_1 = arith.constant 0 : index
    %c0_2 = arith.constant 0 : index
    %1 = vector.load %arg2[%c0_1, %c0_2] : memref<192x32xf32, #tpu.memory_space<vmem>>, vector<192x32xf32>
    %c0_3 = arith.constant 0 : index
    %c0_4 = arith.constant 0 : index
    %2 = vector.load %arg3[%c0_3, %c0_4] : memref<192x192xf32, #tpu.memory_space<vmem>>, vector<192x192xf32>
    %c0_5 = arith.constant 0 : index
    %c0_6 = arith.constant 0 : index
    %3 = vector.load %arg4[%c0_5, %c0_6] : memref<32x32xf32, #tpu.memory_space<vmem>>, vector<32x32xf32>
    %cst = arith.constant dense<0.000000e+00> : vector<192x32xf32>
    %4 = tpu.matmul %0, %3, %cst {dimension_numbers = #tpu.dot_dimension_numbers<[1], [0], [0], [1], [0, 0, 1, 1], [], []>} : vector<192x32xf32>, vector<32x32xf32>, vector<192x32xf32> -> vector<192x32xf32>
    %cst_7 = arith.constant dense<0.000000e+00> : vector<192x32xf32>
    %5 = tpu.matmul %2, %4, %cst_7 {dimension_numbers = #tpu.dot_dimension_numbers<[1], [0], [0], [1], [0, 0, 1, 1], [], []>} : vector<192x192xf32>, vector<192x32xf32>, vector<192x32xf32> -> vector<192x32xf32>
    %cst_8 = arith.constant dense<0.000000e+00> : vector<192x32xf32>
    %6 = tpu.matmul %1, %3, %cst_8 {dimension_numbers = #tpu.dot_dimension_numbers<[1], [0], [0], [1], [0, 0, 1, 1], [], []>} : vector<192x32xf32>, vector<32x32xf32>, vector<192x32xf32> -> vector<192x32xf32>
    %cst_9 = arith.constant dense<0.000000e+00> : vector<192x32xf32>
    %7 = tpu.matmul %2, %6, %cst_9 {dimension_numbers = #tpu.dot_dimension_numbers<[1], [0], [0], [1], [0, 0, 1, 1], [], []>} : vector<192x192xf32>, vector<192x32xf32>, vector<192x32xf32> -> vector<192x32xf32>
    %8 = arith.mulf %0, %0 : vector<192x32xf32>
    %cst_10 = arith.constant dense<0.000000e+00> : vector<192x32xf32>
    %9 = tpu.matmul %8, %3, %cst_10 {dimension_numbers = #tpu.dot_dimension_numbers<[1], [0], [0], [1], [0, 0, 1, 1], [], []>} : vector<192x32xf32>, vector<32x32xf32>, vector<192x32xf32> -> vector<192x32xf32>
    %cst_11 = arith.constant dense<0.000000e+00> : vector<192x32xf32>
    %10 = tpu.matmul %2, %9, %cst_11 {dimension_numbers = #tpu.dot_dimension_numbers<[1], [0], [0], [1], [0, 0, 1, 1], [], []>} : vector<192x192xf32>, vector<192x32xf32>, vector<192x32xf32> -> vector<192x32xf32>
    %11 = arith.mulf %1, %1 : vector<192x32xf32>
    %cst_12 = arith.constant dense<0.000000e+00> : vector<192x32xf32>
    %12 = tpu.matmul %11, %3, %cst_12 {dimension_numbers = #tpu.dot_dimension_numbers<[1], [0], [0], [1], [0, 0, 1, 1], [], []>} : vector<192x32xf32>, vector<32x32xf32>, vector<192x32xf32> -> vector<192x32xf32>
    %cst_13 = arith.constant dense<0.000000e+00> : vector<192x32xf32>
    %13 = tpu.matmul %2, %12, %cst_13 {dimension_numbers = #tpu.dot_dimension_numbers<[1], [0], [0], [1], [0, 0, 1, 1], [], []>} : vector<192x192xf32>, vector<192x32xf32>, vector<192x32xf32> -> vector<192x32xf32>
    %14 = arith.mulf %0, %1 : vector<192x32xf32>
    %cst_14 = arith.constant dense<0.000000e+00> : vector<192x32xf32>
    %15 = tpu.matmul %14, %3, %cst_14 {dimension_numbers = #tpu.dot_dimension_numbers<[1], [0], [0], [1], [0, 0, 1, 1], [], []>} : vector<192x32xf32>, vector<32x32xf32>, vector<192x32xf32> -> vector<192x32xf32>
    %cst_15 = arith.constant dense<0.000000e+00> : vector<192x32xf32>
    %16 = tpu.matmul %2, %15, %cst_15 {dimension_numbers = #tpu.dot_dimension_numbers<[1], [0], [0], [1], [0, 0, 1, 1], [], []>} : vector<192x192xf32>, vector<192x32xf32>, vector<192x32xf32> -> vector<192x32xf32>
    %17 = arith.mulf %5, %5 : vector<192x32xf32>
    %18 = arith.mulf %7, %7 : vector<192x32xf32>
    %19 = arith.mulf %5, %7 : vector<192x32xf32>
    %20 = arith.subf %10, %17 : vector<192x32xf32>
    %21 = arith.subf %13, %18 : vector<192x32xf32>
    %22 = arith.subf %16, %19 : vector<192x32xf32>
    %cst_16 = arith.constant 2.000000e+00 : f32
    %23 = vector.broadcast %cst_16 : f32 to vector<192x32xf32>
    %24 = arith.mulf %23, %22 : vector<192x32xf32>
    %cst_17 = arith.constant 5.852250e+01 : f32
    %25 = vector.broadcast %cst_17 : f32 to vector<192x32xf32>
    %26 = arith.addf %24, %25 : vector<192x32xf32>
    %27 = arith.addf %20, %21 : vector<192x32xf32>
    %cst_18 = arith.constant 5.852250e+01 : f32
    %28 = vector.broadcast %cst_18 : f32 to vector<192x32xf32>
    %29 = arith.addf %27, %28 : vector<192x32xf32>
    %cst_19 = arith.constant 2.000000e+00 : f32
    %30 = vector.broadcast %cst_19 : f32 to vector<192x32xf32>
    %31 = arith.mulf %30, %19 : vector<192x32xf32>
    %cst_20 = arith.constant 6.502500e+00 : f32
    %32 = vector.broadcast %cst_20 : f32 to vector<192x32xf32>
    %33 = arith.addf %31, %32 : vector<192x32xf32>
    %34 = arith.mulf %33, %26 : vector<192x32xf32>
    %35 = arith.addf %17, %18 : vector<192x32xf32>
    %cst_21 = arith.constant 6.502500e+00 : f32
    %36 = vector.broadcast %cst_21 : f32 to vector<192x32xf32>
    %37 = arith.addf %35, %36 : vector<192x32xf32>
    %38 = arith.mulf %37, %29 : vector<192x32xf32>
    %39 = arith.divf %34, %38 : vector<192x32xf32>
    %40 = arith.divf %26, %29 : vector<192x32xf32>
    %cst_22 = arith.constant 0.000000e+00 : f32
    %41 = vector.broadcast %cst_22 : f32 to vector<1x1x128xf32>
    %42 = vector.shape_cast %39 : vector<192x32xf32> to vector<1x192x32xf32>
    %cst_23 = arith.constant dense<0.000000e+00> : vector<1xf32>
    %43 = vector.multi_reduction <add>, %42, %cst_23 [1, 2] : vector<1x192x32xf32> to vector<1xf32>
    %44 = vector.shape_cast %43 : vector<1xf32> to vector<1x1x1xf32>
    %45 = vector.extract %44[0, 0, 0] : f32 from vector<1x1x1xf32>
    %46 = vector.broadcast %45 : f32 to vector<1x1x128xf32>
    %47 = arith.addf %41, %46 : vector<1x1x128xf32>
    %c0_24 = arith.constant 0 : index
    %c0_25 = arith.constant 0 : index
    %c0_26 = arith.constant 0 : index
    %48 = vector.load %arg7[%c0_24, %c0_25, %c0_26] : memref<1x1x128xf32, #tpu.memory_space<vmem>>, vector<1x1x128xf32>
    tpu.vector_store %arg7[%c0_24, %c0_25, %c0_26], %47 {strides = array<i32>} : memref<1x1x128xf32, #tpu.memory_space<vmem>>, vector<1x1x128xf32>,
    %cst_27 = arith.constant 0.000000e+00 : f32
    %49 = vector.broadcast %cst_27 : f32 to vector<1x1x128xf32>
    %50 = vector.shape_cast %40 : vector<192x32xf32> to vector<1x192x32xf32>
    %cst_28 = arith.constant dense<0.000000e+00> : vector<1xf32>
    %51 = vector.multi_reduction <add>, %50, %cst_28 [1, 2] : vector<1x192x32xf32> to vector<1xf32>
    %52 = vector.shape_cast %51 : vector<1xf32> to vector<1x1x1xf32>
    %53 = vector.extract %52[0, 0, 0] : f32 from vector<1x1x1xf32>
    %54 = vector.broadcast %53 : f32 to vector<1x1x128xf32>
    %55 = arith.addf %49, %54 : vector<1x1x128xf32>
    %c0_29 = arith.constant 0 : index
    %c0_30 = arith.constant 0 : index
    %c0_31 = arith.constant 0 : index
    %56 = vector.load %arg8[%c0_29, %c0_30, %c0_31] : memref<1x1x128xf32, #tpu.memory_space<vmem>>, vector<1x1x128xf32>
    tpu.vector_store %arg8[%c0_29, %c0_30, %c0_31], %55 {strides = array<i32>} : memref<1x1x128xf32, #tpu.memory_space<vmem>>, vector<1x1x128xf32>,
    %c0_32 = arith.constant 0 : index
    %c0_33 = arith.constant 0 : index
    %57 = vector.load %arg5[%c0_32, %c0_33] : memref<96x192xf32, #tpu.memory_space<vmem>>, vector<96x192xf32>
    %c0_34 = arith.constant 0 : index
    %c0_35 = arith.constant 0 : index
    %58 = vector.load %arg6[%c0_34, %c0_35] : memref<32x16xf32, #tpu.memory_space<vmem>>, vector<32x16xf32>
    %cst_36 = arith.constant dense<0.000000e+00> : vector<192x16xf32>
    %59 = tpu.matmul %0, %58, %cst_36 {dimension_numbers = #tpu.dot_dimension_numbers<[1], [0], [0], [1], [0, 0, 1, 1], [], []>} : vector<192x32xf32>, vector<32x16xf32>, vector<192x16xf32> -> vector<192x16xf32>
    %cst_37 = arith.constant dense<0.000000e+00> : vector<96x16xf32>
    %60 = tpu.matmul %57, %59, %cst_37 {dimension_numbers = #tpu.dot_dimension_numbers<[1], [0], [0], [1], [0, 0, 1, 1], [], []>} : vector<96x192xf32>, vector<192x16xf32>, vector<96x16xf32> -> vector<96x16xf32>
    %c0_38 = arith.constant 0 : index
    %c0_39 = arith.constant 0 : index
    %61 = vector.load %arg9[%c0_38, %c0_39] : memref<96x16xf32, #tpu.memory_space<vmem>>, vector<96x16xf32>
    tpu.vector_store %arg9[%c0_38, %c0_39], %60 {strides = array<i32>} : memref<96x16xf32, #tpu.memory_space<vmem>>, vector<96x16xf32>,
    %cst_40 = arith.constant dense<0.000000e+00> : vector<192x16xf32>
    %62 = tpu.matmul %1, %58, %cst_40 {dimension_numbers = #tpu.dot_dimension_numbers<[1], [0], [0], [1], [0, 0, 1, 1], [], []>} : vector<192x32xf32>, vector<32x16xf32>, vector<192x16xf32> -> vector<192x16xf32>
    %cst_41 = arith.constant dense<0.000000e+00> : vector<96x16xf32>
    %63 = tpu.matmul %57, %62, %cst_41 {dimension_numbers = #tpu.dot_dimension_numbers<[1], [0], [0], [1], [0, 0, 1, 1], [], []>} : vector<96x192xf32>, vector<192x16xf32>, vector<96x16xf32> -> vector<96x16xf32>
    %c0_42 = arith.constant 0 : index
    %c0_43 = arith.constant 0 : index
    %64 = vector.load %arg10[%c0_42, %c0_43] : memref<96x16xf32, #tpu.memory_space<vmem>>, vector<96x16xf32>
    tpu.vector_store %arg10[%c0_42, %c0_43], %63 {strides = array<i32>} : memref<96x16xf32, #tpu.memory_space<vmem>>, vector<96x16xf32>,
    return
  }
  func.func @transform_0(%arg0: i32) -> (i32, i32) {
    %c0_i32 = arith.constant 0 : i32
    %c0_i32_0 = arith.constant 0 : i32
    return %arg0, %c0_i32 : i32, i32
  }
  func.func @transform_1(%arg0: i32) -> (i32, i32) {
    %c0_i32 = arith.constant 0 : i32
    %c0_i32_0 = arith.constant 0 : i32
    return %arg0, %c0_i32 : i32, i32
  }
  func.func @transform_2(%arg0: i32) -> (i32, i32) {
    %c0_i32 = arith.constant 0 : i32
    %c0_i32_0 = arith.constant 0 : i32
    %c0_i32_1 = arith.constant 0 : i32
    return %c0_i32, %c0_i32_0 : i32, i32
  }
  func.func @transform_3(%arg0: i32) -> (i32, i32) {
    %c0_i32 = arith.constant 0 : i32
    %c0_i32_0 = arith.constant 0 : i32
    %c0_i32_1 = arith.constant 0 : i32
    return %c0_i32, %c0_i32_0 : i32, i32
  }
  func.func @transform_4(%arg0: i32) -> (i32, i32) {
    %c0_i32 = arith.constant 0 : i32
    %c0_i32_0 = arith.constant 0 : i32
    %c0_i32_1 = arith.constant 0 : i32
    return %c0_i32, %c0_i32_0 : i32, i32
  }
  func.func @transform_5(%arg0: i32) -> (i32, i32) {
    %c0_i32 = arith.constant 0 : i32
    %c0_i32_0 = arith.constant 0 : i32
    %c0_i32_1 = arith.constant 0 : i32
    return %c0_i32, %c0_i32_0 : i32, i32
  }
  func.func @transform_6(%arg0: i32) -> (i32, i32, i32) {
    %c0_i32 = arith.constant 0 : i32
    %c0_i32_0 = arith.constant 0 : i32
    %c0_i32_1 = arith.constant 0 : i32
    return %arg0, %c0_i32, %c0_i32_0 : i32, i32, i32
  }
  func.func @transform_7(%arg0: i32) -> (i32, i32, i32) {
    %c0_i32 = arith.constant 0 : i32
    %c0_i32_0 = arith.constant 0 : i32
    %c0_i32_1 = arith.constant 0 : i32
    return %arg0, %c0_i32, %c0_i32_0 : i32, i32, i32
  }
  func.func @transform_8(%arg0: i32) -> (i32, i32) {
    %c0_i32 = arith.constant 0 : i32
    %c0_i32_0 = arith.constant 0 : i32
    return %arg0, %c0_i32 : i32, i32
  }
  func.func @transform_9(%arg0: i32) -> (i32, i32) {
    %c0_i32 = arith.constant 0 : i32
    %c0_i32_0 = arith.constant 0 : i32
    return %arg0, %c0_i32 : i32, i32
  }
}

module attributes {stable_mosaic.version = 11 : i64} {
  func.func @_level_kernel(%arg0: i32, %arg1: memref<48x8xf32, #tpu.memory_space<vmem>>, %arg2: memref<48x8xf32, #tpu.memory_space<vmem>>, %arg3: memref<48x48xf32, #tpu.memory_space<vmem>>, %arg4: memref<8x8xf32, #tpu.memory_space<vmem>>, %arg5: memref<24x48xf32, #tpu.memory_space<vmem>>, %arg6: memref<8x4xf32, #tpu.memory_space<vmem>>, %arg7: memref<1x1x128xf32, #tpu.memory_space<vmem>>, %arg8: memref<1x1x128xf32, #tpu.memory_space<vmem>>, %arg9: memref<24x4xf32, #tpu.memory_space<vmem>>, %arg10: memref<24x4xf32, #tpu.memory_space<vmem>>) attributes {dimension_semantics = [#tpu.dimension_semantics<parallel>], iteration_bounds = array<i64: 1>, scalar_prefetch = 0 : i64, scratch_operands = 0 : i64, tpu.core_type = #tpu.core_type<tc>, window_params = [{transform_indices = @transform_0, window_bounds = array<i64: 48, 8>}, {transform_indices = @transform_1, window_bounds = array<i64: 48, 8>}, {pipeline_mode = #tpu.pipeline_mode<synchronous>, transform_indices = @transform_2, window_bounds = array<i64: 48, 48>}, {pipeline_mode = #tpu.pipeline_mode<synchronous>, transform_indices = @transform_3, window_bounds = array<i64: 8, 8>}, {pipeline_mode = #tpu.pipeline_mode<synchronous>, transform_indices = @transform_4, window_bounds = array<i64: 24, 48>}, {pipeline_mode = #tpu.pipeline_mode<synchronous>, transform_indices = @transform_5, window_bounds = array<i64: 8, 4>}, {transform_indices = @transform_6, window_bounds = array<i64: 1, 1, 128>}, {transform_indices = @transform_7, window_bounds = array<i64: 1, 1, 128>}, {transform_indices = @transform_8, window_bounds = array<i64: 24, 4>}, {transform_indices = @transform_9, window_bounds = array<i64: 24, 4>}]} {
    %c0 = arith.constant 0 : index
    %c0_0 = arith.constant 0 : index
    %0 = vector.load %arg1[%c0, %c0_0] : memref<48x8xf32, #tpu.memory_space<vmem>>, vector<48x8xf32>
    %c0_1 = arith.constant 0 : index
    %c0_2 = arith.constant 0 : index
    %1 = vector.load %arg2[%c0_1, %c0_2] : memref<48x8xf32, #tpu.memory_space<vmem>>, vector<48x8xf32>
    %c0_3 = arith.constant 0 : index
    %c0_4 = arith.constant 0 : index
    %2 = vector.load %arg3[%c0_3, %c0_4] : memref<48x48xf32, #tpu.memory_space<vmem>>, vector<48x48xf32>
    %c0_5 = arith.constant 0 : index
    %c0_6 = arith.constant 0 : index
    %3 = vector.load %arg4[%c0_5, %c0_6] : memref<8x8xf32, #tpu.memory_space<vmem>>, vector<8x8xf32>
    %cst = arith.constant dense<0.000000e+00> : vector<48x8xf32>
    %4 = tpu.matmul %0, %3, %cst {dimension_numbers = #tpu.dot_dimension_numbers<[1], [0], [0], [1], [0, 0, 1, 1], [], []>} : vector<48x8xf32>, vector<8x8xf32>, vector<48x8xf32> -> vector<48x8xf32>
    %cst_7 = arith.constant dense<0.000000e+00> : vector<48x8xf32>
    %5 = tpu.matmul %2, %4, %cst_7 {dimension_numbers = #tpu.dot_dimension_numbers<[1], [0], [0], [1], [0, 0, 1, 1], [], []>} : vector<48x48xf32>, vector<48x8xf32>, vector<48x8xf32> -> vector<48x8xf32>
    %cst_8 = arith.constant dense<0.000000e+00> : vector<48x8xf32>
    %6 = tpu.matmul %1, %3, %cst_8 {dimension_numbers = #tpu.dot_dimension_numbers<[1], [0], [0], [1], [0, 0, 1, 1], [], []>} : vector<48x8xf32>, vector<8x8xf32>, vector<48x8xf32> -> vector<48x8xf32>
    %cst_9 = arith.constant dense<0.000000e+00> : vector<48x8xf32>
    %7 = tpu.matmul %2, %6, %cst_9 {dimension_numbers = #tpu.dot_dimension_numbers<[1], [0], [0], [1], [0, 0, 1, 1], [], []>} : vector<48x48xf32>, vector<48x8xf32>, vector<48x8xf32> -> vector<48x8xf32>
    %8 = arith.mulf %0, %0 : vector<48x8xf32>
    %cst_10 = arith.constant dense<0.000000e+00> : vector<48x8xf32>
    %9 = tpu.matmul %8, %3, %cst_10 {dimension_numbers = #tpu.dot_dimension_numbers<[1], [0], [0], [1], [0, 0, 1, 1], [], []>} : vector<48x8xf32>, vector<8x8xf32>, vector<48x8xf32> -> vector<48x8xf32>
    %cst_11 = arith.constant dense<0.000000e+00> : vector<48x8xf32>
    %10 = tpu.matmul %2, %9, %cst_11 {dimension_numbers = #tpu.dot_dimension_numbers<[1], [0], [0], [1], [0, 0, 1, 1], [], []>} : vector<48x48xf32>, vector<48x8xf32>, vector<48x8xf32> -> vector<48x8xf32>
    %11 = arith.mulf %1, %1 : vector<48x8xf32>
    %cst_12 = arith.constant dense<0.000000e+00> : vector<48x8xf32>
    %12 = tpu.matmul %11, %3, %cst_12 {dimension_numbers = #tpu.dot_dimension_numbers<[1], [0], [0], [1], [0, 0, 1, 1], [], []>} : vector<48x8xf32>, vector<8x8xf32>, vector<48x8xf32> -> vector<48x8xf32>
    %cst_13 = arith.constant dense<0.000000e+00> : vector<48x8xf32>
    %13 = tpu.matmul %2, %12, %cst_13 {dimension_numbers = #tpu.dot_dimension_numbers<[1], [0], [0], [1], [0, 0, 1, 1], [], []>} : vector<48x48xf32>, vector<48x8xf32>, vector<48x8xf32> -> vector<48x8xf32>
    %14 = arith.mulf %0, %1 : vector<48x8xf32>
    %cst_14 = arith.constant dense<0.000000e+00> : vector<48x8xf32>
    %15 = tpu.matmul %14, %3, %cst_14 {dimension_numbers = #tpu.dot_dimension_numbers<[1], [0], [0], [1], [0, 0, 1, 1], [], []>} : vector<48x8xf32>, vector<8x8xf32>, vector<48x8xf32> -> vector<48x8xf32>
    %cst_15 = arith.constant dense<0.000000e+00> : vector<48x8xf32>
    %16 = tpu.matmul %2, %15, %cst_15 {dimension_numbers = #tpu.dot_dimension_numbers<[1], [0], [0], [1], [0, 0, 1, 1], [], []>} : vector<48x48xf32>, vector<48x8xf32>, vector<48x8xf32> -> vector<48x8xf32>
    %17 = arith.mulf %5, %5 : vector<48x8xf32>
    %18 = arith.mulf %7, %7 : vector<48x8xf32>
    %19 = arith.mulf %5, %7 : vector<48x8xf32>
    %20 = arith.subf %10, %17 : vector<48x8xf32>
    %21 = arith.subf %13, %18 : vector<48x8xf32>
    %22 = arith.subf %16, %19 : vector<48x8xf32>
    %cst_16 = arith.constant 2.000000e+00 : f32
    %23 = vector.broadcast %cst_16 : f32 to vector<48x8xf32>
    %24 = arith.mulf %23, %22 : vector<48x8xf32>
    %cst_17 = arith.constant 5.852250e+01 : f32
    %25 = vector.broadcast %cst_17 : f32 to vector<48x8xf32>
    %26 = arith.addf %24, %25 : vector<48x8xf32>
    %27 = arith.addf %20, %21 : vector<48x8xf32>
    %cst_18 = arith.constant 5.852250e+01 : f32
    %28 = vector.broadcast %cst_18 : f32 to vector<48x8xf32>
    %29 = arith.addf %27, %28 : vector<48x8xf32>
    %cst_19 = arith.constant 2.000000e+00 : f32
    %30 = vector.broadcast %cst_19 : f32 to vector<48x8xf32>
    %31 = arith.mulf %30, %19 : vector<48x8xf32>
    %cst_20 = arith.constant 6.502500e+00 : f32
    %32 = vector.broadcast %cst_20 : f32 to vector<48x8xf32>
    %33 = arith.addf %31, %32 : vector<48x8xf32>
    %34 = arith.mulf %33, %26 : vector<48x8xf32>
    %35 = arith.addf %17, %18 : vector<48x8xf32>
    %cst_21 = arith.constant 6.502500e+00 : f32
    %36 = vector.broadcast %cst_21 : f32 to vector<48x8xf32>
    %37 = arith.addf %35, %36 : vector<48x8xf32>
    %38 = arith.mulf %37, %29 : vector<48x8xf32>
    %39 = arith.divf %34, %38 : vector<48x8xf32>
    %40 = arith.divf %26, %29 : vector<48x8xf32>
    %cst_22 = arith.constant 0.000000e+00 : f32
    %41 = vector.broadcast %cst_22 : f32 to vector<1x1x128xf32>
    %42 = vector.shape_cast %39 : vector<48x8xf32> to vector<1x48x8xf32>
    %cst_23 = arith.constant dense<0.000000e+00> : vector<1xf32>
    %43 = vector.multi_reduction <add>, %42, %cst_23 [1, 2] : vector<1x48x8xf32> to vector<1xf32>
    %44 = vector.shape_cast %43 : vector<1xf32> to vector<1x1x1xf32>
    %45 = vector.extract %44[0, 0, 0] : f32 from vector<1x1x1xf32>
    %46 = vector.broadcast %45 : f32 to vector<1x1x128xf32>
    %47 = arith.addf %41, %46 : vector<1x1x128xf32>
    %c0_24 = arith.constant 0 : index
    %c0_25 = arith.constant 0 : index
    %c0_26 = arith.constant 0 : index
    %48 = vector.load %arg7[%c0_24, %c0_25, %c0_26] : memref<1x1x128xf32, #tpu.memory_space<vmem>>, vector<1x1x128xf32>
    tpu.vector_store %arg7[%c0_24, %c0_25, %c0_26], %47 {strides = array<i32>} : memref<1x1x128xf32, #tpu.memory_space<vmem>>, vector<1x1x128xf32>,
    %cst_27 = arith.constant 0.000000e+00 : f32
    %49 = vector.broadcast %cst_27 : f32 to vector<1x1x128xf32>
    %50 = vector.shape_cast %40 : vector<48x8xf32> to vector<1x48x8xf32>
    %cst_28 = arith.constant dense<0.000000e+00> : vector<1xf32>
    %51 = vector.multi_reduction <add>, %50, %cst_28 [1, 2] : vector<1x48x8xf32> to vector<1xf32>
    %52 = vector.shape_cast %51 : vector<1xf32> to vector<1x1x1xf32>
    %53 = vector.extract %52[0, 0, 0] : f32 from vector<1x1x1xf32>
    %54 = vector.broadcast %53 : f32 to vector<1x1x128xf32>
    %55 = arith.addf %49, %54 : vector<1x1x128xf32>
    %c0_29 = arith.constant 0 : index
    %c0_30 = arith.constant 0 : index
    %c0_31 = arith.constant 0 : index
    %56 = vector.load %arg8[%c0_29, %c0_30, %c0_31] : memref<1x1x128xf32, #tpu.memory_space<vmem>>, vector<1x1x128xf32>
    tpu.vector_store %arg8[%c0_29, %c0_30, %c0_31], %55 {strides = array<i32>} : memref<1x1x128xf32, #tpu.memory_space<vmem>>, vector<1x1x128xf32>,
    %c0_32 = arith.constant 0 : index
    %c0_33 = arith.constant 0 : index
    %57 = vector.load %arg5[%c0_32, %c0_33] : memref<24x48xf32, #tpu.memory_space<vmem>>, vector<24x48xf32>
    %c0_34 = arith.constant 0 : index
    %c0_35 = arith.constant 0 : index
    %58 = vector.load %arg6[%c0_34, %c0_35] : memref<8x4xf32, #tpu.memory_space<vmem>>, vector<8x4xf32>
    %cst_36 = arith.constant dense<0.000000e+00> : vector<48x4xf32>
    %59 = tpu.matmul %0, %58, %cst_36 {dimension_numbers = #tpu.dot_dimension_numbers<[1], [0], [0], [1], [0, 0, 1, 1], [], []>} : vector<48x8xf32>, vector<8x4xf32>, vector<48x4xf32> -> vector<48x4xf32>
    %cst_37 = arith.constant dense<0.000000e+00> : vector<24x4xf32>
    %60 = tpu.matmul %57, %59, %cst_37 {dimension_numbers = #tpu.dot_dimension_numbers<[1], [0], [0], [1], [0, 0, 1, 1], [], []>} : vector<24x48xf32>, vector<48x4xf32>, vector<24x4xf32> -> vector<24x4xf32>
    %c0_38 = arith.constant 0 : index
    %c0_39 = arith.constant 0 : index
    %61 = vector.load %arg9[%c0_38, %c0_39] : memref<24x4xf32, #tpu.memory_space<vmem>>, vector<24x4xf32>
    tpu.vector_store %arg9[%c0_38, %c0_39], %60 {strides = array<i32>} : memref<24x4xf32, #tpu.memory_space<vmem>>, vector<24x4xf32>,
    %cst_40 = arith.constant dense<0.000000e+00> : vector<48x4xf32>
    %62 = tpu.matmul %1, %58, %cst_40 {dimension_numbers = #tpu.dot_dimension_numbers<[1], [0], [0], [1], [0, 0, 1, 1], [], []>} : vector<48x8xf32>, vector<8x4xf32>, vector<48x4xf32> -> vector<48x4xf32>
    %cst_41 = arith.constant dense<0.000000e+00> : vector<24x4xf32>
    %63 = tpu.matmul %57, %62, %cst_41 {dimension_numbers = #tpu.dot_dimension_numbers<[1], [0], [0], [1], [0, 0, 1, 1], [], []>} : vector<24x48xf32>, vector<48x4xf32>, vector<24x4xf32> -> vector<24x4xf32>
    %c0_42 = arith.constant 0 : index
    %c0_43 = arith.constant 0 : index
    %64 = vector.load %arg10[%c0_42, %c0_43] : memref<24x4xf32, #tpu.memory_space<vmem>>, vector<24x4xf32>
    tpu.vector_store %arg10[%c0_42, %c0_43], %63 {strides = array<i32>} : memref<24x4xf32, #tpu.memory_space<vmem>>, vector<24x4xf32>,
    return
  }
  func.func @transform_0(%arg0: i32) -> (i32, i32) {
    %c0_i32 = arith.constant 0 : i32
    %c0_i32_0 = arith.constant 0 : i32
    return %arg0, %c0_i32 : i32, i32
  }
  func.func @transform_1(%arg0: i32) -> (i32, i32) {
    %c0_i32 = arith.constant 0 : i32
    %c0_i32_0 = arith.constant 0 : i32
    return %arg0, %c0_i32 : i32, i32
  }
  func.func @transform_2(%arg0: i32) -> (i32, i32) {
    %c0_i32 = arith.constant 0 : i32
    %c0_i32_0 = arith.constant 0 : i32
    %c0_i32_1 = arith.constant 0 : i32
    return %c0_i32, %c0_i32_0 : i32, i32
  }
  func.func @transform_3(%arg0: i32) -> (i32, i32) {
    %c0_i32 = arith.constant 0 : i32
    %c0_i32_0 = arith.constant 0 : i32
    %c0_i32_1 = arith.constant 0 : i32
    return %c0_i32, %c0_i32_0 : i32, i32
  }
  func.func @transform_4(%arg0: i32) -> (i32, i32) {
    %c0_i32 = arith.constant 0 : i32
    %c0_i32_0 = arith.constant 0 : i32
    %c0_i32_1 = arith.constant 0 : i32
    return %c0_i32, %c0_i32_0 : i32, i32
  }
  func.func @transform_5(%arg0: i32) -> (i32, i32) {
    %c0_i32 = arith.constant 0 : i32
    %c0_i32_0 = arith.constant 0 : i32
    %c0_i32_1 = arith.constant 0 : i32
    return %c0_i32, %c0_i32_0 : i32, i32
  }
  func.func @transform_6(%arg0: i32) -> (i32, i32, i32) {
    %c0_i32 = arith.constant 0 : i32
    %c0_i32_0 = arith.constant 0 : i32
    %c0_i32_1 = arith.constant 0 : i32
    return %arg0, %c0_i32, %c0_i32_0 : i32, i32, i32
  }
  func.func @transform_7(%arg0: i32) -> (i32, i32, i32) {
    %c0_i32 = arith.constant 0 : i32
    %c0_i32_0 = arith.constant 0 : i32
    %c0_i32_1 = arith.constant 0 : i32
    return %arg0, %c0_i32, %c0_i32_0 : i32, i32, i32
  }
  func.func @transform_8(%arg0: i32) -> (i32, i32) {
    %c0_i32 = arith.constant 0 : i32
    %c0_i32_0 = arith.constant 0 : i32
    return %arg0, %c0_i32 : i32, i32
  }
  func.func @transform_9(%arg0: i32) -> (i32, i32) {
    %c0_i32 = arith.constant 0 : i32
    %c0_i32_0 = arith.constant 0 : i32
    return %arg0, %c0_i32 : i32, i32
  }
}

module attributes {stable_mosaic.version = 11 : i64} {
  func.func @_level_kernel(%arg0: i32, %arg1: memref<12x2xf32, #tpu.memory_space<vmem>>, %arg2: memref<12x2xf32, #tpu.memory_space<vmem>>, %arg3: memref<18x12xf32, #tpu.memory_space<vmem>>, %arg4: memref<2x3xf32, #tpu.memory_space<vmem>>, %arg5: memref<1x1x128xf32, #tpu.memory_space<vmem>>, %arg6: memref<1x1x128xf32, #tpu.memory_space<vmem>>) attributes {dimension_semantics = [#tpu.dimension_semantics<parallel>], iteration_bounds = array<i64: 1>, scalar_prefetch = 0 : i64, scratch_operands = 0 : i64, tpu.core_type = #tpu.core_type<tc>, window_params = [{transform_indices = @transform_0, window_bounds = array<i64: 12, 2>}, {transform_indices = @transform_1, window_bounds = array<i64: 12, 2>}, {pipeline_mode = #tpu.pipeline_mode<synchronous>, transform_indices = @transform_2, window_bounds = array<i64: 18, 12>}, {pipeline_mode = #tpu.pipeline_mode<synchronous>, transform_indices = @transform_3, window_bounds = array<i64: 2, 3>}, {transform_indices = @transform_4, window_bounds = array<i64: 1, 1, 128>}, {transform_indices = @transform_5, window_bounds = array<i64: 1, 1, 128>}]} {
    %c0 = arith.constant 0 : index
    %c0_0 = arith.constant 0 : index
    %0 = vector.load %arg1[%c0, %c0_0] : memref<12x2xf32, #tpu.memory_space<vmem>>, vector<12x2xf32>
    %c0_1 = arith.constant 0 : index
    %c0_2 = arith.constant 0 : index
    %1 = vector.load %arg2[%c0_1, %c0_2] : memref<12x2xf32, #tpu.memory_space<vmem>>, vector<12x2xf32>
    %c0_3 = arith.constant 0 : index
    %c0_4 = arith.constant 0 : index
    %2 = vector.load %arg3[%c0_3, %c0_4] : memref<18x12xf32, #tpu.memory_space<vmem>>, vector<18x12xf32>
    %c0_5 = arith.constant 0 : index
    %c0_6 = arith.constant 0 : index
    %3 = vector.load %arg4[%c0_5, %c0_6] : memref<2x3xf32, #tpu.memory_space<vmem>>, vector<2x3xf32>
    %cst = arith.constant dense<0.000000e+00> : vector<12x3xf32>
    %4 = tpu.matmul %0, %3, %cst {dimension_numbers = #tpu.dot_dimension_numbers<[1], [0], [0], [1], [0, 0, 1, 1], [], []>} : vector<12x2xf32>, vector<2x3xf32>, vector<12x3xf32> -> vector<12x3xf32>
    %cst_7 = arith.constant dense<0.000000e+00> : vector<18x3xf32>
    %5 = tpu.matmul %2, %4, %cst_7 {dimension_numbers = #tpu.dot_dimension_numbers<[1], [0], [0], [1], [0, 0, 1, 1], [], []>} : vector<18x12xf32>, vector<12x3xf32>, vector<18x3xf32> -> vector<18x3xf32>
    %cst_8 = arith.constant dense<0.000000e+00> : vector<12x3xf32>
    %6 = tpu.matmul %1, %3, %cst_8 {dimension_numbers = #tpu.dot_dimension_numbers<[1], [0], [0], [1], [0, 0, 1, 1], [], []>} : vector<12x2xf32>, vector<2x3xf32>, vector<12x3xf32> -> vector<12x3xf32>
    %cst_9 = arith.constant dense<0.000000e+00> : vector<18x3xf32>
    %7 = tpu.matmul %2, %6, %cst_9 {dimension_numbers = #tpu.dot_dimension_numbers<[1], [0], [0], [1], [0, 0, 1, 1], [], []>} : vector<18x12xf32>, vector<12x3xf32>, vector<18x3xf32> -> vector<18x3xf32>
    %8 = arith.mulf %0, %0 : vector<12x2xf32>
    %cst_10 = arith.constant dense<0.000000e+00> : vector<12x3xf32>
    %9 = tpu.matmul %8, %3, %cst_10 {dimension_numbers = #tpu.dot_dimension_numbers<[1], [0], [0], [1], [0, 0, 1, 1], [], []>} : vector<12x2xf32>, vector<2x3xf32>, vector<12x3xf32> -> vector<12x3xf32>
    %cst_11 = arith.constant dense<0.000000e+00> : vector<18x3xf32>
    %10 = tpu.matmul %2, %9, %cst_11 {dimension_numbers = #tpu.dot_dimension_numbers<[1], [0], [0], [1], [0, 0, 1, 1], [], []>} : vector<18x12xf32>, vector<12x3xf32>, vector<18x3xf32> -> vector<18x3xf32>
    %11 = arith.mulf %1, %1 : vector<12x2xf32>
    %cst_12 = arith.constant dense<0.000000e+00> : vector<12x3xf32>
    %12 = tpu.matmul %11, %3, %cst_12 {dimension_numbers = #tpu.dot_dimension_numbers<[1], [0], [0], [1], [0, 0, 1, 1], [], []>} : vector<12x2xf32>, vector<2x3xf32>, vector<12x3xf32> -> vector<12x3xf32>
    %cst_13 = arith.constant dense<0.000000e+00> : vector<18x3xf32>
    %13 = tpu.matmul %2, %12, %cst_13 {dimension_numbers = #tpu.dot_dimension_numbers<[1], [0], [0], [1], [0, 0, 1, 1], [], []>} : vector<18x12xf32>, vector<12x3xf32>, vector<18x3xf32> -> vector<18x3xf32>
    %14 = arith.mulf %0, %1 : vector<12x2xf32>
    %cst_14 = arith.constant dense<0.000000e+00> : vector<12x3xf32>
    %15 = tpu.matmul %14, %3, %cst_14 {dimension_numbers = #tpu.dot_dimension_numbers<[1], [0], [0], [1], [0, 0, 1, 1], [], []>} : vector<12x2xf32>, vector<2x3xf32>, vector<12x3xf32> -> vector<12x3xf32>
    %cst_15 = arith.constant dense<0.000000e+00> : vector<18x3xf32>
    %16 = tpu.matmul %2, %15, %cst_15 {dimension_numbers = #tpu.dot_dimension_numbers<[1], [0], [0], [1], [0, 0, 1, 1], [], []>} : vector<18x12xf32>, vector<12x3xf32>, vector<18x3xf32> -> vector<18x3xf32>
    %17 = arith.mulf %5, %5 : vector<18x3xf32>
    %18 = arith.mulf %7, %7 : vector<18x3xf32>
    %19 = arith.mulf %5, %7 : vector<18x3xf32>
    %20 = arith.subf %10, %17 : vector<18x3xf32>
    %21 = arith.subf %13, %18 : vector<18x3xf32>
    %22 = arith.subf %16, %19 : vector<18x3xf32>
    %cst_16 = arith.constant 2.000000e+00 : f32
    %23 = vector.broadcast %cst_16 : f32 to vector<18x3xf32>
    %24 = arith.mulf %23, %22 : vector<18x3xf32>
    %cst_17 = arith.constant 5.852250e+01 : f32
    %25 = vector.broadcast %cst_17 : f32 to vector<18x3xf32>
    %26 = arith.addf %24, %25 : vector<18x3xf32>
    %27 = arith.addf %20, %21 : vector<18x3xf32>
    %cst_18 = arith.constant 5.852250e+01 : f32
    %28 = vector.broadcast %cst_18 : f32 to vector<18x3xf32>
    %29 = arith.addf %27, %28 : vector<18x3xf32>
    %cst_19 = arith.constant 2.000000e+00 : f32
    %30 = vector.broadcast %cst_19 : f32 to vector<18x3xf32>
    %31 = arith.mulf %30, %19 : vector<18x3xf32>
    %cst_20 = arith.constant 6.502500e+00 : f32
    %32 = vector.broadcast %cst_20 : f32 to vector<18x3xf32>
    %33 = arith.addf %31, %32 : vector<18x3xf32>
    %34 = arith.mulf %33, %26 : vector<18x3xf32>
    %35 = arith.addf %17, %18 : vector<18x3xf32>
    %cst_21 = arith.constant 6.502500e+00 : f32
    %36 = vector.broadcast %cst_21 : f32 to vector<18x3xf32>
    %37 = arith.addf %35, %36 : vector<18x3xf32>
    %38 = arith.mulf %37, %29 : vector<18x3xf32>
    %39 = arith.divf %34, %38 : vector<18x3xf32>
    %40 = arith.divf %26, %29 : vector<18x3xf32>
    %cst_22 = arith.constant 0.000000e+00 : f32
    %41 = vector.broadcast %cst_22 : f32 to vector<1x1x128xf32>
    %42 = vector.shape_cast %39 : vector<18x3xf32> to vector<1x18x3xf32>
    %cst_23 = arith.constant dense<0.000000e+00> : vector<1xf32>
    %43 = vector.multi_reduction <add>, %42, %cst_23 [1, 2] : vector<1x18x3xf32> to vector<1xf32>
    %44 = vector.shape_cast %43 : vector<1xf32> to vector<1x1x1xf32>
    %45 = vector.extract %44[0, 0, 0] : f32 from vector<1x1x1xf32>
    %46 = vector.broadcast %45 : f32 to vector<1x1x128xf32>
    %47 = arith.addf %41, %46 : vector<1x1x128xf32>
    %c0_24 = arith.constant 0 : index
    %c0_25 = arith.constant 0 : index
    %c0_26 = arith.constant 0 : index
    %48 = vector.load %arg5[%c0_24, %c0_25, %c0_26] : memref<1x1x128xf32, #tpu.memory_space<vmem>>, vector<1x1x128xf32>
    tpu.vector_store %arg5[%c0_24, %c0_25, %c0_26], %47 {strides = array<i32>} : memref<1x1x128xf32, #tpu.memory_space<vmem>>, vector<1x1x128xf32>,
    %cst_27 = arith.constant 0.000000e+00 : f32
    %49 = vector.broadcast %cst_27 : f32 to vector<1x1x128xf32>
    %50 = vector.shape_cast %40 : vector<18x3xf32> to vector<1x18x3xf32>
    %cst_28 = arith.constant dense<0.000000e+00> : vector<1xf32>
    %51 = vector.multi_reduction <add>, %50, %cst_28 [1, 2] : vector<1x18x3xf32> to vector<1xf32>
    %52 = vector.shape_cast %51 : vector<1xf32> to vector<1x1x1xf32>
    %53 = vector.extract %52[0, 0, 0] : f32 from vector<1x1x1xf32>
    %54 = vector.broadcast %53 : f32 to vector<1x1x128xf32>
    %55 = arith.addf %49, %54 : vector<1x1x128xf32>
    %c0_29 = arith.constant 0 : index
    %c0_30 = arith.constant 0 : index
    %c0_31 = arith.constant 0 : index
    %56 = vector.load %arg6[%c0_29, %c0_30, %c0_31] : memref<1x1x128xf32, #tpu.memory_space<vmem>>, vector<1x1x128xf32>
    tpu.vector_store %arg6[%c0_29, %c0_30, %c0_31], %55 {strides = array<i32>} : memref<1x1x128xf32, #tpu.memory_space<vmem>>, vector<1x1x128xf32>,
    return
  }
  func.func @transform_0(%arg0: i32) -> (i32, i32) {
    %c0_i32 = arith.constant 0 : i32
    %c0_i32_0 = arith.constant 0 : i32
    return %arg0, %c0_i32 : i32, i32
  }
  func.func @transform_1(%arg0: i32) -> (i32, i32) {
    %c0_i32 = arith.constant 0 : i32
    %c0_i32_0 = arith.constant 0 : i32
    return %arg0, %c0_i32 : i32, i32
  }
  func.func @transform_2(%arg0: i32) -> (i32, i32) {
    %c0_i32 = arith.constant 0 : i32
    %c0_i32_0 = arith.constant 0 : i32
    %c0_i32_1 = arith.constant 0 : i32
    return %c0_i32, %c0_i32_0 : i32, i32
  }
  func.func @transform_3(%arg0: i32) -> (i32, i32) {
    %c0_i32 = arith.constant 0 : i32
    %c0_i32_0 = arith.constant 0 : i32
    %c0_i32_1 = arith.constant 0 : i32
    return %c0_i32, %c0_i32_0 : i32, i32
  }
  func.func @transform_4(%arg0: i32) -> (i32, i32, i32) {
    %c0_i32 = arith.constant 0 : i32
    %c0_i32_0 = arith.constant 0 : i32
    %c0_i32_1 = arith.constant 0 : i32
    return %arg0, %c0_i32, %c0_i32_0 : i32, i32, i32
  }
  func.func @transform_5(%arg0: i32) -> (i32, i32, i32) {
    %c0_i32 = arith.constant 0 : i32
    %c0_i32_0 = arith.constant 0 : i32
    %c0_i32_1 = arith.constant 0 : i32
    return %arg0, %c0_i32, %c0_i32_0 : i32, i32, i32
  }
}

</mosaic_0001>

<bundles_post_ra>
// kernel: ms_ssim.8
= control target key start
LH: loop header
LB: loop body
LE: loop exit
PB: predicated region body
PF: predicated region fallthrough
CT: control target
= control target key end

     0   :  { %vm49_vm0 = vcmask 1043456   ;;  %v1765_v2 = vmov 0.0   ;;  %vm1766_vm1 = vmmov 0   ;;  %vm39_vm2 = vcmask 31744   ;;  %s2139_s0 = inlined_call_operand.vmem [shape: f32[24,4], index: 0, kind: input, shape index: {}]   ;;  %s2140_s1 = inlined_call_operand.vmem [shape: f32[24,4], index: 1, kind: input, shape index: {}]   ;;  %s2141_s2 = inlined_call_operand.vmem [shape: f32[30,24], index: 2, kind: input, shape index: {}]   ;;  %s2142_s3 = inlined_call_operand.vmem [shape: f32[4,5], index: 3, kind: input, shape index: {}]   ;;  %s2143_s4 = inlined_call_operand.vmem [shape: f32[12,24], index: 4, kind: input, shape index: {}]   ;;  %s2144_s5 = inlined_call_operand.vmem [shape: f32[4,2], index: 5, kind: input, shape index: {}]   ;;  %s2145_s6 = inlined_call_operand.hbm [shape: f32[1,1,128], index: 6, kind: output, shape index: {0}]   ;;  %s2146_s7 = inlined_call_operand.vmem [shape: f32[1,1,128], index: 7, kind: output, shape index: {1}]   ;;  %s2147_s8 = inlined_call_operand.vmem [shape: f32[12,2], index: 8, kind: output, shape index: {2}]   ;;  %s2148_s9 = inlined_call_operand.vmem [shape: f32[12,2], index: 9, kind: output, shape index: {3}]  }
   0x1   :  { %v1821_v0 = vld [vmem:[%s2142_s3] sm:$0xf]  ;;  %1535 = vmatprep.subr.mxu0 %v1765_v2  ;;  %1537 = vmatprep.mubr.msk.f32.mxu0 %vm1766_vm1, %v1765_v2 }
   0x2   :  { %v1826_v1 = vld [vmem:[%s2139_s0] sm:$0xff]  ;;  %1536 = vmatpush3.msk.msra.mxu0 %vm49_vm0, %v1821_v0 }
   0x3   :  { %15 = vsyncpa [#allocation3], 0  ;;  %1538 = vmatmul.mubr.msk.f32.vlgmr.msra.gmra.mrb[0].mxu0 %vm39_vm2, %v1826_v1  ;;  %1558 = vmatprep.subr.mxu0 %v1765_v2  ;;  %v1841_v3 = vld [vmem:[%s2139_s0 + $0x8] sm:$0xff]  ;;  %v1852_v4 = vld [vmem:[%s2139_s0 + $0x10] sm:$0xff]  ;;  %vm133_vm3 = vcmask 195584   ;;  %v405_v26 = vmul.f32 %v1826_v1, %v1826_v1  ;;  %vm1016_vm4 = vcmask 39936  }
   0x4   :  { %1540 = vmatprep.mubr.msk.f32.mxu0 %vm1766_vm1, %v1765_v2  ;;  %1559 = vmatpush3.msk.msra.mxu0 %vm49_vm0, %v1821_v0  ;;  %v1859_v5 = vld [vmem:[%s2140_s1] sm:$0xff]  ;;  %v1870_v6 = vld [vmem:[%s2140_s1 + $0x8] sm:$0xff]  ;;  %v1879_v7 = vld [vmem:[%s2140_s1 + $0x10] sm:$0xff]  ;;  %v406_v27 = vmul.f32 %v1841_v3, %v1841_v3  ;;  %v407_v28 = vmul.f32 %v1852_v4, %v1852_v4  ;;  %vm1022_vm5 = vcmask 37888   ;;  %vm1225_vm6 = vcmask 11264  }
   0x5   :  { %v1886_v8 = vld [vmem:[%s2141_s2] sm:$0xff]  ;;  %v1895_v16 = vld [vmem:[%s2141_s2 + $0x8] sm:$0xff]  ;;  %v1900_v17 = vld [vmem:[%s2141_s2 + $0x10] sm:$0xff]  ;;  %v582_v60 = vmul.f32 %v1859_v5, %v1859_v5  ;;  %v583_v61 = vmul.f32 %v1870_v6, %v1870_v6  ;;  %v584_v62 = vmul.f32 %v1879_v7, %v1879_v7  ;;  %vm1223_vm7 = vcmask 15360  }
   0x6   :  { %1552 = vmatprep.mubr.msk.f32.mxu1 %vm133_vm3, %v1886_v8  ;;  %v1909_v20 = vld [vmem:[%s2141_s2 + $0x18] sm:$0x3f] }
   0x7   :  { %1541 = vmatmul.mubr.msk.f32.gmra.mrb[2].mxu0 %vm39_vm2, %v1841_v3 }
   0x8   :  { %1543 = vmatprep.mubr.msk.f32.mxu0 %vm1766_vm1, %v1765_v2 }
   0xb   :  { %1544 = vmatmul.mubr.msk.f32.gmra.mrb[4].mxu0 %vm39_vm2, %v1852_v4 }
   0xc   :  { %1560 = vmatprep.mubr.msk.f32.mxu0 %vm1766_vm1, %v1765_v2 }
   0xf   :  { %1561 = vmatmul.mubr.msk.f32.vlgmr.msra.gmra.mrb[6].mxu0 %vm39_vm2, %v1859_v5 }
  0x10   :  { %1563 = vmatprep.mubr.msk.f32.mxu0 %vm1766_vm1, %v1765_v2 }
  0x13   :  { %1564 = vmatmul.mubr.msk.f32.gmra.mrb[8].mxu0 %vm39_vm2, %v1870_v6 }
  0x14   :  { %1566 = vmatprep.mubr.msk.f32.mxu0 %vm1766_vm1, %v1765_v2 }
  0x17   :  { %1567 = vmatmul.mubr.msk.f32.gmra.mrb[10].mxu0 %vm39_vm2, %v1879_v7 }
  0x18   :  { %1598 = vmatprep.mubr.msk.f32.mxu0 %vm133_vm3, %v1886_v8 }
  0xd6   :  { %v119_v9 = vpop.f32.mrb[0].mxu0 }
  0xd7   :  { %v1539_v10 = vpop.f32.mrb[1].mxu0 }
  0xda   :  { %v124_v11 = vpop.f32.mrb[2].mxu0 }
  0xdb   :  { %v1690_v12 = vpack.c.bf16 %v124_v11, %v119_v9  ;;  %v1542_v13 = vpop.f32.mrb[3].mxu0 }
  0xdd   :  { %1691 = vmatprep.subr.bf16.mxu1 %v1690_v12 }
  0xde   :  { %v129_v14 = vpop.f32.mrb[4].mxu0  ;;  %1693 = vmatpush3.bf16.msra.mxu1 %v1690_v12 }
  0xdf   :  { %v1545_v15 = vpop.f32.mrb[5].mxu0  ;;  %1550 = vmatprep.subr.mxu1 %v129_v14 }
  0xe2   :  { %1551 = vmatpush3.msra.mxu1 %v129_v14  ;;  %v306_v18 = vpop.f32.mrb[6].mxu0 }
  0xe3   :  { %v1562_v19 = vpop.f32.mrb[7].mxu0  ;;  %1553 = vmatmul.mubr.msk.f32.vlgmr.msra.gmra.mrb[0].mxu1 %vm133_vm3, %v1895_v16 }
  0xe4   :  { %1555 = vmatprep.mubr.msk.f32.mxu1 %vm133_vm3, %v1900_v17 }
  0xe6   :  { %v311_v21 = vpop.f32.mrb[8].mxu0 }
  0xe7   :  { %v1694_v22 = vpack.c.bf16 %v311_v21, %v306_v18  ;;  %v1565_v23 = vpop.f32.mrb[9].mxu0  ;;  %1556 = vmatmul.mubr.msk.f32.gmra.mrb[2].mxu1 %vm133_vm3, %v1909_v20 }
  0xe8   :  { %1575 = vmatprep.mubr.msk.f32.mxu1 %vm133_vm3, %v1886_v8 }
  0xe9   :  { %1695 = vmatprep.subr.bf16.mxu1 %v1694_v22 }
  0xea   :  { %1697 = vmatpush3.bf16.msra.mxu1 %v1694_v22  ;;  %v316_v24 = vpop.f32.mrb[10].mxu0 }
  0xeb   :  { %v1568_v25 = vpop.f32.mrb[11].mxu0  ;;  %1573 = vmatprep.subr.mxu1 %v316_v24 }
  0xec   :  { %v759_v25 = vmul.f32 %v1859_v5, %v1826_v1 }
  0xee   :  { %1574 = vmatpush3.msra.mxu1 %v316_v24 }
  0xef   :  { %1576 = vmatmul.mubr.msk.f32.vlgmr.msra.gmra.mrb[4].mxu1 %vm133_vm3, %v1895_v16  ;;  %1581 = vmatprep.subr.mxu1 %v1765_v2 }
  0xf0   :  { %1578 = vmatprep.mubr.msk.f32.mxu1 %vm133_vm3, %v1900_v17  ;;  %1582 = vmatpush3.msk.msra.mxu1 %vm49_vm0, %v1821_v0 }
  0xf3   :  { %1579 = vmatmul.mubr.msk.f32.gmra.mrb[6].mxu1 %vm133_vm3, %v1909_v20 }
  0xf4   :  { %1583 = vmatprep.mubr.msk.f32.mxu1 %vm1766_vm1, %v1765_v2 }
  0xf7   :  { %1584 = vmatmul.mubr.msk.f32.vlgmr.msra.gmra.mrb[8].mxu1 %vm39_vm2, %v405_v26  ;;  %v760_v26 = vmul.f32 %v1870_v6, %v1841_v3 }
  0xf8   :  { %1586 = vmatprep.mubr.msk.f32.mxu1 %vm1766_vm1, %v1765_v2 }
  0xfb   :  { %1587 = vmatmul.mubr.msk.f32.gmra.mrb[10].mxu1 %vm39_vm2, %v406_v27 }
  0xfc   :  { %1589 = vmatprep.mubr.msk.f32.mxu1 %vm1766_vm1, %v1765_v2 }
  0xff   :  { %1590 = vmatmul.mubr.msk.f32.gmra.mrb[12].mxu1 %vm39_vm2, %v407_v28 }
 0x100   :  { %1621 = vmatprep.mubr.msk.f32.mxu1 %vm133_vm3, %v1886_v8 }
 0x1b6   :  { %v1554_v29 = vpop.f32.mrb[0].mxu1 }
 0x1b7   :  { %v212_v30 = vpop.f32.mrb[1].mxu1  ;;  %v1941_v34 = vmul.f32 %v1554_v29, %v1554_v29 }
 0x1b8   :  { %v1947_v38 = vmul.f32 %v212_v30, %v212_v30 }
 0x1ba   :  { %v1557_v31 = vpop.f32.mrb[2].mxu1 }
 0x1bb   :  { %v222_v32 = vpop.f32.mrb[3].mxu1  ;;  %v1961_v44 = vmul.f32 %v1557_v31, %v1557_v31 }
 0x1bc   :  { %v1967_v48 = vmul.f32 %v222_v32, %v222_v32 }
 0x1c2   :  { %v1577_v33 = vpop.f32.mrb[4].mxu1 }
 0x1c3   :  { %v1943_v35 = vmul.f32 %v1577_v33, %v1577_v33  ;;  %v1945_v36 = vmul.f32 %v1577_v33, %v1554_v29  ;;  %v386_v37 = vpop.f32.mrb[5].mxu1 }
 0x1c4   :  { %v1949_v39 = vmul.f32 %v386_v37, %v386_v37  ;;  %v1951_v40 = vmul.f32 %v386_v37, %v212_v30 }
 0x1c5   :  { %v1955_v41 = vadd.f32 %v1943_v35, %v1941_v34 }
 0x1c6   :  { %v1959_v42 = vadd.f32 %v1949_v39, %v1947_v38  ;;  %v1580_v43 = vpop.f32.mrb[6].mxu1 }
 0x1c7   :  { %v1963_v45 = vmul.f32 %v1580_v43, %v1580_v43  ;;  %v1965_v46 = vmul.f32 %v1580_v43, %v1557_v31  ;;  %v396_v47 = vpop.f32.mrb[7].mxu1 }
 0x1c8   :  { %v1969_v49 = vmul.f32 %v396_v47, %v396_v47  ;;  %v1971_v50 = vmul.f32 %v396_v47, %v222_v32 }
 0x1c9   :  { %v1975_v51 = vadd.f32 %v1963_v45, %v1961_v44 }
 0x1ca   :  { %v1979_v52 = vadd.f32 %v1969_v49, %v1967_v48  ;;  %v483_v53 = vpop.f32.mrb[8].mxu1 }
 0x1cb   :  { %v1585_v54 = vpop.f32.mrb[9].mxu1 }
 0x1ce   :  { %v488_v55 = vpop.f32.mrb[10].mxu1 }
 0x1cf   :  { %v1698_v56 = vpack.c.bf16 %v488_v55, %v483_v53  ;;  %v1588_v57 = vpop.f32.mrb[11].mxu1 }
 0x1d1   :  { %1699 = vmatprep.subr.bf16.mxu0 %v1698_v56 }
 0x1d2   :  { %1701 = vmatpush3.bf16.msra.mxu0 %v1698_v56  ;;  %v493_v58 = vpop.f32.mrb[12].mxu1 }
 0x1d3   :  { %v1591_v59 = vpop.f32.mrb[13].mxu1  ;;  %1596 = vmatprep.subr.mxu0 %v493_v58 }
 0x1d6   :  { %1597 = vmatpush3.msra.mxu0 %v493_v58 }
 0x1d7   :  { %1599 = vmatmul.mubr.msk.f32.vlgmr.msra.gmra.mrb[12].mxu0 %vm133_vm3, %v1895_v16  ;;  %1604 = vmatprep.subr.mxu0 %v1765_v2 }
 0x1d8   :  { %1601 = vmatprep.mubr.msk.f32.mxu0 %vm133_vm3, %v1900_v17  ;;  %1605 = vmatpush3.msk.msra.mxu0 %vm49_vm0, %v1821_v0 }
 0x1db   :  { %1602 = vmatmul.mubr.msk.f32.gmra.mrb[14].mxu0 %vm133_vm3, %v1909_v20 }
 0x1dc   :  { %1606 = vmatprep.mubr.msk.f32.mxu0 %vm1766_vm1, %v1765_v2 }
 0x1df   :  { %1607 = vmatmul.mubr.msk.f32.vlgmr.msra.gmra.mrb[16].mxu0 %vm39_vm2, %v582_v60 }
 0x1e0   :  { %1609 = vmatprep.mubr.msk.f32.mxu0 %vm1766_vm1, %v1765_v2 }
 0x1e3   :  { %1610 = vmatmul.mubr.msk.f32.gmra.mrb[18].mxu0 %vm39_vm2, %v583_v61 }
 0x1e4   :  { %1612 = vmatprep.mubr.msk.f32.mxu0 %vm1766_vm1, %v1765_v2 }
 0x1e7   :  { %1613 = vmatmul.mubr.msk.f32.gmra.mrb[20].mxu0 %vm39_vm2, %v584_v62 }
 0x1e8   :  { %1644 = vmatprep.mubr.msk.f32.mxu0 %vm133_vm3, %v1886_v8 }
 0x2aa   :  { %v1600_v63 = vpop.f32.mrb[12].mxu0 }
 0x2ab   :  { %v949_v9 = vsub.f32 %v1600_v63, %v1941_v34  ;;  %v563_v10 = vpop.f32.mrb[13].mxu0  ;;  %v993_v34 = vadd.f32 6.5025, %v1955_v41  ;;  %v994_v41 = vadd.f32 6.5025, %v1979_v52 }
 0x2ac   :  { %v948_v11 = vsub.f32 %v563_v10, %v1947_v38 }
 0x2ae   :  { %v1603_v12 = vpop.f32.mrb[14].mxu0 }
 0x2af   :  { %v951_v13 = vsub.f32 %v1603_v12, %v1961_v44  ;;  %v573_v14 = vpop.f32.mrb[15].mxu0  ;;  %v992_v44 = vadd.f32 6.5025, %v1959_v42 }
 0x2b0   :  { %v950_v15 = vsub.f32 %v573_v14, %v1967_v48  ;;  %v979_v14 = vmul.f32 2.0, %v1965_v46 }
 0x2b2   :  { %v660_v18 = vpop.f32.mrb[16].mxu0 }
 0x2b3   :  { %v1608_v19 = vpop.f32.mrb[17].mxu0 }
 0x2b6   :  { %v665_v21 = vpop.f32.mrb[18].mxu0 }
 0x2b7   :  { %v1702_v22 = vpack.c.bf16 %v665_v21, %v660_v18  ;;  %v1611_v23 = vpop.f32.mrb[19].mxu0 }
 0x2b9   :  { %1703 = vmatprep.subr.bf16.mxu1 %v1702_v22 }
 0x2ba   :  { %1705 = vmatpush3.bf16.msra.mxu1 %v1702_v22  ;;  %v670_v8 = vpop.f32.mrb[20].mxu0  ;;  %v978_v22 = vmul.f32 2.0, %v1971_v50 }
 0x2bb   :  { %v1614_v24 = vpop.f32.mrb[21].mxu0  ;;  %1619 = vmatprep.subr.mxu1 %v670_v8 }
 0x2be   :  { %1620 = vmatpush3.msra.mxu1 %v670_v8 }
 0x2bf   :  { %1622 = vmatmul.mubr.msk.f32.vlgmr.msra.gmra.mrb[14].mxu1 %vm133_vm3, %v1895_v16  ;;  %1627 = vmatprep.subr.mxu1 %v1765_v2 }
 0x2c0   :  { %1624 = vmatprep.mubr.msk.f32.mxu1 %vm133_vm3, %v1900_v17  ;;  %1628 = vmatpush3.msk.msra.mxu1 %vm49_vm0, %v1821_v0  ;;  %v761_v0 = vmul.f32 %v1879_v7, %v1852_v4 }
 0x2c3   :  { %1625 = vmatmul.mubr.msk.f32.gmra.mrb[16].mxu1 %vm133_vm3, %v1909_v20 }
 0x2c4   :  { %1629 = vmatprep.mubr.msk.f32.mxu1 %vm1766_vm1, %v1765_v2 }
 0x2c7   :  { %1630 = vmatmul.mubr.msk.f32.vlgmr.msra.gmra.mrb[18].mxu1 %vm39_vm2, %v759_v25 }
 0x2c8   :  { %1632 = vmatprep.mubr.msk.f32.mxu1 %vm1766_vm1, %v1765_v2 }
 0x2cb   :  { %1633 = vmatmul.mubr.msk.f32.gmra.mrb[20].mxu1 %vm39_vm2, %v760_v26 }
 0x2cc   :  { %1635 = vmatprep.mubr.msk.f32.mxu1 %vm1766_vm1, %v1765_v2 }
 0x2cf   :  { %1636 = vmatmul.mubr.msk.f32.gmra.mrb[22].mxu1 %vm39_vm2, %v761_v0 }
 0x392   :  { %v1623_v27 = vpop.f32.mrb[14].mxu1 }
 0x393   :  { %v953_v28 = vsub.f32 %v1623_v27, %v1943_v35  ;;  %v740_v29 = vpop.f32.mrb[15].mxu1 }
 0x394   :  { %v952_v30 = vsub.f32 %v740_v29, %v1949_v39  ;;  %v995_v39 = vadd.f32 6.5025, %v1975_v51 }
 0x395   :  { %v969_v31 = vadd.f32 %v953_v28, %v949_v9  ;;  %v2046_v9 = vld [vmem:[%s2144_s5] sm:$0xf] }
 0x396   :  { %v968_v32 = vadd.f32 %v952_v30, %v948_v11  ;;  %v1626_v33 = vpop.f32.mrb[16].mxu1 }
 0x397   :  { %v973_v37 = vadd.f32 58.5225, %v969_v31  ;;  %v955_v38 = vsub.f32 %v1626_v33, %v1963_v45  ;;  %v750_v43 = vpop.f32.mrb[17].mxu1  ;;  %v983_v31 = vadd.f32 6.5025, %v979_v14 }
 0x398   :  { %v972_v47 = vadd.f32 58.5225, %v968_v32  ;;  %v954_v48 = vsub.f32 %v750_v43, %v1969_v49 }
 0x399   :  { %v997_v53 = vmul.f32 %v993_v34, %v973_v37  ;;  %v971_v54 = vadd.f32 %v955_v38, %v951_v13  ;;  %1725 = vrcp.f32 %v973_v37  ;;  %v982_v38 = vadd.f32 6.5025, %v978_v22 }
 0x39a   :  { %v996_v35 = vmul.f32 %v992_v44, %v972_v47  ;;  %v970_v55 = vadd.f32 %v954_v48, %v950_v15  ;;  %v837_v56 = vpop.f32.mrb[18].mxu1  ;;  %1727 = vrcp.f32 %v972_v47 }
 0x39b   :  { %v975_v57 = vadd.f32 58.5225, %v971_v54  ;;  %v1631_v58 = vpop.f32.mrb[19].mxu1  ;;  %1729 = vrcp.f32 %v997_v53 }
 0x39c   :  { %v974_v59 = vadd.f32 58.5225, %v970_v55  ;;  %1731 = vrcp.f32 %v996_v35 }
 0x39d   :  { %v999_v60 = vmul.f32 %v995_v39, %v975_v57  ;;  %1733 = vrcp.f32 %v975_v57 }
 0x39e   :  { %v998_v45 = vmul.f32 %v994_v41, %v974_v59  ;;  %v842_v61 = vpop.f32.mrb[20].mxu1  ;;  %1735 = vrcp.f32 %v974_v59 }
 0x39f   :  { %v1706_v62 = vpack.c.bf16 %v842_v61, %v837_v56  ;;  %v1634_v42 = vpop.f32.mrb[21].mxu1  ;;  %1737 = vrcp.f32 %v999_v60 }
 0x3a0   :  { %1739 = vrcp.f32 %v998_v45 }
 0x3a1   :  { %1707 = vmatprep.subr.bf16.mxu0 %v1706_v62 }
 0x3a2   :  { %1709 = vmatpush3.bf16.msra.mxu0 %v1706_v62  ;;  %v847_v49 = vpop.f32.mrb[22].mxu1 }
 0x3a3   :  { %v1637_v63 = vpop.f32.mrb[23].mxu1  ;;  %1642 = vmatprep.subr.mxu0 %v847_v49  ;;  %v1726_v21 = vpop.eup %1725 }
 0x3a6   :  { %1643 = vmatpush3.msra.mxu0 %v847_v49 }
 0x3a7   :  { %1645 = vmatmul.mubr.msk.f32.vlgmr.msra.gmra.mrb[22].mxu0 %vm133_vm3, %v1895_v16  ;;  %1650 = vmatprep.subr.mxu0 %v1765_v2  ;;  %v1056_v16 = vld [vmem:[%s2143_s4] sm:$0xff] }
 0x3a8   :  { %1647 = vmatprep.mubr.msk.f32.mxu0 %vm133_vm3, %v1900_v17  ;;  %1651 = vmatpush3.msk.msra.mxu0 %vm49_vm0, %v2046_v9  ;;  %v976_v17 = vmul.f32 2.0, %v1951_v40 }
 0x3a9   :  { %1667 = vmatprep.mubr.msk.f32.mxu1 %vm133_vm3, %v1056_v16 }
 0x3aa   :  { %v980_v13 = vadd.f32 6.5025, %v976_v17 }
 0x3ab   :  { %1648 = vmatmul.mubr.msk.f32.gmra.mrb[24].mxu0 %vm133_vm3, %v1909_v20 }
 0x3ac   :  { %1652 = vmatprep.mubr.msk.f32.mxu0 %vm1766_vm1, %v1765_v2 }
 0x3af   :  { %1653 = vmatmul.mubr.msk.f32.vlgmr.msra.gmra.mrb[26].mxu0 %vm39_vm2, %v1826_v1  ;;  %v977_v1 = vmul.f32 2.0, %v1945_v36 }
 0x3b0   :  { %1655 = vmatprep.mubr.msk.f32.mxu0 %vm1766_vm1, %v1765_v2 }
 0x3b1   :  { %v981_v10 = vadd.f32 6.5025, %v977_v1 }
 0x3b3   :  { %1656 = vmatmul.mubr.msk.f32.gmra.mrb[28].mxu0 %vm39_vm2, %v1841_v3 }
 0x3b4   :  { %1658 = vmatprep.mubr.msk.f32.mxu0 %vm1766_vm1, %v1765_v2 }
 0x3b7   :  { %1659 = vmatmul.mubr.msk.f32.gmra.mrb[30].mxu0 %vm39_vm2, %v1852_v4 }
 0x3b8   :  { %1687 = vmatprep.mubr.msk.f32.mxu0 %vm133_vm3, %v1056_v16 }
 0x47a   :  { %v1646_v3 = vpop.f32.mrb[22].mxu0 }
 0x47b   :  { %v957_v4 = vsub.f32 %v1646_v3, %v1945_v36  ;;  %v917_v20 = vpop.f32.mrb[23].mxu0 }
 0x47c   :  { %v956_v51 = vsub.f32 %v917_v20, %v1951_v40  ;;  %v1728_v40 = vpop.eup %1727  ;;  %v1057_v20 = vld [vmem:[%s2143_s4 + $0x8] sm:$0xf] }
 0x47d   :  { %v961_v52 = vmul.f32 2.0, %v957_v4  ;;  %v1730_v26 = vpop.eup %1729 }
 0x47e   :  { %v960_v11 = vmul.f32 2.0, %v956_v51  ;;  %v1649_v12 = vpop.f32.mrb[24].mxu0  ;;  %v1732_v30 = vpop.eup %1731 }
 0x47f   :  { %v965_v15 = vadd.f32 58.5225, %v961_v52  ;;  %v959_v18 = vsub.f32 %v1649_v12, %v1965_v46  ;;  %v927_v19 = vpop.f32.mrb[25].mxu0  ;;  %v1734_v37 = vpop.eup %1733 }
 0x480   :  { %v964_v36 = vadd.f32 58.5225, %v960_v11  ;;  %v958_v23 = vsub.f32 %v927_v19, %v1971_v50  ;;  %v1736_v47 = vpop.eup %1735 }
 0x481   :  { %v985_v8 = vmul.f32 %v981_v10, %v965_v15  ;;  %v1011_v24 = vmul.f32 %v1726_v21, %v965_v15  ;;  %v963_v25 = vmul.f32 2.0, %v959_v18  ;;  %v1738_v55 = vpop.eup %1737 }
 0x482   :  { %v984_v0 = vmul.f32 %v980_v13, %v964_v36  ;;  %v1009_v27 = vmul.f32 %v1728_v40, %v964_v36  ;;  %v962_v28 = vmul.f32 2.0, %v958_v23  ;;  %v1128_v29 = vpop.f32.mrb[26].mxu0  ;;  %v1740_v41 = vpop.eup %1739 }
 0x483   :  { %v1003_v46 = vmul.f32 %v1730_v26, %v985_v8  ;;  %v1038_v32 = vsel %vm1016_vm4, %v1011_v24, 0.0  ;;  %v967_v33 = vadd.f32 58.5225, %v963_v25  ;;  %v1654_v34 = vpop.f32.mrb[27].mxu0 }
 0x484   :  { %v1001_v43 = vmul.f32 %v1732_v30, %v984_v0  ;;  %v1037_v50 = vsel %vm1016_vm4, %v1009_v27, 0.0  ;;  %v966_v44 = vadd.f32 58.5225, %v962_v28 }
 0x485   :  { %v987_v48 = vmul.f32 %v983_v31, %v967_v33  ;;  %v1015_v53 = vmul.f32 %v1734_v37, %v967_v33  ;;  %v1018_v54 = vsel %vm1016_vm4, %v1003_v46, 0.0  ;;  %v1039_v35 = vadd.f32 %v1038_v32, %v1037_v50 }
 0x486   :  { %v986_v56 = vmul.f32 %v982_v38, %v966_v44  ;;  %v1013_v39 = vmul.f32 %v1736_v47, %v966_v44  ;;  %v1133_v57 = vpop.f32.mrb[28].mxu0  ;;  %v1017_v58 = vsel %vm1016_vm4, %v1001_v43, 0.0 }
 0x487   :  { %v1710_v59 = vpack.c.bf16 %v1133_v57, %v1128_v29  ;;  %v1657_v60 = vpop.f32.mrb[29].mxu0  ;;  %v1007_v45 = vmul.f32 %v1738_v55, %v987_v48  ;;  %v1019_v61 = vadd.f32 %v1018_v54, %v1017_v58  ;;  %v1042_v1 = vsel %vm1022_vm5, %v1015_v53, 0.0 }
 0x488   :  { %v1005_v62 = vmul.f32 %v1740_v41, %v986_v56  ;;  %v1040_v42 = vsel %vm1016_vm4, %v1013_v39, 0.0 }
 0x489   :  { %1711 = vmatprep.subr.bf16.mxu1 %v1710_v59  ;;  %v1041_v49 = vadd.f32 %v1040_v42, %v1039_v35  ;;  %v1023_v51 = vsel %vm1022_vm5, %v1007_v45, 0.0 }
 0x48a   :  { %1713 = vmatpush3.bf16.msra.mxu1 %v1710_v59  ;;  %v1138_v63 = vpop.f32.mrb[30].mxu0  ;;  %v1020_v16 = vsel %vm1016_vm4, %v1005_v62, 0.0 }
 0x48b   :  { %v1660_v3 = vpop.f32.mrb[31].mxu0  ;;  %1665 = vmatprep.subr.mxu1 %v1138_v63  ;;  %v1021_v17 = vadd.f32 %v1020_v16, %v1019_v61  ;;  %v1043_v4 = vadd.f32 %v1042_v1, %v1041_v49 }
 0x48d   :  { %v1024_v52 = vadd.f32 %v1023_v51, %v1021_v17 }
 0x48e   :  { %1666 = vmatpush3.msra.mxu1 %v1138_v63 }
 0x48f   :  { %1668 = vmatmul.mubr.msk.f32.vlgmr.msra.gmra.mrb[24].mxu1 %vm133_vm3, %v1057_v20  ;;  %1025 = vadd.xlane.f32.xlu0 %v1024_v52 }
 0x490   :  { %1670 = vmatprep.subr.mxu1 %v1765_v2  ;;  %1672 = vmatprep.mubr.msk.f32.mxu1 %vm1766_vm1, %v1765_v2 }
 0x491   :  { %1671 = vmatpush3.msk.msra.mxu1 %vm49_vm0, %v2046_v9 }
 0x493   :  { %1673 = vmatmul.mubr.msk.f32.vlgmr.msra.gmra.mrb[26].mxu1 %vm39_vm2, %v1859_v5  ;;  %1044 = vadd.xlane.f32.xlu0 %v1043_v4 }
 0x494   :  { %1675 = vmatprep.mubr.msk.f32.mxu1 %vm1766_vm1, %v1765_v2 }
 0x497   :  { %1676 = vmatmul.mubr.msk.f32.gmra.mrb[28].mxu1 %vm39_vm2, %v1870_v6 }
 0x498   :  { %1678 = vmatprep.mubr.msk.f32.mxu1 %vm1766_vm1, %v1765_v2 }
 0x49b   :  { %1679 = vmatmul.mubr.msk.f32.gmra.mrb[30].mxu1 %vm39_vm2, %v1879_v7 }
 0x51c   :  { %v1026_v10 = vpop.xlane.xlu0 %1025 }
 0x51d   :  { %v1027_v11 = vrot.slane %v1026_v10, 4 }
 0x51f   :  { %v1028_v12 = vadd.f32 %v1027_v11, %v1026_v10 }
 0x520   :  { %v1045_v9 = vpop.xlane.xlu0 %1044 }
 0x521   :  { %v1029_v13 = vrot.slane %v1028_v12, 2  ;;  %v1046_v14 = vrot.slane %v1045_v9, 4 }
 0x523   :  { %v1047_v5 = vadd.f32 %v1046_v14, %v1045_v9  ;;  %v1030_v15 = vadd.f32 %v1029_v13, %v1028_v12 }
 0x525   :  { %v1048_v18 = vrot.slane %v1047_v5, 2  ;;  %v1031_v19 = vrot.slane %v1030_v15, 1 }
 0x527   :  { %v1049_v21 = vadd.f32 %v1048_v18, %v1047_v5  ;;  %v1032_v22 = vadd.f32 %v1031_v19, %v1030_v15 }
 0x529   :  { %1718 = vpush %v1032_v22  ;;  %v1050_v6 = vrot.slane %v1049_v21, 1 }
 0x52b   :  { %v1051_v36 = vadd.f32 %v1050_v6, %v1049_v21 }
 0x52d   :  { %1720 = vpush %v1051_v36 }
 0x55a   :  { %s1719_s4 = spop %1718 }
 0x55b   :  { %v1034_v2 = vstv %s1719_s4 }
 0x55c   :  { %1036 = vst [vmem:[#allocation2] sm:$0x1] %v1034_v2 }
 0x55e   :  { %s1721_s11 = spop %1720 }
 0x55f   :  { %v1053_v7 = vstv %s1721_s11 }
 0x560   :  { %1055 = vst [vmem:[%s2146_s7] sm:$0x1] %v1053_v7  ;;  %s1767_s7 = smov [#allocation2]  }
 0x561   :  { %s1390_s17 = sshll.u32 %s1767_s7, 4  ;;  %s1391_s17 = int_to_ptr.vmem [resolvable:$true] %s1390_s17 }
 0x562   :  { %v1669_v23 = vpop.f32.mrb[24].mxu1  ;;  %s1741_s18 = scalar_lea.vmem %s1391_s17, 16  ;;  %s1745_s0 = scalar_lea.vmem %s1391_s17, 32 }
 0x563   :  { %1226 = vst.msk [vmem:[%s2147_s8 + $0x8] sm:$0xf] %vm1225_vm6, %v1669_v23  ;;  %v1214_v40 = vpop.f32.mrb[25].mxu1  ;;  %p1742_p0 = scmp.ne.s32.totalorder %s1391_s17, %s1741_s18  ;;  %p1746_p1 = scmp.lt.s32.totalorder %s1391_s17, %s1391_s17 }
 0x564   :  { %1224 = vst.msk [vmem:[%s2147_s8] sm:$0xff] %vm1223_vm7, %v1214_v40  ;;  %p1747_p2 = scmp.lt.s32.totalorder %s1745_s0, %s1741_s18 }
 0x566   :  { %v1293_v8 = vpop.f32.mrb[26].mxu1  ;;  %p1748_p3 = por %p1747_p2, %p1746_p1 }
 0x567   :  { %v1674_v24 = vpop.f32.mrb[27].mxu1 }
 0x568   :  { %p1749_p4 = pnand %p1748_p3, %p1742_p0 }
 0x56a   :  { %v1298_v25 = vpop.f32.mrb[28].mxu1 }
 0x56b   :  { %v1714_v26 = vpack.c.bf16 %v1298_v25, %v1293_v8  ;;  %v1677_v0 = vpop.f32.mrb[29].mxu1 }
 0x56d   :  { %1715 = vmatprep.subr.bf16.mxu0 %v1714_v26 }
 0x56e   :  { %1717 = vmatpush3.bf16.msra.mxu0 %v1714_v26  ;;  %v1303_v27 = vpop.f32.mrb[30].mxu1 }
 0x56f   :  { %v1680_v28 = vpop.f32.mrb[31].mxu1  ;;  %1685 = vmatprep.subr.mxu0 %v1303_v27 }
 0x572   :  { %1686 = vmatpush3.msra.mxu0 %v1303_v27 }
 0x573   :  { %1688 = vmatmul.mubr.msk.f32.vlgmr.msra.gmra.mrb[32].mxu0 %vm133_vm3, %v1057_v20 }
 0x574   :  { %1752 = shalt.err (!%p1749_p4)
}
 0x575   :  { %s1753_s20 = scalar_lea.hbm %s2145_s6, 16 }
 0x576   :  { %p1754_p5 = scmp.ne.s32.totalorder %s2145_s6, %s1753_s20  ;;  %p1757_p6 = scmp.lt.u32.totalorder %s1753_s20, %s2145_s6 }
 0x578   :  { %p1759_p7 = pnand %p1757_p6, %p1754_p5 }
 0x57a   :  { %1762 = shalt.err (!%p1759_p7)
}
 0x57b   :  { %1393 = dma.vmem_to_hbm [thread:$0]  %s1391_s17, 16, %s2145_s6, [#allocation3]  }
 0x646   :  { %v1689_v29 = vpop.f32.mrb[32].mxu0 }
 0x647   :  { %1383 = vst.msk [vmem:[%s2148_s9 + $0x8] sm:$0xf] %vm1225_vm6, %v1689_v29  ;;  %v1373_v30 = vpop.f32.mrb[33].mxu0 }
 0x648   :  { %1382 = vst.msk [vmem:[%s2148_s9] sm:$0xff] %vm1223_vm7, %v1373_v30 }
 0x649   :  { %1763 = dma.done.wait [#allocation3], 16  }
 0x64a   :  { %1764 = vsyncadd [#allocation3], 4294967280 }
 0x64b   :  { %1409 = vsyncpa [#allocation3], 1 }

// kernel: ms_ssim.7
= control target key start
LH: loop header
LB: loop body
LE: loop exit
PB: predicated region body
PF: predicated region fallthrough
CT: control target
= control target key end

     0   :  { %vm47_vm0 = vcmask 64512   ;;  %s2657_s0 = inlined_call_operand.vmem [shape: f32[48,8], index: 0, kind: input, shape index: {}]   ;;  %s2658_s1 = inlined_call_operand.vmem [shape: f32[48,8], index: 1, kind: input, shape index: {}]   ;;  %s2659_s2 = inlined_call_operand.vmem [shape: f32[48,48], index: 2, kind: input, shape index: {}]   ;;  %s2660_s3 = inlined_call_operand.vmem [shape: f32[8,8], index: 3, kind: input, shape index: {}]   ;;  %s2661_s4 = inlined_call_operand.vmem [shape: f32[24,48], index: 4, kind: input, shape index: {}]   ;;  %s2662_s5 = inlined_call_operand.vmem [shape: f32[8,4], index: 5, kind: input, shape index: {}]   ;;  %s2663_s6 = inlined_call_operand.hbm [shape: f32[1,1,128], index: 6, kind: output, shape index: {0}]   ;;  %s2664_s7 = inlined_call_operand.vmem [shape: f32[1,1,128], index: 7, kind: output, shape index: {1}]   ;;  %s2665_s8 = inlined_call_operand.vmem [shape: f32[24,4], index: 8, kind: output, shape index: {2}]   ;;  %s2666_s9 = inlined_call_operand.vmem [shape: f32[24,4], index: 9, kind: output, shape index: {3}]  }
   0x1   :  { %v46_v0 = vld [vmem:[%s2660_s3] sm:$0xff]  ;;  %v2321_v2 = vld [vmem:[%s2657_s0 + $0x8] sm:$0xff]  ;;  %v2328_v3 = vld [vmem:[%s2657_s0 + $0x10] sm:$0xff] }
   0x2   :  { %v2316_v1 = vld [vmem:[%s2657_s0] sm:$0xff]  ;;  %1892 = vmatprep.subr.mxu0 %v46_v0  ;;  %v2337_v4 = vld [vmem:[%s2657_s0 + $0x18] sm:$0xff] }
   0x3   :  { %1894 = vmatprep.mubr.msk.f32.mxu0 %vm47_vm0, %v2316_v1  ;;  %1893 = vmatpush3.msra.mxu0 %v46_v0 }
   0x4   :  { %1895 = vmatmul.mubr.msk.f32.vlgmr.msra.gmra.mrb[0].mxu0 %vm47_vm0, %v2321_v2  ;;  %1924 = vmatprep.subr.mxu0 %v46_v0 }
   0x5   :  { %1925 = vmatpush3.msra.mxu0 %v46_v0  ;;  %1897 = vmatprep.mubr.msk.f32.mxu0 %vm47_vm0, %v2328_v3 }
   0x6   :  { %15 = vsyncpa [#allocation3], 0  ;;  %v2342_v5 = vld [vmem:[%s2657_s0 + $0x20] sm:$0xff]  ;;  %1956 = vmatprep.subr.mxu0 %v46_v0  ;;  %v2351_v6 = vld [vmem:[%s2657_s0 + $0x28] sm:$0xff]  ;;  %v483_v13 = vmul.f32 %v2316_v1, %v2316_v1  ;;  %v484_v14 = vmul.f32 %v2321_v2, %v2321_v2  ;;  %v485_v15 = vmul.f32 %v2328_v3, %v2328_v3  ;;  %v486_v16 = vmul.f32 %v2337_v4, %v2337_v4 }
   0x7   :  { %v2356_v7 = vld [vmem:[%s2658_s1] sm:$0xff]  ;;  %v2363_v8 = vld [vmem:[%s2658_s1 + $0x8] sm:$0xff]  ;;  %v2370_v9 = vld [vmem:[%s2658_s1 + $0x10] sm:$0xff]  ;;  %v487_v17 = vmul.f32 %v2342_v5, %v2342_v5  ;;  %v488_v18 = vmul.f32 %v2351_v6, %v2351_v6  ;;  %vm161_vm1 = vcmask 392192   ;;  %vm2257_vm2 = vmmov 0  }
   0x8   :  { %1898 = vmatmul.mubr.msk.f32.gmra.mrb[2].mxu0 %vm47_vm0, %v2337_v4  ;;  %v2379_v10 = vld [vmem:[%s2658_s1 + $0x18] sm:$0xff]  ;;  %v2384_v11 = vld [vmem:[%s2658_s1 + $0x20] sm:$0xff]  ;;  %v39_v12 = vld [vmem:[%s2658_s1 + $0x28] sm:$0xff]  ;;  %v697_v19 = vmul.f32 %v2356_v7, %v2356_v7  ;;  %v698_v20 = vmul.f32 %v2363_v8, %v2363_v8  ;;  %v699_v21 = vmul.f32 %v2370_v9, %v2370_v9  ;;  %v911_v25 = vmul.f32 %v2356_v7, %v2316_v1 }
   0x9   :  { %1900 = vmatprep.mubr.msk.f32.mxu0 %vm47_vm0, %v2342_v5  ;;  %v700_v22 = vmul.f32 %v2379_v10, %v2379_v10  ;;  %v701_v23 = vmul.f32 %v2384_v11, %v2384_v11  ;;  %v702_v24 = vmul.f32 %v39_v12, %v39_v12  ;;  %v912_v26 = vmul.f32 %v2363_v8, %v2321_v2  ;;  %v2450_v31 = vld [vmem:[%s2659_s2] sm:$0xff]  ;;  %v2481_v44 = vld [vmem:[%s2659_s2 + $0x8] sm:$0xff]  ;;  %v2486_v46 = vld [vmem:[%s2659_s2 + $0x10] sm:$0xff] }
   0xa   :  { %v913_v27 = vmul.f32 %v2370_v9, %v2328_v3  ;;  %v914_v28 = vmul.f32 %v2379_v10, %v2337_v4  ;;  %v915_v29 = vmul.f32 %v2384_v11, %v2342_v5  ;;  %v916_v30 = vmul.f32 %v39_v12, %v2351_v6  ;;  %1915 = vmatprep.mubr.msk.f32.mxu1 %vm161_vm1, %v2450_v31  ;;  %v1294_v32 = vld [vmem:[%s2662_s5] sm:$0xff]  ;;  %v2495_v49 = vld [vmem:[%s2659_s2 + $0x18] sm:$0xff]  ;;  %v2509_v54 = vld [vmem:[%s2659_s2 + $0x28] sm:$0xff] }
   0xb   :  { %v2500_v51 = vld [vmem:[%s2659_s2 + $0x20] sm:$0xff]  ;;  %vm1479_vm3 = vcmask 31744  }
   0xc   :  { %1901 = vmatmul.mubr.msk.f32.gmra.mrb[4].mxu0 %vm47_vm0, %v2351_v6 }
   0xd   :  { %1926 = vmatprep.mubr.msk.f32.mxu0 %vm47_vm0, %v2356_v7 }
  0x10   :  { %1927 = vmatmul.mubr.msk.f32.vlgmr.msra.gmra.mrb[6].mxu0 %vm47_vm0, %v2363_v8 }
  0x11   :  { %1957 = vmatpush3.msra.mxu0 %v46_v0  ;;  %1929 = vmatprep.mubr.msk.f32.mxu0 %vm47_vm0, %v2370_v9 }
  0x12   :  { %1988 = vmatprep.subr.mxu0 %v46_v0 }
  0x14   :  { %1930 = vmatmul.mubr.msk.f32.gmra.mrb[8].mxu0 %vm47_vm0, %v2379_v10 }
  0x15   :  { %1932 = vmatprep.mubr.msk.f32.mxu0 %vm47_vm0, %v2384_v11 }
  0x18   :  { %1933 = vmatmul.mubr.msk.f32.gmra.mrb[10].mxu0 %vm47_vm0, %v39_v12 }
  0x19   :  { %1958 = vmatprep.mubr.msk.f32.mxu0 %vm47_vm0, %v483_v13 }
  0x1c   :  { %1959 = vmatmul.mubr.msk.f32.vlgmr.msra.gmra.mrb[12].mxu0 %vm47_vm0, %v484_v14 }
  0x1d   :  { %1989 = vmatpush3.msra.mxu0 %v46_v0  ;;  %1961 = vmatprep.mubr.msk.f32.mxu0 %vm47_vm0, %v485_v15 }
  0x1e   :  { %2020 = vmatprep.subr.mxu0 %v46_v0 }
  0x20   :  { %1962 = vmatmul.mubr.msk.f32.gmra.mrb[14].mxu0 %vm47_vm0, %v486_v16 }
  0x21   :  { %1964 = vmatprep.mubr.msk.f32.mxu0 %vm47_vm0, %v487_v17 }
  0x24   :  { %1965 = vmatmul.mubr.msk.f32.gmra.mrb[16].mxu0 %vm47_vm0, %v488_v18 }
  0x25   :  { %1990 = vmatprep.mubr.msk.f32.mxu0 %vm47_vm0, %v697_v19 }
  0x28   :  { %1991 = vmatmul.mubr.msk.f32.vlgmr.msra.gmra.mrb[18].mxu0 %vm47_vm0, %v698_v20 }
  0x29   :  { %2021 = vmatpush3.msra.mxu0 %v46_v0  ;;  %1993 = vmatprep.mubr.msk.f32.mxu0 %vm47_vm0, %v699_v21 }
  0x2a   :  { %2052 = vmatprep.subr.mxu0 %v1294_v32 }
  0x2c   :  { %1994 = vmatmul.mubr.msk.f32.gmra.mrb[20].mxu0 %vm47_vm0, %v700_v22  ;;  %v2256_v22 = vmov 0.0|0.0  }
  0x2d   :  { %1996 = vmatprep.mubr.msk.f32.mxu0 %vm47_vm0, %v701_v23 }
  0x30   :  { %1997 = vmatmul.mubr.msk.f32.gmra.mrb[22].mxu0 %vm47_vm0, %v702_v24 }
  0x31   :  { %2022 = vmatprep.mubr.msk.f32.mxu0 %vm47_vm0, %v911_v25 }
  0x34   :  { %2023 = vmatmul.mubr.msk.f32.vlgmr.msra.gmra.mrb[24].mxu0 %vm47_vm0, %v912_v26 }
  0x35   :  { %2025 = vmatprep.mubr.msk.f32.mxu0 %vm47_vm0, %v913_v27  ;;  %2053 = vmatpush3.msra.mxu0 %v1294_v32 }
  0x36   :  { %2084 = vmatprep.subr.mxu0 %v1294_v32 }
  0x38   :  { %2026 = vmatmul.mubr.msk.f32.gmra.mrb[26].mxu0 %vm47_vm0, %v914_v28 }
  0x39   :  { %2028 = vmatprep.mubr.msk.f32.mxu0 %vm47_vm0, %v915_v29 }
  0x3c   :  { %2029 = vmatmul.mubr.msk.f32.gmra.mrb[28].mxu0 %vm47_vm0, %v916_v30 }
  0x3d   :  { %2054 = vmatprep.mubr.msk.f32.mxu0 %vm47_vm0, %v2316_v1 }
  0x40   :  { %2055 = vmatmul.mubr.msk.f32.vlgmr.msra.gmra.mrb[30].mxu0 %vm47_vm0, %v2321_v2 }
  0x41   :  { %2085 = vmatpush3.msra.mxu0 %v1294_v32  ;;  %2057 = vmatprep.mubr.msk.f32.mxu0 %vm47_vm0, %v2328_v3  ;;  %v2258_v32 = vmov 0.0  }
  0x42   :  { %2185 = vmatprep.subr.bf16.mxu0 %v2256_v22 }
  0x44   :  { %2058 = vmatmul.mubr.msk.f32.gmra.mrb[32].mxu0 %vm47_vm0, %v2337_v4 }
  0x45   :  { %2060 = vmatprep.mubr.msk.f32.mxu0 %vm47_vm0, %v2342_v5 }
  0x48   :  { %2061 = vmatmul.mubr.msk.f32.gmra.mrb[34].mxu0 %vm47_vm0, %v2351_v6 }
  0x49   :  { %2086 = vmatprep.mubr.msk.f32.mxu0 %vm47_vm0, %v2356_v7 }
  0x4c   :  { %2087 = vmatmul.mubr.msk.f32.vlgmr.msra.gmra.mrb[36].mxu0 %vm47_vm0, %v2363_v8 }
  0x4d   :  { %2089 = vmatprep.mubr.msk.f32.mxu0 %vm47_vm0, %v2370_v9 }
  0x50   :  { %2090 = vmatmul.mubr.msk.f32.gmra.mrb[38].mxu0 %vm47_vm0, %v2379_v10 }
  0x51   :  { %2092 = vmatprep.mubr.msk.f32.mxu0 %vm47_vm0, %v2384_v11 }
  0x54   :  { %2093 = vmatmul.mubr.msk.f32.gmra.mrb[40].mxu0 %vm47_vm0, %v39_v12 }
  0x55   :  { %2107 = vmatprep.mubr.msk.f32.mxu0 %vm2257_vm2, %v2258_v32 }
  0xd7   :  { %v1896_v33 = vpop.f32.mrb[0].mxu0 }
  0xd8   :  { %v132_v34 = vpop.f32.mrb[1].mxu0 }
  0xd9   :  { %v2116_v35 = vpack.c.bf16 %v1896_v33, %v132_v34  ;;  %v1291_v33 = vld [vmem:[%s2661_s4] sm:$0xff] }
  0xdb   :  { %v1899_v36 = vpop.f32.mrb[2].mxu0  ;;  %2117 = vmatprep.subr.bf16.mxu1 %v2116_v35 }
  0xdc   :  { %v142_v37 = vpop.f32.mrb[3].mxu0  ;;  %2119 = vmatpush3.bf16.msra.mxu1 %v2116_v35 }
  0xdd   :  { %v2120_v38 = vpack.c.bf16 %v1899_v36, %v142_v37  ;;  %v1292_v37 = vld [vmem:[%s2661_s4 + $0x8] sm:$0xff] }
  0xdf   :  { %v1902_v39 = vpop.f32.mrb[4].mxu0  ;;  %2121 = vmatprep.subr.bf16.mxu1 %v2120_v38 }
  0xe0   :  { %v152_v40 = vpop.f32.mrb[5].mxu0  ;;  %2123 = vmatpush3.bf16.msra.mxu1 %v2120_v38 }
  0xe1   :  { %v2124_v41 = vpack.c.bf16 %v1902_v39, %v152_v40 }
  0xe3   :  { %2125 = vmatprep.subr.bf16.mxu1 %v2124_v41  ;;  %v1928_v42 = vpop.f32.mrb[6].mxu0 }
  0xe4   :  { %2127 = vmatpush3.bf16.msra.mxu1 %v2124_v41  ;;  %v359_v43 = vpop.f32.mrb[7].mxu0  ;;  %v1293_v41 = vld [vmem:[%s2661_s4 + $0x10] sm:$0xff] }
  0xe5   :  { %v2128_v45 = vpack.c.bf16 %v1928_v42, %v359_v43 }
  0xe7   :  { %1916 = vmatmul.mubr.msk.f32.vlgmr.msra.gmra.mrb[0].mxu1 %vm161_vm1, %v2481_v44  ;;  %v1931_v47 = vpop.f32.mrb[8].mxu0  ;;  %2129 = vmatprep.subr.bf16.mxu1 %v2128_v45 }
  0xe8   :  { %v369_v48 = vpop.f32.mrb[9].mxu0  ;;  %2131 = vmatpush3.bf16.msra.mxu1 %v2128_v45  ;;  %1918 = vmatprep.mubr.msk.f32.mxu1 %vm161_vm1, %v2486_v46 }
  0xe9   :  { %v2132_v50 = vpack.c.bf16 %v1931_v47, %v369_v48 }
  0xeb   :  { %1919 = vmatmul.mubr.msk.f32.gmra.mrb[2].mxu1 %vm161_vm1, %v2495_v49  ;;  %v1934_v52 = vpop.f32.mrb[10].mxu0  ;;  %2133 = vmatprep.subr.bf16.mxu1 %v2132_v50 }
  0xec   :  { %v379_v53 = vpop.f32.mrb[11].mxu0  ;;  %2135 = vmatpush3.bf16.msra.mxu1 %v2132_v50  ;;  %1921 = vmatprep.mubr.msk.f32.mxu1 %vm161_vm1, %v2500_v51 }
  0xed   :  { %v2136_v55 = vpack.c.bf16 %v1934_v52, %v379_v53 }
  0xef   :  { %1922 = vmatmul.mubr.msk.f32.gmra.mrb[4].mxu1 %vm161_vm1, %v2509_v54  ;;  %2137 = vmatprep.subr.bf16.mxu1 %v2136_v55  ;;  %v1960_v56 = vpop.f32.mrb[12].mxu0 }
  0xf0   :  { %2139 = vmatpush3.bf16.msra.mxu1 %v2136_v55  ;;  %v573_v57 = vpop.f32.mrb[13].mxu0  ;;  %1947 = vmatprep.mubr.msk.f32.mxu1 %vm161_vm1, %v2450_v31 }
  0xf1   :  { %v2140_v58 = vpack.c.bf16 %v1960_v56, %v573_v57 }
  0xf3   :  { %1948 = vmatmul.mubr.msk.f32.vlgmr.msra.gmra.mrb[6].mxu1 %vm161_vm1, %v2481_v44  ;;  %v1963_v59 = vpop.f32.mrb[14].mxu0  ;;  %2141 = vmatprep.subr.bf16.mxu1 %v2140_v58 }
  0xf4   :  { %v583_v60 = vpop.f32.mrb[15].mxu0  ;;  %2143 = vmatpush3.bf16.msra.mxu1 %v2140_v58  ;;  %1950 = vmatprep.mubr.msk.f32.mxu1 %vm161_vm1, %v2486_v46 }
  0xf5   :  { %v2144_v61 = vpack.c.bf16 %v1963_v59, %v583_v60 }
  0xf7   :  { %1951 = vmatmul.mubr.msk.f32.gmra.mrb[8].mxu1 %vm161_vm1, %v2495_v49  ;;  %v1966_v62 = vpop.f32.mrb[16].mxu0  ;;  %2145 = vmatprep.subr.bf16.mxu1 %v2144_v61 }
  0xf8   :  { %v593_v63 = vpop.f32.mrb[17].mxu0  ;;  %2147 = vmatpush3.bf16.msra.mxu1 %v2144_v61  ;;  %1953 = vmatprep.mubr.msk.f32.mxu1 %vm161_vm1, %v2500_v51 }
  0xf9   :  { %v2148_v0 = vpack.c.bf16 %v1966_v62, %v593_v63 }
  0xfb   :  { %1954 = vmatmul.mubr.msk.f32.gmra.mrb[10].mxu1 %vm161_vm1, %v2509_v54  ;;  %2149 = vmatprep.subr.bf16.mxu1 %v2148_v0  ;;  %v1992_v1 = vpop.f32.mrb[18].mxu0 }
  0xfc   :  { %2151 = vmatpush3.bf16.msra.mxu1 %v2148_v0  ;;  %v787_v2 = vpop.f32.mrb[19].mxu0  ;;  %1979 = vmatprep.mubr.msk.f32.mxu1 %vm161_vm1, %v2450_v31 }
  0xfd   :  { %v2152_v3 = vpack.c.bf16 %v1992_v1, %v787_v2 }
  0xff   :  { %1980 = vmatmul.mubr.msk.f32.vlgmr.msra.gmra.mrb[12].mxu1 %vm161_vm1, %v2481_v44  ;;  %v1995_v4 = vpop.f32.mrb[20].mxu0  ;;  %2153 = vmatprep.subr.bf16.mxu1 %v2152_v3 }
 0x100   :  { %v797_v5 = vpop.f32.mrb[21].mxu0  ;;  %2155 = vmatpush3.bf16.msra.mxu1 %v2152_v3  ;;  %1982 = vmatprep.mubr.msk.f32.mxu1 %vm161_vm1, %v2486_v46 }
 0x101   :  { %v2156_v6 = vpack.c.bf16 %v1995_v4, %v797_v5 }
 0x103   :  { %1983 = vmatmul.mubr.msk.f32.gmra.mrb[14].mxu1 %vm161_vm1, %v2495_v49  ;;  %v1998_v7 = vpop.f32.mrb[22].mxu0  ;;  %2157 = vmatprep.subr.bf16.mxu1 %v2156_v6 }
 0x104   :  { %v807_v8 = vpop.f32.mrb[23].mxu0  ;;  %2159 = vmatpush3.bf16.msra.mxu1 %v2156_v6  ;;  %1985 = vmatprep.mubr.msk.f32.mxu1 %vm161_vm1, %v2500_v51 }
 0x105   :  { %v2160_v9 = vpack.c.bf16 %v1998_v7, %v807_v8 }
 0x107   :  { %1986 = vmatmul.mubr.msk.f32.gmra.mrb[16].mxu1 %vm161_vm1, %v2509_v54  ;;  %2161 = vmatprep.subr.bf16.mxu1 %v2160_v9  ;;  %v2024_v10 = vpop.f32.mrb[24].mxu0 }
 0x108   :  { %2163 = vmatpush3.bf16.msra.mxu1 %v2160_v9  ;;  %v1001_v11 = vpop.f32.mrb[25].mxu0  ;;  %2011 = vmatprep.mubr.msk.f32.mxu1 %vm161_vm1, %v2450_v31 }
 0x109   :  { %v2164_v12 = vpack.c.bf16 %v2024_v10, %v1001_v11 }
 0x10b   :  { %2012 = vmatmul.mubr.msk.f32.vlgmr.msra.gmra.mrb[18].mxu1 %vm161_vm1, %v2481_v44  ;;  %v2027_v13 = vpop.f32.mrb[26].mxu0  ;;  %2165 = vmatprep.subr.bf16.mxu1 %v2164_v12 }
 0x10c   :  { %v1011_v14 = vpop.f32.mrb[27].mxu0  ;;  %2167 = vmatpush3.bf16.msra.mxu1 %v2164_v12  ;;  %2014 = vmatprep.mubr.msk.f32.mxu1 %vm161_vm1, %v2486_v46 }
 0x10d   :  { %v2168_v15 = vpack.c.bf16 %v2027_v13, %v1011_v14 }
 0x10f   :  { %2015 = vmatmul.mubr.msk.f32.gmra.mrb[20].mxu1 %vm161_vm1, %v2495_v49  ;;  %v2030_v16 = vpop.f32.mrb[28].mxu0  ;;  %2169 = vmatprep.subr.bf16.mxu1 %v2168_v15 }
 0x110   :  { %v1021_v17 = vpop.f32.mrb[29].mxu0  ;;  %2171 = vmatpush3.bf16.msra.mxu1 %v2168_v15  ;;  %2017 = vmatprep.mubr.msk.f32.mxu1 %vm161_vm1, %v2500_v51 }
 0x111   :  { %v2172_v18 = vpack.c.bf16 %v2030_v16, %v1021_v17 }
 0x113   :  { %2018 = vmatmul.mubr.msk.f32.gmra.mrb[22].mxu1 %vm161_vm1, %v2509_v54  ;;  %2173 = vmatprep.subr.bf16.mxu1 %v2172_v18  ;;  %v2056_v19 = vpop.f32.mrb[30].mxu0 }
 0x114   :  { %2175 = vmatpush3.bf16.msra.mxu1 %v2172_v18  ;;  %2043 = vmatprep.mubr.msk.f32.mxu1 %vm161_vm1, %v2450_v31  ;;  %v1361_v20 = vpop.f32.mrb[31].mxu0 }
 0x115   :  { %v2177_v21 = vpack.c.bf16 %v2056_v19, %v1361_v20  ;;  %2176 = vmatprep.subr.bf16.mxu1 %v2256_v22 }
 0x117   :  { %2044 = vmatmul.mubr.msk.f32.vlgmr.msra.gmra.mrb[24].mxu1 %vm161_vm1, %v2481_v44  ;;  %v2059_v23 = vpop.f32.mrb[32].mxu0 }
 0x118   :  { %2046 = vmatprep.mubr.msk.f32.mxu1 %vm161_vm1, %v2486_v46  ;;  %2178 = vmatpush3.bf16.msra.mxu1 %v2177_v21  ;;  %v1371_v24 = vpop.f32.mrb[33].mxu0 }
 0x119   :  { %2179 = vmatprep.subr.bf16.mxu1 %v2256_v22  ;;  %v2180_v25 = vpack.c.bf16 %v2059_v23, %v1371_v24 }
 0x11b   :  { %2047 = vmatmul.mubr.msk.f32.gmra.mrb[26].mxu1 %vm161_vm1, %v2495_v49  ;;  %v2062_v26 = vpop.f32.mrb[34].mxu0 }
 0x11c   :  { %2049 = vmatprep.mubr.msk.f32.mxu1 %vm161_vm1, %v2500_v51  ;;  %2181 = vmatpush3.bf16.msra.mxu1 %v2180_v25  ;;  %v1381_v27 = vpop.f32.mrb[35].mxu0 }
 0x11d   :  { %2182 = vmatprep.subr.bf16.mxu1 %v2256_v22  ;;  %v2183_v28 = vpack.c.bf16 %v2062_v26, %v1381_v27 }
 0x11f   :  { %2050 = vmatmul.mubr.msk.f32.gmra.mrb[28].mxu1 %vm161_vm1, %v2509_v54  ;;  %v2088_v29 = vpop.f32.mrb[36].mxu0 }
 0x120   :  { %2184 = vmatpush3.bf16.msra.mxu1 %v2183_v28  ;;  %v1549_v30 = vpop.f32.mrb[37].mxu0  ;;  %2075 = vmatprep.mubr.msk.f32.mxu1 %vm2257_vm2, %v2258_v32 }
 0x121   :  { %2194 = vmatprep.subr.bf16.mxu1 %v2256_v22  ;;  %v2186_v31 = vpack.c.bf16 %v2088_v29, %v1549_v30 }
 0x123   :  { %2076 = vmatmul.mubr.msk.f32.vlgmr.msra.gmra.mrb[30].mxu1 %vm161_vm1, %v1291_v33  ;;  %v2091_v34 = vpop.f32.mrb[38].mxu0  ;;  %2187 = vmatpush3.bf16.msra.mxu0 %v2186_v31 }
 0x124   :  { %2197 = vmatpush3.bf16.msra.mxu1 %v2186_v31  ;;  %v1559_v35 = vpop.f32.mrb[39].mxu0  ;;  %2078 = vmatprep.mubr.msk.f32.mxu1 %vm2257_vm2, %v2258_v32 }
 0x125   :  { %2188 = vmatprep.subr.bf16.mxu0 %v2256_v22  ;;  %v2189_v36 = vpack.c.bf16 %v2091_v34, %v1559_v35  ;;  %2195 = vmatprep.subr.bf16.mxu1 %v2256_v22 }
 0x127   :  { %2079 = vmatmul.mubr.msk.f32.gmra.mrb[32].mxu1 %vm161_vm1, %v1292_v37  ;;  %2190 = vmatpush3.bf16.msra.mxu0 %v2189_v36  ;;  %v2094_v38 = vpop.f32.mrb[40].mxu0 }
 0x128   :  { %2198 = vmatpush3.bf16.msra.mxu1 %v2189_v36  ;;  %2081 = vmatprep.mubr.msk.f32.mxu1 %vm2257_vm2, %v2258_v32  ;;  %v1569_v39 = vpop.f32.mrb[41].mxu0 }
 0x129   :  { %2191 = vmatprep.subr.bf16.mxu0 %v2256_v22  ;;  %2196 = vmatprep.subr.bf16.mxu1 %v2256_v22  ;;  %v2192_v40 = vpack.c.bf16 %v2094_v38, %v1569_v39 }
 0x12b   :  { %2082 = vmatmul.mubr.msk.f32.gmra.mrb[34].mxu1 %vm161_vm1, %v1293_v41  ;;  %2193 = vmatpush3.bf16.msra.mxu0 %v2192_v40 }
 0x12c   :  { %2199 = vmatpush3.bf16.msra.mxu1 %v2192_v40  ;;  %2110 = vmatprep.mubr.msk.f32.mxu1 %vm2257_vm2, %v2258_v32 }
 0x12e   :  { %2108 = vmatmul.mubr.msk.f32.vlgmr.msra.gmra.mrb[42].mxu0 %vm161_vm1, %v1291_v33 }
 0x12f   :  { %2111 = vmatmul.mubr.msk.f32.vlgmr.msra.gmra.mrb[36].mxu1 %vm161_vm1, %v1292_v37 }
 0x130   :  { %2113 = vmatprep.mubr.msk.f32.mxu1 %vm2257_vm2, %v2258_v32 }
 0x133   :  { %2114 = vmatmul.mubr.msk.f32.gmra.mrb[38].mxu1 %vm161_vm1, %v1293_v41 }
 0x1ba   :  { %v1917_v42 = vpop.f32.mrb[0].mxu1 }
 0x1bb   :  { %v246_v43 = vpop.f32.mrb[1].mxu1  ;;  %v1126_v49 = vmul.f32 %v1917_v42, %v1917_v42 }
 0x1bc   :  { %v1125_v53 = vmul.f32 %v246_v43, %v246_v43 }
 0x1be   :  { %v1920_v44 = vpop.f32.mrb[2].mxu1 }
 0x1bf   :  { %v256_v45 = vpop.f32.mrb[3].mxu1  ;;  %v1128_v59 = vmul.f32 %v1920_v44, %v1920_v44 }
 0x1c0   :  { %v1127_v63 = vmul.f32 %v256_v45, %v256_v45 }
 0x1c2   :  { %v1923_v46 = vpop.f32.mrb[4].mxu1 }
 0x1c3   :  { %v266_v47 = vpop.f32.mrb[5].mxu1  ;;  %v1130_v5 = vmul.f32 %v1923_v46, %v1923_v46 }
 0x1c4   :  { %v1129_v9 = vmul.f32 %v266_v47, %v266_v47 }
 0x1c6   :  { %v1949_v48 = vpop.f32.mrb[6].mxu1 }
 0x1c7   :  { %v1132_v50 = vmul.f32 %v1949_v48, %v1949_v48  ;;  %v2582_v51 = vmul.f32 %v1949_v48, %v1917_v42  ;;  %v454_v52 = vpop.f32.mrb[7].mxu1 }
 0x1c8   :  { %v1131_v54 = vmul.f32 %v454_v52, %v454_v52  ;;  %v2584_v55 = vmul.f32 %v454_v52, %v246_v43 }
 0x1c9   :  { %v1204_v56 = vadd.f32 %v1132_v50, %v1126_v49  ;;  %v1186_v40 = vmul.f32 2.0, %v2582_v51 }
 0x1ca   :  { %v1203_v57 = vadd.f32 %v1131_v54, %v1125_v53  ;;  %v1952_v58 = vpop.f32.mrb[8].mxu1  ;;  %v1185_v43 = vmul.f32 2.0, %v2584_v55 }
 0x1cb   :  { %v1134_v60 = vmul.f32 %v1952_v58, %v1952_v58  ;;  %v2586_v61 = vmul.f32 %v1952_v58, %v1920_v44  ;;  %v464_v62 = vpop.f32.mrb[9].mxu1  ;;  %v1210_v33 = vadd.f32 6.5025, %v1204_v56 }
 0x1cc   :  { %v1133_v0 = vmul.f32 %v464_v62, %v464_v62  ;;  %v2588_v1 = vmul.f32 %v464_v62, %v256_v45  ;;  %v1209_v37 = vadd.f32 6.5025, %v1203_v57 }
 0x1cd   :  { %v1206_v2 = vadd.f32 %v1134_v60, %v1128_v59  ;;  %v1188_v56 = vmul.f32 2.0, %v2586_v61 }
 0x1ce   :  { %v1205_v3 = vadd.f32 %v1133_v0, %v1127_v63  ;;  %v1955_v4 = vpop.f32.mrb[10].mxu1 }
 0x1cf   :  { %v1136_v6 = vmul.f32 %v1955_v4, %v1955_v4  ;;  %v2590_v7 = vmul.f32 %v1955_v4, %v1923_v46  ;;  %v474_v8 = vpop.f32.mrb[11].mxu1 }
 0x1d0   :  { %v1135_v10 = vmul.f32 %v474_v8, %v474_v8  ;;  %v2592_v11 = vmul.f32 %v474_v8, %v266_v47  ;;  %v1212_v47 = vadd.f32 6.5025, %v1206_v2  ;;  %v1211_v52 = vadd.f32 6.5025, %v1205_v3 }
 0x1d1   :  { %v1208_v12 = vadd.f32 %v1136_v6, %v1130_v5 }
 0x1d2   :  { %v1207_v13 = vadd.f32 %v1135_v10, %v1129_v9  ;;  %v1981_v14 = vpop.f32.mrb[12].mxu1 }
 0x1d3   :  { %v1144_v15 = vsub.f32 %v1981_v14, %v1126_v49  ;;  %v668_v16 = vpop.f32.mrb[13].mxu1 }
 0x1d4   :  { %v1143_v17 = vsub.f32 %v668_v16, %v1125_v53 }
 0x1d6   :  { %v1984_v18 = vpop.f32.mrb[14].mxu1 }
 0x1d7   :  { %v1146_v19 = vsub.f32 %v1984_v18, %v1128_v59  ;;  %v678_v20 = vpop.f32.mrb[15].mxu1  ;;  %v1187_v59 = vmul.f32 2.0, %v2588_v1 }
 0x1d8   :  { %v1145_v21 = vsub.f32 %v678_v20, %v1127_v63 }
 0x1da   :  { %v1987_v22 = vpop.f32.mrb[16].mxu1 }
 0x1db   :  { %v1148_v23 = vsub.f32 %v1987_v22, %v1130_v5  ;;  %v688_v24 = vpop.f32.mrb[17].mxu1  ;;  %v1213_v5 = vadd.f32 6.5025, %v1207_v13  ;;  %v1193_v22 = vadd.f32 6.5025, %v1187_v59 }
 0x1dc   :  { %v1147_v25 = vsub.f32 %v688_v24, %v1129_v9  ;;  %v1192_v9 = vadd.f32 6.5025, %v1186_v40 }
 0x1de   :  { %v2013_v26 = vpop.f32.mrb[18].mxu1 }
 0x1df   :  { %v1150_v27 = vsub.f32 %v2013_v26, %v1132_v50  ;;  %v882_v28 = vpop.f32.mrb[19].mxu1 }
 0x1e0   :  { %v1149_v29 = vsub.f32 %v882_v28, %v1131_v54 }
 0x1e1   :  { %v1174_v30 = vadd.f32 %v1150_v27, %v1144_v15  ;;  %v1191_v15 = vadd.f32 6.5025, %v1185_v43 }
 0x1e2   :  { %v1173_v31 = vadd.f32 %v1149_v29, %v1143_v17  ;;  %v2016_v32 = vpop.f32.mrb[20].mxu1 }
 0x1e3   :  { %v1180_v34 = vadd.f32 58.5225, %v1174_v30  ;;  %v1152_v35 = vsub.f32 %v2016_v32, %v1134_v60  ;;  %v892_v36 = vpop.f32.mrb[21].mxu1  ;;  %v1189_v30 = vmul.f32 2.0, %v2592_v11 }
 0x1e4   :  { %v1179_v38 = vadd.f32 58.5225, %v1173_v31  ;;  %v1151_v39 = vsub.f32 %v892_v36, %v1133_v0  ;;  %v1214_v0 = vadd.f32 6.5025, %v1208_v12 }
 0x1e5   :  { %v1216_v41 = vmul.f32 %v1210_v33, %v1180_v34  ;;  %2208 = vrcp.f32 %v1180_v34  ;;  %v1176_v42 = vadd.f32 %v1152_v35, %v1146_v19  ;;  %v1194_v19 = vadd.f32 6.5025, %v1188_v56 }
 0x1e6   :  { %v1215_v44 = vmul.f32 %v1209_v37, %v1179_v38  ;;  %2210 = vrcp.f32 %v1179_v38  ;;  %v1175_v45 = vadd.f32 %v1151_v39, %v1145_v21  ;;  %v2019_v46 = vpop.f32.mrb[22].mxu1 }
 0x1e7   :  { %2212 = vrcp.f32 %v1216_v41  ;;  %v1182_v48 = vadd.f32 58.5225, %v1176_v42  ;;  %v1154_v49 = vsub.f32 %v2019_v46, %v1136_v6  ;;  %v902_v50 = vpop.f32.mrb[23].mxu1 }
 0x1e8   :  { %2214 = vrcp.f32 %v1215_v44  ;;  %v1181_v53 = vadd.f32 58.5225, %v1175_v45  ;;  %v1153_v54 = vsub.f32 %v902_v50, %v1135_v10 }
 0x1e9   :  { %v1218_v57 = vmul.f32 %v1212_v47, %v1182_v48  ;;  %2216 = vrcp.f32 %v1182_v48  ;;  %v1178_v58 = vadd.f32 %v1154_v49, %v1148_v23 }
 0x1ea   :  { %v1217_v60 = vmul.f32 %v1211_v52, %v1181_v53  ;;  %2218 = vrcp.f32 %v1181_v53  ;;  %v1177_v62 = vadd.f32 %v1153_v54, %v1147_v25  ;;  %v2045_v63 = vpop.f32.mrb[24].mxu1  ;;  %v1190_v25 = vmul.f32 2.0, %v2590_v7 }
 0x1eb   :  { %2220 = vrcp.f32 %v1218_v57  ;;  %v1184_v2 = vadd.f32 58.5225, %v1178_v58  ;;  %v1156_v4 = vsub.f32 %v2045_v63, %v2582_v51  ;;  %v1096_v3 = vpop.f32.mrb[25].mxu1 }
 0x1ec   :  { %2222 = vrcp.f32 %v1217_v60  ;;  %v1183_v6 = vadd.f32 58.5225, %v1177_v62  ;;  %v1155_v8 = vsub.f32 %v1096_v3, %v2584_v55  ;;  %v1196_v60 = vadd.f32 6.5025, %v1190_v25 }
 0x1ed   :  { %v1220_v10 = vmul.f32 %v1214_v0, %v1184_v2  ;;  %2224 = vrcp.f32 %v1184_v2  ;;  %v1162_v14 = vmul.f32 2.0, %v1156_v4  ;;  %v1195_v2 = vadd.f32 6.5025, %v1189_v30 }
 0x1ee   :  { %v1219_v16 = vmul.f32 %v1213_v5, %v1183_v6  ;;  %2226 = vrcp.f32 %v1183_v6  ;;  %v1161_v17 = vmul.f32 2.0, %v1155_v8  ;;  %v2048_v18 = vpop.f32.mrb[26].mxu1 }
 0x1ef   :  { %v2209_v12 = vpop.eup %2208  ;;  %2228 = vrcp.f32 %v1220_v10  ;;  %v1168_v20 = vadd.f32 58.5225, %v1162_v14  ;;  %v1158_v51 = vsub.f32 %v2048_v18, %v2586_v61  ;;  %v1106_v13 = vpop.f32.mrb[27].mxu1 }
 0x1f0   :  { %v2211_v21 = vpop.eup %2210  ;;  %2230 = vrcp.f32 %v1219_v16  ;;  %v1167_v55 = vadd.f32 58.5225, %v1161_v17  ;;  %v1157_v23 = vsub.f32 %v1106_v13, %v2588_v1 }
 0x1f1   :  { %v2213_v24 = vpop.eup %2212  ;;  %v1198_v26 = vmul.f32 %v1192_v9, %v1168_v20  ;;  %v1236_v27 = vmul.f32 %v2209_v12, %v1168_v20  ;;  %v1164_v28 = vmul.f32 2.0, %v1158_v51 }
 0x1f2   :  { %v2215_v29 = vpop.eup %2214  ;;  %v1197_v31 = vmul.f32 %v1191_v15, %v1167_v55  ;;  %v1234_v32 = vmul.f32 %v2211_v21, %v1167_v55  ;;  %v1163_v33 = vmul.f32 2.0, %v1157_v23  ;;  %v2051_v61 = vpop.f32.mrb[28].mxu1 }
 0x1f3   :  { %v2217_v34 = vpop.eup %2216  ;;  %v1224_v35 = vmul.f32 %v2213_v24, %v1198_v26  ;;  %v1269_v36 = vsel %vm47_vm0, %v1236_v27, 0.0  ;;  %v1170_v37 = vadd.f32 58.5225, %v1164_v28  ;;  %v1160_v1 = vsub.f32 %v2051_v61, %v2590_v7  ;;  %v1116_v38 = vpop.f32.mrb[29].mxu1 }
 0x1f4   :  { %v2219_v39 = vpop.eup %2218  ;;  %v1222_v40 = vmul.f32 %v2215_v29, %v1197_v31  ;;  %v1268_v41 = vsel %vm47_vm0, %v1234_v32, 0.0  ;;  %v1169_v42 = vadd.f32 58.5225, %v1163_v33  ;;  %v1159_v43 = vsub.f32 %v1116_v38, %v2592_v11 }
 0x1f5   :  { %v2221_v44 = vpop.eup %2220  ;;  %v1246_v45 = vsel %vm47_vm0, %v1224_v35, 0.0  ;;  %v1270_v46 = vadd.f32 %v1269_v36, %v1268_v41  ;;  %v1200_v47 = vmul.f32 %v1194_v19, %v1170_v37  ;;  %v1240_v48 = vmul.f32 %v2217_v34, %v1170_v37 }
 0x1f6   :  { %v2223_v49 = vpop.eup %2222  ;;  %v1245_v50 = vsel %vm47_vm0, %v1222_v40, 0.0  ;;  %v1199_v52 = vmul.f32 %v1193_v22, %v1169_v42  ;;  %v1238_v53 = vmul.f32 %v2219_v39, %v1169_v42  ;;  %v1166_v7 = vmul.f32 2.0, %v1160_v1  ;;  %v1465_v26 = vpop.f32.mrb[30].mxu1 }
 0x1f7   :  { %v2225_v54 = vpop.eup %2224  ;;  %v1228_v56 = vmul.f32 %v2221_v44, %v1200_v47  ;;  %v1165_v57 = vmul.f32 2.0, %v1159_v43  ;;  %v1247_v58 = vadd.f32 %v1246_v45, %v1245_v50  ;;  %v1273_v6 = vsel %vm47_vm0, %v1240_v48, 0.0  ;;  %1480 = vst.msk [vmem:[%s2665_s8] sm:$0xff] %vm1479_vm3, %v1465_v26  ;;  %v2077_v27 = vpop.f32.mrb[31].mxu1 }
 0x1f8   :  { %v2227_v59 = vpop.eup %2226  ;;  %v1226_v62 = vmul.f32 %v2223_v49, %v1199_v52  ;;  %v1271_v11 = vsel %vm47_vm0, %v1238_v53, 0.0  ;;  %v1172_v63 = vadd.f32 58.5225, %v1166_v7 }
 0x1f9   :  { %v2229_v0 = vpop.eup %2228  ;;  %v1272_v4 = vadd.f32 %v1271_v11, %v1270_v46  ;;  %v1171_v3 = vadd.f32 58.5225, %v1165_v57  ;;  %v1250_v12 = vsel %vm47_vm0, %v1228_v56, 0.0 }
 0x1fa   :  { %v2231_v5 = vpop.eup %2230  ;;  %v1202_v8 = vmul.f32 %v1196_v60, %v1172_v63  ;;  %v1244_v9 = vmul.f32 %v2225_v54, %v1172_v63  ;;  %v1248_v10 = vsel %vm47_vm0, %v1226_v62, 0.0  ;;  %v1470_v28 = vpop.f32.mrb[32].mxu1 }
 0x1fb   :  { %v1201_v14 = vmul.f32 %v1195_v2, %v1171_v3  ;;  %v1242_v15 = vmul.f32 %v2227_v59, %v1171_v3  ;;  %v1249_v16 = vadd.f32 %v1248_v10, %v1247_v58  ;;  %v1274_v17 = vadd.f32 %v1273_v6, %v1272_v4  ;;  %1481 = vst.msk [vmem:[%s2665_s8 + $0x8] sm:$0xff] %vm1479_vm3, %v1470_v28  ;;  %v2080_v29 = vpop.f32.mrb[33].mxu1 }
 0x1fc   :  { %v1232_v18 = vmul.f32 %v2229_v0, %v1202_v8  ;;  %v1277_v22 = vsel %vm47_vm0, %v1244_v9, 0.0 }
 0x1fd   :  { %v1230_v19 = vmul.f32 %v2231_v5, %v1201_v14  ;;  %v1251_v20 = vadd.f32 %v1250_v12, %v1249_v16  ;;  %v1275_v51 = vsel %vm47_vm0, %v1242_v15, 0.0 }
 0x1fe   :  { %v1276_v13 = vadd.f32 %v1275_v51, %v1274_v17  ;;  %v1254_v24 = vsel %vm47_vm0, %v1232_v18, 0.0  ;;  %v1475_v30 = vpop.f32.mrb[34].mxu1 }
 0x1ff   :  { %v1252_v21 = vsel %vm47_vm0, %v1230_v19, 0.0  ;;  %1482 = vst.msk [vmem:[%s2665_s8 + $0x10] sm:$0xff] %vm1479_vm3, %v1475_v30  ;;  %v2083_v31 = vpop.f32.mrb[35].mxu1  ;;  %s2259_s8 = smov [#allocation2]  }
 0x200   :  { %v1253_v55 = vadd.f32 %v1252_v21, %v1251_v20  ;;  %v1278_v23 = vadd.f32 %v1277_v22, %v1276_v13 }
 0x201   :  { %v1644_v61 = vpop.f32.mrb[42].mxu0 }
 0x202   :  { %v1255_v25 = vadd.f32 %v1254_v24, %v1253_v55  ;;  %v1649_v32 = vpop.f32.mrb[36].mxu1  ;;  %1658 = vst.msk [vmem:[%s2666_s9] sm:$0xff] %vm1479_vm3, %v1644_v61  ;;  %v2109_v35 = vpop.f32.mrb[43].mxu0 }
 0x203   :  { %1659 = vst.msk [vmem:[%s2666_s9 + $0x8] sm:$0xff] %vm1479_vm3, %v1649_v32  ;;  %v2112_v33 = vpop.f32.mrb[37].mxu1 }
 0x204   :  { %1256 = vadd.xlane.f32.xlu0 %v1255_v25 }
 0x206   :  { %v1654_v34 = vpop.f32.mrb[38].mxu1 }
 0x207   :  { %1660 = vst.msk [vmem:[%s2666_s9 + $0x10] sm:$0xff] %vm1479_vm3, %v1654_v34  ;;  %v2115_v36 = vpop.f32.mrb[39].mxu1  ;;  %s1667_s9 = sshll.u32 %s2259_s8, 4  ;;  %s1668_s9 = int_to_ptr.vmem [resolvable:$true] %s1667_s9 }
 0x208   :  { %1279 = vadd.xlane.f32.xlu0 %v1278_v23  ;;  %s2232_s16 = scalar_lea.vmem %s1668_s9, 16  ;;  %s2236_s3 = scalar_lea.vmem %s1668_s9, 32 }
 0x209   :  { %p2233_p0 = scmp.ne.s32.totalorder %s1668_s9, %s2232_s16  ;;  %p2237_p1 = scmp.lt.s32.totalorder %s1668_s9, %s1668_s9 }
 0x20a   :  { %p2238_p2 = scmp.lt.s32.totalorder %s2236_s3, %s2232_s16 }
 0x20c   :  { %p2239_p3 = por %p2238_p2, %p2237_p1 }
 0x20e   :  { %p2240_p4 = pnand %p2239_p3, %p2233_p0 }
 0x291   :  { %v1257_v37 = vpop.xlane.xlu0 %1256 }
 0x292   :  { %v1258_v1 = vrot.slane %v1257_v37, 4 }
 0x294   :  { %v1259_v38 = vadd.f32 %v1258_v1, %v1257_v37 }
 0x295   :  { %v1280_v39 = vpop.xlane.xlu0 %1279 }
 0x296   :  { %v1260_v40 = vrot.slane %v1259_v38, 2  ;;  %v1281_v41 = vrot.slane %v1280_v39, 4 }
 0x298   :  { %v1282_v42 = vadd.f32 %v1281_v41, %v1280_v39  ;;  %v1261_v43 = vadd.f32 %v1260_v40, %v1259_v38 }
 0x29a   :  { %v1283_v44 = vrot.slane %v1282_v42, 2  ;;  %v1262_v45 = vrot.slane %v1261_v43, 1 }
 0x29c   :  { %v1284_v46 = vadd.f32 %v1283_v44, %v1282_v42  ;;  %v1263_v47 = vadd.f32 %v1262_v45, %v1261_v43 }
 0x29e   :  { %2200 = vpush %v1263_v47  ;;  %v1285_v48 = vrot.slane %v1284_v46, 1 }
 0x2a0   :  { %v1286_v49 = vadd.f32 %v1285_v48, %v1284_v46 }
 0x2a2   :  { %2202 = vpush %v1286_v49 }
 0x2cf   :  { %s2201_s15 = spop %2200 }
 0x2d0   :  { %v1265_v50 = vstv %s2201_s15 }
 0x2d1   :  { %1267 = vst [vmem:[#allocation2] sm:$0x1] %v1265_v50 }
 0x2d2   :  { %2243 = shalt.err (!%p2240_p4)
}
 0x2d3   :  { %s2244_s19 = scalar_lea.hbm %s2663_s6, 16 }
 0x2d4   :  { %p2245_p5 = scmp.ne.s32.totalorder %s2663_s6, %s2244_s19  ;;  %p2248_p6 = scmp.lt.u32.totalorder %s2244_s19, %s2663_s6 }
 0x2d6   :  { %p2250_p7 = pnand %p2248_p6, %p2245_p5 }
 0x2d8   :  { %2253 = shalt.err (!%p2250_p7)
}
 0x2d9   :  { %1670 = dma.vmem_to_hbm [thread:$0]  %s1668_s9, 16, %s2663_s6, [#allocation3]  }
 0x2da   :  { %s2203_s25 = spop %2202 }
 0x2db   :  { %v1288_v52 = vstv %s2203_s25 }
 0x2dc   :  { %1290 = vst [vmem:[%s2664_s7] sm:$0x1] %v1288_v52 }
 0x2dd   :  { %2254 = dma.done.wait [#allocation3], 16  }
 0x2de   :  { %2255 = vsyncadd [#allocation3], 4294967280 }
 0x2df   :  { %1686 = vsyncpa [#allocation3], 1 }

// kernel: ms_ssim.6
= control target key start
LH: loop header
LB: loop body
LE: loop exit
PB: predicated region body
PF: predicated region fallthrough
CT: control target
= control target key end

     0   :  { %vm66_vm0 = vcmask 130048   ;;  %s4515_s0 = inlined_call_operand.vmem [shape: f32[96,16], index: 0, kind: input, shape index: {}]   ;;  %s4516_s1 = inlined_call_operand.vmem [shape: f32[96,16], index: 1, kind: input, shape index: {}]   ;;  %s4517_s2 = inlined_call_operand.vmem [shape: f32[96,96], index: 2, kind: input, shape index: {}]   ;;  %s4518_s3 = inlined_call_operand.vmem [shape: f32[16,16], index: 3, kind: input, shape index: {}]   ;;  %s4519_s4 = inlined_call_operand.vmem [shape: f32[48,96], index: 4, kind: input, shape index: {}]   ;;  %s4520_s5 = inlined_call_operand.vmem [shape: f32[16,8], index: 5, kind: input, shape index: {}]   ;;  %s4521_s6 = inlined_call_operand.hbm [shape: f32[1,1,128], index: 6, kind: output, shape index: {0}]   ;;  %s4522_s7 = inlined_call_operand.vmem [shape: f32[1,1,128], index: 7, kind: output, shape index: {1}]   ;;  %s4523_s8 = inlined_call_operand.vmem [shape: f32[48,8], index: 8, kind: output, shape index: {2}]   ;;  %s4524_s9 = inlined_call_operand.vmem [shape: f32[48,8], index: 9, kind: output, shape index: {3}]  }
   0x1   :  { %v64_v0 = vld [vmem:[%s4518_s3] sm:$0xff]  ;;  %v65_v1 = vld [vmem:[%s4518_s3 + $0x8] sm:$0xff]  ;;  %v3587_v5 = vld [vmem:[%s4515_s0 + $0x10] sm:$0xff] }
   0x2   :  { %v3570_v2 = vld [vmem:[%s4515_s0] sm:$0xff]  ;;  %v3572_v3 = vpack.c.bf16 %v65_v1, %v64_v0  ;;  %v3581_v4 = vld [vmem:[%s4515_s0 + $0x8] sm:$0xff]  ;;  %v3597_v6 = vld [vmem:[%s4515_s0 + $0x18] sm:$0xff] }
   0x3   :  { %2799 = vmatprep.mubr.msk.f32.mxu0 %vm66_vm0, %v3570_v2 }
   0x4   :  { %3226 = vmatprep.subr.bf16.mxu0 %v3572_v3 }
   0x5   :  { %3228 = vmatpush3.bf16.msra.mxu0 %v3572_v3 }
   0x6   :  { %3254 = vmatprep.subr.bf16.mxu0 %v3572_v3 }
   0x8   :  { %2800 = vmatmul.mubr.msk.f32.vlgmr.msra.gmra.mrb[0].mxu0 %vm66_vm0, %v3581_v4 }
   0x9   :  { %3256 = vmatpush3.bf16.msra.mxu0 %v3572_v3  ;;  %2802 = vmatprep.mubr.msk.f32.mxu0 %vm66_vm0, %v3587_v5 }
   0xa   :  { %15 = vsyncpa [#allocation3], 0  ;;  %v3602_v7 = vld [vmem:[%s4515_s0 + $0x20] sm:$0xff]  ;;  %3282 = vmatprep.subr.bf16.mxu0 %v3572_v3  ;;  %v3612_v8 = vld [vmem:[%s4515_s0 + $0x28] sm:$0xff]  ;;  %v676_v27 = vmul.f32 %v3570_v2, %v3570_v2  ;;  %v677_v28 = vmul.f32 %v3581_v4, %v3581_v4  ;;  %v678_v29 = vmul.f32 %v3587_v5, %v3587_v5  ;;  %v679_v30 = vmul.f32 %v3597_v6, %v3597_v6  ;;  %s3510_s22 = smov [#allocation2]  }
   0xb   :  { %v3617_v9 = vld [vmem:[%s4515_s0 + $0x30] sm:$0xff]  ;;  %v3626_v10 = vld [vmem:[%s4515_s0 + $0x38] sm:$0xff]  ;;  %v3631_v11 = vld [vmem:[%s4515_s0 + $0x40] sm:$0xff]  ;;  %v680_v31 = vmul.f32 %v3602_v7, %v3602_v7  ;;  %v681_v32 = vmul.f32 %v3612_v8, %v3612_v8  ;;  %vm228_vm1 = vcmask 785408   ;;  %vm2126_vm2 = vcmask 64512   ;;  %s2365_s23 = sshll.u32 %s3510_s22, 4  ;;  %s2366_s23 = int_to_ptr.vmem [resolvable:$true] %s2365_s23 }
   0xc   :  { %2803 = vmatmul.mubr.msk.f32.gmra.mrb[2].mxu0 %vm66_vm0, %v3597_v6  ;;  %v3640_v12 = vld [vmem:[%s4515_s0 + $0x48] sm:$0xff]  ;;  %v3645_v13 = vld [vmem:[%s4515_s0 + $0x50] sm:$0xff]  ;;  %v3654_v14 = vld [vmem:[%s4515_s0 + $0x58] sm:$0xff]  ;;  %v682_v33 = vmul.f32 %v3617_v9, %v3617_v9  ;;  %v683_v34 = vmul.f32 %v3626_v10, %v3626_v10  ;;  %v684_v35 = vmul.f32 %v3631_v11, %v3631_v11  ;;  %s3490_s25 = scalar_lea.vmem %s2366_s23, 32  ;;  %p3491_p1 = scmp.lt.s32.totalorder %s2366_s23, %s2366_s23 }
   0xd   :  { %2805 = vmatprep.mubr.msk.f32.mxu0 %vm66_vm0, %v3602_v7  ;;  %v3659_v15 = vld [vmem:[%s4516_s1] sm:$0xff]  ;;  %v3666_v16 = vld [vmem:[%s4516_s1 + $0x8] sm:$0xff]  ;;  %v3673_v17 = vld [vmem:[%s4516_s1 + $0x10] sm:$0xff]  ;;  %v685_v36 = vmul.f32 %v3640_v12, %v3640_v12  ;;  %v686_v37 = vmul.f32 %v3645_v13, %v3645_v13  ;;  %v687_v38 = vmul.f32 %v3654_v14, %v3654_v14 }
   0xe   :  { %v3683_v18 = vld [vmem:[%s4516_s1 + $0x18] sm:$0xff]  ;;  %v3688_v19 = vld [vmem:[%s4516_s1 + $0x20] sm:$0xff]  ;;  %v3698_v20 = vld [vmem:[%s4516_s1 + $0x28] sm:$0xff]  ;;  %v974_v39 = vmul.f32 %v3659_v15, %v3659_v15  ;;  %v975_v40 = vmul.f32 %v3666_v16, %v3666_v16  ;;  %v976_v41 = vmul.f32 %v3673_v17, %v3673_v17  ;;  %v1272_v51 = vmul.f32 %v3659_v15, %v3570_v2 }
   0xf   :  { %v3703_v21 = vld [vmem:[%s4516_s1 + $0x30] sm:$0xff]  ;;  %v3712_v22 = vld [vmem:[%s4516_s1 + $0x38] sm:$0xff]  ;;  %v3717_v23 = vld [vmem:[%s4516_s1 + $0x40] sm:$0xff]  ;;  %v977_v42 = vmul.f32 %v3683_v18, %v3683_v18  ;;  %v978_v43 = vmul.f32 %v3688_v19, %v3688_v19  ;;  %v979_v44 = vmul.f32 %v3698_v20, %v3698_v20  ;;  %v1273_v52 = vmul.f32 %v3666_v16, %v3581_v4 }
  0x10   :  { %2806 = vmatmul.mubr.msk.f32.gmra.mrb[4].mxu0 %vm66_vm0, %v3612_v8  ;;  %v3726_v24 = vld [vmem:[%s4516_s1 + $0x48] sm:$0xff]  ;;  %v3731_v25 = vld [vmem:[%s4516_s1 + $0x50] sm:$0xff]  ;;  %v3740_v26 = vld [vmem:[%s4516_s1 + $0x58] sm:$0xff]  ;;  %v980_v45 = vmul.f32 %v3703_v21, %v3703_v21  ;;  %v981_v46 = vmul.f32 %v3712_v22, %v3712_v22  ;;  %v982_v47 = vmul.f32 %v3717_v23, %v3717_v23  ;;  %v1274_v53 = vmul.f32 %v3673_v17, %v3587_v5 }
  0x11   :  { %2808 = vmatprep.mubr.msk.f32.mxu0 %vm66_vm0, %v3617_v9  ;;  %v983_v48 = vmul.f32 %v3726_v24, %v3726_v24  ;;  %v984_v49 = vmul.f32 %v3731_v25, %v3731_v25  ;;  %v985_v50 = vmul.f32 %v3740_v26, %v3740_v26  ;;  %v1275_v54 = vmul.f32 %v3683_v18, %v3597_v6  ;;  %v3853_v62 = vld [vmem:[%s4517_s2] sm:$0xff]  ;;  %v1887_v1 = vld [vmem:[%s4520_s5 + $0x8] sm:$0xff] }
  0x12   :  { %v1276_v55 = vmul.f32 %v3688_v19, %v3602_v7  ;;  %v1277_v56 = vmul.f32 %v3698_v20, %v3612_v8  ;;  %v1278_v57 = vmul.f32 %v3703_v21, %v3617_v9  ;;  %v1279_v58 = vmul.f32 %v3712_v22, %v3626_v10  ;;  %2841 = vmatprep.mubr.msk.f32.mxu1 %vm228_vm1, %v3853_v62  ;;  %v1886_v0 = vld [vmem:[%s4520_s5] sm:$0xff] }
  0x13   :  { %v1280_v59 = vmul.f32 %v3717_v23, %v3631_v11  ;;  %v1281_v60 = vmul.f32 %v3726_v24, %v3640_v12  ;;  %v1282_v61 = vmul.f32 %v3731_v25, %v3645_v13  ;;  %v1283_v63 = vmul.f32 %v3740_v26, %v3654_v14 }
  0x14   :  { %2809 = vmatmul.mubr.msk.f32.gmra.mrb[6].mxu0 %vm66_vm0, %v3626_v10 }
  0x15   :  { %2811 = vmatprep.mubr.msk.f32.mxu0 %vm66_vm0, %v3631_v11 }
  0x18   :  { %2812 = vmatmul.mubr.msk.f32.gmra.mrb[8].mxu0 %vm66_vm0, %v3640_v12 }
  0x19   :  { %2814 = vmatprep.mubr.msk.f32.mxu0 %vm66_vm0, %v3645_v13 }
  0x1c   :  { %2815 = vmatmul.mubr.msk.f32.gmra.mrb[10].mxu0 %vm66_vm0, %v3654_v14 }
  0x1d   :  { %2863 = vmatprep.mubr.msk.f32.mxu0 %vm66_vm0, %v3659_v15 }
  0x20   :  { %2864 = vmatmul.mubr.msk.f32.vlgmr.msra.gmra.mrb[12].mxu0 %vm66_vm0, %v3666_v16 }
  0x21   :  { %3284 = vmatpush3.bf16.msra.mxu0 %v3572_v3  ;;  %2866 = vmatprep.mubr.msk.f32.mxu0 %vm66_vm0, %v3673_v17 }
  0x22   :  { %3310 = vmatprep.subr.bf16.mxu0 %v3572_v3 }
  0x24   :  { %2867 = vmatmul.mubr.msk.f32.gmra.mrb[14].mxu0 %vm66_vm0, %v3683_v18 }
  0x25   :  { %2869 = vmatprep.mubr.msk.f32.mxu0 %vm66_vm0, %v3688_v19 }
  0x28   :  { %2870 = vmatmul.mubr.msk.f32.gmra.mrb[16].mxu0 %vm66_vm0, %v3698_v20 }
  0x29   :  { %2872 = vmatprep.mubr.msk.f32.mxu0 %vm66_vm0, %v3703_v21 }
  0x2c   :  { %2873 = vmatmul.mubr.msk.f32.gmra.mrb[18].mxu0 %vm66_vm0, %v3712_v22 }
  0x2d   :  { %2875 = vmatprep.mubr.msk.f32.mxu0 %vm66_vm0, %v3717_v23 }
  0x30   :  { %2876 = vmatmul.mubr.msk.f32.gmra.mrb[20].mxu0 %vm66_vm0, %v3726_v24 }
  0x31   :  { %2878 = vmatprep.mubr.msk.f32.mxu0 %vm66_vm0, %v3731_v25 }
  0x34   :  { %2879 = vmatmul.mubr.msk.f32.gmra.mrb[22].mxu0 %vm66_vm0, %v3740_v26 }
  0x35   :  { %2927 = vmatprep.mubr.msk.f32.mxu0 %vm66_vm0, %v676_v27 }
  0x38   :  { %2928 = vmatmul.mubr.msk.f32.vlgmr.msra.gmra.mrb[24].mxu0 %vm66_vm0, %v677_v28  ;;  %v3933_v28 = vld [vmem:[%s4517_s2 + $0x18] sm:$0xff] }
  0x39   :  { %3312 = vmatpush3.bf16.msra.mxu0 %v3572_v3  ;;  %2930 = vmatprep.mubr.msk.f32.mxu0 %vm66_vm0, %v678_v29 }
  0x3a   :  { %3338 = vmatprep.subr.bf16.mxu0 %v3572_v3 }
  0x3c   :  { %2931 = vmatmul.mubr.msk.f32.gmra.mrb[26].mxu0 %vm66_vm0, %v679_v30  ;;  %v3938_v30 = vld [vmem:[%s4517_s2 + $0x20] sm:$0xff] }
  0x3d   :  { %2933 = vmatprep.mubr.msk.f32.mxu0 %vm66_vm0, %v680_v31 }
  0x40   :  { %2934 = vmatmul.mubr.msk.f32.gmra.mrb[28].mxu0 %vm66_vm0, %v681_v32 }
  0x41   :  { %2936 = vmatprep.mubr.msk.f32.mxu0 %vm66_vm0, %v682_v33  ;;  %v3947_v33 = vld [vmem:[%s4517_s2 + $0x28] sm:$0xff] }
  0x44   :  { %2937 = vmatmul.mubr.msk.f32.gmra.mrb[30].mxu0 %vm66_vm0, %v683_v34 }
  0x45   :  { %2939 = vmatprep.mubr.msk.f32.mxu0 %vm66_vm0, %v684_v35  ;;  %v3952_v35 = vld [vmem:[%s4517_s2 + $0x30] sm:$0xff] }
  0x48   :  { %2940 = vmatmul.mubr.msk.f32.gmra.mrb[32].mxu0 %vm66_vm0, %v685_v36 }
  0x49   :  { %2942 = vmatprep.mubr.msk.f32.mxu0 %vm66_vm0, %v686_v37 }
  0x4c   :  { %2943 = vmatmul.mubr.msk.f32.gmra.mrb[34].mxu0 %vm66_vm0, %v687_v38  ;;  %v3961_v38 = vld [vmem:[%s4517_s2 + $0x38] sm:$0xff] }
  0x4d   :  { %2991 = vmatprep.mubr.msk.f32.mxu0 %vm66_vm0, %v974_v39 }
  0x50   :  { %2992 = vmatmul.mubr.msk.f32.vlgmr.msra.gmra.mrb[36].mxu0 %vm66_vm0, %v975_v40  ;;  %v3966_v40 = vld [vmem:[%s4517_s2 + $0x40] sm:$0xff] }
  0x51   :  { %3340 = vmatpush3.bf16.msra.mxu0 %v3572_v3  ;;  %2994 = vmatprep.mubr.msk.f32.mxu0 %vm66_vm0, %v976_v41  ;;  %v3365_v3 = vpack.c.bf16 %v1887_v1, %v1886_v0 }
  0x53   :  { %3366 = vmatprep.subr.bf16.mxu0 %v3365_v3 }
  0x54   :  { %2995 = vmatmul.mubr.msk.f32.gmra.mrb[38].mxu0 %vm66_vm0, %v977_v42 }
  0x55   :  { %2997 = vmatprep.mubr.msk.f32.mxu0 %vm66_vm0, %v978_v43  ;;  %v3975_v43 = vld [vmem:[%s4517_s2 + $0x48] sm:$0xff] }
  0x58   :  { %2998 = vmatmul.mubr.msk.f32.gmra.mrb[40].mxu0 %vm66_vm0, %v979_v44 }
  0x59   :  { %3000 = vmatprep.mubr.msk.f32.mxu0 %vm66_vm0, %v980_v45  ;;  %v3980_v45 = vld [vmem:[%s4517_s2 + $0x50] sm:$0xff] }
  0x5c   :  { %3001 = vmatmul.mubr.msk.f32.gmra.mrb[42].mxu0 %vm66_vm0, %v981_v46 }
  0x5d   :  { %3003 = vmatprep.mubr.msk.f32.mxu0 %vm66_vm0, %v982_v47 }
  0x60   :  { %3004 = vmatmul.mubr.msk.f32.gmra.mrb[44].mxu0 %vm66_vm0, %v983_v48  ;;  %v3989_v48 = vld [vmem:[%s4517_s2 + $0x58] sm:$0xff] }
  0x61   :  { %3006 = vmatprep.mubr.msk.f32.mxu0 %vm66_vm0, %v984_v49 }
  0x64   :  { %3007 = vmatmul.mubr.msk.f32.gmra.mrb[46].mxu0 %vm66_vm0, %v985_v50 }
  0x65   :  { %3055 = vmatprep.mubr.msk.f32.mxu0 %vm66_vm0, %v1272_v51 }
  0x68   :  { %3056 = vmatmul.mubr.msk.f32.vlgmr.msra.gmra.mrb[48].mxu0 %vm66_vm0, %v1273_v52 }
  0x69   :  { %3058 = vmatprep.mubr.msk.f32.mxu0 %vm66_vm0, %v1274_v53  ;;  %3368 = vmatpush3.bf16.msra.mxu0 %v3365_v3 }
  0x6a   :  { %3394 = vmatprep.subr.bf16.mxu0 %v3365_v3 }
  0x6c   :  { %3059 = vmatmul.mubr.msk.f32.gmra.mrb[50].mxu0 %vm66_vm0, %v1275_v54 }
  0x6d   :  { %3061 = vmatprep.mubr.msk.f32.mxu0 %vm66_vm0, %v1276_v55 }
  0x70   :  { %3062 = vmatmul.mubr.msk.f32.gmra.mrb[52].mxu0 %vm66_vm0, %v1277_v56 }
  0x71   :  { %3064 = vmatprep.mubr.msk.f32.mxu0 %vm66_vm0, %v1278_v57 }
  0x74   :  { %3065 = vmatmul.mubr.msk.f32.gmra.mrb[54].mxu0 %vm66_vm0, %v1279_v58 }
  0x75   :  { %3067 = vmatprep.mubr.msk.f32.mxu0 %vm66_vm0, %v1280_v59 }
  0x78   :  { %3068 = vmatmul.mubr.msk.f32.gmra.mrb[56].mxu0 %vm66_vm0, %v1281_v60 }
  0x79   :  { %3070 = vmatprep.mubr.msk.f32.mxu0 %vm66_vm0, %v1282_v61 }
  0x7c   :  { %3071 = vmatmul.mubr.msk.f32.gmra.mrb[58].mxu0 %vm66_vm0, %v1283_v63 }
  0x7d   :  { %3119 = vmatprep.mubr.msk.f32.mxu0 %vm66_vm0, %v3570_v2 }
  0x80   :  { %3120 = vmatmul.mubr.msk.f32.vlgmr.msra.gmra.mrb[60].mxu0 %vm66_vm0, %v3581_v4 }
  0x81   :  { %3396 = vmatpush3.bf16.msra.mxu0 %v3365_v3  ;;  %3122 = vmatprep.mubr.msk.f32.mxu0 %vm66_vm0, %v3587_v5 }
  0x84   :  { %3123 = vmatmul.mubr.msk.f32.gmra.mrb[62].mxu0 %vm66_vm0, %v3597_v6 }
  0x85   :  { %3125 = vmatprep.mubr.msk.f32.mxu0 %vm66_vm0, %v3602_v7 }
  0x88   :  { %3126 = vmatmul.mubr.msk.f32.gmra.mrb[64].mxu0 %vm66_vm0, %v3612_v8 }
  0x89   :  { %3128 = vmatprep.mubr.msk.f32.mxu0 %vm66_vm0, %v3617_v9 }
  0x8c   :  { %3129 = vmatmul.mubr.msk.f32.gmra.mrb[66].mxu0 %vm66_vm0, %v3626_v10 }
  0x8d   :  { %3131 = vmatprep.mubr.msk.f32.mxu0 %vm66_vm0, %v3631_v11 }
  0x90   :  { %3132 = vmatmul.mubr.msk.f32.gmra.mrb[68].mxu0 %vm66_vm0, %v3640_v12 }
  0x91   :  { %3134 = vmatprep.mubr.msk.f32.mxu0 %vm66_vm0, %v3645_v13 }
  0x94   :  { %3135 = vmatmul.mubr.msk.f32.gmra.mrb[70].mxu0 %vm66_vm0, %v3654_v14 }
  0x95   :  { %3174 = vmatprep.mubr.msk.f32.mxu0 %vm66_vm0, %v3659_v15 }
  0x98   :  { %3175 = vmatmul.mubr.msk.f32.vlgmr.msra.gmra.mrb[72].mxu0 %vm66_vm0, %v3666_v16 }
  0x99   :  { %3177 = vmatprep.mubr.msk.f32.mxu0 %vm66_vm0, %v3673_v17 }
  0x9c   :  { %3178 = vmatmul.mubr.msk.f32.gmra.mrb[74].mxu0 %vm66_vm0, %v3683_v18 }
  0x9d   :  { %3180 = vmatprep.mubr.msk.f32.mxu0 %vm66_vm0, %v3688_v19 }
  0xa0   :  { %3181 = vmatmul.mubr.msk.f32.gmra.mrb[76].mxu0 %vm66_vm0, %v3698_v20 }
  0xa1   :  { %3183 = vmatprep.mubr.msk.f32.mxu0 %vm66_vm0, %v3703_v21 }
  0xa4   :  { %3184 = vmatmul.mubr.msk.f32.gmra.mrb[78].mxu0 %vm66_vm0, %v3712_v22 }
  0xa5   :  { %3186 = vmatprep.mubr.msk.f32.mxu0 %vm66_vm0, %v3717_v23  ;;  %v3919_v23 = vld [vmem:[%s4517_s2 + $0x8] sm:$0xff] }
  0xa8   :  { %3187 = vmatmul.mubr.msk.f32.gmra.mrb[80].mxu0 %vm66_vm0, %v3726_v24 }
  0xa9   :  { %3189 = vmatprep.mubr.msk.f32.mxu0 %vm66_vm0, %v3731_v25  ;;  %v3924_v25 = vld [vmem:[%s4517_s2 + $0x10] sm:$0xff] }
  0xac   :  { %3190 = vmatmul.mubr.msk.f32.gmra.mrb[82].mxu0 %vm66_vm0, %v3740_v26 }
  0xdb   :  { %v2801_v2 = vpop.f32.mrb[0].mxu0 }
  0xdc   :  { %v169_v4 = vpop.f32.mrb[1].mxu0 }
  0xdd   :  { %v3229_v5 = vpack.c.bf16 %v2801_v2, %v169_v4 }
  0xdf   :  { %v2804_v6 = vpop.f32.mrb[2].mxu0  ;;  %3230 = vmatprep.subr.bf16.mxu1 %v3229_v5 }
  0xe0   :  { %v179_v7 = vpop.f32.mrb[3].mxu0  ;;  %3232 = vmatpush3.bf16.msra.mxu1 %v3229_v5 }
  0xe1   :  { %v3233_v8 = vpack.c.bf16 %v2804_v6, %v179_v7 }
  0xe3   :  { %v2807_v9 = vpop.f32.mrb[4].mxu0  ;;  %3234 = vmatprep.subr.bf16.mxu1 %v3233_v8 }
  0xe4   :  { %v189_v10 = vpop.f32.mrb[5].mxu0  ;;  %3236 = vmatpush3.bf16.msra.mxu1 %v3233_v8 }
  0xe5   :  { %v3237_v11 = vpack.c.bf16 %v2807_v9, %v189_v10 }
  0xe7   :  { %v2810_v12 = vpop.f32.mrb[6].mxu0  ;;  %3238 = vmatprep.subr.bf16.mxu1 %v3237_v11 }
  0xe8   :  { %v199_v13 = vpop.f32.mrb[7].mxu0  ;;  %3240 = vmatpush3.bf16.msra.mxu1 %v3237_v11 }
  0xe9   :  { %v3241_v14 = vpack.c.bf16 %v2810_v12, %v199_v13 }
  0xeb   :  { %v2813_v15 = vpop.f32.mrb[8].mxu0  ;;  %3242 = vmatprep.subr.bf16.mxu1 %v3241_v14 }
  0xec   :  { %v209_v16 = vpop.f32.mrb[9].mxu0  ;;  %3244 = vmatpush3.bf16.msra.mxu1 %v3241_v14 }
  0xed   :  { %v3245_v17 = vpack.c.bf16 %v2813_v15, %v209_v16 }
  0xef   :  { %v2816_v18 = vpop.f32.mrb[10].mxu0  ;;  %3246 = vmatprep.subr.bf16.mxu1 %v3245_v17 }
  0xf0   :  { %v219_v19 = vpop.f32.mrb[11].mxu0  ;;  %3248 = vmatpush3.bf16.msra.mxu1 %v3245_v17 }
  0xf1   :  { %v3249_v20 = vpack.c.bf16 %v2816_v18, %v219_v19 }
  0xf3   :  { %3250 = vmatprep.subr.bf16.mxu1 %v3249_v20  ;;  %v2865_v21 = vpop.f32.mrb[12].mxu0 }
  0xf4   :  { %3252 = vmatpush3.bf16.msra.mxu1 %v3249_v20  ;;  %v492_v22 = vpop.f32.mrb[13].mxu0 }
  0xf5   :  { %v3257_v24 = vpack.c.bf16 %v2865_v21, %v492_v22 }
  0xf7   :  { %2842 = vmatmul.mubr.msk.f32.vlgmr.msra.gmra.mrb[0].mxu1 %vm228_vm1, %v3919_v23  ;;  %v2868_v26 = vpop.f32.mrb[14].mxu0  ;;  %3258 = vmatprep.subr.bf16.mxu1 %v3257_v24 }
  0xf8   :  { %v502_v27 = vpop.f32.mrb[15].mxu0  ;;  %3260 = vmatpush3.bf16.msra.mxu1 %v3257_v24  ;;  %2844 = vmatprep.mubr.msk.f32.mxu1 %vm228_vm1, %v3924_v25 }
  0xf9   :  { %v3261_v29 = vpack.c.bf16 %v2868_v26, %v502_v27 }
  0xfb   :  { %2845 = vmatmul.mubr.msk.f32.gmra.mrb[2].mxu1 %vm228_vm1, %v3933_v28  ;;  %v2871_v31 = vpop.f32.mrb[16].mxu0  ;;  %3262 = vmatprep.subr.bf16.mxu1 %v3261_v29 }
  0xfc   :  { %v512_v32 = vpop.f32.mrb[17].mxu0  ;;  %3264 = vmatpush3.bf16.msra.mxu1 %v3261_v29  ;;  %2847 = vmatprep.mubr.msk.f32.mxu1 %vm228_vm1, %v3938_v30 }
  0xfd   :  { %v3265_v34 = vpack.c.bf16 %v2871_v31, %v512_v32 }
  0xff   :  { %2848 = vmatmul.mubr.msk.f32.gmra.mrb[4].mxu1 %vm228_vm1, %v3947_v33  ;;  %v2874_v36 = vpop.f32.mrb[18].mxu0  ;;  %3266 = vmatprep.subr.bf16.mxu1 %v3265_v34 }
 0x100   :  { %v522_v37 = vpop.f32.mrb[19].mxu0  ;;  %3268 = vmatpush3.bf16.msra.mxu1 %v3265_v34  ;;  %2850 = vmatprep.mubr.msk.f32.mxu1 %vm228_vm1, %v3952_v35 }
 0x101   :  { %v3269_v39 = vpack.c.bf16 %v2874_v36, %v522_v37 }
 0x103   :  { %2851 = vmatmul.mubr.msk.f32.gmra.mrb[6].mxu1 %vm228_vm1, %v3961_v38  ;;  %v2877_v41 = vpop.f32.mrb[20].mxu0  ;;  %3270 = vmatprep.subr.bf16.mxu1 %v3269_v39 }
 0x104   :  { %v532_v42 = vpop.f32.mrb[21].mxu0  ;;  %3272 = vmatpush3.bf16.msra.mxu1 %v3269_v39  ;;  %2853 = vmatprep.mubr.msk.f32.mxu1 %vm228_vm1, %v3966_v40 }
 0x105   :  { %v3273_v44 = vpack.c.bf16 %v2877_v41, %v532_v42 }
 0x107   :  { %2854 = vmatmul.mubr.msk.f32.gmra.mrb[8].mxu1 %vm228_vm1, %v3975_v43  ;;  %v2880_v46 = vpop.f32.mrb[22].mxu0  ;;  %3274 = vmatprep.subr.bf16.mxu1 %v3273_v44 }
 0x108   :  { %v542_v47 = vpop.f32.mrb[23].mxu0  ;;  %3276 = vmatpush3.bf16.msra.mxu1 %v3273_v44  ;;  %2856 = vmatprep.mubr.msk.f32.mxu1 %vm228_vm1, %v3980_v45 }
 0x109   :  { %v3277_v49 = vpack.c.bf16 %v2880_v46, %v542_v47 }
 0x10b   :  { %2857 = vmatmul.mubr.msk.f32.gmra.mrb[10].mxu1 %vm228_vm1, %v3989_v48  ;;  %3278 = vmatprep.subr.bf16.mxu1 %v3277_v49  ;;  %v2929_v50 = vpop.f32.mrb[24].mxu0 }
 0x10c   :  { %3280 = vmatpush3.bf16.msra.mxu1 %v3277_v49  ;;  %v790_v51 = vpop.f32.mrb[25].mxu0  ;;  %2905 = vmatprep.mubr.msk.f32.mxu1 %vm228_vm1, %v3853_v62 }
 0x10d   :  { %v3285_v52 = vpack.c.bf16 %v2929_v50, %v790_v51 }
 0x10f   :  { %2906 = vmatmul.mubr.msk.f32.vlgmr.msra.gmra.mrb[12].mxu1 %vm228_vm1, %v3919_v23  ;;  %v2932_v53 = vpop.f32.mrb[26].mxu0  ;;  %3286 = vmatprep.subr.bf16.mxu1 %v3285_v52 }
 0x110   :  { %v800_v54 = vpop.f32.mrb[27].mxu0  ;;  %3288 = vmatpush3.bf16.msra.mxu1 %v3285_v52  ;;  %2908 = vmatprep.mubr.msk.f32.mxu1 %vm228_vm1, %v3924_v25 }
 0x111   :  { %v3289_v55 = vpack.c.bf16 %v2932_v53, %v800_v54 }
 0x113   :  { %2909 = vmatmul.mubr.msk.f32.gmra.mrb[14].mxu1 %vm228_vm1, %v3933_v28  ;;  %v2935_v56 = vpop.f32.mrb[28].mxu0  ;;  %3290 = vmatprep.subr.bf16.mxu1 %v3289_v55 }
 0x114   :  { %v810_v57 = vpop.f32.mrb[29].mxu0  ;;  %3292 = vmatpush3.bf16.msra.mxu1 %v3289_v55  ;;  %2911 = vmatprep.mubr.msk.f32.mxu1 %vm228_vm1, %v3938_v30 }
 0x115   :  { %v3293_v58 = vpack.c.bf16 %v2935_v56, %v810_v57 }
 0x117   :  { %2912 = vmatmul.mubr.msk.f32.gmra.mrb[16].mxu1 %vm228_vm1, %v3947_v33  ;;  %v2938_v59 = vpop.f32.mrb[30].mxu0  ;;  %3294 = vmatprep.subr.bf16.mxu1 %v3293_v58 }
 0x118   :  { %v820_v60 = vpop.f32.mrb[31].mxu0  ;;  %3296 = vmatpush3.bf16.msra.mxu1 %v3293_v58  ;;  %2914 = vmatprep.mubr.msk.f32.mxu1 %vm228_vm1, %v3952_v35 }
 0x119   :  { %v3297_v61 = vpack.c.bf16 %v2938_v59, %v820_v60 }
 0x11b   :  { %2915 = vmatmul.mubr.msk.f32.gmra.mrb[18].mxu1 %vm228_vm1, %v3961_v38  ;;  %v2941_v63 = vpop.f32.mrb[32].mxu0  ;;  %3298 = vmatprep.subr.bf16.mxu1 %v3297_v61 }
 0x11c   :  { %v830_v0 = vpop.f32.mrb[33].mxu0  ;;  %3300 = vmatpush3.bf16.msra.mxu1 %v3297_v61  ;;  %2917 = vmatprep.mubr.msk.f32.mxu1 %vm228_vm1, %v3966_v40  ;;  %v1880_v61 = vld [vmem:[%s4519_s4] sm:$0xff] }
 0x11d   :  { %v3301_v1 = vpack.c.bf16 %v2941_v63, %v830_v0  ;;  %v1881_v0 = vld [vmem:[%s4519_s4 + $0x8] sm:$0xff]  ;;  %3216 = vmatprep.mubr.msk.f32.mxu0 %vm228_vm1, %v1880_v61 }
 0x11f   :  { %2918 = vmatmul.mubr.msk.f32.gmra.mrb[20].mxu1 %vm228_vm1, %v3975_v43  ;;  %v2944_v3 = vpop.f32.mrb[34].mxu0  ;;  %3302 = vmatprep.subr.bf16.mxu1 %v3301_v1 }
 0x120   :  { %v840_v2 = vpop.f32.mrb[35].mxu0  ;;  %3304 = vmatpush3.bf16.msra.mxu1 %v3301_v1  ;;  %2920 = vmatprep.mubr.msk.f32.mxu1 %vm228_vm1, %v3980_v45 }
 0x121   :  { %v3305_v4 = vpack.c.bf16 %v2944_v3, %v840_v2 }
 0x123   :  { %2921 = vmatmul.mubr.msk.f32.gmra.mrb[22].mxu1 %vm228_vm1, %v3989_v48  ;;  %3306 = vmatprep.subr.bf16.mxu1 %v3305_v4  ;;  %v2993_v5 = vpop.f32.mrb[36].mxu0 }
 0x124   :  { %3308 = vmatpush3.bf16.msra.mxu1 %v3305_v4  ;;  %v1088_v6 = vpop.f32.mrb[37].mxu0  ;;  %2969 = vmatprep.mubr.msk.f32.mxu1 %vm228_vm1, %v3853_v62 }
 0x125   :  { %v3313_v7 = vpack.c.bf16 %v2993_v5, %v1088_v6 }
 0x127   :  { %2970 = vmatmul.mubr.msk.f32.vlgmr.msra.gmra.mrb[24].mxu1 %vm228_vm1, %v3919_v23  ;;  %v2996_v8 = vpop.f32.mrb[38].mxu0  ;;  %3314 = vmatprep.subr.bf16.mxu1 %v3313_v7 }
 0x128   :  { %v1098_v9 = vpop.f32.mrb[39].mxu0  ;;  %3316 = vmatpush3.bf16.msra.mxu1 %v3313_v7  ;;  %2972 = vmatprep.mubr.msk.f32.mxu1 %vm228_vm1, %v3924_v25 }
 0x129   :  { %v3317_v10 = vpack.c.bf16 %v2996_v8, %v1098_v9 }
 0x12b   :  { %2973 = vmatmul.mubr.msk.f32.gmra.mrb[26].mxu1 %vm228_vm1, %v3933_v28  ;;  %v2999_v11 = vpop.f32.mrb[40].mxu0  ;;  %3318 = vmatprep.subr.bf16.mxu1 %v3317_v10 }
 0x12c   :  { %v1108_v12 = vpop.f32.mrb[41].mxu0  ;;  %3320 = vmatpush3.bf16.msra.mxu1 %v3317_v10  ;;  %2975 = vmatprep.mubr.msk.f32.mxu1 %vm228_vm1, %v3938_v30 }
 0x12d   :  { %v3321_v13 = vpack.c.bf16 %v2999_v11, %v1108_v12  ;;  %v1882_v12 = vld [vmem:[%s4519_s4 + $0x10] sm:$0xff] }
 0x12f   :  { %2976 = vmatmul.mubr.msk.f32.gmra.mrb[28].mxu1 %vm228_vm1, %v3947_v33  ;;  %v3002_v14 = vpop.f32.mrb[42].mxu0  ;;  %3322 = vmatprep.subr.bf16.mxu1 %v3321_v13 }
 0x130   :  { %v1118_v15 = vpop.f32.mrb[43].mxu0  ;;  %3324 = vmatpush3.bf16.msra.mxu1 %v3321_v13  ;;  %2978 = vmatprep.mubr.msk.f32.mxu1 %vm228_vm1, %v3952_v35 }
 0x131   :  { %v3325_v16 = vpack.c.bf16 %v3002_v14, %v1118_v15  ;;  %v1883_v14 = vld [vmem:[%s4519_s4 + $0x18] sm:$0xff] }
 0x133   :  { %2979 = vmatmul.mubr.msk.f32.gmra.mrb[30].mxu1 %vm228_vm1, %v3961_v38  ;;  %v3005_v17 = vpop.f32.mrb[44].mxu0  ;;  %3326 = vmatprep.subr.bf16.mxu1 %v3325_v16 }
 0x134   :  { %v1128_v18 = vpop.f32.mrb[45].mxu0  ;;  %3328 = vmatpush3.bf16.msra.mxu1 %v3325_v16  ;;  %2981 = vmatprep.mubr.msk.f32.mxu1 %vm228_vm1, %v3966_v40 }
 0x135   :  { %v3329_v19 = vpack.c.bf16 %v3005_v17, %v1128_v18  ;;  %v1884_v17 = vld [vmem:[%s4519_s4 + $0x20] sm:$0xff]  ;;  %v1885_v18 = vld [vmem:[%s4519_s4 + $0x28] sm:$0xff] }
 0x137   :  { %2982 = vmatmul.mubr.msk.f32.gmra.mrb[32].mxu1 %vm228_vm1, %v3975_v43  ;;  %v3008_v20 = vpop.f32.mrb[46].mxu0  ;;  %3330 = vmatprep.subr.bf16.mxu1 %v3329_v19 }
 0x138   :  { %v1138_v21 = vpop.f32.mrb[47].mxu0  ;;  %3332 = vmatpush3.bf16.msra.mxu1 %v3329_v19  ;;  %2984 = vmatprep.mubr.msk.f32.mxu1 %vm228_vm1, %v3980_v45 }
 0x139   :  { %v3333_v22 = vpack.c.bf16 %v3008_v20, %v1138_v21 }
 0x13b   :  { %2985 = vmatmul.mubr.msk.f32.gmra.mrb[34].mxu1 %vm228_vm1, %v3989_v48  ;;  %3334 = vmatprep.subr.bf16.mxu1 %v3333_v22  ;;  %v3057_v24 = vpop.f32.mrb[48].mxu0 }
 0x13c   :  { %3336 = vmatpush3.bf16.msra.mxu1 %v3333_v22  ;;  %v1386_v26 = vpop.f32.mrb[49].mxu0  ;;  %3033 = vmatprep.mubr.msk.f32.mxu1 %vm228_vm1, %v3853_v62 }
 0x13d   :  { %v3341_v27 = vpack.c.bf16 %v3057_v24, %v1386_v26 }
 0x13f   :  { %3034 = vmatmul.mubr.msk.f32.vlgmr.msra.gmra.mrb[36].mxu1 %vm228_vm1, %v3919_v23  ;;  %v3060_v29 = vpop.f32.mrb[50].mxu0  ;;  %3342 = vmatprep.subr.bf16.mxu1 %v3341_v27 }
 0x140   :  { %v1396_v31 = vpop.f32.mrb[51].mxu0  ;;  %3344 = vmatpush3.bf16.msra.mxu1 %v3341_v27  ;;  %3036 = vmatprep.mubr.msk.f32.mxu1 %vm228_vm1, %v3924_v25 }
 0x141   :  { %v3345_v32 = vpack.c.bf16 %v3060_v29, %v1396_v31 }
 0x143   :  { %3037 = vmatmul.mubr.msk.f32.gmra.mrb[38].mxu1 %vm228_vm1, %v3933_v28  ;;  %v3063_v34 = vpop.f32.mrb[52].mxu0  ;;  %3346 = vmatprep.subr.bf16.mxu1 %v3345_v32 }
 0x144   :  { %v1406_v36 = vpop.f32.mrb[53].mxu0  ;;  %3348 = vmatpush3.bf16.msra.mxu1 %v3345_v32  ;;  %3039 = vmatprep.mubr.msk.f32.mxu1 %vm228_vm1, %v3938_v30 }
 0x145   :  { %v3349_v37 = vpack.c.bf16 %v3063_v34, %v1406_v36 }
 0x147   :  { %3040 = vmatmul.mubr.msk.f32.gmra.mrb[40].mxu1 %vm228_vm1, %v3947_v33  ;;  %v3066_v39 = vpop.f32.mrb[54].mxu0  ;;  %3350 = vmatprep.subr.bf16.mxu1 %v3349_v37 }
 0x148   :  { %v1416_v41 = vpop.f32.mrb[55].mxu0  ;;  %3352 = vmatpush3.bf16.msra.mxu1 %v3349_v37  ;;  %3042 = vmatprep.mubr.msk.f32.mxu1 %vm228_vm1, %v3952_v35 }
 0x149   :  { %v3353_v42 = vpack.c.bf16 %v3066_v39, %v1416_v41 }
 0x14b   :  { %3043 = vmatmul.mubr.msk.f32.gmra.mrb[42].mxu1 %vm228_vm1, %v3961_v38  ;;  %v3069_v44 = vpop.f32.mrb[56].mxu0  ;;  %3354 = vmatprep.subr.bf16.mxu1 %v3353_v42 }
 0x14c   :  { %v1426_v46 = vpop.f32.mrb[57].mxu0  ;;  %3356 = vmatpush3.bf16.msra.mxu1 %v3353_v42  ;;  %3045 = vmatprep.mubr.msk.f32.mxu1 %vm228_vm1, %v3966_v40 }
 0x14d   :  { %v3357_v47 = vpack.c.bf16 %v3069_v44, %v1426_v46 }
 0x14f   :  { %3046 = vmatmul.mubr.msk.f32.gmra.mrb[44].mxu1 %vm228_vm1, %v3975_v43  ;;  %v3072_v49 = vpop.f32.mrb[58].mxu0  ;;  %3358 = vmatprep.subr.bf16.mxu1 %v3357_v47 }
 0x150   :  { %v1436_v50 = vpop.f32.mrb[59].mxu0  ;;  %3360 = vmatpush3.bf16.msra.mxu1 %v3357_v47  ;;  %3048 = vmatprep.mubr.msk.f32.mxu1 %vm228_vm1, %v3980_v45 }
 0x151   :  { %v3361_v51 = vpack.c.bf16 %v3072_v49, %v1436_v50 }
 0x153   :  { %3049 = vmatmul.mubr.msk.f32.gmra.mrb[46].mxu1 %vm228_vm1, %v3989_v48  ;;  %3362 = vmatprep.subr.bf16.mxu1 %v3361_v51 }
 0x154   :  { %3364 = vmatpush3.bf16.msra.mxu1 %v3361_v51  ;;  %3097 = vmatprep.mubr.msk.f32.mxu1 %vm228_vm1, %v3853_v62  ;;  %v3121_v62 = vpop.f32.mrb[60].mxu0 }
 0x157   :  { %3098 = vmatmul.mubr.msk.f32.vlgmr.msra.gmra.mrb[48].mxu1 %vm228_vm1, %v3919_v23  ;;  %v1954_v23 = vpop.f32.mrb[61].mxu0 }
 0x158   :  { %3100 = vmatprep.mubr.msk.f32.mxu1 %vm228_vm1, %v3924_v25  ;;  %v3369_v25 = vpack.c.bf16 %v3121_v62, %v1954_v23 }
 0x15a   :  { %3370 = vmatprep.subr.bf16.mxu1 %v3369_v25 }
 0x15b   :  { %3101 = vmatmul.mubr.msk.f32.gmra.mrb[50].mxu1 %vm228_vm1, %v3933_v28  ;;  %v3124_v28 = vpop.f32.mrb[62].mxu0 }
 0x15c   :  { %3103 = vmatprep.mubr.msk.f32.mxu1 %vm228_vm1, %v3938_v30  ;;  %v1964_v30 = vpop.f32.mrb[63].mxu0  ;;  %3372 = vmatpush3.bf16.msra.mxu1 %v3369_v25 }
 0x15f   :  { %3104 = vmatmul.mubr.msk.f32.gmra.mrb[52].mxu1 %vm228_vm1, %v3947_v33  ;;  %v3373_v33 = vpack.c.bf16 %v3124_v28, %v1964_v30 }
 0x160   :  { %3106 = vmatprep.mubr.msk.f32.mxu1 %vm228_vm1, %v3952_v35  ;;  %v3127_v35 = vpop.f32.mrb[64].mxu0 }
 0x161   :  { %3374 = vmatprep.subr.bf16.mxu1 %v3373_v33 }
 0x162   :  { %3376 = vmatpush3.bf16.msra.mxu1 %v3373_v33 }
 0x163   :  { %3107 = vmatmul.mubr.msk.f32.gmra.mrb[54].mxu1 %vm228_vm1, %v3961_v38  ;;  %v1974_v38 = vpop.f32.mrb[65].mxu0 }
 0x164   :  { %3109 = vmatprep.mubr.msk.f32.mxu1 %vm228_vm1, %v3966_v40  ;;  %v3377_v40 = vpack.c.bf16 %v3127_v35, %v1974_v38 }
 0x166   :  { %3378 = vmatprep.subr.bf16.mxu1 %v3377_v40 }
 0x167   :  { %3110 = vmatmul.mubr.msk.f32.gmra.mrb[56].mxu1 %vm228_vm1, %v3975_v43  ;;  %v3130_v43 = vpop.f32.mrb[66].mxu0 }
 0x168   :  { %3112 = vmatprep.mubr.msk.f32.mxu1 %vm228_vm1, %v3980_v45  ;;  %v1984_v52 = vpop.f32.mrb[67].mxu0  ;;  %3380 = vmatpush3.bf16.msra.mxu1 %v3377_v40 }
 0x169   :  { %v3381_v45 = vpack.c.bf16 %v3130_v43, %v1984_v52  ;;  %v3133_v53 = vpop.f32.mrb[68].mxu0 }
 0x16b   :  { %3113 = vmatmul.mubr.msk.f32.gmra.mrb[58].mxu1 %vm228_vm1, %v3989_v48  ;;  %3382 = vmatprep.subr.bf16.mxu1 %v3381_v45  ;;  %v1994_v48 = vpop.f32.mrb[69].mxu0 }
 0x16c   :  { %3384 = vmatpush3.bf16.msra.mxu1 %v3381_v45  ;;  %v3385_v54 = vpack.c.bf16 %v3133_v53, %v1994_v48  ;;  %v3136_v55 = vpop.f32.mrb[70].mxu0  ;;  %3161 = vmatprep.mubr.msk.f32.mxu1 %vm228_vm1, %v1880_v61 }
 0x16d   :  { %v2004_v56 = vpop.f32.mrb[71].mxu0 }
 0x16e   :  { %3386 = vmatprep.subr.bf16.mxu1 %v3385_v54  ;;  %v3389_v57 = vpack.c.bf16 %v3136_v55, %v2004_v56  ;;  %v3176_v58 = vpop.f32.mrb[72].mxu0 }
 0x16f   :  { %v2199_v59 = vpop.f32.mrb[73].mxu0 }
 0x170   :  { %3388 = vmatpush3.bf16.msra.mxu1 %v3385_v54  ;;  %v3397_v60 = vpack.c.bf16 %v3176_v58, %v2199_v59  ;;  %v3179_v63 = vpop.f32.mrb[74].mxu0 }
 0x171   :  { %3390 = vmatprep.subr.bf16.mxu1 %v3389_v57  ;;  %v2209_v1 = vpop.f32.mrb[75].mxu0 }
 0x172   :  { %3398 = vmatprep.subr.bf16.mxu0 %v3397_v60  ;;  %v3401_v3 = vpack.c.bf16 %v3179_v63, %v2209_v1 }
 0x173   :  { %3400 = vmatpush3.bf16.msra.mxu0 %v3397_v60  ;;  %v3182_v2 = vpop.f32.mrb[76].mxu0 }
 0x174   :  { %3392 = vmatpush3.bf16.msra.mxu1 %v3389_v57  ;;  %3402 = vmatprep.subr.bf16.mxu0 %v3401_v3  ;;  %v2219_v4 = vpop.f32.mrb[77].mxu0 }
 0x175   :  { %3421 = vmatprep.subr.bf16.mxu1 %v3397_v60  ;;  %v3405_v5 = vpack.c.bf16 %v3182_v2, %v2219_v4 }
 0x177   :  { %3162 = vmatmul.mubr.msk.f32.vlgmr.msra.gmra.mrb[60].mxu1 %vm228_vm1, %v1881_v0  ;;  %3404 = vmatpush3.bf16.msra.mxu0 %v3401_v3  ;;  %v3185_v6 = vpop.f32.mrb[78].mxu0 }
 0x178   :  { %3427 = vmatpush3.bf16.msra.mxu1 %v3397_v60  ;;  %3406 = vmatprep.subr.bf16.mxu0 %v3405_v5  ;;  %v2229_v7 = vpop.f32.mrb[79].mxu0 }
 0x179   :  { %3422 = vmatprep.subr.bf16.mxu1 %v3401_v3  ;;  %v3409_v8 = vpack.c.bf16 %v3185_v6, %v2229_v7  ;;  %3164 = vmatprep.mubr.msk.f32.mxu1 %vm228_vm1, %v1882_v12 }
 0x17b   :  { %3408 = vmatpush3.bf16.msra.mxu0 %v3405_v5  ;;  %v3188_v9 = vpop.f32.mrb[80].mxu0  ;;  %3165 = vmatmul.mubr.msk.f32.gmra.mrb[62].mxu1 %vm228_vm1, %v1883_v14 }
 0x17c   :  { %3428 = vmatpush3.bf16.msra.mxu1 %v3401_v3  ;;  %3410 = vmatprep.subr.bf16.mxu0 %v3409_v8  ;;  %v2239_v10 = vpop.f32.mrb[81].mxu0 }
 0x17d   :  { %3423 = vmatprep.subr.bf16.mxu1 %v3405_v5  ;;  %v3413_v11 = vpack.c.bf16 %v3188_v9, %v2239_v10  ;;  %3167 = vmatprep.mubr.msk.f32.mxu1 %vm228_vm1, %v1884_v17 }
 0x17f   :  { %3412 = vmatpush3.bf16.msra.mxu0 %v3409_v8  ;;  %v3191_v13 = vpop.f32.mrb[82].mxu0  ;;  %3168 = vmatmul.mubr.msk.f32.gmra.mrb[64].mxu1 %vm228_vm1, %v1885_v18 }
 0x180   :  { %3429 = vmatpush3.bf16.msra.mxu1 %v3405_v5  ;;  %3414 = vmatprep.subr.bf16.mxu0 %v3413_v11  ;;  %v2249_v15 = vpop.f32.mrb[83].mxu0 }
 0x181   :  { %3424 = vmatprep.subr.bf16.mxu1 %v3409_v8  ;;  %v3417_v16 = vpack.c.bf16 %v3191_v13, %v2249_v15  ;;  %3219 = vmatprep.mubr.msk.f32.mxu1 %vm228_vm1, %v1882_v12 }
 0x183   :  { %3416 = vmatpush3.bf16.msra.mxu0 %v3413_v11 }
 0x184   :  { %3430 = vmatpush3.bf16.msra.mxu1 %v3409_v8  ;;  %3418 = vmatprep.subr.bf16.mxu0 %v3417_v16 }
 0x185   :  { %3425 = vmatprep.subr.bf16.mxu1 %v3413_v11 }
 0x187   :  { %3420 = vmatpush3.bf16.msra.mxu0 %v3417_v16 }
 0x188   :  { %3431 = vmatpush3.bf16.msra.mxu1 %v3413_v11 }
 0x189   :  { %3426 = vmatprep.subr.bf16.mxu1 %v3417_v16 }
 0x18a   :  { %3217 = vmatmul.mubr.msk.f32.vlgmr.msra.gmra.mrb[84].mxu0 %vm228_vm1, %v1881_v0 }
 0x18c   :  { %3432 = vmatpush3.bf16.msra.mxu1 %v3417_v16 }
 0x18f   :  { %3220 = vmatmul.mubr.msk.f32.vlgmr.msra.gmra.mrb[66].mxu1 %vm228_vm1, %v1883_v14 }
 0x190   :  { %3222 = vmatprep.mubr.msk.f32.mxu1 %vm228_vm1, %v1884_v17 }
 0x193   :  { %3223 = vmatmul.mubr.msk.f32.gmra.mrb[68].mxu1 %vm228_vm1, %v1885_v18 }
 0x1ca   :  { %v2843_v19 = vpop.f32.mrb[0].mxu1 }
 0x1cb   :  { %v331_v20 = vpop.f32.mrb[1].mxu1  ;;  %v4119_v39 = vmul.f32 %v2843_v19, %v2843_v19 }
 0x1cc   :  { %v4125_v46 = vmul.f32 %v331_v20, %v331_v20 }
 0x1ce   :  { %v2846_v21 = vpop.f32.mrb[2].mxu1 }
 0x1cf   :  { %v341_v22 = vpop.f32.mrb[3].mxu1  ;;  %v4139_v23 = vmul.f32 %v2846_v21, %v2846_v21 }
 0x1d0   :  { %v4145_v33 = vmul.f32 %v341_v22, %v341_v22 }
 0x1d2   :  { %v2849_v24 = vpop.f32.mrb[4].mxu1 }
 0x1d3   :  { %v351_v26 = vpop.f32.mrb[5].mxu1  ;;  %v4159_v45 = vmul.f32 %v2849_v24, %v2849_v24 }
 0x1d4   :  { %v4165_v55 = vmul.f32 %v351_v26, %v351_v26 }
 0x1d6   :  { %v2852_v27 = vpop.f32.mrb[6].mxu1 }
 0x1d7   :  { %v361_v29 = vpop.f32.mrb[7].mxu1  ;;  %v4179_v61 = vmul.f32 %v2852_v27, %v2852_v27 }
 0x1d8   :  { %v4185_v3 = vmul.f32 %v361_v29, %v361_v29 }
 0x1da   :  { %v2855_v31 = vpop.f32.mrb[8].mxu1 }
 0x1db   :  { %v371_v32 = vpop.f32.mrb[9].mxu1  ;;  %v4199_v8 = vmul.f32 %v2855_v31, %v2855_v31 }
 0x1dc   :  { %v4205_v12 = vmul.f32 %v371_v32, %v371_v32 }
 0x1de   :  { %v2858_v34 = vpop.f32.mrb[10].mxu1 }
 0x1df   :  { %v381_v36 = vpop.f32.mrb[11].mxu1  ;;  %v4219_v18 = vmul.f32 %v2858_v34, %v2858_v34 }
 0x1e2   :  { %v2907_v37 = vpop.f32.mrb[12].mxu1 }
 0x1e3   :  { %v4121_v41 = vmul.f32 %v2907_v37, %v2907_v37  ;;  %v4123_v42 = vmul.f32 %v2907_v37, %v2843_v19  ;;  %v617_v44 = vpop.f32.mrb[13].mxu1 }
 0x1e4   :  { %v4127_v47 = vmul.f32 %v617_v44, %v617_v44  ;;  %v4129_v49 = vmul.f32 %v617_v44, %v331_v20 }
 0x1e5   :  { %4529 = vst [vmem:[#allocation5_spill] sm:$0xff] %v4123_v42  ;;  %v4133_v50 = vadd.f32 %v4121_v41, %v4119_v39 }
 0x1e6   :  { %v4137_v51 = vadd.f32 %v4127_v47, %v4125_v46  ;;  %v2910_v62 = vpop.f32.mrb[14].mxu1 }
 0x1e7   :  { %v4141_v25 = vmul.f32 %v2910_v62, %v2910_v62  ;;  %v4143_v28 = vmul.f32 %v2910_v62, %v2846_v21  ;;  %v627_v30 = vpop.f32.mrb[15].mxu1 }
 0x1e8   :  { %v4147_v35 = vmul.f32 %v627_v30, %v627_v30  ;;  %v4149_v38 = vmul.f32 %v627_v30, %v341_v22  ;;  %v4225_v22 = vmul.f32 %v381_v36, %v381_v36 }
 0x1e9   :  { %v4153_v40 = vadd.f32 %v4141_v25, %v4139_v23 }
 0x1ea   :  { %4530 = vst [vmem:[#allocation6_spill] sm:$0xff] %v4149_v38  ;;  %v4157_v43 = vadd.f32 %v4147_v35, %v4145_v33  ;;  %v2913_v52 = vpop.f32.mrb[16].mxu1 }
 0x1eb   :  { %v4161_v53 = vmul.f32 %v2913_v52, %v2913_v52  ;;  %v4163_v48 = vmul.f32 %v2913_v52, %v2849_v24  ;;  %v637_v54 = vpop.f32.mrb[17].mxu1 }
 0x1ec   :  { %v4167_v56 = vmul.f32 %v637_v54, %v637_v54  ;;  %v4169_v57 = vmul.f32 %v637_v54, %v351_v26 }
 0x1ed   :  { %v4173_v58 = vadd.f32 %v4161_v53, %v4159_v45 }
 0x1ee   :  { %v4177_v59 = vadd.f32 %v4167_v56, %v4165_v55  ;;  %v2916_v60 = vpop.f32.mrb[18].mxu1 }
 0x1ef   :  { %v4181_v63 = vmul.f32 %v2916_v60, %v2916_v60  ;;  %v4183_v0 = vmul.f32 %v2916_v60, %v2852_v27  ;;  %v647_v1 = vpop.f32.mrb[19].mxu1 }
 0x1f0   :  { %v4187_v2 = vmul.f32 %v647_v1, %v647_v1  ;;  %v4189_v4 = vmul.f32 %v647_v1, %v361_v29 }
 0x1f1   :  { %v4193_v5 = vadd.f32 %v4181_v63, %v4179_v61 }
 0x1f2   :  { %v4197_v6 = vadd.f32 %v4187_v2, %v4185_v3  ;;  %v2919_v7 = vpop.f32.mrb[20].mxu1 }
 0x1f3   :  { %v4201_v9 = vmul.f32 %v2919_v7, %v2919_v7  ;;  %v4203_v10 = vmul.f32 %v2919_v7, %v2855_v31  ;;  %v657_v11 = vpop.f32.mrb[21].mxu1 }
 0x1f4   :  { %v4207_v13 = vmul.f32 %v657_v11, %v657_v11  ;;  %v4209_v14 = vmul.f32 %v657_v11, %v371_v32 }
 0x1f5   :  { %v4213_v15 = vadd.f32 %v4201_v9, %v4199_v8 }
 0x1f6   :  { %v4217_v16 = vadd.f32 %v4207_v13, %v4205_v12  ;;  %v2922_v17 = vpop.f32.mrb[22].mxu1 }
 0x1f7   :  { %v4221_v19 = vmul.f32 %v2922_v17, %v2922_v17  ;;  %v4223_v20 = vmul.f32 %v2922_v17, %v2858_v34  ;;  %v667_v21 = vpop.f32.mrb[23].mxu1 }
 0x1f8   :  { %v4227_v24 = vmul.f32 %v667_v21, %v667_v21  ;;  %v4229_v26 = vmul.f32 %v667_v21, %v381_v36 }
 0x1f9   :  { %4531 = vst [vmem:[#allocation7_spill] sm:$0xff] %v4223_v20  ;;  %v4233_v27 = vadd.f32 %v4221_v19, %v4219_v18  ;;  %v1739_v20 = vadd.f32 6.5025, %v4133_v50 }
 0x1fa   :  { %4532 = vst [vmem:[#allocation8_spill] sm:$0xff] %v4229_v26  ;;  %v4237_v29 = vadd.f32 %v4227_v24, %v4225_v22  ;;  %v2971_v31 = vpop.f32.mrb[24].mxu1 }
 0x1fb   :  { %4533 = vst [vmem:[#allocation9_spill] sm:$0xff] %v4233_v27  ;;  %v1607_v32 = vsub.f32 %v2971_v31, %v4119_v39  ;;  %v915_v34 = vpop.f32.mrb[25].mxu1  ;;  %v1693_v39 = vmul.f32 2.0, %v4143_v28 }
 0x1fc   :  { %4534 = vst [vmem:[#allocation10_spill] sm:$0xff] %v4237_v29  ;;  %v1606_v37 = vsub.f32 %v915_v34, %v4125_v46  ;;  %v1692_v29 = vmul.f32 2.0, %v4149_v38 }
 0x1fd   :  { %v4284_v50 = vadd.f32 6.5025, %v1693_v39 }
 0x1fe   :  { %v2974_v44 = vpop.f32.mrb[26].mxu1 }
 0x1ff   :  { %v1609_v62 = vsub.f32 %v2974_v44, %v4139_v23  ;;  %v925_v30 = vpop.f32.mrb[27].mxu1 }
 0x200   :  { %v1608_v36 = vsub.f32 %v925_v30, %v4145_v33 }
 0x202   :  { %v2977_v52 = vpop.f32.mrb[28].mxu1 }
 0x203   :  { %v1611_v54 = vsub.f32 %v2977_v52, %v4159_v45  ;;  %v935_v60 = vpop.f32.mrb[29].mxu1  ;;  %v1690_v45 = vmul.f32 2.0, %v4129_v49 }
 0x204   :  { %v1610_v1 = vsub.f32 %v935_v60, %v4165_v55  ;;  %v1691_v60 = vmul.f32 2.0, %v4123_v42  ;;  %v1738_v42 = vadd.f32 6.5025, %v4137_v51  ;;  %v1694_v51 = vmul.f32 2.0, %v4169_v57 }
 0x206   :  { %v4245_v7 = vpop.f32.mrb[30].mxu1 }
 0x207   :  { %v4249_v11 = vpop.f32.mrb[31].mxu1 }
 0x20a   :  { %v4253_v23 = vpop.f32.mrb[32].mxu1 }
 0x20b   :  { %v4257_v17 = vpop.f32.mrb[33].mxu1 }
 0x20e   :  { %v4261_v55 = vpop.f32.mrb[34].mxu1 }
 0x20f   :  { %v4265_v31 = vpop.f32.mrb[35].mxu1 }
 0x212   :  { %v3035_v44 = vpop.f32.mrb[36].mxu1 }
 0x213   :  { %v1619_v30 = vsub.f32 %v3035_v44, %v4121_v41  ;;  %v1213_v52 = vpop.f32.mrb[37].mxu1  ;;  %v4277_v44 = vadd.f32 6.5025, %v1691_v60  ;;  %v4287_v60 = vadd.f32 6.5025, %v1692_v29 }
 0x214   :  { %v1618_v33 = vsub.f32 %v1213_v52, %v4127_v47  ;;  %v1743_v29 = vadd.f32 6.5025, %v4173_v58 }
 0x215   :  { %v1667_v46 = vadd.f32 %v1619_v30, %v1607_v32  ;;  %v4281_v32 = vadd.f32 6.5025, %v1690_v45 }
 0x216   :  { %v1666_v26 = vadd.f32 %v1618_v33, %v1606_v37  ;;  %v3038_v21 = vpop.f32.mrb[38].mxu1  ;;  %v1695_v37 = vmul.f32 2.0, %v4163_v48 }
 0x217   :  { %v1679_v34 = vadd.f32 58.5225, %v1667_v46  ;;  %v1621_v27 = vsub.f32 %v3038_v21, %v4141_v25  ;;  %v1223_v41 = vpop.f32.mrb[39].mxu1  ;;  %v1741_v46 = vadd.f32 6.5025, %v4153_v40 }
 0x218   :  { %v1678_v47 = vadd.f32 58.5225, %v1666_v26  ;;  %v1620_v52 = vsub.f32 %v1223_v41, %v4147_v35  ;;  %v1740_v41 = vadd.f32 6.5025, %v4157_v43 }
 0x219   :  { %v1751_v33 = vmul.f32 %v1739_v20, %v1679_v34  ;;  %v1669_v30 = vadd.f32 %v1621_v27, %v1609_v62  ;;  %3438 = vrcp.f32 %v1679_v34  ;;  %v4293_v62 = vadd.f32 6.5025, %v1695_v37 }
 0x21a   :  { %v1750_v38 = vmul.f32 %v1738_v42, %v1678_v47  ;;  %v1668_v25 = vadd.f32 %v1620_v52, %v1608_v36  ;;  %v3041_v21 = vpop.f32.mrb[40].mxu1  ;;  %3440 = vrcp.f32 %v1678_v47 }
 0x21b   :  { %v1681_v26 = vadd.f32 58.5225, %v1669_v30  ;;  %v1623_v35 = vsub.f32 %v3041_v21, %v4161_v53  ;;  %v1233_v45 = vpop.f32.mrb[41].mxu1  ;;  %3442 = vrcp.f32 %v1751_v33  ;;  %v4296_v30 = vadd.f32 6.5025, %v1694_v51 }
 0x21c   :  { %v1680_v20 = vadd.f32 58.5225, %v1668_v25  ;;  %v1622_v27 = vsub.f32 %v1233_v45, %v4167_v56  ;;  %3444 = vrcp.f32 %v1750_v38  ;;  %v1742_v56 = vadd.f32 6.5025, %v4177_v59 }
 0x21d   :  { %v1753_v42 = vmul.f32 %v1741_v46, %v1681_v26  ;;  %v1671_v40 = vadd.f32 %v1623_v35, %v1611_v54  ;;  %3446 = vrcp.f32 %v1681_v26  ;;  %v1697_v54 = vmul.f32 2.0, %v4183_v0 }
 0x21e   :  { %v1752_v36 = vmul.f32 %v1740_v41, %v1680_v20  ;;  %v1670_v39 = vadd.f32 %v1622_v27, %v1610_v1  ;;  %v3044_v52 = vpop.f32.mrb[42].mxu1  ;;  %3448 = vrcp.f32 %v1680_v20  ;;  %v4535_v1 = vsub.f32 %v4245_v7, %v4179_v61 }
 0x21f   :  { %v1683_v53 = vadd.f32 58.5225, %v1671_v40  ;;  %v1625_v43 = vsub.f32 %v3044_v52, %v4181_v63  ;;  %v1243_v34 = vpop.f32.mrb[43].mxu1  ;;  %v1696_v38 = vmul.f32 2.0, %v4189_v4  ;;  %3450 = vrcp.f32 %v1753_v42 }
 0x220   :  { %v1682_v37 = vadd.f32 58.5225, %v1670_v39  ;;  %v1624_v47 = vsub.f32 %v1243_v34, %v4187_v2  ;;  %v4536_v63 = vsub.f32 %v4249_v11, %v4185_v3  ;;  %v1745_v21 = vadd.f32 6.5025, %v4193_v5 }
 0x221   :  { %v1755_v58 = vmul.f32 %v1743_v29, %v1683_v53  ;;  %v1673_v33 = vadd.f32 %v1625_v43, %v4535_v1  ;;  %3452 = vrcp.f32 %v1752_v36  ;;  %v1744_v35 = vadd.f32 6.5025, %v4197_v6 }
 0x222   :  { %v1754_v46 = vmul.f32 %v1742_v56, %v1682_v37  ;;  %v1672_v59 = vadd.f32 %v1624_v47, %v4536_v63  ;;  %v3047_v25 = vpop.f32.mrb[44].mxu1  ;;  %3454 = vrcp.f32 %v1683_v53  ;;  %v4313_v45 = vadd.f32 6.5025, %v1697_v54  ;;  %v4543_v63 = vld [vmem:[#allocation10_spill] sm:$0xff] }
 0x223   :  { %v1685_v2 = vadd.f32 58.5225, %v1673_v33  ;;  %v1627_v51 = vsub.f32 %v3047_v25, %v4201_v9  ;;  %v1253_v26 = vpop.f32.mrb[45].mxu1  ;;  %3456 = vrcp.f32 %v1682_v37  ;;  %v4537_v3 = vsub.f32 %v4253_v23, %v4199_v8  ;;  %v4318_v5 = vpop.eup %3438 }
 0x224   :  { %v1684_v61 = vadd.f32 58.5225, %v1672_v59  ;;  %v1626_v7 = vsub.f32 %v1253_v26, %v4207_v13  ;;  %v4320_v20 = vadd.f32 6.5025, %v1696_v38  ;;  %3458 = vrcp.f32 %v1755_v58  ;;  %v4325_v13 = vpop.eup %3440  ;;  %v4541_v58 = vld [vmem:[#allocation9_spill] sm:$0xff] }
 0x225   :  { %v1757_v41 = vmul.f32 %v1745_v21, %v1685_v2  ;;  %v1675_v11 = vadd.f32 %v1627_v51, %v4537_v3  ;;  %v4538_v6 = vsub.f32 %v4257_v17, %v4205_v12  ;;  %v1747_v40 = vadd.f32 6.5025, %v4213_v15  ;;  %v3443_v36 = vpop.eup %3442  ;;  %v4542_v38 = vld [vmem:[#allocation5_spill] sm:$0xff] }
 0x226   :  { %v1756_v9 = vmul.f32 %v1744_v35, %v1684_v61  ;;  %v3050_v42 = vpop.f32.mrb[46].mxu1  ;;  %3460 = vrcp.f32 %v1754_v46  ;;  %v1746_v39 = vadd.f32 6.5025, %v4217_v16  ;;  %v3445_v43 = vpop.eup %3444  ;;  %v1699_v12 = vmul.f32 2.0, %v4203_v10 }
 0x227   :  { %v1674_v27 = vadd.f32 %v1626_v7, %v4538_v6  ;;  %v1687_v29 = vadd.f32 58.5225, %v1675_v11  ;;  %v1629_v8 = vsub.f32 %v3050_v42, %v4221_v19  ;;  %v1263_v23 = vpop.f32.mrb[47].mxu1  ;;  %3462 = vrcp.f32 %v1685_v2  ;;  %v4335_v56 = vpop.eup %3446  ;;  %v4544_v11 = vld [vmem:[#allocation7_spill] sm:$0xff] }
 0x228   :  { %v1628_v53 = vsub.f32 %v1263_v23, %v4227_v24  ;;  %3464 = vrcp.f32 %v1684_v61  ;;  %v4539_v15 = vsub.f32 %v4261_v55, %v4219_v18  ;;  %v1698_v19 = vmul.f32 2.0, %v4209_v14  ;;  %v4341_v54 = vpop.eup %3448  ;;  %v4546_v23 = vld [vmem:[#allocation6_spill] sm:$0xff] }
 0x229   :  { %v1686_v52 = vadd.f32 58.5225, %v1674_v27  ;;  %v1759_v17 = vmul.f32 %v1747_v40, %v1687_v29  ;;  %3466 = vrcp.f32 %v1757_v41  ;;  %v4540_v16 = vsub.f32 %v4265_v31, %v4225_v22  ;;  %v4345_v46 = vpop.eup %3450  ;;  %v4545_v40 = vld [vmem:[#allocation8_spill] sm:$0xff] }
 0x22a   :  { %v1677_v34 = vadd.f32 %v1629_v8, %v4539_v15  ;;  %v3099_v24 = vpop.f32.mrb[48].mxu1  ;;  %v1749_v1 = vadd.f32 6.5025, %v4541_v58  ;;  %3468 = vrcp.f32 %v1756_v9  ;;  %v1748_v59 = vadd.f32 6.5025, %v4543_v63 }
 0x22b   :  { %v1758_v37 = vmul.f32 %v1746_v39, %v1686_v52  ;;  %v1676_v47 = vadd.f32 %v1628_v53, %v4540_v16  ;;  %v1631_v18 = vsub.f32 %v3099_v24, %v4542_v38  ;;  %v1511_v55 = vpop.f32.mrb[49].mxu1  ;;  %3470 = vrcp.f32 %v1687_v29  ;;  %v3453_v22 = vpop.eup %3452 }
 0x22c   :  { %v1689_v33 = vadd.f32 58.5225, %v1677_v34  ;;  %v1630_v21 = vsub.f32 %v1511_v55, %v4129_v49  ;;  %v4349_v31 = vadd.f32 6.5025, %v1699_v12  ;;  %3472 = vrcp.f32 %v1686_v52  ;;  %v4351_v26 = vpop.eup %3454 }
 0x22d   :  { %v1688_v25 = vadd.f32 58.5225, %v1676_v47  ;;  %v1643_v51 = vmul.f32 2.0, %v1631_v18  ;;  %v4353_v35 = vadd.f32 6.5025, %v1698_v19  ;;  %3474 = vrcp.f32 %v1759_v17  ;;  %v4355_v3 = vpop.eup %3456 }
 0x22e   :  { %v1761_v2 = vmul.f32 %v1749_v1, %v1689_v33  ;;  %v1642_v7 = vmul.f32 2.0, %v1630_v21  ;;  %v3102_v41 = vpop.f32.mrb[50].mxu1  ;;  %v4358_v9 = vmul.f32 2.0, %v4544_v11  ;;  %3476 = vrcp.f32 %v1758_v37  ;;  %v4361_v42 = vpop.eup %3458 }
 0x22f   :  { %v1760_v61 = vmul.f32 %v1748_v59, %v1688_v25  ;;  %v1655_v49 = vadd.f32 58.5225, %v1643_v51  ;;  %v1633_v6 = vsub.f32 %v3102_v41, %v4143_v28  ;;  %v1521_v27 = vpop.f32.mrb[51].mxu1  ;;  %v4364_v29 = vmul.f32 2.0, %v4545_v40 }
 0x230   :  { %3478 = vrcp.f32 %v1689_v33  ;;  %v1654_v8 = vadd.f32 58.5225, %v1642_v7  ;;  %v1632_v39 = vsub.f32 %v1521_v27, %v4546_v23  ;;  %v4367_v52 = vpop.eup %3460 }
 0x231   :  { %3480 = vrcp.f32 %v1688_v25  ;;  %v1715_v53 = vmul.f32 %v4277_v44, %v1655_v49  ;;  %v1789_v12 = vmul.f32 %v4318_v5, %v1655_v49  ;;  %v1645_v17 = vmul.f32 2.0, %v1633_v6  ;;  %v4371_v15 = vpop.eup %3462 }
 0x232   :  { %3482 = vrcp.f32 %v1761_v2  ;;  %v1714_v28 = vmul.f32 %v4281_v32, %v1654_v8  ;;  %v1787_v34 = vmul.f32 %v4325_v13, %v1654_v8  ;;  %v1644_v19 = vmul.f32 2.0, %v1632_v39  ;;  %v3105_v37 = vpop.f32.mrb[52].mxu1  ;;  %v4375_v16 = vpop.eup %3464 }
 0x233   :  { %v1765_v47 = vmul.f32 %v3443_v36, %v1715_v53  ;;  %v1846_v24 = vsel %vm66_vm0, %v1789_v12, 0.0  ;;  %v1657_v58 = vadd.f32 58.5225, %v1645_v17  ;;  %v1635_v44 = vsub.f32 %v3105_v37, %v4163_v48  ;;  %v1531_v1 = vpop.f32.mrb[53].mxu1  ;;  %v4379_v5 = vpop.eup %3466 }
 0x234   :  { %v1763_v33 = vmul.f32 %v3445_v43, %v1714_v28  ;;  %v1845_v38 = vsel %vm66_vm0, %v1787_v34, 0.0  ;;  %v1656_v18 = vadd.f32 58.5225, %v1644_v19  ;;  %v1634_v32 = vsub.f32 %v1531_v1, %v4169_v57  ;;  %v4383_v13 = vpop.eup %3468 }
 0x235   :  { %v1811_v55 = vsel %vm66_vm0, %v1765_v47, 0.0  ;;  %v1847_v63 = vadd.f32 %v1846_v24, %v1845_v38  ;;  %v1717_v36 = vmul.f32 %v4284_v50, %v1657_v58  ;;  %v1793_v59 = vmul.f32 %v4335_v56, %v1657_v58  ;;  %v4388_v25 = vpop.eup %3470 }
 0x236   :  { %v1810_v48 = vsel %vm66_vm0, %v1763_v33, 0.0  ;;  %v1716_v43 = vmul.f32 %v4287_v60, %v1656_v18  ;;  %v1791_v21 = vmul.f32 %v4341_v54, %v1656_v18  ;;  %v1647_v2 = vmul.f32 2.0, %v1635_v44  ;;  %v3108_v51 = vpop.f32.mrb[54].mxu1  ;;  %v4393_v57 = vpop.eup %3472 }
 0x237   :  { %3484 = vrcp.f32 %v1760_v61  ;;  %v1812_v7 = vadd.f32 %v1811_v55, %v1810_v48  ;;  %v1769_v41 = vmul.f32 %v4345_v46, %v1717_v36  ;;  %v1646_v49 = vmul.f32 2.0, %v1634_v32  ;;  %v1541_v50 = vpop.f32.mrb[55].mxu1  ;;  %v4396_v6 = vpop.eup %3474 }
 0x238   :  { %v1767_v56 = vmul.f32 %v3453_v22, %v1716_v43  ;;  %v1848_v27 = vsel %vm66_vm0, %v1791_v21, 0.0  ;;  %v1659_v8 = vadd.f32 58.5225, %v1647_v2  ;;  %v1637_v60 = vsub.f32 %v3108_v51, %v4183_v0  ;;  %v4400_v23 = vpop.eup %3476 }
 0x239   :  { %v1850_v54 = vsel %vm66_vm0, %v1793_v59, 0.0  ;;  %v1849_v39 = vadd.f32 %v1848_v27, %v1847_v63  ;;  %v1658_v53 = vadd.f32 58.5225, %v1646_v49  ;;  %v1636_v61 = vsub.f32 %v1541_v50, %v4189_v4 }
 0x23a   :  { %v4404_v12 = vpop.eup %3478  ;;  %v1813_v46 = vsel %vm66_vm0, %v1767_v56, 0.0  ;;  %v1719_v17 = vmul.f32 %v4293_v62, %v1659_v8  ;;  %v1797_v22 = vmul.f32 %v4351_v26, %v1659_v8  ;;  %v1649_v28 = vmul.f32 2.0, %v1637_v60  ;;  %v3111_v34 = vpop.f32.mrb[56].mxu1 }
 0x23b   :  { %v4409_v19 = vpop.eup %3480  ;;  %v1814_v0 = vadd.f32 %v1813_v46, %v1812_v7  ;;  %v1718_v37 = vmul.f32 %v4296_v30, %v1658_v53  ;;  %v1795_v47 = vmul.f32 %v4355_v3, %v1658_v53  ;;  %v1851_v24 = vadd.f32 %v1850_v54, %v1849_v39  ;;  %v1551_v58 = vpop.f32.mrb[57].mxu1 }
 0x23c   :  { %v3483_v4 = vpop.eup %3482  ;;  %v1815_v44 = vsel %vm66_vm0, %v1769_v41, 0.0  ;;  %v1773_v1 = vmul.f32 %v4361_v42, %v1719_v17  ;;  %v1661_v33 = vadd.f32 58.5225, %v1649_v28  ;;  %v1648_v62 = vmul.f32 2.0, %v1636_v61 }
 0x23d   :  { %v1771_v26 = vmul.f32 %v4367_v52, %v1718_v37  ;;  %v1816_v38 = vadd.f32 %v1815_v44, %v1814_v0  ;;  %v1852_v18 = vsel %vm66_vm0, %v1795_v47, 0.0  ;;  %v1639_v32 = vsub.f32 %v3111_v34, %v4203_v10 }
 0x23e   :  { %v1854_v30 = vsel %vm66_vm0, %v1797_v22, 0.0  ;;  %v1853_v55 = vadd.f32 %v1852_v18, %v1851_v24  ;;  %v1721_v3 = vmul.f32 %v4313_v45, %v1661_v33  ;;  %v1801_v63 = vmul.f32 %v4371_v15, %v1661_v33  ;;  %v3114_v36 = vpop.f32.mrb[58].mxu1 }
 0x23f   :  { %v1817_v59 = vsel %vm66_vm0, %v1771_v26, 0.0  ;;  %v1660_v42 = vadd.f32 58.5225, %v1648_v62  ;;  %v1651_v48 = vmul.f32 2.0, %v1639_v32  ;;  %v1638_v43 = vsub.f32 %v1551_v58, %v4209_v14  ;;  %v1561_v52 = vpop.f32.mrb[59].mxu1 }
 0x240   :  { %v1819_v21 = vsel %vm66_vm0, %v1773_v1, 0.0  ;;  %v1818_v2 = vadd.f32 %v1817_v59, %v1816_v38  ;;  %v1777_v10 = vmul.f32 %v4379_v5, %v1721_v3  ;;  %v1855_v51 = vadd.f32 %v1854_v30, %v1853_v55 }
 0x241   :  { %v3485_v7 = vpop.eup %3484  ;;  %v1720_v41 = vmul.f32 %v4320_v20, %v1660_v42  ;;  %v1799_v45 = vmul.f32 %v4375_v16, %v1660_v42  ;;  %v1663_v15 = vadd.f32 58.5225, %v1651_v48  ;;  %v1650_v49 = vmul.f32 2.0, %v1638_v43 }
 0x242   :  { %v1713_v50 = vadd.f32 6.5025, %v4358_v9  ;;  %v1820_v56 = vadd.f32 %v1819_v21, %v1818_v2  ;;  %v1641_v27 = vsub.f32 %v3114_v36, %v4544_v11  ;;  %v1640_v14 = vsub.f32 %v1561_v52, %v4545_v40 }
 0x243   :  { %v1775_v8 = vmul.f32 %v4383_v13, %v1720_v41  ;;  %v1856_v60 = vsel %vm66_vm0, %v1799_v45, 0.0  ;;  %v1723_v5 = vmul.f32 %v4349_v31, %v1663_v15  ;;  %v1805_v54 = vmul.f32 %v4388_v25, %v1663_v15 }
 0x244   :  { %v1857_v20 = vadd.f32 %v1856_v60, %v1855_v51  ;;  %v1662_v39 = vadd.f32 58.5225, %v1650_v49  ;;  %v1653_v16 = vmul.f32 2.0, %v1641_v27  ;;  %v1652_v53 = vmul.f32 2.0, %v1640_v14 }
 0x245   :  { %v1712_v61 = vadd.f32 6.5025, %v4364_v29  ;;  %v1858_v9 = vsel %vm66_vm0, %v1801_v63, 0.0  ;;  %v1821_v11 = vsel %vm66_vm0, %v1775_v8, 0.0  ;;  %v1781_v40 = vmul.f32 %v4396_v6, %v1723_v5 }
 0x246   :  { %v1822_v46 = vadd.f32 %v1821_v11, %v1820_v56  ;;  %v1722_v13 = vmul.f32 %v4353_v35, %v1662_v39  ;;  %v1803_v17 = vmul.f32 %v4393_v57, %v1662_v39  ;;  %v1859_v31 = vadd.f32 %v1858_v9, %v1857_v20 }
 0x247   :  { %v1823_v25 = vsel %vm66_vm0, %v1777_v10, 0.0  ;;  %v1665_v22 = vadd.f32 58.5225, %v1653_v16  ;;  %v1664_v28 = vadd.f32 58.5225, %v1652_v53  ;;  %v1862_v58 = vsel %vm66_vm0, %v1805_v54, 0.0 }
 0x248   :  { %v1779_v34 = vmul.f32 %v4400_v23, %v1722_v13  ;;  %v1860_v29 = vsel %vm66_vm0, %v1803_v17, 0.0  ;;  %v1824_v0 = vadd.f32 %v1823_v25, %v1822_v46  ;;  %v1827_v23 = vsel %vm66_vm0, %v1781_v40, 0.0 }
 0x249   :  { %v1861_v37 = vadd.f32 %v1860_v29, %v1859_v31  ;;  %v1725_v47 = vmul.f32 %v1713_v50, %v1665_v22  ;;  %v1809_v24 = vmul.f32 %v4404_v12, %v1665_v22  ;;  %v1724_v6 = vmul.f32 %v1712_v61, %v1664_v28 }
 0x24a   :  { %v1807_v35 = vmul.f32 %v4409_v19, %v1664_v28  ;;  %v1825_v57 = vsel %vm66_vm0, %v1779_v34, 0.0 }
 0x24b   :  { %v1783_v44 = vmul.f32 %v3485_v7, %v1724_v6  ;;  %v1785_v1 = vmul.f32 %v3483_v4, %v1725_v47  ;;  %v1826_v33 = vadd.f32 %v1825_v57, %v1824_v0  ;;  %v1863_v62 = vadd.f32 %v1862_v58, %v1861_v37  ;;  %v3163_v4 = vpop.f32.mrb[60].mxu1 }
 0x24c   :  { %v1864_v26 = vsel %vm66_vm0, %v1807_v35, 0.0  ;;  %v1866_v12 = vsel %vm66_vm0, %v1809_v24, 0.0  ;;  %2128 = vst.msk [vmem:[%s4523_s8 + $0x8] sm:$0xff] %vm2126_vm2, %v3163_v4  ;;  %v2097_v63 = vpop.f32.mrb[61].mxu1 }
 0x24d   :  { %v1828_v38 = vadd.f32 %v1827_v23, %v1826_v33  ;;  %v1829_v18 = vsel %vm66_vm0, %v1783_v44, 0.0  ;;  %v1865_v32 = vadd.f32 %v1864_v26, %v1863_v62  ;;  %v1831_v19 = vsel %vm66_vm0, %v1785_v1, 0.0  ;;  %2127 = vst.msk [vmem:[%s4523_s8] sm:$0xff] %vm2126_vm2, %v2097_v63 }
 0x24e   :  { %v3166_v36 = vpop.f32.mrb[62].mxu1 }
 0x24f   :  { %v1830_v30 = vadd.f32 %v1829_v18, %v1828_v38  ;;  %v1867_v55 = vadd.f32 %v1866_v12, %v1865_v32  ;;  %2130 = vst.msk [vmem:[%s4523_s8 + $0x18] sm:$0xff] %vm2126_vm2, %v3166_v36  ;;  %v2107_v59 = vpop.f32.mrb[63].mxu1 }
 0x250   :  { %2129 = vst.msk [vmem:[%s4523_s8 + $0x10] sm:$0xff] %vm2126_vm2, %v2107_v59 }
 0x251   :  { %v1832_v3 = vadd.f32 %v1831_v19, %v1830_v30 }
 0x252   :  { %v3169_v42 = vpop.f32.mrb[64].mxu1 }
 0x253   :  { %1833 = vadd.xlane.f32.xlu0 %v1832_v3  ;;  %2132 = vst.msk [vmem:[%s4523_s8 + $0x28] sm:$0xff] %vm2126_vm2, %v3169_v42  ;;  %v2117_v48 = vpop.f32.mrb[65].mxu1 }
 0x254   :  { %2131 = vst.msk [vmem:[%s4523_s8 + $0x20] sm:$0xff] %vm2126_vm2, %v2117_v48 }
 0x257   :  { %1868 = vadd.xlane.f32.xlu0 %v1867_v55 }
 0x25d   :  { %v3218_v21 = vpop.f32.mrb[84].mxu0 }
 0x25e   :  { %2354 = vst.msk [vmem:[%s4524_s9 + $0x8] sm:$0xff] %vm2126_vm2, %v3218_v21  ;;  %v2324_v10 = vpop.f32.mrb[85].mxu0 }
 0x25f   :  { %2353 = vst.msk [vmem:[%s4524_s9] sm:$0xff] %vm2126_vm2, %v2324_v10 }
 0x262   :  { %v3221_v43 = vpop.f32.mrb[66].mxu1 }
 0x263   :  { %2356 = vst.msk [vmem:[%s4524_s9 + $0x18] sm:$0xff] %vm2126_vm2, %v3221_v43  ;;  %v2334_v52 = vpop.f32.mrb[67].mxu1 }
 0x264   :  { %2355 = vst.msk [vmem:[%s4524_s9 + $0x10] sm:$0xff] %vm2126_vm2, %v2334_v52 }
 0x266   :  { %v3224_v2 = vpop.f32.mrb[68].mxu1 }
 0x267   :  { %2358 = vst.msk [vmem:[%s4524_s9 + $0x28] sm:$0xff] %vm2126_vm2, %v3224_v2  ;;  %v2344_v51 = vpop.f32.mrb[69].mxu1 }
 0x268   :  { %2357 = vst.msk [vmem:[%s4524_s9 + $0x20] sm:$0xff] %vm2126_vm2, %v2344_v51  ;;  %s3486_s9 = scalar_lea.vmem %s2366_s23, 16 }
 0x269   :  { %p3487_p0 = scmp.ne.s32.totalorder %s2366_s23, %s3486_s9  ;;  %p3492_p2 = scmp.lt.s32.totalorder %s3490_s25, %s3486_s9 }
 0x26b   :  { %p3493_p3 = por %p3492_p2, %p3491_p1 }
 0x26d   :  { %p3494_p4 = pnand %p3493_p3, %p3487_p0 }
 0x2e0   :  { %v1834_v7 = vpop.xlane.xlu0 %1833 }
 0x2e1   :  { %v1835_v41 = vrot.slane %v1834_v7, 4 }
 0x2e3   :  { %v1836_v45 = vadd.f32 %v1835_v41, %v1834_v7 }
 0x2e4   :  { %v1869_v15 = vpop.xlane.xlu0 %1868 }
 0x2e5   :  { %v1837_v49 = vrot.slane %v1836_v45, 2  ;;  %v1870_v50 = vrot.slane %v1869_v15, 4 }
 0x2e7   :  { %v1871_v56 = vadd.f32 %v1870_v50, %v1869_v15  ;;  %v1838_v27 = vadd.f32 %v1837_v49, %v1836_v45 }
 0x2e9   :  { %v1872_v14 = vrot.slane %v1871_v56, 2  ;;  %v1839_v8 = vrot.slane %v1838_v27, 1 }
 0x2eb   :  { %v1873_v60 = vadd.f32 %v1872_v14, %v1871_v56  ;;  %v1840_v5 = vadd.f32 %v1839_v8, %v1838_v27 }
 0x2ed   :  { %3433 = vpush %v1840_v5  ;;  %v1874_v54 = vrot.slane %v1873_v60, 1 }
 0x2ef   :  { %v1875_v20 = vadd.f32 %v1874_v54, %v1873_v60 }
 0x2f1   :  { %3435 = vpush %v1875_v20 }
 0x31e   :  { %s3434_s24 = spop %3433 }
 0x31f   :  { %v1842_v39 = vstv %s3434_s24 }
 0x320   :  { %1844 = vst [vmem:[#allocation2] sm:$0x1] %v1842_v39 }
 0x321   :  { %3497 = shalt.err (!%p3494_p4)
}
 0x322   :  { %s3498_s27 = scalar_lea.hbm %s4521_s6, 16 }
 0x323   :  { %p3499_p5 = scmp.ne.s32.totalorder %s4521_s6, %s3498_s27  ;;  %p3502_p6 = scmp.lt.u32.totalorder %s3498_s27, %s4521_s6 }
 0x325   :  { %p3504_p7 = pnand %p3502_p6, %p3499_p5 }
 0x327   :  { %3507 = shalt.err (!%p3504_p7)
}
 0x328   :  { %2368 = dma.vmem_to_hbm [thread:$0]  %s2366_s23, 16, %s4521_s6, [#allocation3]  }
 0x329   :  { %s3436_s13 = spop %3435 }
 0x32a   :  { %v1877_v16 = vstv %s3436_s13 }
 0x32b   :  { %1879 = vst [vmem:[%s4522_s7] sm:$0x1] %v1877_v16 }
 0x32c   :  { %3508 = dma.done.wait [#allocation3], 16  }
 0x32d   :  { %3509 = vsyncadd [#allocation3], 4294967280 }
 0x32e   :  { %2384 = vsyncpa [#allocation3], 1 }

// kernel: ms_ssim.5
= control target key start
LH: loop header
LB: loop body
LE: loop exit
PB: predicated region body
PF: predicated region fallthrough
CT: control target
= control target key end

     0   :  { %15 = vsyncpa [#allocation3], 0  ;;  %s7735_s0 = inlined_call_operand.hbm [shape: f32[192,32], index: 0, kind: input, shape index: {}]   ;;  %s7736_s1 = inlined_call_operand.hbm [shape: f32[192,32], index: 1, kind: input, shape index: {}]   ;;  %s7737_s2 = inlined_call_operand.hbm [shape: f32[192,192], index: 2, kind: input, shape index: {}]   ;;  %s7738_s3 = inlined_call_operand.vmem [shape: f32[32,32], index: 3, kind: input, shape index: {}]   ;;  %s7739_s4 = inlined_call_operand.hbm [shape: f32[96,192], index: 4, kind: input, shape index: {}]   ;;  %s7740_s5 = inlined_call_operand.vmem [shape: f32[32,16], index: 5, kind: input, shape index: {}]   ;;  %s7741_s6 = inlined_call_operand.hbm [shape: f32[1,1,128], index: 6, kind: output, shape index: {0}]   ;;  %s7742_s7 = inlined_call_operand.vmem [shape: f32[1,1,128], index: 7, kind: output, shape index: {1}]   ;;  %s7743_s8 = inlined_call_operand.vmem [shape: f32[96,16], index: 8, kind: output, shape index: {2}]   ;;  %s7744_s9 = inlined_call_operand.vmem [shape: f32[96,16], index: 9, kind: output, shape index: {3}]  }
   0x1   :  { %16 = vsyncpa [#allocation6], 0 }
   0x2   :  { %17 = vsyncpa [#allocation9], 0 }
   0x3   :  { %18 = vsyncpa [#allocation4], 0  ;;  %s5379_s30 = smov [#allocation5]   ;;  %s5380_s11 = smov [#allocation2]  }
   0x4   :  { %s36_s10 = sshll.u32 %s5379_s30, 4  ;;  %s24_s12 = sshll.u32 %s5380_s11, 4  ;;  %s37_s10 = int_to_ptr.vmem [resolvable:$true] %s36_s10  ;;  %s5439_s12 = int_to_ptr.vmem [resolvable:$true] %s24_s12 }
   0x5   :  { %s5261_s15 = scalar_lea.hbm %s7736_s1, 3072 }
   0x6   :  { %p5262_p0 = scmp.ne.s32.totalorder %s7736_s1, %s5261_s15  ;;  %p5265_p1 = scmp.lt.u32.totalorder %s5261_s15, %s7736_s1 }
   0x8   :  { %p5267_p2 = pnand %p5265_p1, %p5262_p0 }
   0xa   :  { %5270 = shalt.err (!%p5267_p2)
}
   0xb   :  { %s5271_s20 = scalar_lea.vmem %s37_s10, 3072  ;;  %p5276_p4 = scmp.lt.s32.totalorder %s37_s10, %s37_s10 }
   0xc   :  { %p5272_p3 = scmp.ne.s32.totalorder %s37_s10, %s5271_s20  ;;  %p5277_p5 = scmp.lt.s32.totalorder %s5271_s20, %s5271_s20 }
   0xe   :  { %p5278_p6 = por %p5277_p5, %p5276_p4 }
  0x10   :  { %p5279_p7 = pnand %p5278_p6, %p5272_p3 }
  0x12   :  { %5282 = shalt.err (!%p5279_p7)
}
  0x13   :  { %s5381_s21 = smov 128   ;;  %s5382_s22 = smov 8  }
  0x14   :  { %42 = dma.hbm_to_vmem [thread:$0]  %s7736_s1, 3072, %s37_s10, [#allocation6], %s5381_s21, %s5381_s21, %s5382_s22  }
  0x15   :  { %s5283_s27 = scalar_lea.hbm %s7735_s0, 3072 }
  0x16   :  { %p5284_p8 = scmp.ne.s32.totalorder %s7735_s0, %s5283_s27  ;;  %p5287_p9 = scmp.lt.u32.totalorder %s5283_s27, %s7735_s0 }
  0x18   :  { %p5289_p10 = pnand %p5287_p9, %p5284_p8 }
  0x1a   :  { %5292 = shalt.err (!%p5289_p10)
}
  0x1b   :  { %s5293_s13 = scalar_lea.vmem %s5439_s12, 3072  ;;  %p5298_p12 = scmp.lt.s32.totalorder %s5439_s12, %s5439_s12 }
  0x1c   :  { %p5294_p11 = scmp.ne.s32.totalorder %s5439_s12, %s5293_s13  ;;  %p5299_p13 = scmp.lt.s32.totalorder %s5293_s13, %s5293_s13 }
  0x1e   :  { %p5300_p0 = por %p5299_p13, %p5298_p12 }
  0x20   :  { %p5301_p1 = pnand %p5300_p0, %p5294_p11 }
  0x22   :  { %5304 = shalt.err (!%p5301_p1)
}
  0x23   :  { %30 = dma.hbm_to_vmem [thread:$0]  %s7735_s0, 3072, %s5439_s12, [#allocation3], %s5381_s21, %s5381_s21, %s5382_s22  }
  0x24   :  { %s5383_s14 = smov [#allocation7]   ;;  %s5305_s18 = scalar_lea.hbm %s7737_s2, 6144 }
  0x25   :  { %s48_s15 = sshll.u32 %s5383_s14, 4  ;;  %p5306_p2 = scmp.ne.s32.totalorder %s7737_s2, %s5305_s18  ;;  %s49_s15 = int_to_ptr.vmem [resolvable:$true] %s48_s15 }
  0x26   :  { %p5309_p3 = scmp.lt.u32.totalorder %s5305_s18, %s7737_s2 }
  0x28   :  { %p5311_p4 = pnand %p5309_p3, %p5306_p2 }
  0x2a   :  { %5314 = shalt.err (!%p5311_p4)
}
  0x2b   :  { %s5315_s25 = scalar_lea.vmem %s49_s15, 6144  ;;  %p5320_p6 = scmp.lt.s32.totalorder %s49_s15, %s49_s15 }
  0x2c   :  { %p5316_p5 = scmp.ne.s32.totalorder %s49_s15, %s5315_s25  ;;  %p5321_p7 = scmp.lt.s32.totalorder %s5315_s25, %s5315_s25 }
  0x2e   :  { %p5322_p8 = por %p5321_p7, %p5320_p6 }
  0x30   :  { %p5323_p9 = pnand %p5322_p8, %p5316_p5 }
  0x32   :  { %5326 = shalt.err (!%p5323_p9)
}
  0x33   :  { %s5384_s0 = smov 256   ;;  %s5385_s12 = smov 16  }
  0x34   :  { %54 = dma.hbm_to_vmem [thread:$0]  %s7737_s2, 6144, %s49_s15, [#allocation6], %s5384_s0, %s5384_s0, %s5385_s12  }
  0x35   :  { %s5386_s26 = smov [#allocation8]   ;;  %s5327_s30 = scalar_lea.hbm %s7739_s4, 3072 }
  0x36   :  { %s62_s27 = sshll.u32 %s5386_s26, 4  ;;  %p5328_p10 = scmp.ne.s32.totalorder %s7739_s4, %s5327_s30  ;;  %s63_s27 = int_to_ptr.vmem [resolvable:$true] %s62_s27 }
  0x37   :  { %p5331_p11 = scmp.lt.u32.totalorder %s5327_s30, %s7739_s4 }
  0x39   :  { %p5333_p12 = pnand %p5331_p11, %p5328_p10 }
  0x3b   :  { %5336 = shalt.err (!%p5333_p12)
}
  0x3c   :  { %s5337_s14 = scalar_lea.vmem %s63_s27, 3072  ;;  %p5342_p0 = scmp.lt.s32.totalorder %s63_s27, %s63_s27 }
  0x3d   :  { %p5338_p13 = scmp.ne.s32.totalorder %s63_s27, %s5337_s14  ;;  %p5343_p1 = scmp.lt.s32.totalorder %s5337_s14, %s5337_s14 }
  0x3f   :  { %p5344_p2 = por %p5343_p1, %p5342_p0 }
  0x41   :  { %p5345_p3 = pnand %p5344_p2, %p5338_p13 }
  0x43   :  { %5348 = shalt.err (!%p5345_p3)
}
  0x44   :  { %68 = dma.hbm_to_vmem [thread:$0]  %s7739_s4, 3072, %s63_s27, [#allocation9], %s5384_s0, %s5384_s0, %s5385_s12  }
  0x45   :  { %5371 = dma.done.wait [#allocation3], 3072  }
  0x46   :  { %5372 = vsyncadd [#allocation3], 4294964224 }
  0x47   :  { %5373 = dma.done.wait [#allocation6], 9216  }
  0x48   :  { %5374 = vsyncadd [#allocation6], 4294958080 }
  0x49   :  { %5375 = dma.done.wait [#allocation9], 3072  }
  0x4a   :  { %5376 = vsyncadd [#allocation9], 4294964224  ;;  %vm183_vm0 = vcmask 261120   ;;  %v179_v0 = vld [vmem:[%s7738_s3] sm:$0xff]  ;;  %v180_v1 = vld [vmem:[%s7738_s3 + $0x8] sm:$0xff]  ;;  %v7763_v53 = vmov 0.0|0.0  }
  0x4b   :  { %v181_v2 = vld [vmem:[%s7738_s3 + $0x10] sm:$0xff]  ;;  %v5503_v3 = vpack.c.bf16 %v180_v1, %v179_v0  ;;  %v182_v4 = vld [vmem:[%s7738_s3 + $0x18] sm:$0xff]  ;;  %v5508_v5 = vld [vmem:[#allocation2] sm:$0xff]  ;;  %4699 = vmatprep.subr.bf16.mxu1 %v7763_v53  ;;  %vm441_vm1 = vcmask 523264   ;;  %vm3511_vm2 = vcmask 130048   ;;  %s5388_s22 = smov [#allocation10]  }
  0x4c   :  { %v5510_v6 = vpack.c.bf16 %v182_v4, %v181_v2  ;;  %4391 = vmatprep.mubr.msk.f32.mxu0 %vm183_vm0, %v5508_v5  ;;  %v5518_v7 = vld [vmem:[#allocation2 + $0x8] sm:$0xff]  ;;  %v5520_v8 = vld [vmem:[#allocation2 + $0x10] sm:$0xff]  ;;  %v5527_v9 = vld [vmem:[#allocation2 + $0x18] sm:$0xff]  ;;  %s3852_s26 = sshll.u32 %s5388_s22, 4  ;;  %s3853_s26 = int_to_ptr.vmem [resolvable:$true] %s3852_s26 }
  0x4d   :  { %4692 = vmatprep.subr.bf16.mxu0 %v5503_v3  ;;  %v5530_v10 = vld [vmem:[#allocation2 + $0x20] sm:$0xff]  ;;  %v5537_v11 = vld [vmem:[#allocation2 + $0x28] sm:$0xff]  ;;  %v5540_v12 = vld [vmem:[#allocation2 + $0x30] sm:$0xff]  ;;  %s5349_s27 = scalar_lea.vmem %s3853_s26, 16  ;;  %p5354_p5 = scmp.lt.s32.totalorder %s3853_s26, %s3853_s26 }
  0x4e   :  { %4694 = vmatpush3.bf16.msra.mxu0 %v5503_v3  ;;  %v5546_v13 = vld [vmem:[#allocation2 + $0x38] sm:$0xff]  ;;  %v5548_v14 = vld [vmem:[#allocation2 + $0x40] sm:$0xff]  ;;  %v5554_v15 = vld [vmem:[#allocation2 + $0x48] sm:$0xff]  ;;  %p5350_p4 = scmp.ne.s32.totalorder %s3853_s26, %s5349_s27 }
  0x4f   :  { %4696 = vmatprep.subr.bf16.mxu0 %v5510_v6  ;;  %v5556_v16 = vld [vmem:[#allocation2 + $0x50] sm:$0xff]  ;;  %v5562_v17 = vld [vmem:[#allocation2 + $0x58] sm:$0xff]  ;;  %v5564_v18 = vld [vmem:[#allocation2 + $0x60] sm:$0xff] }
  0x50   :  { %v5570_v19 = vld [vmem:[#allocation2 + $0x68] sm:$0xff]  ;;  %v5572_v20 = vld [vmem:[#allocation2 + $0x70] sm:$0xff]  ;;  %v5578_v21 = vld [vmem:[#allocation2 + $0x78] sm:$0xff] }
  0x51   :  { %v5580_v22 = vld [vmem:[#allocation2 + $0x80] sm:$0xff]  ;;  %v5586_v23 = vld [vmem:[#allocation2 + $0x88] sm:$0xff]  ;;  %v5588_v24 = vld [vmem:[#allocation2 + $0x90] sm:$0xff] }
  0x52   :  { %4698 = vmatpush3.bf16.msra.mxu0 %v5510_v6  ;;  %v5594_v25 = vld [vmem:[#allocation2 + $0x98] sm:$0xff]  ;;  %v5596_v26 = vld [vmem:[#allocation2 + $0xa0] sm:$0xff]  ;;  %v5602_v27 = vld [vmem:[#allocation2 + $0xa8] sm:$0xff] }
  0x53   :  { %4736 = vmatprep.subr.bf16.mxu0 %v5503_v3  ;;  %v5604_v28 = vld [vmem:[#allocation2 + $0xb0] sm:$0xff]  ;;  %v5610_v29 = vld [vmem:[#allocation2 + $0xb8] sm:$0xff]  ;;  %v5612_v30 = vld [vmem:[#allocation5] sm:$0xff] }
  0x54   :  { %v5616_v31 = vld [vmem:[#allocation5 + $0x8] sm:$0xff]  ;;  %v5620_v32 = vld [vmem:[#allocation5 + $0x10] sm:$0xff]  ;;  %v5626_v33 = vld [vmem:[#allocation5 + $0x18] sm:$0xff] }
  0x55   :  { %4392 = vmatmul.mubr.msk.f32.vlgmr.msra.gmra.mrb[0].mxu0 %vm183_vm0, %v5518_v7  ;;  %v5628_v34 = vld [vmem:[#allocation5 + $0x20] sm:$0xff]  ;;  %v5634_v35 = vld [vmem:[#allocation5 + $0x28] sm:$0xff]  ;;  %v5636_v36 = vld [vmem:[#allocation5 + $0x30] sm:$0xff] }
  0x56   :  { %4394 = vmatprep.mubr.msk.f32.mxu0 %vm183_vm0, %v5520_v8  ;;  %4738 = vmatpush3.bf16.msra.mxu0 %v5503_v3  ;;  %7884 = vst [vmem:[#allocation15_spill] sm:$0xff] %v5636_v36  ;;  %v5642_v37 = vld [vmem:[#allocation5 + $0x38] sm:$0xff]  ;;  %v5644_v38 = vld [vmem:[#allocation5 + $0x40] sm:$0xff]  ;;  %v5650_v39 = vld [vmem:[#allocation5 + $0x48] sm:$0xff] }
  0x57   :  { %4740 = vmatprep.subr.bf16.mxu0 %v5510_v6  ;;  %7885 = vst [vmem:[#allocation16_spill] sm:$0xff] %v5642_v37  ;;  %7886 = vst [vmem:[#allocation17_spill] sm:$0xff] %v5644_v38  ;;  %v5652_v40 = vld [vmem:[#allocation5 + $0x50] sm:$0xff]  ;;  %v5658_v41 = vld [vmem:[#allocation5 + $0x58] sm:$0xff] }
  0x58   :  { %7887 = vst [vmem:[#allocation18_spill] sm:$0xff] %v5650_v39  ;;  %7888 = vst [vmem:[#allocation19_spill] sm:$0xff] %v5652_v40  ;;  %v5660_v42 = vld [vmem:[#allocation5 + $0x60] sm:$0xff]  ;;  %v5666_v43 = vld [vmem:[#allocation5 + $0x68] sm:$0xff] }
  0x59   :  { %4395 = vmatmul.mubr.msk.f32.gmra.mrb[2].mxu0 %vm183_vm0, %v5527_v9  ;;  %7889 = vst [vmem:[#allocation20_spill] sm:$0xff] %v5658_v41  ;;  %7890 = vst [vmem:[#allocation21_spill] sm:$0xff] %v5660_v42  ;;  %v5668_v44 = vld [vmem:[#allocation5 + $0x70] sm:$0xff]  ;;  %v5674_v45 = vld [vmem:[#allocation5 + $0x78] sm:$0xff] }
  0x5a   :  { %4397 = vmatprep.mubr.msk.f32.mxu0 %vm183_vm0, %v5530_v10  ;;  %4742 = vmatpush3.bf16.msra.mxu0 %v5510_v6  ;;  %7891 = vst [vmem:[#allocation22_spill] sm:$0xff] %v5666_v43  ;;  %7892 = vst [vmem:[#allocation23_spill] sm:$0xff] %v5668_v44  ;;  %v5676_v46 = vld [vmem:[#allocation5 + $0x80] sm:$0xff]  ;;  %v5682_v47 = vld [vmem:[#allocation5 + $0x88] sm:$0xff] }
  0x5b   :  { %7893 = vst [vmem:[#allocation24_spill] sm:$0xff] %v5674_v45  ;;  %7894 = vst [vmem:[#allocation25_spill] sm:$0xff] %v5676_v46  ;;  %v5684_v48 = vld [vmem:[#allocation5 + $0x90] sm:$0xff]  ;;  %v5690_v49 = vld [vmem:[#allocation5 + $0x98] sm:$0xff]  ;;  %4743 = vmatprep.subr.bf16.mxu0 %v7763_v53 }
  0x5c   :  { %7895 = vst [vmem:[#allocation26_spill] sm:$0xff] %v5682_v47  ;;  %7896 = vst [vmem:[#allocation27_spill] sm:$0xff] %v5684_v48  ;;  %v5692_v50 = vld [vmem:[#allocation5 + $0xa0] sm:$0xff]  ;;  %v5698_v51 = vld [vmem:[#allocation5 + $0xa8] sm:$0xff] }
  0x5d   :  { %4398 = vmatmul.mubr.msk.f32.gmra.mrb[4].mxu0 %vm183_vm0, %v5537_v11  ;;  %7897 = vst [vmem:[#allocation28_spill] sm:$0xff] %v5690_v49  ;;  %7898 = vst [vmem:[#allocation29_spill] sm:$0xff] %v5692_v50  ;;  %v5700_v52 = vld [vmem:[#allocation5 + $0xb0] sm:$0xff]  ;;  %v5708_v54 = vld [vmem:[#allocation5 + $0xb8] sm:$0xff] }
  0x5e   :  { %4400 = vmatprep.mubr.msk.f32.mxu0 %vm183_vm0, %v5540_v12  ;;  %7899 = vst [vmem:[#allocation30_spill] sm:$0xff] %v5698_v51  ;;  %7900 = vst [vmem:[#allocation31_spill] sm:$0xff] %v5700_v52  ;;  %v5712_v55 = vld [vmem:[#allocation7 + $0x8] sm:$0xff] }
  0x5f   :  { %7901 = vst [vmem:[#allocation32_spill] sm:$0xff] %v5708_v54  ;;  %3899 = vmatprep.mubr.msk.f32.mxu1 %vm441_vm1, %v5712_v55 }
  0x61   :  { %4401 = vmatmul.mubr.msk.f32.gmra.mrb[6].mxu0 %vm183_vm0, %v5546_v13 }
  0x62   :  { %4403 = vmatprep.mubr.msk.f32.mxu0 %vm183_vm0, %v5548_v14 }
  0x65   :  { %4404 = vmatmul.mubr.msk.f32.gmra.mrb[8].mxu0 %vm183_vm0, %v5554_v15 }
  0x66   :  { %4406 = vmatprep.mubr.msk.f32.mxu0 %vm183_vm0, %v5556_v16 }
  0x69   :  { %4407 = vmatmul.mubr.msk.f32.gmra.mrb[10].mxu0 %vm183_vm0, %v5562_v17 }
  0x6a   :  { %4409 = vmatprep.mubr.msk.f32.mxu0 %vm183_vm0, %v5564_v18 }
  0x6d   :  { %4410 = vmatmul.mubr.msk.f32.gmra.mrb[12].mxu0 %vm183_vm0, %v5570_v19 }
  0x6e   :  { %4412 = vmatprep.mubr.msk.f32.mxu0 %vm183_vm0, %v5572_v20 }
  0x71   :  { %4413 = vmatmul.mubr.msk.f32.gmra.mrb[14].mxu0 %vm183_vm0, %v5578_v21 }
  0x72   :  { %4415 = vmatprep.mubr.msk.f32.mxu0 %vm183_vm0, %v5580_v22 }
  0x75   :  { %4416 = vmatmul.mubr.msk.f32.gmra.mrb[16].mxu0 %vm183_vm0, %v5586_v23 }
  0x76   :  { %4418 = vmatprep.mubr.msk.f32.mxu0 %vm183_vm0, %v5588_v24 }
  0x79   :  { %4419 = vmatmul.mubr.msk.f32.gmra.mrb[18].mxu0 %vm183_vm0, %v5594_v25 }
  0x7a   :  { %4421 = vmatprep.mubr.msk.f32.mxu0 %vm183_vm0, %v5596_v26 }
  0x7d   :  { %4422 = vmatmul.mubr.msk.f32.gmra.mrb[20].mxu0 %vm183_vm0, %v5602_v27 }
  0x7e   :  { %4424 = vmatprep.mubr.msk.f32.mxu0 %vm183_vm0, %v5604_v28 }
  0x81   :  { %4425 = vmatmul.mubr.msk.f32.gmra.mrb[22].mxu0 %vm183_vm0, %v5610_v29 }
  0x82   :  { %4435 = vmatprep.mubr.msk.f32.mxu0 %vm183_vm0, %v5612_v30 }
  0x85   :  { %4436 = vmatmul.mubr.msk.f32.vlgmr.msra.gmra.mrb[24].mxu0 %vm183_vm0, %v5616_v31 }
  0x86   :  { %4438 = vmatprep.mubr.msk.f32.mxu0 %vm183_vm0, %v5620_v32 }
  0x89   :  { %4439 = vmatmul.mubr.msk.f32.gmra.mrb[26].mxu0 %vm183_vm0, %v5626_v33 }
  0x8a   :  { %4441 = vmatprep.mubr.msk.f32.mxu0 %vm183_vm0, %v5628_v34 }
  0x8d   :  { %4442 = vmatmul.mubr.msk.f32.gmra.mrb[28].mxu0 %vm183_vm0, %v5634_v35 }
  0x8e   :  { %4444 = vmatprep.mubr.msk.f32.mxu0 %vm183_vm0, %v5636_v36 }
  0x91   :  { %4445 = vmatmul.mubr.msk.f32.gmra.mrb[30].mxu0 %vm183_vm0, %v5642_v37 }
  0x92   :  { %4447 = vmatprep.mubr.msk.f32.mxu0 %vm183_vm0, %v5644_v38 }
  0x95   :  { %4448 = vmatmul.mubr.msk.f32.gmra.mrb[32].mxu0 %vm183_vm0, %v5650_v39 }
  0x96   :  { %4450 = vmatprep.mubr.msk.f32.mxu0 %vm183_vm0, %v5652_v40 }
  0x99   :  { %4451 = vmatmul.mubr.msk.f32.gmra.mrb[34].mxu0 %vm183_vm0, %v5658_v41 }
  0x9a   :  { %4453 = vmatprep.mubr.msk.f32.mxu0 %vm183_vm0, %v5660_v42 }
  0x9d   :  { %4454 = vmatmul.mubr.msk.f32.gmra.mrb[36].mxu0 %vm183_vm0, %v5666_v43 }
  0x9e   :  { %4456 = vmatprep.mubr.msk.f32.mxu0 %vm183_vm0, %v5668_v44 }
  0xa1   :  { %4457 = vmatmul.mubr.msk.f32.gmra.mrb[38].mxu0 %vm183_vm0, %v5674_v45 }
  0xa2   :  { %4459 = vmatprep.mubr.msk.f32.mxu0 %vm183_vm0, %v5676_v46 }
  0xa5   :  { %4460 = vmatmul.mubr.msk.f32.gmra.mrb[40].mxu0 %vm183_vm0, %v5682_v47 }
  0xa6   :  { %4462 = vmatprep.mubr.msk.f32.mxu0 %vm183_vm0, %v5684_v48 }
  0xa9   :  { %4463 = vmatmul.mubr.msk.f32.gmra.mrb[42].mxu0 %vm183_vm0, %v5690_v49 }
  0xaa   :  { %4465 = vmatprep.mubr.msk.f32.mxu0 %vm183_vm0, %v5692_v50 }
  0xad   :  { %4466 = vmatmul.mubr.msk.f32.gmra.mrb[44].mxu0 %vm183_vm0, %v5698_v51  ;;  %v5768_v51 = vld [vmem:[#allocation7 + $0x58] sm:$0xff] }
  0xae   :  { %4468 = vmatprep.mubr.msk.f32.mxu0 %vm183_vm0, %v5700_v52 }
  0xb1   :  { %4469 = vmatmul.mubr.msk.f32.gmra.mrb[46].mxu0 %vm183_vm0, %v5708_v54 }
  0xb2   :  { %3947 = vmatprep.mubr.msk.f32.mxu0 %vm441_vm1, %v5712_v55 }
 0x128   :  { %v4393_v56 = vpop.f32.mrb[0].mxu0 }
 0x129   :  { %v322_v57 = vpop.f32.mrb[1].mxu0 }
 0x12a   :  { %v4700_v58 = vpack.c.bf16 %v4393_v56, %v322_v57 }
 0x12c   :  { %v4396_v59 = vpop.f32.mrb[2].mxu0  ;;  %4701 = vmatpush1.bf16.msra.mxu1 %v4700_v58 }
 0x12d   :  { %v332_v60 = vpop.f32.mrb[3].mxu0  ;;  %4702 = vmatprep.subr.bf16.mxu1 %v7763_v53 }
 0x12e   :  { %v4703_v61 = vpack.c.bf16 %v4396_v59, %v332_v60 }
 0x130   :  { %v4399_v62 = vpop.f32.mrb[4].mxu0  ;;  %4704 = vmatpush1.bf16.msra.mxu1 %v4703_v61 }
 0x131   :  { %v342_v63 = vpop.f32.mrb[5].mxu0  ;;  %4705 = vmatprep.subr.bf16.mxu1 %v7763_v53 }
 0x132   :  { %v4706_v0 = vpack.c.bf16 %v4399_v62, %v342_v63 }
 0x134   :  { %v4402_v1 = vpop.f32.mrb[6].mxu0  ;;  %4707 = vmatpush1.bf16.msra.mxu1 %v4706_v0 }
 0x135   :  { %v352_v2 = vpop.f32.mrb[7].mxu0  ;;  %4708 = vmatprep.subr.bf16.mxu1 %v7763_v53 }
 0x136   :  { %v4709_v4 = vpack.c.bf16 %v4402_v1, %v352_v2 }
 0x138   :  { %v4405_v54 = vpop.f32.mrb[8].mxu0  ;;  %4710 = vmatpush1.bf16.msra.mxu1 %v4709_v4 }
 0x139   :  { %v362_v56 = vpop.f32.mrb[9].mxu0  ;;  %4711 = vmatprep.subr.bf16.mxu1 %v7763_v53 }
 0x13a   :  { %v4712_v57 = vpack.c.bf16 %v4405_v54, %v362_v56 }
 0x13c   :  { %v4408_v58 = vpop.f32.mrb[10].mxu0  ;;  %4713 = vmatpush1.bf16.msra.mxu1 %v4712_v57 }
 0x13d   :  { %v372_v59 = vpop.f32.mrb[11].mxu0  ;;  %4714 = vmatprep.subr.bf16.mxu1 %v7763_v53 }
 0x13e   :  { %v4715_v60 = vpack.c.bf16 %v4408_v58, %v372_v59 }
 0x140   :  { %v4411_v61 = vpop.f32.mrb[12].mxu0  ;;  %4716 = vmatpush1.bf16.msra.mxu1 %v4715_v60 }
 0x141   :  { %v382_v62 = vpop.f32.mrb[13].mxu0  ;;  %4717 = vmatprep.subr.bf16.mxu1 %v7763_v53 }
 0x142   :  { %v4718_v63 = vpack.c.bf16 %v4411_v61, %v382_v62 }
 0x144   :  { %v4414_v0 = vpop.f32.mrb[14].mxu0  ;;  %4719 = vmatpush1.bf16.msra.mxu1 %v4718_v63 }
 0x145   :  { %v392_v1 = vpop.f32.mrb[15].mxu0  ;;  %4720 = vmatprep.subr.bf16.mxu1 %v7763_v53 }
 0x146   :  { %v4721_v2 = vpack.c.bf16 %v4414_v0, %v392_v1 }
 0x148   :  { %v4417_v4 = vpop.f32.mrb[16].mxu0  ;;  %4722 = vmatpush1.bf16.msra.mxu1 %v4721_v2 }
 0x149   :  { %v402_v54 = vpop.f32.mrb[17].mxu0  ;;  %4723 = vmatprep.subr.bf16.mxu1 %v7763_v53 }
 0x14a   :  { %v4724_v56 = vpack.c.bf16 %v4417_v4, %v402_v54  ;;  %v5729_v4 = vld [vmem:[#allocation7] sm:$0xff] }
 0x14c   :  { %v4420_v57 = vpop.f32.mrb[18].mxu0  ;;  %4725 = vmatpush1.bf16.msra.mxu1 %v4724_v56 }
 0x14d   :  { %v412_v58 = vpop.f32.mrb[19].mxu0  ;;  %4726 = vmatprep.subr.bf16.mxu1 %v7763_v53 }
 0x14e   :  { %v4727_v59 = vpack.c.bf16 %v4420_v57, %v412_v58  ;;  %v5732_v57 = vld [vmem:[#allocation7 + $0x18] sm:$0xff] }
 0x150   :  { %v4423_v60 = vpop.f32.mrb[20].mxu0  ;;  %4728 = vmatpush1.bf16.msra.mxu1 %v4727_v59  ;;  %v5736_v59 = vld [vmem:[#allocation7 + $0x10] sm:$0xff] }
 0x151   :  { %v422_v61 = vpop.f32.mrb[21].mxu0  ;;  %4729 = vmatprep.subr.bf16.mxu1 %v7763_v53 }
 0x152   :  { %v4730_v62 = vpack.c.bf16 %v4423_v60, %v422_v61  ;;  %v5741_v61 = vld [vmem:[#allocation7 + $0x28] sm:$0xff] }
 0x154   :  { %v4426_v63 = vpop.f32.mrb[22].mxu0  ;;  %4731 = vmatpush1.bf16.msra.mxu1 %v4730_v62 }
 0x155   :  { %v432_v0 = vpop.f32.mrb[23].mxu0  ;;  %4732 = vmatprep.subr.bf16.mxu1 %v7763_v53 }
 0x156   :  { %v4733_v1 = vpack.c.bf16 %v4426_v63, %v432_v0  ;;  %v5747_v0 = vld [vmem:[#allocation7 + $0x20] sm:$0xff] }
 0x158   :  { %4734 = vmatpush1.bf16.msra.mxu1 %v4733_v1  ;;  %v4437_v2 = vpop.f32.mrb[24].mxu0 }
 0x159   :  { %v837_v54 = vpop.f32.mrb[25].mxu0  ;;  %4780 = vmatprep.subr.bf16.mxu1 %v5503_v3 }
 0x15a   :  { %v4744_v56 = vpack.c.bf16 %v4437_v2, %v837_v54  ;;  %v5750_v2 = vld [vmem:[#allocation7 + $0x38] sm:$0xff] }
 0x15b   :  { %579 = vmatmul.mubr.f32.vlgmr.msra.gmra.mrb[0].mxu1 %v5729_v4 }
 0x15c   :  { %v4440_v58 = vpop.f32.mrb[26].mxu0  ;;  %4745 = vmatpush1.bf16.msra.mxu0 %v4744_v56  ;;  %4782 = vmatpush3.bf16.msra.mxu1 %v5503_v3 }
 0x15d   :  { %v847_v60 = vpop.f32.mrb[27].mxu0  ;;  %3900 = vmatprep.mubr.msk.f32.mxu1 %vm441_vm1, %v5732_v57  ;;  %4746 = vmatprep.subr.bf16.mxu0 %v7763_v53 }
 0x15e   :  { %v4747_v62 = vpack.c.bf16 %v4440_v58, %v847_v60  ;;  %4784 = vmatprep.subr.bf16.mxu1 %v5510_v6  ;;  %v5757_v58 = vld [vmem:[#allocation7 + $0x30] sm:$0xff] }
 0x15f   :  { %584 = vmatmul.mubr.f32.gmra.mrb[2].mxu1 %v5736_v59 }
 0x160   :  { %v4443_v63 = vpop.f32.mrb[28].mxu0  ;;  %4748 = vmatpush1.bf16.msra.mxu0 %v4747_v62  ;;  %3901 = vmatprep.mubr.msk.f32.mxu1 %vm441_vm1, %v5741_v61  ;;  %v5760_v62 = vld [vmem:[#allocation7 + $0x48] sm:$0xff] }
 0x161   :  { %v857_v1 = vpop.f32.mrb[29].mxu0  ;;  %4749 = vmatprep.subr.bf16.mxu0 %v7763_v53  ;;  %4786 = vmatpush3.bf16.msra.mxu1 %v5510_v6 }
 0x162   :  { %v4750_v54 = vpack.c.bf16 %v4443_v63, %v857_v1  ;;  %4787 = vmatprep.subr.bf16.mxu1 %v7763_v53  ;;  %v5765_v1 = vld [vmem:[#allocation7 + $0x40] sm:$0xff] }
 0x163   :  { %589 = vmatmul.mubr.f32.gmra.mrb[4].mxu1 %v5747_v0 }
 0x164   :  { %v4446_v56 = vpop.f32.mrb[30].mxu0  ;;  %4751 = vmatpush1.bf16.msra.mxu0 %v4750_v54  ;;  %3902 = vmatprep.mubr.msk.f32.mxu1 %vm441_vm1, %v5750_v2 }
 0x165   :  { %v867_v60 = vpop.f32.mrb[31].mxu0  ;;  %4752 = vmatprep.subr.bf16.mxu0 %v7763_v53 }
 0x166   :  { %v4753_v52 = vpack.c.bf16 %v4446_v56, %v867_v60  ;;  %v5773_v56 = vld [vmem:[#allocation7 + $0x50] sm:$0xff]  ;;  %v5776_v60 = vld [vmem:[#allocation7 + $0x68] sm:$0xff] }
 0x167   :  { %594 = vmatmul.mubr.f32.gmra.mrb[6].mxu1 %v5757_v58 }
 0x168   :  { %v4449_v63 = vpop.f32.mrb[32].mxu0  ;;  %4754 = vmatpush1.bf16.msra.mxu0 %v4753_v52  ;;  %3903 = vmatprep.mubr.msk.f32.mxu1 %vm441_vm1, %v5760_v62 }
 0x169   :  { %v877_v54 = vpop.f32.mrb[33].mxu0  ;;  %4755 = vmatprep.subr.bf16.mxu0 %v7763_v53 }
 0x16a   :  { %v4756_v50 = vpack.c.bf16 %v4449_v63, %v877_v54  ;;  %v5781_v63 = vld [vmem:[#allocation7 + $0x60] sm:$0xff]  ;;  %v5784_v54 = vld [vmem:[#allocation7 + $0x78] sm:$0xff] }
 0x16b   :  { %599 = vmatmul.mubr.f32.gmra.mrb[8].mxu1 %v5765_v1 }
 0x16c   :  { %v4452_v49 = vpop.f32.mrb[34].mxu0  ;;  %4757 = vmatpush1.bf16.msra.mxu0 %v4756_v50  ;;  %3904 = vmatprep.mubr.msk.f32.mxu1 %vm441_vm1, %v5768_v51 }
 0x16d   :  { %v887_v52 = vpop.f32.mrb[35].mxu0  ;;  %4758 = vmatprep.subr.bf16.mxu0 %v7763_v53 }
 0x16e   :  { %v4759_v48 = vpack.c.bf16 %v4452_v49, %v887_v52  ;;  %v5789_v49 = vld [vmem:[#allocation7 + $0x70] sm:$0xff]  ;;  %v5792_v52 = vld [vmem:[#allocation7 + $0x88] sm:$0xff] }
 0x16f   :  { %604 = vmatmul.mubr.f32.gmra.mrb[10].mxu1 %v5773_v56 }
 0x170   :  { %v4455_v47 = vpop.f32.mrb[36].mxu0  ;;  %4760 = vmatpush1.bf16.msra.mxu0 %v4759_v48  ;;  %3905 = vmatprep.mubr.msk.f32.mxu1 %vm441_vm1, %v5776_v60 }
 0x171   :  { %v897_v50 = vpop.f32.mrb[37].mxu0  ;;  %4761 = vmatprep.subr.bf16.mxu0 %v7763_v53 }
 0x172   :  { %v4762_v46 = vpack.c.bf16 %v4455_v47, %v897_v50  ;;  %v5797_v47 = vld [vmem:[#allocation7 + $0x80] sm:$0xff]  ;;  %v5800_v50 = vld [vmem:[#allocation7 + $0x98] sm:$0xff] }
 0x173   :  { %609 = vmatmul.mubr.f32.gmra.mrb[12].mxu1 %v5781_v63 }
 0x174   :  { %v4458_v45 = vpop.f32.mrb[38].mxu0  ;;  %4763 = vmatpush1.bf16.msra.mxu0 %v4762_v46  ;;  %3906 = vmatprep.mubr.msk.f32.mxu1 %vm441_vm1, %v5784_v54 }
 0x175   :  { %v907_v48 = vpop.f32.mrb[39].mxu0  ;;  %4764 = vmatprep.subr.bf16.mxu0 %v7763_v53 }
 0x176   :  { %v4765_v44 = vpack.c.bf16 %v4458_v45, %v907_v48  ;;  %v5805_v45 = vld [vmem:[#allocation7 + $0x90] sm:$0xff]  ;;  %v5808_v48 = vld [vmem:[#allocation7 + $0xa8] sm:$0xff] }
 0x177   :  { %614 = vmatmul.mubr.f32.gmra.mrb[14].mxu1 %v5789_v49 }
 0x178   :  { %v4461_v43 = vpop.f32.mrb[40].mxu0  ;;  %4766 = vmatpush1.bf16.msra.mxu0 %v4765_v44  ;;  %3907 = vmatprep.mubr.msk.f32.mxu1 %vm441_vm1, %v5792_v52 }
 0x179   :  { %v917_v46 = vpop.f32.mrb[41].mxu0  ;;  %4767 = vmatprep.subr.bf16.mxu0 %v7763_v53 }
 0x17a   :  { %v4768_v42 = vpack.c.bf16 %v4461_v43, %v917_v46  ;;  %v5813_v43 = vld [vmem:[#allocation7 + $0xa0] sm:$0xff]  ;;  %v5816_v46 = vld [vmem:[#allocation7 + $0xb8] sm:$0xff] }
 0x17b   :  { %619 = vmatmul.mubr.f32.gmra.mrb[16].mxu1 %v5797_v47 }
 0x17c   :  { %v4464_v41 = vpop.f32.mrb[42].mxu0  ;;  %4769 = vmatpush1.bf16.msra.mxu0 %v4768_v42  ;;  %3908 = vmatprep.mubr.msk.f32.mxu1 %vm441_vm1, %v5800_v50 }
 0x17d   :  { %v927_v44 = vpop.f32.mrb[43].mxu0  ;;  %4770 = vmatprep.subr.bf16.mxu0 %v7763_v53 }
 0x17e   :  { %v4771_v40 = vpack.c.bf16 %v4464_v41, %v927_v44  ;;  %v5821_v41 = vld [vmem:[#allocation7 + $0xb0] sm:$0xff]  ;;  %v5824_v44 = vld [vmem:[#allocation7 + $0xc8] sm:$0xff] }
 0x17f   :  { %624 = vmatmul.mubr.f32.gmra.mrb[18].mxu1 %v5805_v45 }
 0x180   :  { %v4467_v39 = vpop.f32.mrb[44].mxu0  ;;  %4772 = vmatpush1.bf16.msra.mxu0 %v4771_v40  ;;  %3909 = vmatprep.mubr.msk.f32.mxu1 %vm441_vm1, %v5808_v48 }
 0x181   :  { %v937_v42 = vpop.f32.mrb[45].mxu0  ;;  %4773 = vmatprep.subr.bf16.mxu0 %v7763_v53 }
 0x182   :  { %v4774_v38 = vpack.c.bf16 %v4467_v39, %v937_v42  ;;  %v5829_v39 = vld [vmem:[#allocation7 + $0xc0] sm:$0xff]  ;;  %v5876_v42 = vld [vmem:[#allocation7 + $0x118] sm:$0xff] }
 0x183   :  { %629 = vmatmul.mubr.f32.gmra.mrb[20].mxu1 %v5813_v43 }
 0x184   :  { %v4470_v37 = vpop.f32.mrb[46].mxu0  ;;  %4775 = vmatpush1.bf16.msra.mxu0 %v4774_v38  ;;  %3910 = vmatprep.mubr.msk.f32.mxu1 %vm441_vm1, %v5816_v46  ;;  %v5831_v38 = vld [vmem:[#allocation7 + $0xd8] sm:$0xff] }
 0x185   :  { %v947_v40 = vpop.f32.mrb[47].mxu0  ;;  %4776 = vmatprep.subr.bf16.mxu0 %v7763_v53 }
 0x186   :  { %v4777_v36 = vpack.c.bf16 %v4470_v37, %v947_v40  ;;  %v5842_v37 = vld [vmem:[#allocation7 + $0xe8] sm:$0xff] }
 0x187   :  { %634 = vmatmul.mubr.f32.gmra.mrb[22].mxu1 %v5821_v41  ;;  %v7903_v40 = vld [vmem:[#allocation16_spill] sm:$0xff] }
 0x188   :  { %4778 = vmatpush1.bf16.msra.mxu0 %v4777_v36  ;;  %3911 = vmatprep.mubr.msk.f32.mxu1 %vm441_vm1, %v5824_v44  ;;  %v5840_v36 = vld [vmem:[#allocation7 + $0xd0] sm:$0xff] }
 0x189   :  { %4824 = vmatprep.subr.bf16.mxu0 %v5503_v3 }
 0x18b   :  { %639 = vmatmul.mubr.f32.gmra.mrb[24].mxu1 %v5829_v39  ;;  %1021 = vmatmul.mubr.f32.vlgmr.msra.gmra.mrb[48].mxu0 %v5729_v4  ;;  %v5852_v4 = vld [vmem:[#allocation7 + $0xe0] sm:$0xff] }
 0x18c   :  { %3912 = vmatprep.mubr.msk.f32.mxu1 %vm441_vm1, %v5831_v38  ;;  %3948 = vmatprep.mubr.msk.f32.mxu0 %vm441_vm1, %v5732_v57  ;;  %v5854_v57 = vld [vmem:[#allocation7 + $0xf8] sm:$0xff] }
 0x18d   :  { %4826 = vmatpush3.bf16.msra.mxu0 %v5503_v3 }
 0x18e   :  { %4828 = vmatprep.subr.bf16.mxu0 %v5510_v6 }
 0x18f   :  { %644 = vmatmul.mubr.f32.gmra.mrb[26].mxu1 %v5840_v36  ;;  %1026 = vmatmul.mubr.f32.gmra.mrb[50].mxu0 %v5736_v59  ;;  %v5864_v59 = vld [vmem:[#allocation7 + $0xf0] sm:$0xff] }
 0x190   :  { %3913 = vmatprep.mubr.msk.f32.mxu1 %vm441_vm1, %v5842_v37  ;;  %3949 = vmatprep.mubr.msk.f32.mxu0 %vm441_vm1, %v5741_v61  ;;  %v5866_v61 = vld [vmem:[#allocation7 + $0x108] sm:$0xff] }
 0x191   :  { %4830 = vmatpush3.bf16.msra.mxu0 %v5510_v6 }
 0x192   :  { %4831 = vmatprep.subr.bf16.mxu0 %v7763_v53 }
 0x193   :  { %649 = vmatmul.mubr.f32.gmra.mrb[28].mxu1 %v5852_v4  ;;  %1031 = vmatmul.mubr.f32.gmra.mrb[52].mxu0 %v5747_v0  ;;  %v5874_v0 = vld [vmem:[#allocation7 + $0x100] sm:$0xff] }
 0x194   :  { %3914 = vmatprep.mubr.msk.f32.mxu1 %vm441_vm1, %v5854_v57  ;;  %3950 = vmatprep.mubr.msk.f32.mxu0 %vm441_vm1, %v5750_v2  ;;  %v5884_v2 = vld [vmem:[#allocation7 + $0x110] sm:$0xff] }
 0x197   :  { %654 = vmatmul.mubr.f32.gmra.mrb[30].mxu1 %v5864_v59  ;;  %1036 = vmatmul.mubr.f32.gmra.mrb[54].mxu0 %v5757_v58  ;;  %v5886_v58 = vld [vmem:[#allocation7 + $0x128] sm:$0xff] }
 0x198   :  { %3915 = vmatprep.mubr.msk.f32.mxu1 %vm441_vm1, %v5866_v61  ;;  %3951 = vmatprep.mubr.msk.f32.mxu0 %vm441_vm1, %v5760_v62  ;;  %v5894_v62 = vld [vmem:[#allocation7 + $0x120] sm:$0xff] }
 0x19b   :  { %659 = vmatmul.mubr.f32.gmra.mrb[32].mxu1 %v5874_v0  ;;  %1041 = vmatmul.mubr.f32.gmra.mrb[56].mxu0 %v5765_v1  ;;  %v5896_v1 = vld [vmem:[#allocation7 + $0x138] sm:$0xff] }
 0x19c   :  { %3916 = vmatprep.mubr.msk.f32.mxu1 %vm441_vm1, %v5876_v42  ;;  %3952 = vmatprep.mubr.msk.f32.mxu0 %vm441_vm1, %v5768_v51  ;;  %v5904_v51 = vld [vmem:[#allocation7 + $0x130] sm:$0xff] }
 0x19f   :  { %664 = vmatmul.mubr.f32.gmra.mrb[34].mxu1 %v5884_v2  ;;  %1046 = vmatmul.mubr.f32.gmra.mrb[58].mxu0 %v5773_v56  ;;  %v5906_v56 = vld [vmem:[#allocation7 + $0x148] sm:$0xff] }
 0x1a0   :  { %3917 = vmatprep.mubr.msk.f32.mxu1 %vm441_vm1, %v5886_v58  ;;  %3953 = vmatprep.mubr.msk.f32.mxu0 %vm441_vm1, %v5776_v60  ;;  %v5914_v60 = vld [vmem:[#allocation7 + $0x140] sm:$0xff] }
 0x1a3   :  { %669 = vmatmul.mubr.f32.gmra.mrb[36].mxu1 %v5894_v62  ;;  %1051 = vmatmul.mubr.f32.gmra.mrb[60].mxu0 %v5781_v63  ;;  %v5916_v63 = vld [vmem:[#allocation7 + $0x158] sm:$0xff] }
 0x1a4   :  { %3918 = vmatprep.mubr.msk.f32.mxu1 %vm441_vm1, %v5896_v1  ;;  %3954 = vmatprep.mubr.msk.f32.mxu0 %vm441_vm1, %v5784_v54  ;;  %v5924_v54 = vld [vmem:[#allocation7 + $0x150] sm:$0xff] }
 0x1a7   :  { %674 = vmatmul.mubr.f32.gmra.mrb[38].mxu1 %v5904_v51  ;;  %1056 = vmatmul.mubr.f32.gmra.mrb[62].mxu0 %v5789_v49  ;;  %v5926_v49 = vld [vmem:[#allocation7 + $0x168] sm:$0xff] }
 0x1a8   :  { %3919 = vmatprep.mubr.msk.f32.mxu1 %vm441_vm1, %v5906_v56  ;;  %3955 = vmatprep.mubr.msk.f32.mxu0 %vm441_vm1, %v5792_v52  ;;  %v5934_v52 = vld [vmem:[#allocation7 + $0x160] sm:$0xff] }
 0x1ab   :  { %679 = vmatmul.mubr.f32.gmra.mrb[40].mxu1 %v5914_v60  ;;  %1061 = vmatmul.mubr.f32.gmra.mrb[64].mxu0 %v5797_v47  ;;  %v5936_v47 = vld [vmem:[#allocation7 + $0x178] sm:$0xff] }
 0x1ac   :  { %3920 = vmatprep.mubr.msk.f32.mxu1 %vm441_vm1, %v5916_v63  ;;  %3956 = vmatprep.mubr.msk.f32.mxu0 %vm441_vm1, %v5800_v50  ;;  %v5944_v50 = vld [vmem:[#allocation7 + $0x170] sm:$0xff] }
 0x1af   :  { %684 = vmatmul.mubr.f32.gmra.mrb[42].mxu1 %v5924_v54  ;;  %1066 = vmatmul.mubr.f32.gmra.mrb[66].mxu0 %v5805_v45  ;;  %v1141_v45 = vmul.f32 %v5508_v5, %v5508_v5  ;;  %v1144_v5 = vmul.f32 %v5527_v9, %v5527_v9  ;;  %v1147_v9 = vmul.f32 %v5540_v12, %v5540_v12 }
 0x1b0   :  { %3921 = vmatprep.mubr.msk.f32.mxu1 %vm441_vm1, %v5926_v49  ;;  %3957 = vmatprep.mubr.msk.f32.mxu0 %vm441_vm1, %v5808_v48  ;;  %v1142_v48 = vmul.f32 %v5518_v7, %v5518_v7  ;;  %v1145_v7 = vmul.f32 %v5530_v10, %v5530_v10  ;;  %v1148_v10 = vmul.f32 %v5546_v13, %v5546_v13 }
 0x1b1   :  { %v1150_v12 = vmul.f32 %v5554_v15, %v5554_v15  ;;  %v1151_v13 = vmul.f32 %v5556_v16, %v5556_v16  ;;  %v1153_v15 = vmul.f32 %v5564_v18, %v5564_v18  ;;  %v1154_v16 = vmul.f32 %v5570_v19, %v5570_v19 }
 0x1b2   :  { %v1156_v18 = vmul.f32 %v5578_v21, %v5578_v21  ;;  %v1157_v19 = vmul.f32 %v5580_v22, %v5580_v22  ;;  %v1159_v21 = vmul.f32 %v5588_v24, %v5588_v24  ;;  %v1160_v22 = vmul.f32 %v5594_v25, %v5594_v25 }
 0x1b3   :  { %689 = vmatmul.mubr.f32.gmra.mrb[44].mxu1 %v5934_v52  ;;  %1071 = vmatmul.mubr.f32.gmra.mrb[68].mxu0 %v5813_v43  ;;  %v1143_v43 = vmul.f32 %v5520_v8, %v5520_v8  ;;  %v1146_v8 = vmul.f32 %v5537_v11, %v5537_v11  ;;  %v1149_v11 = vmul.f32 %v5548_v14, %v5548_v14 }
 0x1b4   :  { %3922 = vmatprep.mubr.msk.f32.mxu1 %vm441_vm1, %v5936_v47  ;;  %3958 = vmatprep.mubr.msk.f32.mxu0 %vm441_vm1, %v5816_v46  ;;  %v1152_v14 = vmul.f32 %v5562_v17, %v5562_v17  ;;  %v1155_v17 = vmul.f32 %v5572_v20, %v5572_v20  ;;  %v1158_v20 = vmul.f32 %v5586_v23, %v5586_v23 }
 0x1b5   :  { %v1161_v23 = vmul.f32 %v5596_v26, %v5596_v26  ;;  %v1162_v24 = vmul.f32 %v5602_v27, %v5602_v27  ;;  %v1163_v25 = vmul.f32 %v5604_v28, %v5604_v28  ;;  %v1164_v26 = vmul.f32 %v5610_v29, %v5610_v29 }
 0x1b6   :  { %v1607_v27 = vmul.f32 %v5612_v30, %v5612_v30  ;;  %v1608_v46 = vmul.f32 %v5616_v31, %v5616_v31  ;;  %v1609_v28 = vmul.f32 %v5620_v32, %v5620_v32  ;;  %v1610_v29 = vmul.f32 %v5626_v33, %v5626_v33  ;;  %v7902_v32 = vld [vmem:[#allocation15_spill] sm:$0xff] }
 0x1b7   :  { %694 = vmatmul.mubr.f32.gmra.mrb[46].mxu1 %v5944_v50  ;;  %1076 = vmatmul.mubr.f32.gmra.mrb[70].mxu0 %v5821_v41  ;;  %v1611_v30 = vmul.f32 %v5628_v34, %v5628_v34  ;;  %v1612_v31 = vmul.f32 %v5634_v35, %v5634_v35  ;;  %v1613_v41 = vmul.f32 %v7902_v32, %v7902_v32 }
 0x1b8   :  { %3959 = vmatprep.mubr.msk.f32.mxu0 %vm441_vm1, %v5824_v44  ;;  %4479 = vmatprep.mubr.msk.f32.mxu1 %vm183_vm0, %v1141_v45  ;;  %v1614_v33 = vmul.f32 %v7903_v40, %v7903_v40  ;;  %v7904_v44 = vld [vmem:[#allocation17_spill] sm:$0xff] }
 0x1b9   :  { %v1615_v34 = vmul.f32 %v7904_v44, %v7904_v44 }
 0x1bb   :  { %1081 = vmatmul.mubr.f32.gmra.mrb[72].mxu0 %v5829_v39  ;;  %4480 = vmatmul.mubr.msk.f32.vlgmr.msra.gmra.mrb[48].mxu1 %vm183_vm0, %v1142_v48  ;;  %v7905_v39 = vld [vmem:[#allocation18_spill] sm:$0xff]  ;;  %v7916_v48 = vld [vmem:[#allocation29_spill] sm:$0xff] }
 0x1bc   :  { %3960 = vmatprep.mubr.msk.f32.mxu0 %vm441_vm1, %v5831_v38  ;;  %4482 = vmatprep.mubr.msk.f32.mxu1 %vm183_vm0, %v1143_v43  ;;  %v1616_v35 = vmul.f32 %v7905_v39, %v7905_v39  ;;  %v7906_v38 = vld [vmem:[#allocation19_spill] sm:$0xff]  ;;  %v1627_v43 = vmul.f32 %v7916_v48, %v7916_v48 }
 0x1bf   :  { %1086 = vmatmul.mubr.f32.gmra.mrb[74].mxu0 %v5840_v36  ;;  %4483 = vmatmul.mubr.msk.f32.gmra.mrb[50].mxu1 %vm183_vm0, %v1144_v5  ;;  %v1617_v36 = vmul.f32 %v7906_v38, %v7906_v38  ;;  %v7917_v5 = vld [vmem:[#allocation30_spill] sm:$0xff] }
 0x1c0   :  { %3961 = vmatprep.mubr.msk.f32.mxu0 %vm441_vm1, %v5842_v37  ;;  %4485 = vmatprep.mubr.msk.f32.mxu1 %vm183_vm0, %v1145_v7  ;;  %v7907_v37 = vld [vmem:[#allocation20_spill] sm:$0xff]  ;;  %v1628_v7 = vmul.f32 %v7917_v5, %v7917_v5 }
 0x1c3   :  { %1091 = vmatmul.mubr.f32.gmra.mrb[76].mxu0 %v5852_v4  ;;  %4486 = vmatmul.mubr.msk.f32.gmra.mrb[52].mxu1 %vm183_vm0, %v1146_v8  ;;  %v1618_v4 = vmul.f32 %v7907_v37, %v7907_v37  ;;  %v7918_v8 = vld [vmem:[#allocation31_spill] sm:$0xff] }
 0x1c4   :  { %3962 = vmatprep.mubr.msk.f32.mxu0 %vm441_vm1, %v5854_v57  ;;  %4488 = vmatprep.mubr.msk.f32.mxu1 %vm183_vm0, %v1147_v9  ;;  %v7908_v57 = vld [vmem:[#allocation21_spill] sm:$0xff]  ;;  %v1629_v9 = vmul.f32 %v7918_v8, %v7918_v8 }
 0x1c7   :  { %1096 = vmatmul.mubr.f32.gmra.mrb[78].mxu0 %v5864_v59  ;;  %4489 = vmatmul.mubr.msk.f32.gmra.mrb[54].mxu1 %vm183_vm0, %v1148_v10  ;;  %v1619_v59 = vmul.f32 %v7908_v57, %v7908_v57  ;;  %v7919_v10 = vld [vmem:[#allocation32_spill] sm:$0xff] }
 0x1c8   :  { %3963 = vmatprep.mubr.msk.f32.mxu0 %vm441_vm1, %v5866_v61  ;;  %4491 = vmatprep.mubr.msk.f32.mxu1 %vm183_vm0, %v1149_v11  ;;  %v7909_v61 = vld [vmem:[#allocation22_spill] sm:$0xff]  ;;  %v1630_v11 = vmul.f32 %v7919_v10, %v7919_v10 }
 0x1cb   :  { %1101 = vmatmul.mubr.f32.gmra.mrb[80].mxu0 %v5874_v0  ;;  %4492 = vmatmul.mubr.msk.f32.gmra.mrb[56].mxu1 %vm183_vm0, %v1150_v12  ;;  %v1620_v0 = vmul.f32 %v7909_v61, %v7909_v61 }
 0x1cc   :  { %3964 = vmatprep.mubr.msk.f32.mxu0 %vm441_vm1, %v5876_v42  ;;  %4494 = vmatprep.mubr.msk.f32.mxu1 %vm183_vm0, %v1151_v13  ;;  %v7910_v42 = vld [vmem:[#allocation23_spill] sm:$0xff] }
 0x1cf   :  { %1106 = vmatmul.mubr.f32.gmra.mrb[82].mxu0 %v5884_v2  ;;  %4495 = vmatmul.mubr.msk.f32.gmra.mrb[58].mxu1 %vm183_vm0, %v1152_v14  ;;  %v1621_v2 = vmul.f32 %v7910_v42, %v7910_v42 }
 0x1d0   :  { %3965 = vmatprep.mubr.msk.f32.mxu0 %vm441_vm1, %v5886_v58  ;;  %4497 = vmatprep.mubr.msk.f32.mxu1 %vm183_vm0, %v1153_v15  ;;  %v7911_v58 = vld [vmem:[#allocation24_spill] sm:$0xff] }
 0x1d3   :  { %1111 = vmatmul.mubr.f32.gmra.mrb[84].mxu0 %v5894_v62  ;;  %4498 = vmatmul.mubr.msk.f32.gmra.mrb[60].mxu1 %vm183_vm0, %v1154_v16  ;;  %v1622_v62 = vmul.f32 %v7911_v58, %v7911_v58 }
 0x1d4   :  { %3966 = vmatprep.mubr.msk.f32.mxu0 %vm441_vm1, %v5896_v1  ;;  %4500 = vmatprep.mubr.msk.f32.mxu1 %vm183_vm0, %v1155_v17  ;;  %v7912_v1 = vld [vmem:[#allocation25_spill] sm:$0xff] }
 0x1d7   :  { %1116 = vmatmul.mubr.f32.gmra.mrb[86].mxu0 %v5904_v51  ;;  %4501 = vmatmul.mubr.msk.f32.gmra.mrb[62].mxu1 %vm183_vm0, %v1156_v18  ;;  %v1623_v51 = vmul.f32 %v7912_v1, %v7912_v1 }
 0x1d8   :  { %3967 = vmatprep.mubr.msk.f32.mxu0 %vm441_vm1, %v5906_v56  ;;  %4503 = vmatprep.mubr.msk.f32.mxu1 %vm183_vm0, %v1157_v19  ;;  %v7913_v56 = vld [vmem:[#allocation26_spill] sm:$0xff] }
 0x1db   :  { %1121 = vmatmul.mubr.f32.gmra.mrb[88].mxu0 %v5914_v60  ;;  %4504 = vmatmul.mubr.msk.f32.gmra.mrb[64].mxu1 %vm183_vm0, %v1158_v20  ;;  %v1624_v60 = vmul.f32 %v7913_v56, %v7913_v56 }
 0x1dc   :  { %3968 = vmatprep.mubr.msk.f32.mxu0 %vm441_vm1, %v5916_v63  ;;  %4506 = vmatprep.mubr.msk.f32.mxu1 %vm183_vm0, %v1159_v21  ;;  %v7914_v63 = vld [vmem:[#allocation27_spill] sm:$0xff] }
 0x1df   :  { %1126 = vmatmul.mubr.f32.gmra.mrb[90].mxu0 %v5924_v54  ;;  %4507 = vmatmul.mubr.msk.f32.gmra.mrb[66].mxu1 %vm183_vm0, %v1160_v22  ;;  %v1625_v54 = vmul.f32 %v7914_v63, %v7914_v63 }
 0x1e0   :  { %3969 = vmatprep.mubr.msk.f32.mxu0 %vm441_vm1, %v5926_v49  ;;  %4509 = vmatprep.mubr.msk.f32.mxu1 %vm183_vm0, %v1161_v23  ;;  %v7915_v49 = vld [vmem:[#allocation28_spill] sm:$0xff] }
 0x1e1   :  { %v1626_v45 = vmul.f32 %v7915_v49, %v7915_v49 }
 0x1e3   :  { %1131 = vmatmul.mubr.f32.gmra.mrb[92].mxu0 %v5934_v52  ;;  %4510 = vmatmul.mubr.msk.f32.gmra.mrb[68].mxu1 %vm183_vm0, %v1162_v24 }
 0x1e4   :  { %3970 = vmatprep.mubr.msk.f32.mxu0 %vm441_vm1, %v5936_v47  ;;  %4512 = vmatprep.mubr.msk.f32.mxu1 %vm183_vm0, %v1163_v25 }
 0x1e7   :  { %1136 = vmatmul.mubr.f32.gmra.mrb[94].mxu0 %v5944_v50  ;;  %4513 = vmatmul.mubr.msk.f32.gmra.mrb[70].mxu1 %vm183_vm0, %v1164_v26 }
 0x1e8   :  { %4523 = vmatprep.mubr.msk.f32.mxu0 %vm183_vm0, %v1607_v27  ;;  %3995 = vmatprep.mubr.msk.f32.mxu1 %vm441_vm1, %v5712_v55 }
 0x1eb   :  { %4524 = vmatmul.mubr.msk.f32.vlgmr.msra.gmra.mrb[96].mxu0 %vm183_vm0, %v1608_v46 }
 0x1ec   :  { %4526 = vmatprep.mubr.msk.f32.mxu0 %vm183_vm0, %v1609_v28 }
 0x1ef   :  { %4527 = vmatmul.mubr.msk.f32.gmra.mrb[98].mxu0 %vm183_vm0, %v1610_v29 }
 0x1f0   :  { %4529 = vmatprep.mubr.msk.f32.mxu0 %vm183_vm0, %v1611_v30 }
 0x1f3   :  { %4530 = vmatmul.mubr.msk.f32.gmra.mrb[100].mxu0 %vm183_vm0, %v1612_v31 }
 0x1f4   :  { %4532 = vmatprep.mubr.msk.f32.mxu0 %vm183_vm0, %v1613_v41 }
 0x1f7   :  { %4533 = vmatmul.mubr.msk.f32.gmra.mrb[102].mxu0 %vm183_vm0, %v1614_v33 }
 0x1f8   :  { %4535 = vmatprep.mubr.msk.f32.mxu0 %vm183_vm0, %v1615_v34 }
 0x1fb   :  { %4536 = vmatmul.mubr.msk.f32.gmra.mrb[104].mxu0 %vm183_vm0, %v1616_v35 }
 0x1fc   :  { %4538 = vmatprep.mubr.msk.f32.mxu0 %vm183_vm0, %v1617_v36 }
 0x1ff   :  { %4539 = vmatmul.mubr.msk.f32.gmra.mrb[106].mxu0 %vm183_vm0, %v1618_v4 }
 0x200   :  { %4541 = vmatprep.mubr.msk.f32.mxu0 %vm183_vm0, %v1619_v59 }
 0x203   :  { %4542 = vmatmul.mubr.msk.f32.gmra.mrb[108].mxu0 %vm183_vm0, %v1620_v0 }
 0x204   :  { %4544 = vmatprep.mubr.msk.f32.mxu0 %vm183_vm0, %v1621_v2 }
 0x207   :  { %4545 = vmatmul.mubr.msk.f32.gmra.mrb[110].mxu0 %vm183_vm0, %v1622_v62 }
 0x208   :  { %4547 = vmatprep.mubr.msk.f32.mxu0 %vm183_vm0, %v1623_v51 }
 0x20b   :  { %4548 = vmatmul.mubr.msk.f32.gmra.mrb[112].mxu0 %vm183_vm0, %v1624_v60 }
 0x20c   :  { %4550 = vmatprep.mubr.msk.f32.mxu0 %vm183_vm0, %v1625_v54 }
 0x20f   :  { %4551 = vmatmul.mubr.msk.f32.gmra.mrb[114].mxu0 %vm183_vm0, %v1626_v45 }
 0x210   :  { %4553 = vmatprep.mubr.msk.f32.mxu0 %vm183_vm0, %v1627_v43 }
 0x213   :  { %4554 = vmatmul.mubr.msk.f32.gmra.mrb[116].mxu0 %vm183_vm0, %v1628_v7 }
 0x214   :  { %4556 = vmatprep.mubr.msk.f32.mxu0 %vm183_vm0, %v1629_v9 }
 0x217   :  { %4557 = vmatmul.mubr.msk.f32.gmra.mrb[118].mxu0 %vm183_vm0, %v1630_v11 }
 0x218   :  { %4043 = vmatprep.mubr.msk.f32.mxu0 %vm441_vm1, %v5712_v55 }
 0x22e   :  { %v580_v12 = vpop.f32.mrb[0].mxu1 }
 0x22f   :  { %v582_v13 = vpop.f32.mrb[1].mxu1  ;;  %v6146_v44 = vmul.f32 %v580_v12, %v580_v12 }
 0x232   :  { %v585_v14 = vpop.f32.mrb[2].mxu1 }
 0x233   :  { %v587_v15 = vpop.f32.mrb[3].mxu1  ;;  %v6158_v57 = vmul.f32 %v585_v14, %v585_v14 }
 0x236   :  { %v590_v16 = vpop.f32.mrb[4].mxu1 }
 0x237   :  { %v592_v17 = vpop.f32.mrb[5].mxu1  ;;  %v6170_v1 = vmul.f32 %v590_v16, %v590_v16 }
 0x23a   :  { %v595_v18 = vpop.f32.mrb[6].mxu1 }
 0x23b   :  { %v597_v19 = vpop.f32.mrb[7].mxu1  ;;  %v6182_v48 = vmul.f32 %v595_v18, %v595_v18 }
 0x23e   :  { %v600_v20 = vpop.f32.mrb[8].mxu1 }
 0x23f   :  { %v602_v21 = vpop.f32.mrb[9].mxu1 }
 0x242   :  { %v605_v22 = vpop.f32.mrb[10].mxu1 }
 0x243   :  { %v607_v23 = vpop.f32.mrb[11].mxu1  ;;  %v6206_v21 = vmul.f32 %v605_v22, %v605_v22 }
 0x246   :  { %v6132_v24 = vpop.f32.mrb[12].mxu1 }
 0x247   :  { %v612_v25 = vpop.f32.mrb[13].mxu1 }
 0x24a   :  { %v6134_v26 = vpop.f32.mrb[14].mxu1 }
 0x24b   :  { %v617_v27 = vpop.f32.mrb[15].mxu1 }
 0x24e   :  { %v6136_v46 = vpop.f32.mrb[16].mxu1 }
 0x24f   :  { %v622_v55 = vpop.f32.mrb[17].mxu1 }
 0x252   :  { %v6138_v28 = vpop.f32.mrb[18].mxu1 }
 0x253   :  { %v627_v29 = vpop.f32.mrb[19].mxu1 }
 0x256   :  { %v6140_v30 = vpop.f32.mrb[20].mxu1 }
 0x257   :  { %v632_v31 = vpop.f32.mrb[21].mxu1  ;;  %v6280_v53 = vmul.f32 %v6140_v30, %v6140_v30 }
 0x25a   :  { %v6142_v32 = vpop.f32.mrb[22].mxu1 }
 0x25b   :  { %v637_v41 = vpop.f32.mrb[23].mxu1 }
 0x25c   :  { %v6220_v41 = vmul.f32 %v6132_v24, %v6132_v24 }
 0x25e   :  { %v6144_v40 = vpop.f32.mrb[24].mxu1  ;;  %v1022_v33 = vpop.f32.mrb[48].mxu0 }
 0x25f   :  { %v6148_v34 = vmul.f32 %v1022_v33, %v1022_v33  ;;  %v6150_v39 = vmul.f32 %v1022_v33, %v580_v12  ;;  %v642_v35 = vpop.f32.mrb[25].mxu1  ;;  %v1024_v38 = vpop.f32.mrb[49].mxu0  ;;  %v6194_v12 = vmul.f32 %v600_v20, %v600_v20 }
 0x261   :  { %7920 = vst [vmem:[#allocation15_spill] sm:$0xff] %v6150_v39  ;;  %v6154_v36 = vadd.f32 %v6148_v34, %v6146_v44 }
 0x262   :  { %v6156_v37 = vpop.f32.mrb[26].mxu1  ;;  %v1027_v4 = vpop.f32.mrb[50].mxu0 }
 0x263   :  { %v6160_v59 = vmul.f32 %v1027_v4, %v1027_v4  ;;  %v647_v61 = vpop.f32.mrb[27].mxu1  ;;  %v1029_v0 = vpop.f32.mrb[51].mxu0  ;;  %v6162_v42 = vmul.f32 %v1027_v4, %v585_v14 }
 0x265   :  { %7921 = vst [vmem:[#allocation16_spill] sm:$0xff] %v6162_v42  ;;  %v6166_v2 = vadd.f32 %v6160_v59, %v6158_v57 }
 0x266   :  { %v6168_v58 = vpop.f32.mrb[28].mxu1  ;;  %v1032_v62 = vpop.f32.mrb[52].mxu0 }
 0x267   :  { %v6172_v51 = vmul.f32 %v1032_v62, %v1032_v62  ;;  %v6174_v56 = vmul.f32 %v1032_v62, %v590_v16  ;;  %v652_v60 = vpop.f32.mrb[29].mxu1  ;;  %v1034_v63 = vpop.f32.mrb[53].mxu0  ;;  %v6235_v62 = vmul.f32 %v6134_v26, %v6134_v26 }
 0x269   :  { %7922 = vst [vmem:[#allocation17_spill] sm:$0xff] %v6174_v56  ;;  %v6178_v54 = vadd.f32 %v6172_v51, %v6170_v1 }
 0x26a   :  { %v6180_v49 = vpop.f32.mrb[30].mxu1  ;;  %v1037_v45 = vpop.f32.mrb[54].mxu0 }
 0x26b   :  { %v6184_v43 = vmul.f32 %v1037_v45, %v1037_v45  ;;  %v657_v5 = vpop.f32.mrb[31].mxu1  ;;  %v1039_v7 = vpop.f32.mrb[55].mxu0  ;;  %v6186_v8 = vmul.f32 %v1037_v45, %v595_v18 }
 0x26d   :  { %7923 = vst [vmem:[#allocation18_spill] sm:$0xff] %v6186_v8  ;;  %v6190_v9 = vadd.f32 %v6184_v43, %v6182_v48 }
 0x26e   :  { %v6192_v10 = vpop.f32.mrb[32].mxu1  ;;  %v1042_v11 = vpop.f32.mrb[56].mxu0 }
 0x26f   :  { %v6196_v13 = vmul.f32 %v1042_v11, %v1042_v11  ;;  %v6198_v14 = vmul.f32 %v1042_v11, %v600_v20  ;;  %v662_v15 = vpop.f32.mrb[33].mxu1  ;;  %v1044_v16 = vpop.f32.mrb[57].mxu0 }
 0x270   :  { %v6250_v15 = vmul.f32 %v6136_v46, %v6136_v46 }
 0x271   :  { %7924 = vst [vmem:[#allocation19_spill] sm:$0xff] %v6198_v14  ;;  %v6202_v17 = vadd.f32 %v6196_v13, %v6194_v12 }
 0x272   :  { %v6204_v18 = vpop.f32.mrb[34].mxu1  ;;  %v1047_v19 = vpop.f32.mrb[58].mxu0 }
 0x273   :  { %v6208_v23 = vmul.f32 %v1047_v19, %v1047_v19  ;;  %v667_v25 = vpop.f32.mrb[35].mxu1  ;;  %v1049_v27 = vpop.f32.mrb[59].mxu0  ;;  %v6210_v55 = vmul.f32 %v1047_v19, %v605_v22 }
 0x275   :  { %7925 = vst [vmem:[#allocation20_spill] sm:$0xff] %v6210_v55  ;;  %v6214_v20 = vadd.f32 %v6208_v23, %v6206_v21 }
 0x276   :  { %v6216_v29 = vpop.f32.mrb[36].mxu1  ;;  %v1052_v31 = vpop.f32.mrb[60].mxu0 }
 0x277   :  { %7926 = vst [vmem:[#allocation21_spill] sm:$0xff] %v6214_v20  ;;  %v6222_v33 = vmul.f32 %v1052_v31, %v1052_v31  ;;  %v6225_v35 = vmul.f32 %v1052_v31, %v6132_v24  ;;  %v672_v38 = vpop.f32.mrb[37].mxu1  ;;  %v1054_v4 = vpop.f32.mrb[61].mxu0 }
 0x278   :  { %v6265_v4 = vmul.f32 %v6138_v28, %v6138_v28 }
 0x279   :  { %7927 = vst [vmem:[#allocation22_spill] sm:$0xff] %v6222_v33  ;;  %7928 = vst [vmem:[#allocation23_spill] sm:$0xff] %v6225_v35  ;;  %v6229_v22 = vadd.f32 %v6222_v33, %v6220_v41  ;;  %v6295_v35 = vmul.f32 %v6142_v32, %v6142_v32  ;;  %v6566_v33 = vld [vmem:[#allocation7 + $0xb0] sm:$0xff] }
 0x27a   :  { %v6231_v61 = vpop.f32.mrb[38].mxu1  ;;  %v1057_v0 = vpop.f32.mrb[62].mxu0  ;;  %7999 = vst [vmem:[#allocation93_spill] sm:$0xff] %v6566_v33 }
 0x27b   :  { %7929 = vst [vmem:[#allocation24_spill] sm:$0xff] %v6229_v22  ;;  %v6237_v60 = vmul.f32 %v1057_v0, %v1057_v0  ;;  %v677_v63 = vpop.f32.mrb[39].mxu1  ;;  %v1059_v45 = vpop.f32.mrb[63].mxu0  ;;  %v6240_v24 = vmul.f32 %v1057_v0, %v6134_v26 }
 0x27d   :  { %7930 = vst [vmem:[#allocation25_spill] sm:$0xff] %v6237_v60  ;;  %7931 = vst [vmem:[#allocation26_spill] sm:$0xff] %v6240_v24  ;;  %v6244_v5 = vadd.f32 %v6237_v60, %v6235_v62 }
 0x27e   :  { %v6246_v7 = vpop.f32.mrb[40].mxu1  ;;  %v1062_v11 = vpop.f32.mrb[64].mxu0 }
 0x27f   :  { %7932 = vst [vmem:[#allocation27_spill] sm:$0xff] %v6244_v5  ;;  %v6252_v16 = vmul.f32 %v1062_v11, %v1062_v11  ;;  %v6255_v19 = vmul.f32 %v1062_v11, %v6136_v46  ;;  %v682_v25 = vpop.f32.mrb[41].mxu1  ;;  %v1064_v27 = vpop.f32.mrb[65].mxu0  ;;  %v6550_v5 = vld [vmem:[#allocation7 + $0x90] sm:$0xff] }
 0x280   :  { %7995 = vst [vmem:[#allocation89_spill] sm:$0xff] %v6550_v5 }
 0x281   :  { %7933 = vst [vmem:[#allocation28_spill] sm:$0xff] %v6252_v16  ;;  %7934 = vst [vmem:[#allocation29_spill] sm:$0xff] %v6255_v19  ;;  %v6259_v26 = vadd.f32 %v6252_v16, %v6250_v15  ;;  %v6542_v16 = vld [vmem:[#allocation7 + $0x80] sm:$0xff] }
 0x282   :  { %v6261_v31 = vpop.f32.mrb[42].mxu1  ;;  %v1067_v38 = vpop.f32.mrb[66].mxu0  ;;  %7993 = vst [vmem:[#allocation87_spill] sm:$0xff] %v6542_v16 }
 0x283   :  { %7935 = vst [vmem:[#allocation30_spill] sm:$0xff] %v6259_v26  ;;  %v6267_v0 = vmul.f32 %v1067_v38, %v1067_v38  ;;  %v687_v63 = vpop.f32.mrb[43].mxu1  ;;  %v1069_v45 = vpop.f32.mrb[67].mxu0  ;;  %v6270_v46 = vmul.f32 %v1067_v38, %v6138_v28 }
 0x285   :  { %7936 = vst [vmem:[#allocation31_spill] sm:$0xff] %v6267_v0  ;;  %7937 = vst [vmem:[#allocation32_spill] sm:$0xff] %v6270_v46  ;;  %v6274_v11 = vadd.f32 %v6267_v0, %v6265_v4 }
 0x286   :  { %v6276_v25 = vpop.f32.mrb[44].mxu1  ;;  %v1072_v27 = vpop.f32.mrb[68].mxu0 }
 0x287   :  { %7938 = vst [vmem:[#allocation33_spill] sm:$0xff] %v6274_v11  ;;  %v6282_v19 = vmul.f32 %v1072_v27, %v1072_v27  ;;  %v6285_v24 = vmul.f32 %v1072_v27, %v6140_v30  ;;  %v692_v63 = vpop.f32.mrb[45].mxu1  ;;  %v1074_v45 = vpop.f32.mrb[69].mxu0  ;;  %v6526_v11 = vld [vmem:[#allocation7 + $0x60] sm:$0xff] }
 0x288   :  { %7989 = vst [vmem:[#allocation83_spill] sm:$0xff] %v6526_v11 }
 0x289   :  { %7939 = vst [vmem:[#allocation34_spill] sm:$0xff] %v6282_v19  ;;  %7940 = vst [vmem:[#allocation35_spill] sm:$0xff] %v6285_v24  ;;  %v6289_v28 = vadd.f32 %v6282_v19, %v6280_v53  ;;  %v6308_v24 = vmul.f32 %v6144_v40, %v6144_v40  ;;  %v6518_v19 = vld [vmem:[#allocation7 + $0x50] sm:$0xff] }
 0x28a   :  { %v6291_v38 = vpop.f32.mrb[46].mxu1  ;;  %v1077_v46 = vpop.f32.mrb[70].mxu0 }
 0x28b   :  { %7941 = vst [vmem:[#allocation36_spill] sm:$0xff] %v6289_v28  ;;  %v6297_v55 = vmul.f32 %v1077_v46, %v1077_v46  ;;  %v697_v14 = vpop.f32.mrb[47].mxu1  ;;  %v1079_v8 = vpop.f32.mrb[71].mxu0  ;;  %v6300_v30 = vmul.f32 %v1077_v46, %v6142_v32 }
 0x28d   :  { %7942 = vst [vmem:[#allocation37_spill] sm:$0xff] %v6297_v55  ;;  %7943 = vst [vmem:[#allocation38_spill] sm:$0xff] %v6300_v30  ;;  %v6304_v27 = vadd.f32 %v6297_v55, %v6295_v35 }
 0x28e   :  { %v1082_v63 = vpop.f32.mrb[72].mxu0  ;;  %v4481_v45 = vpop.f32.mrb[48].mxu1 }
 0x28f   :  { %7944 = vst [vmem:[#allocation39_spill] sm:$0xff] %v6304_v27  ;;  %v6310_v56 = vmul.f32 %v1082_v63, %v1082_v63  ;;  %v6313_v42 = vmul.f32 %v1082_v63, %v6144_v40  ;;  %v1303_v14 = vpop.f32.mrb[49].mxu1  ;;  %v1084_v8 = vpop.f32.mrb[73].mxu0  ;;  %v6321_v27 = vmul.f32 %v6156_v37, %v6156_v37 }
 0x290   :  { %v4788_v39 = vpack.c.bf16 %v4481_v45, %v1303_v14  ;;  %v7950_v8 = vmov 0.0|0.0  }
 0x291   :  { %7945 = vst [vmem:[#allocation40_spill] sm:$0xff] %v6310_v56  ;;  %7946 = vst [vmem:[#allocation41_spill] sm:$0xff] %v6313_v42  ;;  %v6317_v32 = vadd.f32 %v6310_v56, %v6308_v24 }
 0x292   :  { %v1087_v46 = vpop.f32.mrb[74].mxu0  ;;  %v4484_v30 = vpop.f32.mrb[50].mxu1  ;;  %4789 = vmatpush1.bf16.msra.mxu1 %v4788_v39 }
 0x293   :  { %7947 = vst [vmem:[#allocation42_spill] sm:$0xff] %v6317_v32  ;;  %v6323_v55 = vmul.f32 %v1087_v46, %v1087_v46  ;;  %v6326_v28 = vmul.f32 %v1087_v46, %v6156_v37  ;;  %v1313_v40 = vpop.f32.mrb[51].mxu1  ;;  %v1089_v63 = vpop.f32.mrb[75].mxu0  ;;  %4790 = vmatprep.subr.bf16.mxu1 %v7950_v8  ;;  %v6335_v32 = vmul.f32 %v6168_v58, %v6168_v58 }
 0x294   :  { %v4791_v45 = vpack.c.bf16 %v4484_v30, %v1313_v40 }
 0x295   :  { %7948 = vst [vmem:[#allocation43_spill] sm:$0xff] %v6323_v55  ;;  %7949 = vst [vmem:[#allocation44_spill] sm:$0xff] %v6326_v28  ;;  %v6331_v14 = vadd.f32 %v6323_v55, %v6321_v27 }
 0x296   :  { %v1092_v42 = vpop.f32.mrb[76].mxu0  ;;  %v4487_v39 = vpop.f32.mrb[52].mxu1  ;;  %4792 = vmatpush1.bf16.msra.mxu1 %v4791_v45 }
 0x297   :  { %7951 = vst [vmem:[#allocation45_spill] sm:$0xff] %v6331_v14  ;;  %v6337_v56 = vmul.f32 %v1092_v42, %v1092_v42  ;;  %v6340_v37 = vmul.f32 %v1092_v42, %v6168_v58  ;;  %v1323_v46 = vpop.f32.mrb[53].mxu1  ;;  %v1094_v63 = vpop.f32.mrb[77].mxu0  ;;  %4793 = vmatprep.subr.bf16.mxu1 %v7950_v8  ;;  %v6349_v14 = vmul.f32 %v6180_v49, %v6180_v49 }
 0x298   :  { %v4794_v30 = vpack.c.bf16 %v4487_v39, %v1323_v46 }
 0x299   :  { %7952 = vst [vmem:[#allocation46_spill] sm:$0xff] %v6337_v56  ;;  %7953 = vst [vmem:[#allocation47_spill] sm:$0xff] %v6340_v37  ;;  %v6345_v40 = vadd.f32 %v6337_v56, %v6335_v32 }
 0x29a   :  { %v1097_v28 = vpop.f32.mrb[78].mxu0  ;;  %v4490_v45 = vpop.f32.mrb[54].mxu1  ;;  %4795 = vmatpush1.bf16.msra.mxu1 %v4794_v30 }
 0x29b   :  { %7954 = vst [vmem:[#allocation48_spill] sm:$0xff] %v6345_v40  ;;  %v6351_v55 = vmul.f32 %v1097_v28, %v1097_v28  ;;  %v6354_v42 = vmul.f32 %v1097_v28, %v6180_v49  ;;  %v1333_v58 = vpop.f32.mrb[55].mxu1  ;;  %v1099_v63 = vpop.f32.mrb[79].mxu0  ;;  %4796 = vmatprep.subr.bf16.mxu1 %v7950_v8  ;;  %v6363_v40 = vmul.f32 %v6192_v10, %v6192_v10 }
 0x29c   :  { %v4797_v39 = vpack.c.bf16 %v4490_v45, %v1333_v58 }
 0x29d   :  { %7955 = vst [vmem:[#allocation49_spill] sm:$0xff] %v6351_v55  ;;  %7956 = vst [vmem:[#allocation50_spill] sm:$0xff] %v6354_v42  ;;  %v6359_v46 = vadd.f32 %v6351_v55, %v6349_v14 }
 0x29e   :  { %v1102_v37 = vpop.f32.mrb[80].mxu0  ;;  %v4493_v30 = vpop.f32.mrb[56].mxu1  ;;  %4798 = vmatpush1.bf16.msra.mxu1 %v4797_v39 }
 0x29f   :  { %7957 = vst [vmem:[#allocation51_spill] sm:$0xff] %v6359_v46  ;;  %v6365_v56 = vmul.f32 %v1102_v37, %v1102_v37  ;;  %v6368_v49 = vmul.f32 %v1102_v37, %v6192_v10  ;;  %v1343_v28 = vpop.f32.mrb[57].mxu1  ;;  %v1104_v63 = vpop.f32.mrb[81].mxu0  ;;  %4799 = vmatprep.subr.bf16.mxu1 %v7950_v8  ;;  %v6377_v46 = vmul.f32 %v6204_v18, %v6204_v18 }
 0x2a0   :  { %v4800_v45 = vpack.c.bf16 %v4493_v30, %v1343_v28 }
 0x2a1   :  { %7958 = vst [vmem:[#allocation52_spill] sm:$0xff] %v6365_v56  ;;  %7959 = vst [vmem:[#allocation53_spill] sm:$0xff] %v6368_v49  ;;  %v6373_v58 = vadd.f32 %v6365_v56, %v6363_v40 }
 0x2a2   :  { %v1107_v42 = vpop.f32.mrb[82].mxu0  ;;  %v4496_v39 = vpop.f32.mrb[58].mxu1  ;;  %4801 = vmatpush1.bf16.msra.mxu1 %v4800_v45 }
 0x2a3   :  { %7960 = vst [vmem:[#allocation54_spill] sm:$0xff] %v6373_v58  ;;  %v6379_v55 = vmul.f32 %v1107_v42, %v1107_v42  ;;  %v6382_v10 = vmul.f32 %v1107_v42, %v6204_v18  ;;  %v1353_v37 = vpop.f32.mrb[59].mxu1  ;;  %v1109_v63 = vpop.f32.mrb[83].mxu0  ;;  %4802 = vmatprep.subr.bf16.mxu1 %v7950_v8  ;;  %v6391_v58 = vmul.f32 %v6216_v29, %v6216_v29 }
 0x2a4   :  { %v4803_v30 = vpack.c.bf16 %v4496_v39, %v1353_v37 }
 0x2a5   :  { %7961 = vst [vmem:[#allocation55_spill] sm:$0xff] %v6379_v55  ;;  %7962 = vst [vmem:[#allocation56_spill] sm:$0xff] %v6382_v10  ;;  %v6387_v28 = vadd.f32 %v6379_v55, %v6377_v46 }
 0x2a6   :  { %v1112_v49 = vpop.f32.mrb[84].mxu0  ;;  %v4499_v45 = vpop.f32.mrb[60].mxu1  ;;  %4804 = vmatpush1.bf16.msra.mxu1 %v4803_v30  ;;  %7964 = vst [vmem:[#allocation58_spill] sm:$0xff] %v6391_v58 }
 0x2a7   :  { %7963 = vst [vmem:[#allocation57_spill] sm:$0xff] %v6387_v28  ;;  %v6393_v56 = vmul.f32 %v1112_v49, %v1112_v49  ;;  %v6396_v18 = vmul.f32 %v1112_v49, %v6216_v29  ;;  %v1363_v42 = vpop.f32.mrb[61].mxu1  ;;  %v1114_v63 = vpop.f32.mrb[85].mxu0  ;;  %4805 = vmatprep.subr.bf16.mxu1 %v7950_v8  ;;  %v6405_v28 = vmul.f32 %v6231_v61, %v6231_v61 }
 0x2a8   :  { %v4806_v39 = vpack.c.bf16 %v4499_v45, %v1363_v42 }
 0x2a9   :  { %7965 = vst [vmem:[#allocation59_spill] sm:$0xff] %v6393_v56  ;;  %7966 = vst [vmem:[#allocation60_spill] sm:$0xff] %v6396_v18  ;;  %v6401_v37 = vadd.f32 %v6393_v56, %v6391_v58 }
 0x2aa   :  { %v1117_v10 = vpop.f32.mrb[86].mxu0  ;;  %v4502_v30 = vpop.f32.mrb[62].mxu1  ;;  %4807 = vmatpush1.bf16.msra.mxu1 %v4806_v39  ;;  %7968 = vst [vmem:[#allocation62_spill] sm:$0xff] %v6405_v28 }
 0x2ab   :  { %7967 = vst [vmem:[#allocation61_spill] sm:$0xff] %v6401_v37  ;;  %v6407_v55 = vmul.f32 %v1117_v10, %v1117_v10  ;;  %v6410_v29 = vmul.f32 %v1117_v10, %v6231_v61  ;;  %v1373_v49 = vpop.f32.mrb[63].mxu1  ;;  %v1119_v63 = vpop.f32.mrb[87].mxu0  ;;  %4808 = vmatprep.subr.bf16.mxu1 %v7950_v8  ;;  %v6419_v37 = vmul.f32 %v6246_v7, %v6246_v7 }
 0x2ac   :  { %v4809_v45 = vpack.c.bf16 %v4502_v30, %v1373_v49 }
 0x2ad   :  { %7969 = vst [vmem:[#allocation63_spill] sm:$0xff] %v6407_v55  ;;  %7970 = vst [vmem:[#allocation64_spill] sm:$0xff] %v6410_v29  ;;  %v6415_v42 = vadd.f32 %v6407_v55, %v6405_v28  ;;  %v6558_v28 = vld [vmem:[#allocation7 + $0xa0] sm:$0xff] }
 0x2ae   :  { %v1122_v18 = vpop.f32.mrb[88].mxu0  ;;  %v4505_v39 = vpop.f32.mrb[64].mxu1  ;;  %4810 = vmatpush1.bf16.msra.mxu1 %v4809_v45  ;;  %7972 = vst [vmem:[#allocation66_spill] sm:$0xff] %v6419_v37  ;;  %7997 = vst [vmem:[#allocation91_spill] sm:$0xff] %v6558_v28 }
 0x2af   :  { %7971 = vst [vmem:[#allocation65_spill] sm:$0xff] %v6415_v42  ;;  %v6421_v56 = vmul.f32 %v1122_v18, %v1122_v18  ;;  %v6424_v61 = vmul.f32 %v1122_v18, %v6246_v7  ;;  %v1383_v10 = vpop.f32.mrb[65].mxu1  ;;  %v1124_v63 = vpop.f32.mrb[89].mxu0  ;;  %4811 = vmatprep.subr.bf16.mxu1 %v7950_v8  ;;  %v6433_v42 = vmul.f32 %v6261_v31, %v6261_v31 }
 0x2b0   :  { %v4812_v30 = vpack.c.bf16 %v4505_v39, %v1383_v10 }
 0x2b1   :  { %7973 = vst [vmem:[#allocation67_spill] sm:$0xff] %v6421_v56  ;;  %7974 = vst [vmem:[#allocation68_spill] sm:$0xff] %v6424_v61  ;;  %v6429_v49 = vadd.f32 %v6421_v56, %v6419_v37 }
 0x2b2   :  { %v1127_v29 = vpop.f32.mrb[90].mxu0  ;;  %v4508_v45 = vpop.f32.mrb[66].mxu1  ;;  %4813 = vmatpush1.bf16.msra.mxu1 %v4812_v30  ;;  %7976 = vst [vmem:[#allocation70_spill] sm:$0xff] %v6433_v42 }
 0x2b3   :  { %7975 = vst [vmem:[#allocation69_spill] sm:$0xff] %v6429_v49  ;;  %v6435_v55 = vmul.f32 %v1127_v29, %v1127_v29  ;;  %v6438_v7 = vmul.f32 %v1127_v29, %v6261_v31  ;;  %v1393_v18 = vpop.f32.mrb[67].mxu1  ;;  %v1129_v63 = vpop.f32.mrb[91].mxu0  ;;  %4814 = vmatprep.subr.bf16.mxu1 %v7950_v8  ;;  %v6447_v49 = vmul.f32 %v6276_v25, %v6276_v25 }
 0x2b4   :  { %v4815_v39 = vpack.c.bf16 %v4508_v45, %v1393_v18 }
 0x2b5   :  { %7977 = vst [vmem:[#allocation71_spill] sm:$0xff] %v6435_v55  ;;  %7978 = vst [vmem:[#allocation72_spill] sm:$0xff] %v6438_v7  ;;  %v6443_v10 = vadd.f32 %v6435_v55, %v6433_v42  ;;  %v6534_v42 = vld [vmem:[#allocation7 + $0x70] sm:$0xff] }
 0x2b6   :  { %v1132_v61 = vpop.f32.mrb[92].mxu0  ;;  %v4511_v30 = vpop.f32.mrb[68].mxu1  ;;  %4816 = vmatpush1.bf16.msra.mxu1 %v4815_v39  ;;  %7980 = vst [vmem:[#allocation74_spill] sm:$0xff] %v6447_v49  ;;  %7991 = vst [vmem:[#allocation85_spill] sm:$0xff] %v6534_v42 }
 0x2b7   :  { %7979 = vst [vmem:[#allocation73_spill] sm:$0xff] %v6443_v10  ;;  %v6449_v56 = vmul.f32 %v1132_v61, %v1132_v61  ;;  %v6452_v31 = vmul.f32 %v1132_v61, %v6276_v25  ;;  %v1403_v29 = vpop.f32.mrb[69].mxu1  ;;  %v1134_v63 = vpop.f32.mrb[93].mxu0  ;;  %4817 = vmatprep.subr.bf16.mxu1 %v7950_v8  ;;  %v6461_v10 = vmul.f32 %v6291_v38, %v6291_v38 }
 0x2b8   :  { %v4818_v45 = vpack.c.bf16 %v4511_v30, %v1403_v29 }
 0x2b9   :  { %7981 = vst [vmem:[#allocation75_spill] sm:$0xff] %v6449_v56  ;;  %7982 = vst [vmem:[#allocation76_spill] sm:$0xff] %v6452_v31  ;;  %v6457_v18 = vadd.f32 %v6449_v56, %v6447_v49  ;;  %v6474_v56 = vld [vmem:[#allocation7] sm:$0xff] }
 0x2ba   :  { %v1137_v7 = vpop.f32.mrb[94].mxu0  ;;  %v4514_v39 = vpop.f32.mrb[70].mxu1  ;;  %4819 = vmatpush1.bf16.msra.mxu1 %v4818_v45  ;;  %7984 = vst [vmem:[#allocation78_spill] sm:$0xff] %v6461_v10 }
 0x2bb   :  { %7983 = vst [vmem:[#allocation77_spill] sm:$0xff] %v6457_v18  ;;  %v6463_v55 = vmul.f32 %v1137_v7, %v1137_v7  ;;  %v6466_v25 = vmul.f32 %v1137_v7, %v6291_v38  ;;  %v1413_v61 = vpop.f32.mrb[71].mxu1  ;;  %v1139_v63 = vpop.f32.mrb[95].mxu0  ;;  %4820 = vmatprep.subr.bf16.mxu1 %v7950_v8 }
 0x2bc   :  { %v4821_v30 = vpack.c.bf16 %v4514_v39, %v1413_v61  ;;  %v6478_v39 = vld [vmem:[#allocation7 + $0x18] sm:$0xff] }
 0x2bd   :  { %7985 = vst [vmem:[#allocation79_spill] sm:$0xff] %v6463_v55  ;;  %7986 = vst [vmem:[#allocation80_spill] sm:$0xff] %v6466_v25  ;;  %v6471_v29 = vadd.f32 %v6463_v55, %v6461_v10  ;;  %v6510_v55 = vld [vmem:[#allocation7 + $0x40] sm:$0xff] }
 0x2be   :  { %4822 = vmatpush1.bf16.msra.mxu1 %v4821_v30  ;;  %v4525_v45 = vpop.f32.mrb[96].mxu0 }
 0x2bf   :  { %7987 = vst [vmem:[#allocation81_spill] sm:$0xff] %v6471_v29  ;;  %v1769_v31 = vpop.f32.mrb[97].mxu0  ;;  %4868 = vmatprep.subr.bf16.mxu1 %v5503_v3  ;;  %v6502_v29 = vld [vmem:[#allocation7 + $0x30] sm:$0xff] }
 0x2c0   :  { %v4832_v18 = vpack.c.bf16 %v4525_v45, %v1769_v31  ;;  %v6484_v31 = vld [vmem:[#allocation7 + $0x10] sm:$0xff]  ;;  %v6494_v45 = vld [vmem:[#allocation7 + $0x20] sm:$0xff] }
 0x2c1   :  { %1487 = vmatmul.mubr.f32.vlgmr.msra.gmra.mrb[72].mxu1 %v6474_v56 }
 0x2c2   :  { %v4528_v38 = vpop.f32.mrb[98].mxu0  ;;  %4833 = vmatpush1.bf16.msra.mxu0 %v4832_v18  ;;  %4870 = vmatpush3.bf16.msra.mxu1 %v5503_v3  ;;  %v6487_v18 = vld [vmem:[#allocation7 + $0x28] sm:$0xff] }
 0x2c3   :  { %v1779_v7 = vpop.f32.mrb[99].mxu0  ;;  %3996 = vmatprep.mubr.msk.f32.mxu1 %vm441_vm1, %v6478_v39  ;;  %4834 = vmatprep.subr.bf16.mxu0 %v7950_v8 }
 0x2c4   :  { %v4835_v61 = vpack.c.bf16 %v4528_v38, %v1779_v7  ;;  %4872 = vmatprep.subr.bf16.mxu1 %v5510_v6  ;;  %v6497_v7 = vld [vmem:[#allocation7 + $0x38] sm:$0xff] }
 0x2c5   :  { %1492 = vmatmul.mubr.f32.gmra.mrb[74].mxu1 %v6484_v31 }
 0x2c6   :  { %v4531_v63 = vpop.f32.mrb[100].mxu0  ;;  %4836 = vmatpush1.bf16.msra.mxu0 %v4835_v61  ;;  %3997 = vmatprep.mubr.msk.f32.mxu1 %vm441_vm1, %v6487_v18 }
 0x2c7   :  { %v1789_v3 = vpop.f32.mrb[101].mxu0  ;;  %4837 = vmatprep.subr.bf16.mxu0 %v7950_v8  ;;  %4874 = vmatpush3.bf16.msra.mxu1 %v5510_v6 }
 0x2c8   :  { %v4838_v30 = vpack.c.bf16 %v4531_v63, %v1789_v3  ;;  %4875 = vmatprep.subr.bf16.mxu1 %v7950_v8  ;;  %v6505_v63 = vld [vmem:[#allocation7 + $0x48] sm:$0xff] }
 0x2c9   :  { %1497 = vmatmul.mubr.f32.gmra.mrb[76].mxu1 %v6494_v45 }
 0x2ca   :  { %v4534_v38 = vpop.f32.mrb[102].mxu0  ;;  %4839 = vmatpush1.bf16.msra.mxu0 %v4838_v30  ;;  %3998 = vmatprep.mubr.msk.f32.mxu1 %vm441_vm1, %v6497_v7 }
 0x2cb   :  { %v1799_v61 = vpop.f32.mrb[103].mxu0  ;;  %4840 = vmatprep.subr.bf16.mxu0 %v7950_v8 }
 0x2cc   :  { %v4841_v25 = vpack.c.bf16 %v4534_v38, %v1799_v61  ;;  %v6513_v61 = vld [vmem:[#allocation7 + $0x58] sm:$0xff] }
 0x2cd   :  { %1502 = vmatmul.mubr.f32.gmra.mrb[78].mxu1 %v6502_v29 }
 0x2ce   :  { %v4537_v6 = vpop.f32.mrb[104].mxu0  ;;  %4842 = vmatpush1.bf16.msra.mxu0 %v4841_v25  ;;  %3999 = vmatprep.mubr.msk.f32.mxu1 %vm441_vm1, %v6505_v63 }
 0x2cf   :  { %v1809_v3 = vpop.f32.mrb[105].mxu0  ;;  %4843 = vmatprep.subr.bf16.mxu0 %v7950_v8 }
 0x2d0   :  { %v4844_v30 = vpack.c.bf16 %v4537_v6, %v1809_v3  ;;  %v6521_v3 = vld [vmem:[#allocation7 + $0x68] sm:$0xff] }
 0x2d1   :  { %1507 = vmatmul.mubr.f32.gmra.mrb[80].mxu1 %v6510_v55  ;;  %7988 = vst [vmem:[#allocation82_spill] sm:$0xff] %v6521_v3 }
 0x2d2   :  { %v4540_v38 = vpop.f32.mrb[106].mxu0  ;;  %4845 = vmatpush1.bf16.msra.mxu0 %v4844_v30  ;;  %4000 = vmatprep.mubr.msk.f32.mxu1 %vm441_vm1, %v6513_v61 }
 0x2d3   :  { %v1819_v25 = vpop.f32.mrb[107].mxu0  ;;  %4846 = vmatprep.subr.bf16.mxu0 %v7950_v8 }
 0x2d4   :  { %v4847_v10 = vpack.c.bf16 %v4540_v38, %v1819_v25  ;;  %v6529_v25 = vld [vmem:[#allocation7 + $0x78] sm:$0xff] }
 0x2d5   :  { %1512 = vmatmul.mubr.f32.gmra.mrb[82].mxu1 %v6518_v19  ;;  %7990 = vst [vmem:[#allocation84_spill] sm:$0xff] %v6529_v25 }
 0x2d6   :  { %v4543_v6 = vpop.f32.mrb[108].mxu0  ;;  %4848 = vmatpush1.bf16.msra.mxu0 %v4847_v10  ;;  %4001 = vmatprep.mubr.msk.f32.mxu1 %vm441_vm1, %v6521_v3 }
 0x2d7   :  { %v1829_v30 = vpop.f32.mrb[109].mxu0  ;;  %4849 = vmatprep.subr.bf16.mxu0 %v7950_v8 }
 0x2d8   :  { %v4850_v49 = vpack.c.bf16 %v4543_v6, %v1829_v30  ;;  %v6537_v30 = vld [vmem:[#allocation7 + $0x88] sm:$0xff] }
 0x2d9   :  { %1517 = vmatmul.mubr.f32.gmra.mrb[84].mxu1 %v6526_v11  ;;  %7992 = vst [vmem:[#allocation86_spill] sm:$0xff] %v6537_v30 }
 0x2da   :  { %v4546_v38 = vpop.f32.mrb[110].mxu0  ;;  %4851 = vmatpush1.bf16.msra.mxu0 %v4850_v49  ;;  %4002 = vmatprep.mubr.msk.f32.mxu1 %vm441_vm1, %v6529_v25 }
 0x2db   :  { %v1839_v10 = vpop.f32.mrb[111].mxu0  ;;  %4852 = vmatprep.subr.bf16.mxu0 %v7950_v8 }
 0x2dc   :  { %v4853_v0 = vpack.c.bf16 %v4546_v38, %v1839_v10  ;;  %v6545_v10 = vld [vmem:[#allocation7 + $0x98] sm:$0xff] }
 0x2dd   :  { %1522 = vmatmul.mubr.f32.gmra.mrb[86].mxu1 %v6534_v42  ;;  %7994 = vst [vmem:[#allocation88_spill] sm:$0xff] %v6545_v10 }
 0x2de   :  { %v4549_v6 = vpop.f32.mrb[112].mxu0  ;;  %4854 = vmatpush1.bf16.msra.mxu0 %v4853_v0  ;;  %4003 = vmatprep.mubr.msk.f32.mxu1 %vm441_vm1, %v6537_v30 }
 0x2df   :  { %v1849_v49 = vpop.f32.mrb[113].mxu0  ;;  %4855 = vmatprep.subr.bf16.mxu0 %v7950_v8 }
 0x2e0   :  { %v4856_v26 = vpack.c.bf16 %v4549_v6, %v1849_v49  ;;  %v6553_v49 = vld [vmem:[#allocation7 + $0xa8] sm:$0xff] }
 0x2e1   :  { %1527 = vmatmul.mubr.f32.gmra.mrb[88].mxu1 %v6542_v16  ;;  %7996 = vst [vmem:[#allocation90_spill] sm:$0xff] %v6553_v49 }
 0x2e2   :  { %v4552_v38 = vpop.f32.mrb[114].mxu0  ;;  %4857 = vmatpush1.bf16.msra.mxu0 %v4856_v26  ;;  %4004 = vmatprep.mubr.msk.f32.mxu1 %vm441_vm1, %v6545_v10 }
 0x2e3   :  { %v1859_v0 = vpop.f32.mrb[115].mxu0  ;;  %4858 = vmatprep.subr.bf16.mxu0 %v7950_v8 }
 0x2e4   :  { %v4859_v37 = vpack.c.bf16 %v4552_v38, %v1859_v0  ;;  %v6561_v0 = vld [vmem:[#allocation7 + $0xb8] sm:$0xff] }
 0x2e5   :  { %1532 = vmatmul.mubr.f32.gmra.mrb[90].mxu1 %v6550_v5  ;;  %7998 = vst [vmem:[#allocation92_spill] sm:$0xff] %v6561_v0 }
 0x2e6   :  { %v4555_v6 = vpop.f32.mrb[116].mxu0  ;;  %4860 = vmatpush1.bf16.msra.mxu0 %v4859_v37  ;;  %4005 = vmatprep.mubr.msk.f32.mxu1 %vm441_vm1, %v6553_v49 }
 0x2e7   :  { %v1869_v26 = vpop.f32.mrb[117].mxu0  ;;  %4861 = vmatprep.subr.bf16.mxu0 %v7950_v8 }
 0x2e8   :  { %v4862_v60 = vpack.c.bf16 %v4555_v6, %v1869_v26  ;;  %v6569_v6 = vld [vmem:[#allocation7 + $0xc8] sm:$0xff]  ;;  %v6577_v26 = vld [vmem:[#allocation7 + $0xd8] sm:$0xff] }
 0x2e9   :  { %1537 = vmatmul.mubr.f32.gmra.mrb[92].mxu1 %v6558_v28  ;;  %8000 = vst [vmem:[#allocation94_spill] sm:$0xff] %v6569_v6  ;;  %8002 = vst [vmem:[#allocation96_spill] sm:$0xff] %v6577_v26 }
 0x2ea   :  { %v4558_v38 = vpop.f32.mrb[118].mxu0  ;;  %4863 = vmatpush1.bf16.msra.mxu0 %v4862_v60  ;;  %4006 = vmatprep.mubr.msk.f32.mxu1 %vm441_vm1, %v6561_v0  ;;  %v6573_v60 = vld [vmem:[#allocation7 + $0xc0] sm:$0xff] }
 0x2eb   :  { %v1879_v37 = vpop.f32.mrb[119].mxu0  ;;  %4864 = vmatprep.subr.bf16.mxu0 %v7950_v8  ;;  %8001 = vst [vmem:[#allocation95_spill] sm:$0xff] %v6573_v60 }
 0x2ec   :  { %v4865_v22 = vpack.c.bf16 %v4558_v38, %v1879_v37  ;;  %v6587_v38 = vld [vmem:[#allocation7 + $0xe8] sm:$0xff] }
 0x2ed   :  { %1542 = vmatmul.mubr.f32.gmra.mrb[94].mxu1 %v6566_v33  ;;  %8004 = vst [vmem:[#allocation98_spill] sm:$0xff] %v6587_v38  ;;  %v6647_v37 = vld [vmem:[#allocation7 + $0x148] sm:$0xff] }
 0x2ee   :  { %4866 = vmatpush1.bf16.msra.mxu0 %v4865_v22  ;;  %4007 = vmatprep.mubr.msk.f32.mxu1 %vm441_vm1, %v6569_v6  ;;  %v6583_v22 = vld [vmem:[#allocation7 + $0xd0] sm:$0xff]  ;;  %8016 = vst [vmem:[#allocation110_spill] sm:$0xff] %v6647_v37 }
 0x2ef   :  { %8003 = vst [vmem:[#allocation97_spill] sm:$0xff] %v6583_v22 }
 0x2f1   :  { %1547 = vmatmul.mubr.f32.gmra.mrb[96].mxu1 %v6573_v60  ;;  %1953 = vmatmul.mubr.f32.vlgmr.msra.gmra.mrb[120].mxu0 %v6474_v56  ;;  %v6593_v56 = vld [vmem:[#allocation7 + $0xe0] sm:$0xff] }
 0x2f2   :  { %4008 = vmatprep.mubr.msk.f32.mxu1 %vm441_vm1, %v6577_v26  ;;  %4044 = vmatprep.mubr.msk.f32.mxu0 %vm441_vm1, %v6478_v39  ;;  %8005 = vst [vmem:[#allocation99_spill] sm:$0xff] %v6593_v56  ;;  %v6597_v39 = vld [vmem:[#allocation7 + $0xf8] sm:$0xff] }
 0x2f3   :  { %8006 = vst [vmem:[#allocation100_spill] sm:$0xff] %v6597_v39 }
 0x2f5   :  { %1552 = vmatmul.mubr.f32.gmra.mrb[98].mxu1 %v6583_v22  ;;  %1958 = vmatmul.mubr.f32.gmra.mrb[122].mxu0 %v6484_v31  ;;  %v6603_v31 = vld [vmem:[#allocation7 + $0xf0] sm:$0xff] }
 0x2f6   :  { %4009 = vmatprep.mubr.msk.f32.mxu1 %vm441_vm1, %v6587_v38  ;;  %4045 = vmatprep.mubr.msk.f32.mxu0 %vm441_vm1, %v6487_v18  ;;  %8007 = vst [vmem:[#allocation101_spill] sm:$0xff] %v6603_v31  ;;  %v6607_v18 = vld [vmem:[#allocation7 + $0x108] sm:$0xff] }
 0x2f7   :  { %8008 = vst [vmem:[#allocation102_spill] sm:$0xff] %v6607_v18 }
 0x2f9   :  { %1557 = vmatmul.mubr.f32.gmra.mrb[100].mxu1 %v6593_v56  ;;  %1963 = vmatmul.mubr.f32.gmra.mrb[124].mxu0 %v6494_v45  ;;  %v6613_v45 = vld [vmem:[#allocation7 + $0x100] sm:$0xff] }
 0x2fa   :  { %4010 = vmatprep.mubr.msk.f32.mxu1 %vm441_vm1, %v6597_v39  ;;  %4046 = vmatprep.mubr.msk.f32.mxu0 %vm441_vm1, %v6497_v7  ;;  %8009 = vst [vmem:[#allocation103_spill] sm:$0xff] %v6613_v45  ;;  %v6617_v7 = vld [vmem:[#allocation7 + $0x118] sm:$0xff] }
 0x2fb   :  { %8010 = vst [vmem:[#allocation104_spill] sm:$0xff] %v6617_v7 }
 0x2fd   :  { %1562 = vmatmul.mubr.f32.gmra.mrb[102].mxu1 %v6603_v31  ;;  %1968 = vmatmul.mubr.f32.gmra.mrb[126].mxu0 %v6502_v29  ;;  %v6623_v29 = vld [vmem:[#allocation7 + $0x110] sm:$0xff] }
 0x2fe   :  { %4011 = vmatprep.mubr.msk.f32.mxu1 %vm441_vm1, %v6607_v18  ;;  %4047 = vmatprep.mubr.msk.f32.mxu0 %vm441_vm1, %v6505_v63  ;;  %8011 = vst [vmem:[#allocation105_spill] sm:$0xff] %v6623_v29  ;;  %v6627_v63 = vld [vmem:[#allocation7 + $0x128] sm:$0xff] }
 0x2ff   :  { %8012 = vst [vmem:[#allocation106_spill] sm:$0xff] %v6627_v63 }
 0x301   :  { %1567 = vmatmul.mubr.f32.gmra.mrb[104].mxu1 %v6613_v45  ;;  %1973 = vmatmul.mubr.f32.gmra.mrb[128].mxu0 %v6510_v55  ;;  %v6633_v55 = vld [vmem:[#allocation7 + $0x120] sm:$0xff] }
 0x302   :  { %4012 = vmatprep.mubr.msk.f32.mxu1 %vm441_vm1, %v6617_v7  ;;  %4048 = vmatprep.mubr.msk.f32.mxu0 %vm441_vm1, %v6513_v61  ;;  %8013 = vst [vmem:[#allocation107_spill] sm:$0xff] %v6633_v55  ;;  %v6637_v61 = vld [vmem:[#allocation7 + $0x138] sm:$0xff] }
 0x303   :  { %8014 = vst [vmem:[#allocation108_spill] sm:$0xff] %v6637_v61 }
 0x305   :  { %1572 = vmatmul.mubr.f32.gmra.mrb[106].mxu1 %v6623_v29  ;;  %1978 = vmatmul.mubr.f32.gmra.mrb[130].mxu0 %v6518_v19  ;;  %v6643_v19 = vld [vmem:[#allocation7 + $0x130] sm:$0xff] }
 0x306   :  { %4013 = vmatprep.mubr.msk.f32.mxu1 %vm441_vm1, %v6627_v63  ;;  %4049 = vmatprep.mubr.msk.f32.mxu0 %vm441_vm1, %v6521_v3  ;;  %8015 = vst [vmem:[#allocation109_spill] sm:$0xff] %v6643_v19  ;;  %v6685_v3 = vld [vmem:[#allocation2 + $0x8] sm:$0xff] }
 0x309   :  { %1577 = vmatmul.mubr.f32.gmra.mrb[108].mxu1 %v6633_v55  ;;  %1983 = vmatmul.mubr.f32.gmra.mrb[132].mxu0 %v6526_v11  ;;  %v6653_v11 = vld [vmem:[#allocation7 + $0x140] sm:$0xff] }
 0x30a   :  { %4014 = vmatprep.mubr.msk.f32.mxu1 %vm441_vm1, %v6637_v61  ;;  %4050 = vmatprep.mubr.msk.f32.mxu0 %vm441_vm1, %v6529_v25  ;;  %8017 = vst [vmem:[#allocation111_spill] sm:$0xff] %v6653_v11  ;;  %v6657_v25 = vld [vmem:[#allocation7 + $0x158] sm:$0xff] }
 0x30b   :  { %8018 = vst [vmem:[#allocation112_spill] sm:$0xff] %v6657_v25 }
 0x30d   :  { %1582 = vmatmul.mubr.f32.gmra.mrb[110].mxu1 %v6643_v19  ;;  %1988 = vmatmul.mubr.f32.gmra.mrb[134].mxu0 %v6534_v42  ;;  %v6663_v42 = vld [vmem:[#allocation7 + $0x150] sm:$0xff] }
 0x30e   :  { %4015 = vmatprep.mubr.msk.f32.mxu1 %vm441_vm1, %v6647_v37  ;;  %4051 = vmatprep.mubr.msk.f32.mxu0 %vm441_vm1, %v6537_v30  ;;  %8019 = vst [vmem:[#allocation113_spill] sm:$0xff] %v6663_v42  ;;  %v6667_v30 = vld [vmem:[#allocation7 + $0x168] sm:$0xff] }
 0x30f   :  { %8020 = vst [vmem:[#allocation114_spill] sm:$0xff] %v6667_v30 }
 0x311   :  { %1587 = vmatmul.mubr.f32.gmra.mrb[112].mxu1 %v6653_v11  ;;  %1993 = vmatmul.mubr.f32.gmra.mrb[136].mxu0 %v6542_v16 }
 0x312   :  { %4016 = vmatprep.mubr.msk.f32.mxu1 %vm441_vm1, %v6657_v25  ;;  %4052 = vmatprep.mubr.msk.f32.mxu0 %vm441_vm1, %v6545_v10  ;;  %v6679_v10 = vld [vmem:[#allocation2] sm:$0xff] }
 0x315   :  { %1592 = vmatmul.mubr.f32.gmra.mrb[114].mxu1 %v6663_v42  ;;  %1998 = vmatmul.mubr.f32.gmra.mrb[138].mxu0 %v6550_v5  ;;  %v6681_v5 = vld [vmem:[#allocation5] sm:$0xff] }
 0x316   :  { %4017 = vmatprep.mubr.msk.f32.mxu1 %vm441_vm1, %v6667_v30  ;;  %4053 = vmatprep.mubr.msk.f32.mxu0 %vm441_vm1, %v6553_v49  ;;  %8021 = vst [vmem:[#allocation115_spill] sm:$0xff] %v6681_v5  ;;  %v2073_v16 = vmul.f32 %v6681_v5, %v6679_v10  ;;  %v6687_v49 = vld [vmem:[#allocation5 + $0x8] sm:$0xff] }
 0x317   :  { %8022 = vst [vmem:[#allocation116_spill] sm:$0xff] %v6687_v49 }
 0x319   :  { %1597 = vmatmul.mubr.f32.gmra.mrb[116].mxu1 %v5934_v52  ;;  %2003 = vmatmul.mubr.f32.gmra.mrb[140].mxu0 %v6558_v28  ;;  %v2074_v52 = vmul.f32 %v6687_v49, %v6685_v3  ;;  %v6704_v49 = vld [vmem:[#allocation2 + $0x18] sm:$0xff] }
 0x31a   :  { %4018 = vmatprep.mubr.msk.f32.mxu1 %vm441_vm1, %v5936_v47  ;;  %4054 = vmatprep.mubr.msk.f32.mxu0 %vm441_vm1, %v6561_v0  ;;  %v6696_v47 = vld [vmem:[#allocation2 + $0x10] sm:$0xff] }
 0x31b   :  { %v6698_v0 = vld [vmem:[#allocation5 + $0x10] sm:$0xff] }
 0x31c   :  { %8023 = vst [vmem:[#allocation117_spill] sm:$0xff] %v6698_v0  ;;  %v2075_v5 = vmul.f32 %v6698_v0, %v6696_v47 }
 0x31d   :  { %1602 = vmatmul.mubr.f32.gmra.mrb[118].mxu1 %v5944_v50  ;;  %2008 = vmatmul.mubr.f32.gmra.mrb[142].mxu0 %v6566_v33  ;;  %v6706_v50 = vld [vmem:[#allocation5 + $0x18] sm:$0xff]  ;;  %v6715_v33 = vld [vmem:[#allocation5 + $0x20] sm:$0xff] }
 0x31e   :  { %4055 = vmatprep.mubr.msk.f32.mxu0 %vm441_vm1, %v6569_v6  ;;  %4567 = vmatprep.mubr.msk.f32.mxu1 %vm183_vm0, %v2073_v16  ;;  %8024 = vst [vmem:[#allocation118_spill] sm:$0xff] %v6706_v50  ;;  %v2076_v6 = vmul.f32 %v6706_v50, %v6704_v49  ;;  %v6713_v16 = vld [vmem:[#allocation2 + $0x20] sm:$0xff]  ;;  %8025 = vst [vmem:[#allocation119_spill] sm:$0xff] %v6715_v33 }
 0x31f   :  { %v2077_v0 = vmul.f32 %v6715_v33, %v6713_v16 }
 0x321   :  { %2013 = vmatmul.mubr.f32.gmra.mrb[144].mxu0 %v6573_v60  ;;  %4568 = vmatmul.mubr.msk.f32.vlgmr.msra.gmra.mrb[120].mxu1 %vm183_vm0, %v2074_v52  ;;  %v6721_v52 = vld [vmem:[#allocation2 + $0x28] sm:$0xff] }
 0x322   :  { %4056 = vmatprep.mubr.msk.f32.mxu0 %vm441_vm1, %v6577_v26  ;;  %4570 = vmatprep.mubr.msk.f32.mxu1 %vm183_vm0, %v2075_v5  ;;  %v6723_v60 = vld [vmem:[#allocation5 + $0x28] sm:$0xff]  ;;  %v6730_v5 = vld [vmem:[#allocation2 + $0x30] sm:$0xff] }
 0x323   :  { %8026 = vst [vmem:[#allocation120_spill] sm:$0xff] %v6723_v60  ;;  %v2078_v50 = vmul.f32 %v6723_v60, %v6721_v52  ;;  %v6732_v26 = vld [vmem:[#allocation5 + $0x30] sm:$0xff] }
 0x324   :  { %8027 = vst [vmem:[#allocation121_spill] sm:$0xff] %v6732_v26  ;;  %v2079_v33 = vmul.f32 %v6732_v26, %v6730_v5 }
 0x325   :  { %2018 = vmatmul.mubr.f32.gmra.mrb[146].mxu0 %v6583_v22  ;;  %4571 = vmatmul.mubr.msk.f32.gmra.mrb[122].mxu1 %vm183_vm0, %v2076_v6  ;;  %v6738_v6 = vld [vmem:[#allocation2 + $0x38] sm:$0xff] }
 0x326   :  { %4057 = vmatprep.mubr.msk.f32.mxu0 %vm441_vm1, %v6587_v38  ;;  %4573 = vmatprep.mubr.msk.f32.mxu1 %vm183_vm0, %v2077_v0  ;;  %v6740_v22 = vld [vmem:[#allocation5 + $0x38] sm:$0xff]  ;;  %v6747_v0 = vld [vmem:[#allocation2 + $0x40] sm:$0xff] }
 0x327   :  { %8028 = vst [vmem:[#allocation122_spill] sm:$0xff] %v6740_v22  ;;  %v2080_v60 = vmul.f32 %v6740_v22, %v6738_v6  ;;  %v6749_v38 = vld [vmem:[#allocation5 + $0x40] sm:$0xff] }
 0x328   :  { %8029 = vst [vmem:[#allocation123_spill] sm:$0xff] %v6749_v38  ;;  %v2081_v26 = vmul.f32 %v6749_v38, %v6747_v0 }
 0x329   :  { %2023 = vmatmul.mubr.f32.gmra.mrb[148].mxu0 %v6593_v56  ;;  %4574 = vmatmul.mubr.msk.f32.gmra.mrb[124].mxu1 %vm183_vm0, %v2078_v50  ;;  %v6755_v50 = vld [vmem:[#allocation2 + $0x48] sm:$0xff] }
 0x32a   :  { %4058 = vmatprep.mubr.msk.f32.mxu0 %vm441_vm1, %v6597_v39  ;;  %4576 = vmatprep.mubr.msk.f32.mxu1 %vm183_vm0, %v2079_v33  ;;  %v6757_v56 = vld [vmem:[#allocation5 + $0x48] sm:$0xff]  ;;  %v6764_v33 = vld [vmem:[#allocation2 + $0x50] sm:$0xff] }
 0x32b   :  { %8030 = vst [vmem:[#allocation124_spill] sm:$0xff] %v6757_v56  ;;  %v2082_v22 = vmul.f32 %v6757_v56, %v6755_v50  ;;  %v6766_v39 = vld [vmem:[#allocation5 + $0x50] sm:$0xff] }
 0x32c   :  { %8031 = vst [vmem:[#allocation125_spill] sm:$0xff] %v6766_v39  ;;  %v2083_v38 = vmul.f32 %v6766_v39, %v6764_v33 }
 0x32d   :  { %2028 = vmatmul.mubr.f32.gmra.mrb[150].mxu0 %v6603_v31  ;;  %4577 = vmatmul.mubr.msk.f32.gmra.mrb[126].mxu1 %vm183_vm0, %v2080_v60  ;;  %v6772_v60 = vld [vmem:[#allocation2 + $0x58] sm:$0xff] }
 0x32e   :  { %4059 = vmatprep.mubr.msk.f32.mxu0 %vm441_vm1, %v6607_v18  ;;  %4579 = vmatprep.mubr.msk.f32.mxu1 %vm183_vm0, %v2081_v26  ;;  %v6774_v31 = vld [vmem:[#allocation5 + $0x58] sm:$0xff]  ;;  %v6781_v26 = vld [vmem:[#allocation2 + $0x60] sm:$0xff] }
 0x32f   :  { %8032 = vst [vmem:[#allocation126_spill] sm:$0xff] %v6774_v31  ;;  %v2084_v56 = vmul.f32 %v6774_v31, %v6772_v60  ;;  %v6783_v18 = vld [vmem:[#allocation5 + $0x60] sm:$0xff] }
 0x330   :  { %8033 = vst [vmem:[#allocation127_spill] sm:$0xff] %v6783_v18  ;;  %v2085_v39 = vmul.f32 %v6783_v18, %v6781_v26 }
 0x331   :  { %2033 = vmatmul.mubr.f32.gmra.mrb[152].mxu0 %v6613_v45  ;;  %4580 = vmatmul.mubr.msk.f32.gmra.mrb[128].mxu1 %vm183_vm0, %v2082_v22  ;;  %v6789_v22 = vld [vmem:[#allocation2 + $0x68] sm:$0xff] }
 0x332   :  { %4060 = vmatprep.mubr.msk.f32.mxu0 %vm441_vm1, %v6617_v7  ;;  %4582 = vmatprep.mubr.msk.f32.mxu1 %vm183_vm0, %v2083_v38  ;;  %v6791_v45 = vld [vmem:[#allocation5 + $0x68] sm:$0xff]  ;;  %v6798_v38 = vld [vmem:[#allocation2 + $0x70] sm:$0xff] }
 0x333   :  { %8034 = vst [vmem:[#allocation128_spill] sm:$0xff] %v6791_v45  ;;  %v2086_v31 = vmul.f32 %v6791_v45, %v6789_v22  ;;  %v6800_v7 = vld [vmem:[#allocation5 + $0x70] sm:$0xff] }
 0x334   :  { %8035 = vst [vmem:[#allocation129_spill] sm:$0xff] %v6800_v7  ;;  %v2087_v18 = vmul.f32 %v6800_v7, %v6798_v38 }
 0x335   :  { %2038 = vmatmul.mubr.f32.gmra.mrb[154].mxu0 %v6623_v29  ;;  %4583 = vmatmul.mubr.msk.f32.gmra.mrb[130].mxu1 %vm183_vm0, %v2084_v56  ;;  %v6806_v56 = vld [vmem:[#allocation2 + $0x78] sm:$0xff] }
 0x336   :  { %4061 = vmatprep.mubr.msk.f32.mxu0 %vm441_vm1, %v6627_v63  ;;  %4585 = vmatprep.mubr.msk.f32.mxu1 %vm183_vm0, %v2085_v39  ;;  %v6808_v29 = vld [vmem:[#allocation5 + $0x78] sm:$0xff]  ;;  %v6815_v39 = vld [vmem:[#allocation2 + $0x80] sm:$0xff] }
 0x337   :  { %8036 = vst [vmem:[#allocation130_spill] sm:$0xff] %v6808_v29  ;;  %v2088_v45 = vmul.f32 %v6808_v29, %v6806_v56  ;;  %v6817_v63 = vld [vmem:[#allocation5 + $0x80] sm:$0xff] }
 0x338   :  { %8037 = vst [vmem:[#allocation131_spill] sm:$0xff] %v6817_v63  ;;  %v2089_v7 = vmul.f32 %v6817_v63, %v6815_v39 }
 0x339   :  { %2043 = vmatmul.mubr.f32.gmra.mrb[156].mxu0 %v6633_v55  ;;  %4586 = vmatmul.mubr.msk.f32.gmra.mrb[132].mxu1 %vm183_vm0, %v2086_v31  ;;  %v6823_v31 = vld [vmem:[#allocation2 + $0x88] sm:$0xff] }
 0x33a   :  { %4062 = vmatprep.mubr.msk.f32.mxu0 %vm441_vm1, %v6637_v61  ;;  %4588 = vmatprep.mubr.msk.f32.mxu1 %vm183_vm0, %v2087_v18  ;;  %v6825_v55 = vld [vmem:[#allocation5 + $0x88] sm:$0xff]  ;;  %v6832_v18 = vld [vmem:[#allocation2 + $0x90] sm:$0xff] }
 0x33b   :  { %8038 = vst [vmem:[#allocation132_spill] sm:$0xff] %v6825_v55  ;;  %v2090_v29 = vmul.f32 %v6825_v55, %v6823_v31  ;;  %v6834_v61 = vld [vmem:[#allocation5 + $0x90] sm:$0xff] }
 0x33c   :  { %8039 = vst [vmem:[#allocation133_spill] sm:$0xff] %v6834_v61  ;;  %v2091_v63 = vmul.f32 %v6834_v61, %v6832_v18 }
 0x33d   :  { %2048 = vmatmul.mubr.f32.gmra.mrb[158].mxu0 %v6643_v19  ;;  %4589 = vmatmul.mubr.msk.f32.gmra.mrb[134].mxu1 %vm183_vm0, %v2088_v45  ;;  %v6840_v45 = vld [vmem:[#allocation2 + $0x98] sm:$0xff] }
 0x33e   :  { %4063 = vmatprep.mubr.msk.f32.mxu0 %vm441_vm1, %v6647_v37  ;;  %4591 = vmatprep.mubr.msk.f32.mxu1 %vm183_vm0, %v2089_v7  ;;  %v6842_v19 = vld [vmem:[#allocation5 + $0x98] sm:$0xff]  ;;  %v6849_v7 = vld [vmem:[#allocation2 + $0xa0] sm:$0xff] }
 0x33f   :  { %8040 = vst [vmem:[#allocation134_spill] sm:$0xff] %v6842_v19  ;;  %v2092_v55 = vmul.f32 %v6842_v19, %v6840_v45  ;;  %v6851_v37 = vld [vmem:[#allocation5 + $0xa0] sm:$0xff] }
 0x340   :  { %8041 = vst [vmem:[#allocation135_spill] sm:$0xff] %v6851_v37  ;;  %v2093_v61 = vmul.f32 %v6851_v37, %v6849_v7 }
 0x341   :  { %2053 = vmatmul.mubr.f32.gmra.mrb[160].mxu0 %v6653_v11  ;;  %4592 = vmatmul.mubr.msk.f32.gmra.mrb[136].mxu1 %vm183_vm0, %v2090_v29  ;;  %v6857_v29 = vld [vmem:[#allocation2 + $0xa8] sm:$0xff] }
 0x342   :  { %4064 = vmatprep.mubr.msk.f32.mxu0 %vm441_vm1, %v6657_v25  ;;  %4594 = vmatprep.mubr.msk.f32.mxu1 %vm183_vm0, %v2091_v63  ;;  %v6859_v11 = vld [vmem:[#allocation5 + $0xa8] sm:$0xff]  ;;  %v6866_v63 = vld [vmem:[#allocation2 + $0xb0] sm:$0xff] }
 0x343   :  { %8042 = vst [vmem:[#allocation136_spill] sm:$0xff] %v6859_v11  ;;  %v2094_v19 = vmul.f32 %v6859_v11, %v6857_v29  ;;  %8043 = vst [vmem:[#allocation137_spill] sm:$0xff] %v6866_v63  ;;  %v6868_v25 = vld [vmem:[#allocation5 + $0xb0] sm:$0xff]  ;;  %v6878_v11 = vld [vmem:[#allocation5 + $0xb8] sm:$0xff] }
 0x344   :  { %8044 = vst [vmem:[#allocation138_spill] sm:$0xff] %v6868_v25  ;;  %v2095_v37 = vmul.f32 %v6868_v25, %v6866_v63  ;;  %8047 = vst [vmem:[#allocation141_spill] sm:$0xff] %v6878_v11  ;;  %v6887_v25 = vld [vmem:[#allocation7 + $0x170] sm:$0xff] }
 0x345   :  { %2058 = vmatmul.mubr.f32.gmra.mrb[162].mxu0 %v6663_v42  ;;  %4595 = vmatmul.mubr.msk.f32.gmra.mrb[138].mxu1 %vm183_vm0, %v2092_v55  ;;  %v6872_v55 = vld [vmem:[#allocation7 + $0x160] sm:$0xff]  ;;  %v6876_v42 = vld [vmem:[#allocation2 + $0xb8] sm:$0xff]  ;;  %8049 = vst [vmem:[#allocation143_spill] sm:$0xff] %v6887_v25 }
 0x346   :  { %4065 = vmatprep.mubr.msk.f32.mxu0 %vm441_vm1, %v6667_v30  ;;  %4597 = vmatprep.mubr.msk.f32.mxu1 %vm183_vm0, %v2093_v61  ;;  %8045 = vst [vmem:[#allocation139_spill] sm:$0xff] %v6872_v55  ;;  %8046 = vst [vmem:[#allocation140_spill] sm:$0xff] %v6876_v42  ;;  %v2096_v61 = vmul.f32 %v6878_v11, %v6876_v42  ;;  %v6882_v30 = vld [vmem:[#allocation7 + $0x178] sm:$0xff]  ;;  %v3161_v11 = vld [vmem:[%s7740_s5] sm:$0xff] }
 0x347   :  { %8048 = vst [vmem:[#allocation142_spill] sm:$0xff] %v6882_v30 }
 0x349   :  { %2063 = vmatmul.mubr.f32.gmra.mrb[164].mxu0 %v6872_v55  ;;  %4598 = vmatmul.mubr.msk.f32.gmra.mrb[140].mxu1 %vm183_vm0, %v2094_v19  ;;  %v5228_v19 = vld [vmem:[#allocation7 + $0x8] sm:$0xff] }
 0x34a   :  { %4066 = vmatprep.mubr.msk.f32.mxu0 %vm441_vm1, %v6882_v30  ;;  %4600 = vmatprep.mubr.msk.f32.mxu1 %vm183_vm0, %v2095_v37  ;;  %v3162_v37 = vld [vmem:[%s7740_s5 + $0x8] sm:$0xff] }
 0x34b   :  { %v6900_v30 = vpack.c.bf16 %v3162_v37, %v3161_v11 }
 0x34d   :  { %2068 = vmatmul.mubr.f32.gmra.mrb[166].mxu0 %v6887_v25  ;;  %4601 = vmatmul.mubr.msk.f32.gmra.mrb[142].mxu1 %vm183_vm0, %v2096_v61  ;;  %8050 = vst [vmem:[#allocation144_spill] sm:$0xff] %v6900_v30 }
 0x34e   :  { %4091 = vmatprep.mubr.msk.f32.mxu1 %vm441_vm1, %v5228_v19  ;;  %4611 = vmatprep.mubr.msk.f32.mxu0 %vm183_vm0, %v6679_v10 }
 0x34f   :  { %4912 = vmatprep.subr.bf16.mxu0 %v6900_v30 }
 0x350   :  { %4914 = vmatpush3.bf16.msra.mxu0 %v6900_v30 }
 0x394   :  { %v1488_v61 = vpop.f32.mrb[72].mxu1 }
 0x395   :  { %v2611_v19 = vsub.f32 %v1488_v61, %v6146_v44  ;;  %v1490_v25 = vpop.f32.mrb[73].mxu1 }
 0x398   :  { %v6905_v55 = vpop.f32.mrb[74].mxu1 }
 0x399   :  { %v1495_v28 = vpop.f32.mrb[75].mxu1 }
 0x39c   :  { %v6909_v58 = vpop.f32.mrb[76].mxu1 }
 0x39d   :  { %v1500_v37 = vpop.f32.mrb[77].mxu1 }
 0x39e   :  { %v3163_v37 = vld [vmem:[%s7740_s5 + $0x10] sm:$0xff] }
 0x3a0   :  { %v6913_v20 = vpop.f32.mrb[78].mxu1 }
 0x3a1   :  { %v1505_v42 = vpop.f32.mrb[79].mxu1 }
 0x3a2   :  { %v3164_v42 = vld [vmem:[%s7740_s5 + $0x18] sm:$0xff]  ;;  %s5353_s5 = scalar_lea.vmem %s3853_s26, 32 }
 0x3a3   :  { %v6931_v30 = vpack.c.bf16 %v3164_v42, %v3163_v37  ;;  %p5355_p6 = scmp.lt.s32.totalorder %s5353_s5, %s5349_s27 }
 0x3a4   :  { %v6917_v44 = vpop.f32.mrb[80].mxu1 }
 0x3a5   :  { %v1510_v61 = vpop.f32.mrb[81].mxu1  ;;  %4916 = vmatprep.subr.bf16.mxu0 %v6931_v30  ;;  %p5356_p7 = por %p5355_p6, %p5354_p5 }
 0x3a6   :  { %4918 = vmatpush3.bf16.msra.mxu0 %v6931_v30 }
 0x3a7   :  { %4919 = vmatprep.subr.bf16.mxu0 %v7950_v8  ;;  %p5357_p8 = pnand %p5356_p7, %p5350_p4 }
 0x3a8   :  { %v6921_v10 = vpop.f32.mrb[82].mxu1 }
 0x3a9   :  { %v1515_v63 = vpop.f32.mrb[83].mxu1  ;;  %4612 = vmatmul.mubr.msk.f32.vlgmr.msra.gmra.mrb[168].mxu0 %vm183_vm0, %v6685_v3 }
 0x3aa   :  { %4614 = vmatprep.mubr.msk.f32.mxu0 %vm183_vm0, %v6696_v47 }
 0x3ac   :  { %v6933_v11 = vpop.f32.mrb[84].mxu1 }
 0x3ad   :  { %v1520_v25 = vpop.f32.mrb[85].mxu1  ;;  %4615 = vmatmul.mubr.msk.f32.gmra.mrb[170].mxu0 %vm183_vm0, %v6704_v49 }
 0x3ae   :  { %4617 = vmatprep.mubr.msk.f32.mxu0 %vm183_vm0, %v6713_v16  ;;  %v2875_v25 = vadd.f32 6.5025, %v6154_v36 }
 0x3b0   :  { %v6940_v63 = vpop.f32.mrb[86].mxu1 }
 0x3b1   :  { %v2618_v37 = vsub.f32 %v6940_v63, %v6235_v62  ;;  %v1525_v42 = vpop.f32.mrb[87].mxu1  ;;  %4618 = vmatmul.mubr.msk.f32.gmra.mrb[172].mxu0 %vm183_vm0, %v6721_v52 }
 0x3b2   :  { %4620 = vmatprep.mubr.msk.f32.mxu0 %vm183_vm0, %v6730_v5 }
 0x3b4   :  { %v6948_v28 = vpop.f32.mrb[88].mxu1 }
 0x3b5   :  { %v1530_v61 = vpop.f32.mrb[89].mxu1  ;;  %4621 = vmatmul.mubr.msk.f32.gmra.mrb[174].mxu0 %vm183_vm0, %v6738_v6  ;;  %v8068_v62 = vsub.f32 %v6948_v28, %v6250_v15 }
 0x3b6   :  { %4623 = vmatprep.mubr.msk.f32.mxu0 %vm183_vm0, %v6747_v0  ;;  %v8084_v0 = vld [vmem:[#allocation39_spill] sm:$0xff] }
 0x3b8   :  { %v6956_v3 = vpop.f32.mrb[90].mxu1 }
 0x3b9   :  { %v1535_v42 = vpop.f32.mrb[91].mxu1  ;;  %4624 = vmatmul.mubr.msk.f32.gmra.mrb[176].mxu0 %vm183_vm0, %v6755_v50  ;;  %v8073_v15 = vsub.f32 %v6956_v3, %v6265_v4 }
 0x3ba   :  { %4626 = vmatprep.mubr.msk.f32.mxu0 %vm183_vm0, %v6764_v33 }
 0x3bc   :  { %v6964_v49 = vpop.f32.mrb[92].mxu1 }
 0x3bd   :  { %v1540_v61 = vpop.f32.mrb[93].mxu1  ;;  %4627 = vmatmul.mubr.msk.f32.gmra.mrb[178].mxu0 %vm183_vm0, %v6772_v60  ;;  %v8079_v4 = vsub.f32 %v6964_v49, %v6280_v53 }
 0x3be   :  { %4629 = vmatprep.mubr.msk.f32.mxu0 %vm183_vm0, %v6781_v26 }
 0x3c0   :  { %v6972_v52 = vpop.f32.mrb[94].mxu1 }
 0x3c1   :  { %v1545_v42 = vpop.f32.mrb[95].mxu1  ;;  %4630 = vmatmul.mubr.msk.f32.gmra.mrb[180].mxu0 %vm183_vm0, %v6789_v22  ;;  %v8051_v22 = vsub.f32 %v6905_v55, %v6158_v57  ;;  %v8083_v53 = vsub.f32 %v6972_v52, %v6295_v35 }
 0x3c2   :  { %4632 = vmatprep.mubr.msk.f32.mxu0 %vm183_vm0, %v6798_v38  ;;  %v8081_v38 = vld [vmem:[#allocation78_spill] sm:$0xff] }
 0x3c4   :  { %v6980_v6 = vpop.f32.mrb[96].mxu1  ;;  %v1954_v47 = vpop.f32.mrb[120].mxu0 }
 0x3c5   :  { %v2635_v61 = vsub.f32 %v1954_v47, %v6148_v34  ;;  %v1550_v16 = vpop.f32.mrb[97].mxu1  ;;  %v1956_v50 = vpop.f32.mrb[121].mxu0  ;;  %4633 = vmatmul.mubr.msk.f32.gmra.mrb[182].mxu0 %vm183_vm0, %v6806_v56  ;;  %v8052_v56 = vsub.f32 %v6909_v58, %v6170_v1  ;;  %v8053_v58 = vsub.f32 %v6913_v20, %v6182_v48  ;;  %v8054_v20 = vsub.f32 %v6917_v44, %v6194_v12 }
 0x3c6   :  { %4635 = vmatprep.mubr.msk.f32.mxu0 %vm183_vm0, %v6815_v39 }
 0x3c7   :  { %v2731_v42 = vadd.f32 %v2635_v61, %v2611_v19 }
 0x3c8   :  { %v6989_v5 = vpop.f32.mrb[98].mxu1  ;;  %v1959_v33 = vpop.f32.mrb[122].mxu0 }
 0x3c9   :  { %v6994_v60 = vadd.f32 58.5225, %v2731_v42  ;;  %v2636_v34 = vsub.f32 %v1959_v33, %v6160_v59  ;;  %v1555_v47 = vpop.f32.mrb[99].mxu1  ;;  %v1961_v16 = vpop.f32.mrb[123].mxu0  ;;  %v2876_v59 = vadd.f32 6.5025, %v6166_v2  ;;  %4636 = vmatmul.mubr.msk.f32.gmra.mrb[184].mxu0 %vm183_vm0, %v6823_v31 }
 0x3ca   :  { %4638 = vmatprep.mubr.msk.f32.mxu0 %vm183_vm0, %v6832_v18  ;;  %v8076_v18 = vld [vmem:[#allocation74_spill] sm:$0xff] }
 0x3cb   :  { %v7002_v26 = vmul.f32 %v2875_v25, %v6994_v60  ;;  %v2732_v19 = vadd.f32 %v2636_v34, %v8051_v22  ;;  %5037 = vrcp.f32 %v6994_v60  ;;  %v3153_v60 = vld [vmem:[#allocation8 + $0x80] sm:$0xff] }
 0x3cc   :  { %v7007_v36 = vpop.f32.mrb[100].mxu1  ;;  %v1964_v61 = vpop.f32.mrb[124].mxu0 }
 0x3cd   :  { %v7012_v50 = vadd.f32 58.5225, %v2732_v19  ;;  %v2637_v25 = vsub.f32 %v1964_v61, %v6172_v51  ;;  %v1560_v42 = vpop.f32.mrb[101].mxu1  ;;  %v1966_v33 = vpop.f32.mrb[125].mxu0  ;;  %v2877_v51 = vadd.f32 6.5025, %v6178_v54  ;;  %4639 = vmatmul.mubr.msk.f32.gmra.mrb[186].mxu0 %vm183_vm0, %v6840_v45  ;;  %5039 = vrcp.f32 %v7002_v26 }
 0x3ce   :  { %4641 = vmatprep.mubr.msk.f32.mxu0 %vm183_vm0, %v6849_v7 }
 0x3cf   :  { %v7020_v57 = vmul.f32 %v2876_v59, %v7012_v50  ;;  %v2733_v55 = vadd.f32 %v2637_v25, %v8052_v56  ;;  %5041 = vrcp.f32 %v7012_v50 }
 0x3d0   :  { %v7025_v2 = vpop.f32.mrb[102].mxu1  ;;  %v1969_v34 = vpop.f32.mrb[126].mxu0 }
 0x3d1   :  { %v7030_v47 = vadd.f32 58.5225, %v2733_v55  ;;  %v2638_v16 = vsub.f32 %v1969_v34, %v6184_v43  ;;  %v1565_v22 = vpop.f32.mrb[103].mxu1  ;;  %v1971_v19 = vpop.f32.mrb[127].mxu0  ;;  %v2878_v43 = vadd.f32 6.5025, %v6190_v9  ;;  %4642 = vmatmul.mubr.msk.f32.gmra.mrb[188].mxu0 %vm183_vm0, %v6857_v29  ;;  %v8056_v29 = vsub.f32 %v6921_v10, %v6206_v21 }
 0x3d2   :  { %v8055_v22 = vld [vmem:[#allocation137_spill] sm:$0xff]  ;;  %v8061_v10 = vsub.f32 %v6933_v11, %v6220_v41  ;;  %5043 = vrcp.f32 %v7020_v57 }
 0x3d3   :  { %v7038_v1 = vmul.f32 %v2877_v51, %v7030_v47  ;;  %v2734_v31 = vadd.f32 %v2638_v16, %v8053_v58  ;;  %4644 = vmatprep.mubr.msk.f32.mxu0 %vm183_vm0, %v8055_v22  ;;  %v8057_v58 = vld [vmem:[#allocation140_spill] sm:$0xff]  ;;  %5045 = vrcp.f32 %v7030_v47  ;;  %v8184_v47 = vld [vmem:[#allocation17_spill] sm:$0xff] }
 0x3d4   :  { %v7043_v54 = vpop.f32.mrb[104].mxu1  ;;  %v1974_v61 = vpop.f32.mrb[128].mxu0  ;;  %v3155_v57 = vld [vmem:[#allocation8 + $0x90] sm:$0xff] }
 0x3d5   :  { %v7048_v59 = vadd.f32 58.5225, %v2734_v31  ;;  %v2639_v25 = vsub.f32 %v1974_v61, %v6196_v13  ;;  %v1570_v42 = vpop.f32.mrb[105].mxu1  ;;  %v1976_v33 = vpop.f32.mrb[129].mxu0  ;;  %v2879_v13 = vadd.f32 6.5025, %v6202_v17  ;;  %4645 = vmatmul.mubr.msk.f32.gmra.mrb[190].mxu0 %vm183_vm0, %v8057_v58  ;;  %5047 = vrcp.f32 %v7038_v1 }
 0x3d6   :  { %v8058_v31 = vld [vmem:[#allocation21_spill] sm:$0xff]  ;;  %v8060_v42 = vld [vmem:[#allocation22_spill] sm:$0xff]  ;;  %v3158_v1 = vld [vmem:[#allocation8 + $0xa8] sm:$0xff] }
 0x3d7   :  { %v7056_v48 = vmul.f32 %v2878_v43, %v7048_v59  ;;  %v2735_v45 = vadd.f32 %v2639_v25, %v8054_v20  ;;  %v8059_v43 = vld [vmem:[#allocation58_spill] sm:$0xff]  ;;  %5049 = vrcp.f32 %v7048_v59 }
 0x3d8   :  { %v7061_v9 = vpop.f32.mrb[106].mxu1  ;;  %v1979_v56 = vpop.f32.mrb[130].mxu0  ;;  %v8070_v25 = vld [vmem:[#allocation70_spill] sm:$0xff] }
 0x3d9   :  { %v7066_v55 = vadd.f32 58.5225, %v2735_v45  ;;  %v2640_v34 = vsub.f32 %v1979_v56, %v6208_v23  ;;  %v1575_v51 = vpop.f32.mrb[107].mxu1  ;;  %v1981_v16 = vpop.f32.mrb[131].mxu0  ;;  %v2880_v23 = vadd.f32 6.5025, %v8058_v31  ;;  %5051 = vrcp.f32 %v7056_v48 }
 0x3da   :  { %v8062_v51 = vld [vmem:[#allocation24_spill] sm:$0xff] }
 0x3db   :  { %v7074_v12 = vmul.f32 %v2879_v13, %v7066_v55  ;;  %v2736_v44 = vadd.f32 %v2640_v34, %v8056_v29  ;;  %v2881_v16 = vadd.f32 6.5025, %v8062_v51  ;;  %v8063_v29 = vld [vmem:[#allocation62_spill] sm:$0xff]  ;;  %5053 = vrcp.f32 %v7066_v55  ;;  %v7462_v55 = vld [vmem:[#allocation8 + $0xb0] sm:$0xff] }
 0x3dc   :  { %v7079_v17 = vpop.f32.mrb[108].mxu1  ;;  %v1984_v19 = vpop.f32.mrb[132].mxu0 }
 0x3dd   :  { %v7084_v61 = vadd.f32 58.5225, %v2736_v44  ;;  %v2641_v33 = vsub.f32 %v1984_v19, %v8060_v42  ;;  %v1580_v20 = vpop.f32.mrb[109].mxu1  ;;  %v1986_v45 = vpop.f32.mrb[133].mxu0  ;;  %v8064_v19 = vld [vmem:[#allocation25_spill] sm:$0xff]  ;;  %5055 = vrcp.f32 %v7074_v12 }
 0x3de   :  { %v8065_v20 = vld [vmem:[#allocation27_spill] sm:$0xff] }
 0x3df   :  { %v7090_v21 = vmul.f32 %v2880_v23, %v7084_v61  ;;  %v2737_v56 = vadd.f32 %v2641_v33, %v8061_v10  ;;  %v2882_v45 = vadd.f32 6.5025, %v8065_v20  ;;  %v8069_v20 = vld [vmem:[#allocation30_spill] sm:$0xff]  ;;  %5057 = vrcp.f32 %v7084_v61 }
 0x3e0   :  { %v7095_v13 = vpop.f32.mrb[110].mxu1  ;;  %v1989_v34 = vpop.f32.mrb[134].mxu0 }
 0x3e1   :  { %v7098_v22 = vadd.f32 58.5225, %v2737_v56  ;;  %v2642_v58 = vsub.f32 %v1989_v34, %v8064_v19  ;;  %v1585_v31 = vpop.f32.mrb[111].mxu1  ;;  %v1991_v42 = vpop.f32.mrb[135].mxu0  ;;  %v8066_v56 = vld [vmem:[#allocation66_spill] sm:$0xff]  ;;  %v8067_v34 = vld [vmem:[#allocation28_spill] sm:$0xff]  ;;  %5059 = vrcp.f32 %v7090_v21 }
 0x3e3   :  { %v7104_v23 = vmul.f32 %v2881_v16, %v7098_v22  ;;  %v2738_v41 = vadd.f32 %v2642_v58, %v2618_v37  ;;  %5061 = vrcp.f32 %v7098_v22 }
 0x3e4   :  { %v7109_v11 = vpop.f32.mrb[112].mxu1  ;;  %v1994_v33 = vpop.f32.mrb[136].mxu0 }
 0x3e5   :  { %v7112_v10 = vadd.f32 58.5225, %v2738_v41  ;;  %v2643_v19 = vsub.f32 %v1994_v33, %v8067_v34  ;;  %v1590_v31 = vpop.f32.mrb[113].mxu1  ;;  %v1996_v42 = vpop.f32.mrb[137].mxu0  ;;  %v2883_v41 = vadd.f32 6.5025, %v8069_v20  ;;  %5063 = vrcp.f32 %v7104_v23 }
 0x3e6   :  { %v8071_v33 = vld [vmem:[#allocation31_spill] sm:$0xff]  ;;  %v8074_v20 = vld [vmem:[#allocation33_spill] sm:$0xff] }
 0x3e7   :  { %v7118_v16 = vmul.f32 %v2882_v45, %v7112_v10  ;;  %v2739_v63 = vadd.f32 %v2643_v19, %v8068_v62  ;;  %5065 = vrcp.f32 %v7112_v10 }
 0x3e8   :  { %v7123_v37 = vpop.f32.mrb[114].mxu1  ;;  %v1999_v58 = vpop.f32.mrb[138].mxu0 }
 0x3e9   :  { %v7126_v44 = vadd.f32 58.5225, %v2739_v63  ;;  %v2644_v34 = vsub.f32 %v1999_v58, %v8071_v33  ;;  %v1595_v31 = vpop.f32.mrb[115].mxu1  ;;  %v2001_v42 = vpop.f32.mrb[139].mxu0  ;;  %v2884_v63 = vadd.f32 6.5025, %v8074_v20  ;;  %5067 = vrcp.f32 %v7118_v16 }
 0x3ea   :  { %v8077_v58 = vld [vmem:[#allocation34_spill] sm:$0xff]  ;;  %v8080_v20 = vld [vmem:[#allocation36_spill] sm:$0xff] }
 0x3eb   :  { %v7132_v45 = vmul.f32 %v2883_v41, %v7126_v44  ;;  %v2740_v28 = vadd.f32 %v2644_v34, %v8073_v15 }
 0x3ec   :  { %v7137_v19 = vpop.f32.mrb[116].mxu1  ;;  %v2004_v62 = vpop.f32.mrb[140].mxu0 }
 0x3ed   :  { %8072 = vst [vmem:[#allocation137_spill] sm:$0xff] %v7132_v45  ;;  %v7140_v7 = vadd.f32 58.5225, %v2740_v28  ;;  %v2645_v33 = vsub.f32 %v2004_v62, %v8077_v58  ;;  %v1600_v31 = vpop.f32.mrb[117].mxu1  ;;  %v2006_v42 = vpop.f32.mrb[141].mxu0  ;;  %v8082_v62 = vld [vmem:[#allocation37_spill] sm:$0xff] }
 0x3ee   :  { %v2885_v28 = vadd.f32 6.5025, %v8080_v20  ;;  %v2886_v20 = vadd.f32 6.5025, %v8084_v0 }
 0x3ef   :  { %8075 = vst [vmem:[#allocation140_spill] sm:$0xff] %v7140_v7  ;;  %v7146_v41 = vmul.f32 %v2884_v63, %v7140_v7  ;;  %v2741_v3 = vadd.f32 %v2645_v33, %v8079_v4 }
 0x3f0   :  { %v7151_v34 = vpop.f32.mrb[118].mxu1  ;;  %v2009_v15 = vpop.f32.mrb[142].mxu0 }
 0x3f1   :  { %8078 = vst [vmem:[#allocation21_spill] sm:$0xff] %v7146_v41  ;;  %v7154_v39 = vadd.f32 58.5225, %v2741_v3  ;;  %v2646_v58 = vsub.f32 %v2009_v15, %v8082_v62  ;;  %v1605_v31 = vpop.f32.mrb[119].mxu1  ;;  %v2011_v42 = vpop.f32.mrb[143].mxu0  ;;  %v8085_v41 = vld [vmem:[#allocation40_spill] sm:$0xff] }
 0x3f3   :  { %v7160_v63 = vmul.f32 %v2885_v28, %v7154_v39  ;;  %v2742_v49 = vadd.f32 %v2646_v58, %v8083_v53  ;;  %v8086_v28 = vsub.f32 %v6980_v6, %v6308_v24  ;;  %v8087_v58 = vld [vmem:[#allocation42_spill] sm:$0xff]  ;;  %v8088_v53 = vld [vmem:[#allocation43_spill] sm:$0xff]  ;;  %v8089_v24 = vsub.f32 %v6989_v5, %v6321_v27 }
 0x3f4   :  { %v2014_v33 = vpop.f32.mrb[144].mxu0  ;;  %v4569_v4 = vpop.f32.mrb[120].mxu1  ;;  %v2887_v42 = vadd.f32 6.5025, %v8087_v58  ;;  %v8092_v27 = vsub.f32 %v7007_v36, %v6335_v32  ;;  %v8095_v32 = vsub.f32 %v7025_v2, %v6349_v14  ;;  %v8098_v14 = vsub.f32 %v7043_v54, %v6363_v40 }
 0x3f5   :  { %v7166_v3 = vadd.f32 58.5225, %v2742_v49  ;;  %v2647_v7 = vsub.f32 %v2014_v33, %v8085_v41  ;;  %v2235_v51 = vpop.f32.mrb[121].mxu1  ;;  %v2016_v45 = vpop.f32.mrb[145].mxu0  ;;  %v8101_v40 = vsub.f32 %v7061_v9, %v6377_v46  ;;  %v8104_v46 = vsub.f32 %v7079_v17, %v8059_v43 }
 0x3f6   :  { %v4876_v15 = vpack.c.bf16 %v4569_v4, %v2235_v51  ;;  %v8107_v17 = vsub.f32 %v7095_v13, %v8063_v29  ;;  %v8110_v13 = vsub.f32 %v7109_v11, %v8066_v56  ;;  %v8113_v11 = vsub.f32 %v7123_v37, %v8070_v25 }
 0x3f7   :  { %v7170_v62 = vmul.f32 %v2886_v20, %v7166_v3  ;;  %v2743_v31 = vadd.f32 %v2647_v7, %v8086_v28  ;;  %v8090_v20 = vld [vmem:[#allocation45_spill] sm:$0xff]  ;;  %v8116_v25 = vsub.f32 %v7137_v19, %v8076_v18  ;;  %v8119_v18 = vsub.f32 %v7151_v34, %v8081_v38  ;;  %v5232_v34 = vld [vmem:[#allocation7 + $0x28] sm:$0xff] }
 0x3f8   :  { %v2019_v35 = vpop.f32.mrb[146].mxu0  ;;  %v4572_v52 = vpop.f32.mrb[122].mxu1  ;;  %4877 = vmatpush1.bf16.msra.mxu1 %v4876_v15  ;;  %v2888_v15 = vadd.f32 6.5025, %v8090_v20  ;;  %v5231_v38 = vld [vmem:[#allocation7 + $0x10] sm:$0xff] }
 0x3f9   :  { %v7176_v0 = vadd.f32 58.5225, %v2743_v31  ;;  %v2648_v49 = vsub.f32 %v2019_v35, %v8088_v53  ;;  %v2245_v41 = vpop.f32.mrb[123].mxu1  ;;  %v2021_v33 = vpop.f32.mrb[147].mxu0  ;;  %4878 = vmatprep.subr.bf16.mxu1 %v7950_v8  ;;  %v8091_v31 = vld [vmem:[#allocation46_spill] sm:$0xff] }
 0x3fa   :  { %v4879_v51 = vpack.c.bf16 %v4572_v52, %v2245_v41  ;;  %v8093_v33 = vld [vmem:[#allocation48_spill] sm:$0xff] }
 0x3fb   :  { %v7181_v45 = vmul.f32 %v2887_v42, %v7176_v0  ;;  %v2744_v6 = vadd.f32 %v2648_v49, %v8089_v24 }
 0x3fc   :  { %v2024_v7 = vpop.f32.mrb[148].mxu0  ;;  %v4575_v4 = vpop.f32.mrb[124].mxu1  ;;  %4880 = vmatpush1.bf16.msra.mxu1 %v4879_v51  ;;  %v2889_v51 = vadd.f32 6.5025, %v8093_v33 }
 0x3fd   :  { %v7187_v28 = vadd.f32 58.5225, %v2744_v6  ;;  %v2649_v35 = vsub.f32 %v2024_v7, %v8091_v31  ;;  %v2255_v58 = vpop.f32.mrb[125].mxu1  ;;  %v2026_v53 = vpop.f32.mrb[149].mxu0  ;;  %4881 = vmatprep.subr.bf16.mxu1 %v7950_v8  ;;  %v8094_v6 = vld [vmem:[#allocation49_spill] sm:$0xff] }
 0x3fe   :  { %v4882_v52 = vpack.c.bf16 %v4575_v4, %v2255_v58  ;;  %v8096_v53 = vld [vmem:[#allocation51_spill] sm:$0xff] }
 0x3ff   :  { %v7192_v42 = vmul.f32 %v2888_v15, %v7187_v28  ;;  %v2745_v5 = vadd.f32 %v2649_v35, %v8092_v27 }
 0x400   :  { %v2029_v49 = vpop.f32.mrb[150].mxu0  ;;  %v4578_v41 = vpop.f32.mrb[126].mxu1  ;;  %4883 = vmatpush1.bf16.msra.mxu1 %v4882_v52  ;;  %v2890_v52 = vadd.f32 6.5025, %v8096_v53 }
 0x401   :  { %v7198_v24 = vadd.f32 58.5225, %v2745_v5  ;;  %v2650_v7 = vsub.f32 %v2029_v49, %v8094_v6  ;;  %v2265_v20 = vpop.f32.mrb[127].mxu1  ;;  %v2031_v31 = vpop.f32.mrb[151].mxu0  ;;  %4884 = vmatprep.subr.bf16.mxu1 %v7950_v8  ;;  %v8097_v5 = vld [vmem:[#allocation52_spill] sm:$0xff] }
 0x402   :  { %v4885_v4 = vpack.c.bf16 %v4578_v41, %v2265_v20  ;;  %v8099_v31 = vld [vmem:[#allocation54_spill] sm:$0xff] }
 0x403   :  { %v7203_v15 = vmul.f32 %v2889_v51, %v7198_v24  ;;  %v2746_v36 = vadd.f32 %v2650_v7, %v8095_v32 }
 0x404   :  { %v2034_v35 = vpop.f32.mrb[152].mxu0  ;;  %v4581_v58 = vpop.f32.mrb[128].mxu1  ;;  %4886 = vmatpush1.bf16.msra.mxu1 %v4885_v4  ;;  %v2891_v4 = vadd.f32 6.5025, %v8099_v31 }
 0x405   :  { %v7209_v27 = vadd.f32 58.5225, %v2746_v36  ;;  %v2651_v49 = vsub.f32 %v2034_v35, %v8097_v5  ;;  %v2275_v33 = vpop.f32.mrb[129].mxu1  ;;  %v2036_v6 = vpop.f32.mrb[153].mxu0  ;;  %4887 = vmatprep.subr.bf16.mxu1 %v7950_v8  ;;  %v8100_v36 = vld [vmem:[#allocation55_spill] sm:$0xff] }
 0x406   :  { %v4888_v41 = vpack.c.bf16 %v4581_v58, %v2275_v33  ;;  %v8102_v6 = vld [vmem:[#allocation57_spill] sm:$0xff] }
 0x407   :  { %v7214_v51 = vmul.f32 %v2890_v52, %v7209_v27  ;;  %v2747_v2 = vadd.f32 %v2651_v49, %v8098_v14 }
 0x408   :  { %v2039_v7 = vpop.f32.mrb[154].mxu0  ;;  %v4584_v20 = vpop.f32.mrb[130].mxu1  ;;  %4889 = vmatpush1.bf16.msra.mxu1 %v4888_v41  ;;  %v2892_v41 = vadd.f32 6.5025, %v8102_v6 }
 0x409   :  { %v7220_v32 = vadd.f32 58.5225, %v2747_v2  ;;  %v2652_v35 = vsub.f32 %v2039_v7, %v8100_v36  ;;  %v2285_v53 = vpop.f32.mrb[131].mxu1  ;;  %v2041_v5 = vpop.f32.mrb[155].mxu0  ;;  %4890 = vmatprep.subr.bf16.mxu1 %v7950_v8  ;;  %v8103_v2 = vld [vmem:[#allocation59_spill] sm:$0xff] }
 0x40a   :  { %v4891_v58 = vpack.c.bf16 %v4584_v20, %v2285_v53  ;;  %v8105_v5 = vld [vmem:[#allocation61_spill] sm:$0xff] }
 0x40b   :  { %v7225_v52 = vmul.f32 %v2891_v4, %v7220_v32  ;;  %v2748_v54 = vadd.f32 %v2652_v35, %v8101_v40 }
 0x40c   :  { %v2044_v49 = vpop.f32.mrb[156].mxu0  ;;  %v4587_v33 = vpop.f32.mrb[132].mxu1  ;;  %4892 = vmatpush1.bf16.msra.mxu1 %v4891_v58  ;;  %v2893_v58 = vadd.f32 6.5025, %v8105_v5 }
 0x40d   :  { %v7231_v14 = vadd.f32 58.5225, %v2748_v54  ;;  %v2653_v7 = vsub.f32 %v2044_v49, %v8103_v2  ;;  %v2295_v31 = vpop.f32.mrb[133].mxu1  ;;  %v2046_v36 = vpop.f32.mrb[157].mxu0  ;;  %4893 = vmatprep.subr.bf16.mxu1 %v7950_v8  ;;  %v8106_v54 = vld [vmem:[#allocation63_spill] sm:$0xff] }
 0x40e   :  { %v4894_v20 = vpack.c.bf16 %v4587_v33, %v2295_v31  ;;  %v8108_v36 = vld [vmem:[#allocation65_spill] sm:$0xff] }
 0x40f   :  { %v7236_v4 = vmul.f32 %v2892_v41, %v7231_v14  ;;  %v2749_v9 = vadd.f32 %v2653_v7, %v8104_v46 }
 0x410   :  { %v2049_v35 = vpop.f32.mrb[158].mxu0  ;;  %v4590_v53 = vpop.f32.mrb[134].mxu1  ;;  %4895 = vmatpush1.bf16.msra.mxu1 %v4894_v20  ;;  %v2894_v20 = vadd.f32 6.5025, %v8108_v36 }
 0x411   :  { %v7242_v40 = vadd.f32 58.5225, %v2749_v9  ;;  %v2654_v49 = vsub.f32 %v2049_v35, %v8106_v54  ;;  %v2305_v6 = vpop.f32.mrb[135].mxu1  ;;  %v2051_v2 = vpop.f32.mrb[159].mxu0  ;;  %4896 = vmatprep.subr.bf16.mxu1 %v7950_v8  ;;  %v8109_v9 = vld [vmem:[#allocation67_spill] sm:$0xff] }
 0x412   :  { %v4897_v33 = vpack.c.bf16 %v4590_v53, %v2305_v6  ;;  %v8111_v2 = vld [vmem:[#allocation69_spill] sm:$0xff] }
 0x413   :  { %v7247_v41 = vmul.f32 %v2893_v58, %v7242_v40  ;;  %v2750_v43 = vadd.f32 %v2654_v49, %v8107_v17 }
 0x414   :  { %v2054_v7 = vpop.f32.mrb[160].mxu0  ;;  %v4593_v31 = vpop.f32.mrb[136].mxu1  ;;  %4898 = vmatpush1.bf16.msra.mxu1 %v4897_v33  ;;  %v2895_v33 = vadd.f32 6.5025, %v8111_v2 }
 0x415   :  { %v7253_v46 = vadd.f32 58.5225, %v2750_v43  ;;  %v2655_v35 = vsub.f32 %v2054_v7, %v8109_v9  ;;  %v2315_v5 = vpop.f32.mrb[137].mxu1  ;;  %v2056_v54 = vpop.f32.mrb[161].mxu0  ;;  %4899 = vmatprep.subr.bf16.mxu1 %v7950_v8  ;;  %v8112_v43 = vld [vmem:[#allocation71_spill] sm:$0xff] }
 0x416   :  { %v4900_v53 = vpack.c.bf16 %v4593_v31, %v2315_v5  ;;  %v8114_v54 = vld [vmem:[#allocation73_spill] sm:$0xff] }
 0x417   :  { %v7258_v58 = vmul.f32 %v2894_v20, %v7253_v46  ;;  %v2751_v29 = vadd.f32 %v2655_v35, %v8110_v13 }
 0x418   :  { %v2059_v49 = vpop.f32.mrb[162].mxu0  ;;  %v4596_v6 = vpop.f32.mrb[138].mxu1  ;;  %4901 = vmatpush1.bf16.msra.mxu1 %v4900_v53  ;;  %v2896_v53 = vadd.f32 6.5025, %v8114_v54 }
 0x419   :  { %v7264_v17 = vadd.f32 58.5225, %v2751_v29  ;;  %v2656_v7 = vsub.f32 %v2059_v49, %v8112_v43  ;;  %v2325_v36 = vpop.f32.mrb[139].mxu1  ;;  %v2061_v9 = vpop.f32.mrb[163].mxu0  ;;  %4902 = vmatprep.subr.bf16.mxu1 %v7950_v8  ;;  %v8115_v29 = vld [vmem:[#allocation75_spill] sm:$0xff] }
 0x41a   :  { %v4903_v31 = vpack.c.bf16 %v4596_v6, %v2325_v36  ;;  %v8117_v9 = vld [vmem:[#allocation77_spill] sm:$0xff] }
 0x41b   :  { %v7269_v20 = vmul.f32 %v2895_v33, %v7264_v17  ;;  %v2752_v56 = vadd.f32 %v2656_v7, %v8113_v11 }
 0x41c   :  { %v2064_v35 = vpop.f32.mrb[164].mxu0  ;;  %v4599_v5 = vpop.f32.mrb[140].mxu1  ;;  %4904 = vmatpush1.bf16.msra.mxu1 %v4903_v31  ;;  %v2897_v31 = vadd.f32 6.5025, %v8117_v9  ;;  %v5234_v9 = vld [vmem:[#allocation7 + $0x38] sm:$0xff] }
 0x41d   :  { %v7275_v13 = vadd.f32 58.5225, %v2752_v56  ;;  %v2657_v49 = vsub.f32 %v2064_v35, %v8115_v29  ;;  %v2335_v2 = vpop.f32.mrb[141].mxu1  ;;  %v2066_v43 = vpop.f32.mrb[165].mxu0  ;;  %4905 = vmatprep.subr.bf16.mxu1 %v7950_v8  ;;  %v8118_v56 = vld [vmem:[#allocation79_spill] sm:$0xff] }
 0x41e   :  { %v4906_v6 = vpack.c.bf16 %v4599_v5, %v2335_v2 }
 0x41f   :  { %v7280_v33 = vmul.f32 %v2896_v53, %v7275_v13  ;;  %v2753_v37 = vadd.f32 %v2657_v49, %v8116_v25  ;;  %v8120_v49 = vld [vmem:[#allocation81_spill] sm:$0xff] }
 0x420   :  { %v2069_v7 = vpop.f32.mrb[166].mxu0  ;;  %v4602_v36 = vpop.f32.mrb[142].mxu1  ;;  %4907 = vmatpush1.bf16.msra.mxu1 %v4906_v6  ;;  %v2898_v2 = vadd.f32 6.5025, %v8120_v49  ;;  %v8121_v6 = vld [vmem:[#allocation144_spill] sm:$0xff]  ;;  %v8126_v49 = vld [vmem:[#allocation86_spill] sm:$0xff] }
 0x421   :  { %v7286_v11 = vadd.f32 58.5225, %v2753_v37  ;;  %v2658_v35 = vsub.f32 %v2069_v7, %v8118_v56  ;;  %v2345_v54 = vpop.f32.mrb[143].mxu1  ;;  %4908 = vmatprep.subr.bf16.mxu1 %v7950_v8  ;;  %v2071_v5 = vpop.f32.mrb[167].mxu0  ;;  %v5229_v37 = vld [vmem:[#allocation7] sm:$0xff]  ;;  %v5230_v7 = vld [vmem:[#allocation7 + $0x18] sm:$0xff] }
 0x422   :  { %v4909_v29 = vpack.c.bf16 %v4602_v36, %v2345_v54  ;;  %v5233_v36 = vld [vmem:[#allocation7 + $0x20] sm:$0xff]  ;;  %v5236_v56 = vld [vmem:[#allocation7 + $0x48] sm:$0xff]  ;;  %v5238_v54 = vld [vmem:[#allocation7 + $0x58] sm:$0xff] }
 0x423   :  { %v7291_v53 = vmul.f32 %v2897_v31, %v7286_v11  ;;  %v2754_v19 = vadd.f32 %v2658_v35, %v8119_v18  ;;  %v5235_v31 = vld [vmem:[#allocation7 + $0x30] sm:$0xff]  ;;  %v5237_v35 = vld [vmem:[#allocation7 + $0x40] sm:$0xff] }
 0x424   :  { %4910 = vmatpush1.bf16.msra.mxu1 %v4909_v29  ;;  %v5239_v5 = vld [vmem:[#allocation7 + $0x50] sm:$0xff]  ;;  %v8123_v29 = vld [vmem:[#allocation83_spill] sm:$0xff] }
 0x425   :  { %v7297_v43 = vadd.f32 58.5225, %v2754_v19  ;;  %4956 = vmatprep.subr.bf16.mxu1 %v8121_v6  ;;  %v8124_v18 = vld [vmem:[#allocation84_spill] sm:$0xff]  ;;  %v8125_v19 = vld [vmem:[#allocation85_spill] sm:$0xff] }
 0x427   :  { %v7301_v25 = vmul.f32 %v2898_v2, %v7297_v43  ;;  %2419 = vmatmul.mubr.f32.vlgmr.msra.gmra.mrb[144].mxu1 %v5229_v37  ;;  %v8127_v2 = vld [vmem:[#allocation87_spill] sm:$0xff]  ;;  %v8129_v37 = vld [vmem:[#allocation89_spill] sm:$0xff] }
 0x428   :  { %4958 = vmatpush3.bf16.msra.mxu1 %v8121_v6  ;;  %4092 = vmatprep.mubr.msk.f32.mxu1 %vm441_vm1, %v5230_v7  ;;  %v8128_v6 = vld [vmem:[#allocation88_spill] sm:$0xff]  ;;  %v8130_v7 = vld [vmem:[#allocation90_spill] sm:$0xff] }
 0x429   :  { %4960 = vmatprep.subr.bf16.mxu1 %v6931_v30 }
 0x42b   :  { %2424 = vmatmul.mubr.f32.gmra.mrb[146].mxu1 %v5231_v38  ;;  %v8131_v38 = vld [vmem:[#allocation91_spill] sm:$0xff] }
 0x42c   :  { %4093 = vmatprep.mubr.msk.f32.mxu1 %vm441_vm1, %v5232_v34  ;;  %4962 = vmatpush3.bf16.msra.mxu1 %v6931_v30  ;;  %v8122_v30 = vld [vmem:[#allocation82_spill] sm:$0xff]  ;;  %v8132_v34 = vld [vmem:[#allocation92_spill] sm:$0xff] }
 0x42d   :  { %4999 = vmatprep.subr.bf16.mxu1 %v7950_v8 }
 0x42f   :  { %2429 = vmatmul.mubr.f32.gmra.mrb[148].mxu1 %v5233_v36  ;;  %v8133_v36 = vld [vmem:[#allocation93_spill] sm:$0xff] }
 0x430   :  { %4094 = vmatprep.mubr.msk.f32.mxu1 %vm441_vm1, %v5234_v9  ;;  %v8134_v9 = vld [vmem:[#allocation94_spill] sm:$0xff] }
 0x433   :  { %2434 = vmatmul.mubr.f32.gmra.mrb[150].mxu1 %v5235_v31  ;;  %v8135_v31 = vld [vmem:[#allocation95_spill] sm:$0xff] }
 0x434   :  { %4095 = vmatprep.mubr.msk.f32.mxu1 %vm441_vm1, %v5236_v56  ;;  %v8136_v56 = vld [vmem:[#allocation96_spill] sm:$0xff] }
 0x437   :  { %2439 = vmatmul.mubr.f32.gmra.mrb[152].mxu1 %v5237_v35  ;;  %v8137_v35 = vld [vmem:[#allocation97_spill] sm:$0xff] }
 0x438   :  { %4096 = vmatprep.mubr.msk.f32.mxu1 %vm441_vm1, %v5238_v54  ;;  %v8138_v54 = vld [vmem:[#allocation98_spill] sm:$0xff] }
 0x43b   :  { %2444 = vmatmul.mubr.f32.gmra.mrb[154].mxu1 %v5239_v5  ;;  %v8139_v5 = vld [vmem:[#allocation99_spill] sm:$0xff] }
 0x43c   :  { %4097 = vmatprep.mubr.msk.f32.mxu1 %vm441_vm1, %v8122_v30  ;;  %v8140_v30 = vld [vmem:[#allocation100_spill] sm:$0xff] }
 0x43f   :  { %2449 = vmatmul.mubr.f32.gmra.mrb[156].mxu1 %v8123_v29  ;;  %v8141_v29 = vld [vmem:[#allocation101_spill] sm:$0xff] }
 0x440   :  { %4098 = vmatprep.mubr.msk.f32.mxu1 %vm441_vm1, %v8124_v18  ;;  %v8142_v18 = vld [vmem:[#allocation102_spill] sm:$0xff] }
 0x443   :  { %2454 = vmatmul.mubr.f32.gmra.mrb[158].mxu1 %v8125_v19  ;;  %v8143_v19 = vld [vmem:[#allocation103_spill] sm:$0xff] }
 0x444   :  { %4099 = vmatprep.mubr.msk.f32.mxu1 %vm441_vm1, %v8126_v49  ;;  %v8144_v49 = vld [vmem:[#allocation104_spill] sm:$0xff] }
 0x447   :  { %2459 = vmatmul.mubr.f32.gmra.mrb[160].mxu1 %v8127_v2  ;;  %v8145_v2 = vld [vmem:[#allocation105_spill] sm:$0xff] }
 0x448   :  { %4100 = vmatprep.mubr.msk.f32.mxu1 %vm441_vm1, %v8128_v6  ;;  %v8146_v6 = vld [vmem:[#allocation106_spill] sm:$0xff] }
 0x44b   :  { %2464 = vmatmul.mubr.f32.gmra.mrb[162].mxu1 %v8129_v37  ;;  %v8147_v37 = vld [vmem:[#allocation107_spill] sm:$0xff] }
 0x44c   :  { %4101 = vmatprep.mubr.msk.f32.mxu1 %vm441_vm1, %v8130_v7  ;;  %v8148_v7 = vld [vmem:[#allocation108_spill] sm:$0xff] }
 0x44f   :  { %2469 = vmatmul.mubr.f32.gmra.mrb[164].mxu1 %v8131_v38  ;;  %v8149_v38 = vld [vmem:[#allocation109_spill] sm:$0xff] }
 0x450   :  { %4102 = vmatprep.mubr.msk.f32.mxu1 %vm441_vm1, %v8132_v34  ;;  %v8150_v34 = vld [vmem:[#allocation110_spill] sm:$0xff] }
 0x453   :  { %2474 = vmatmul.mubr.f32.gmra.mrb[166].mxu1 %v8133_v36  ;;  %v8151_v36 = vld [vmem:[#allocation111_spill] sm:$0xff] }
 0x454   :  { %4103 = vmatprep.mubr.msk.f32.mxu1 %vm441_vm1, %v8134_v9  ;;  %v8152_v9 = vld [vmem:[#allocation112_spill] sm:$0xff] }
 0x457   :  { %2479 = vmatmul.mubr.f32.gmra.mrb[168].mxu1 %v8135_v31  ;;  %v8153_v31 = vld [vmem:[#allocation113_spill] sm:$0xff] }
 0x458   :  { %4104 = vmatprep.mubr.msk.f32.mxu1 %vm441_vm1, %v8136_v56  ;;  %v8154_v56 = vld [vmem:[#allocation114_spill] sm:$0xff] }
 0x45b   :  { %2484 = vmatmul.mubr.f32.gmra.mrb[170].mxu1 %v8137_v35  ;;  %v8155_v35 = vld [vmem:[#allocation139_spill] sm:$0xff] }
 0x45c   :  { %4105 = vmatprep.mubr.msk.f32.mxu1 %vm441_vm1, %v8138_v54  ;;  %v8156_v54 = vld [vmem:[#allocation142_spill] sm:$0xff] }
 0x45f   :  { %2489 = vmatmul.mubr.f32.gmra.mrb[172].mxu1 %v8139_v5  ;;  %v8157_v5 = vld [vmem:[#allocation143_spill] sm:$0xff] }
 0x460   :  { %4106 = vmatprep.mubr.msk.f32.mxu1 %vm441_vm1, %v8140_v30  ;;  %v8158_v30 = vld [vmem:[#allocation115_spill] sm:$0xff] }
 0x463   :  { %2494 = vmatmul.mubr.f32.gmra.mrb[174].mxu1 %v8141_v29  ;;  %v8159_v29 = vld [vmem:[#allocation116_spill] sm:$0xff] }
 0x464   :  { %4107 = vmatprep.mubr.msk.f32.mxu1 %vm441_vm1, %v8142_v18  ;;  %v8160_v18 = vld [vmem:[#allocation117_spill] sm:$0xff] }
 0x467   :  { %2499 = vmatmul.mubr.f32.gmra.mrb[176].mxu1 %v8143_v19  ;;  %v8161_v19 = vld [vmem:[#allocation118_spill] sm:$0xff] }
 0x468   :  { %4108 = vmatprep.mubr.msk.f32.mxu1 %vm441_vm1, %v8144_v49  ;;  %v8162_v49 = vld [vmem:[#allocation119_spill] sm:$0xff] }
 0x46b   :  { %2504 = vmatmul.mubr.f32.gmra.mrb[178].mxu1 %v8145_v2  ;;  %v8163_v2 = vld [vmem:[#allocation120_spill] sm:$0xff] }
 0x46c   :  { %4109 = vmatprep.mubr.msk.f32.mxu1 %vm441_vm1, %v8146_v6  ;;  %v8164_v6 = vld [vmem:[#allocation121_spill] sm:$0xff] }
 0x46f   :  { %2509 = vmatmul.mubr.f32.gmra.mrb[180].mxu1 %v8147_v37  ;;  %v8165_v37 = vld [vmem:[#allocation122_spill] sm:$0xff] }
 0x470   :  { %4110 = vmatprep.mubr.msk.f32.mxu1 %vm441_vm1, %v8148_v7  ;;  %v8166_v7 = vld [vmem:[#allocation123_spill] sm:$0xff] }
 0x473   :  { %2514 = vmatmul.mubr.f32.gmra.mrb[182].mxu1 %v8149_v38  ;;  %v8167_v38 = vld [vmem:[#allocation124_spill] sm:$0xff] }
 0x474   :  { %4111 = vmatprep.mubr.msk.f32.mxu1 %vm441_vm1, %v8150_v34  ;;  %v8168_v34 = vld [vmem:[#allocation125_spill] sm:$0xff] }
 0x477   :  { %2519 = vmatmul.mubr.f32.gmra.mrb[184].mxu1 %v8151_v36  ;;  %v8169_v36 = vld [vmem:[#allocation126_spill] sm:$0xff] }
 0x478   :  { %4112 = vmatprep.mubr.msk.f32.mxu1 %vm441_vm1, %v8152_v9  ;;  %v8170_v9 = vld [vmem:[#allocation127_spill] sm:$0xff] }
 0x47b   :  { %2524 = vmatmul.mubr.f32.gmra.mrb[186].mxu1 %v8153_v31  ;;  %v8171_v31 = vld [vmem:[#allocation128_spill] sm:$0xff] }
 0x47c   :  { %4113 = vmatprep.mubr.msk.f32.mxu1 %vm441_vm1, %v8154_v56  ;;  %v8172_v56 = vld [vmem:[#allocation129_spill] sm:$0xff] }
 0x47f   :  { %2529 = vmatmul.mubr.f32.gmra.mrb[188].mxu1 %v8155_v35  ;;  %v8173_v35 = vld [vmem:[#allocation130_spill] sm:$0xff] }
 0x480   :  { %4114 = vmatprep.mubr.msk.f32.mxu1 %vm441_vm1, %v8156_v54  ;;  %v8174_v54 = vld [vmem:[#allocation131_spill] sm:$0xff] }
 0x483   :  { %2534 = vmatmul.mubr.f32.gmra.mrb[190].mxu1 %v8157_v5  ;;  %v8175_v5 = vld [vmem:[#allocation132_spill] sm:$0xff] }
 0x484   :  { %4655 = vmatprep.mubr.msk.f32.mxu1 %vm183_vm0, %v8158_v30  ;;  %v8176_v30 = vld [vmem:[#allocation133_spill] sm:$0xff] }
 0x487   :  { %4656 = vmatmul.mubr.msk.f32.vlgmr.msra.gmra.mrb[192].mxu1 %vm183_vm0, %v8159_v29  ;;  %v4613_v29 = vpop.f32.mrb[168].mxu0 }
 0x488   :  { %4658 = vmatprep.mubr.msk.f32.mxu1 %vm183_vm0, %v8160_v18  ;;  %v8177_v18 = vld [vmem:[#allocation134_spill] sm:$0xff] }
 0x48b   :  { %4659 = vmatmul.mubr.msk.f32.gmra.mrb[194].mxu1 %vm183_vm0, %v8161_v19  ;;  %v3231_v19 = vpop.f32.mrb[169].mxu0 }
 0x48c   :  { %4661 = vmatprep.mubr.msk.f32.mxu1 %vm183_vm0, %v8162_v49  ;;  %v8178_v49 = vld [vmem:[#allocation135_spill] sm:$0xff] }
 0x48f   :  { %4662 = vmatmul.mubr.msk.f32.gmra.mrb[196].mxu1 %vm183_vm0, %v8163_v2  ;;  %v4920_v2 = vpack.c.bf16 %v4613_v29, %v3231_v19 }
 0x490   :  { %4664 = vmatprep.mubr.msk.f32.mxu1 %vm183_vm0, %v8164_v6  ;;  %v4616_v6 = vpop.f32.mrb[170].mxu0 }
 0x491   :  { %4921 = vmatpush1.bf16.msra.mxu0 %v4920_v2 }
 0x492   :  { %4922 = vmatprep.subr.bf16.mxu0 %v7950_v8 }
 0x493   :  { %4665 = vmatmul.mubr.msk.f32.gmra.mrb[198].mxu1 %vm183_vm0, %v8165_v37  ;;  %v8179_v37 = vld [vmem:[#allocation136_spill] sm:$0xff] }
 0x494   :  { %4667 = vmatprep.mubr.msk.f32.mxu1 %vm183_vm0, %v8166_v7  ;;  %v3241_v7 = vpop.f32.mrb[171].mxu0 }
 0x497   :  { %4668 = vmatmul.mubr.msk.f32.gmra.mrb[200].mxu1 %vm183_vm0, %v8167_v38  ;;  %v8180_v38 = vld [vmem:[#allocation138_spill] sm:$0xff] }
 0x498   :  { %4670 = vmatprep.mubr.msk.f32.mxu1 %vm183_vm0, %v8168_v34  ;;  %v4923_v34 = vpack.c.bf16 %v4616_v6, %v3241_v7 }
 0x49a   :  { %4924 = vmatpush1.bf16.msra.mxu0 %v4923_v34 }
 0x49b   :  { %4671 = vmatmul.mubr.msk.f32.gmra.mrb[202].mxu1 %vm183_vm0, %v8169_v36  ;;  %v4619_v36 = vpop.f32.mrb[172].mxu0  ;;  %4925 = vmatprep.subr.bf16.mxu0 %v7950_v8 }
 0x49c   :  { %4673 = vmatprep.mubr.msk.f32.mxu1 %vm183_vm0, %v8170_v9  ;;  %v8181_v9 = vld [vmem:[#allocation141_spill] sm:$0xff] }
 0x49f   :  { %4674 = vmatmul.mubr.msk.f32.gmra.mrb[204].mxu1 %vm183_vm0, %v8171_v31  ;;  %v3251_v31 = vpop.f32.mrb[173].mxu0 }
 0x4a0   :  { %4676 = vmatprep.mubr.msk.f32.mxu1 %vm183_vm0, %v8172_v56  ;;  %v4926_v56 = vpack.c.bf16 %v4619_v36, %v3251_v31 }
 0x4a2   :  { %4927 = vmatpush1.bf16.msra.mxu0 %v4926_v56 }
 0x4a3   :  { %4677 = vmatmul.mubr.msk.f32.gmra.mrb[206].mxu1 %vm183_vm0, %v8173_v35  ;;  %v4622_v35 = vpop.f32.mrb[174].mxu0  ;;  %4928 = vmatprep.subr.bf16.mxu0 %v7950_v8 }
 0x4a4   :  { %4679 = vmatprep.mubr.msk.f32.mxu1 %vm183_vm0, %v8174_v54  ;;  %v3261_v54 = vpop.f32.mrb[175].mxu0 }
 0x4a7   :  { %4680 = vmatmul.mubr.msk.f32.gmra.mrb[208].mxu1 %vm183_vm0, %v8175_v5  ;;  %v4929_v5 = vpack.c.bf16 %v4622_v35, %v3261_v54 }
 0x4a8   :  { %4682 = vmatprep.mubr.msk.f32.mxu1 %vm183_vm0, %v8176_v30  ;;  %v4625_v30 = vpop.f32.mrb[176].mxu0 }
 0x4a9   :  { %4930 = vmatpush1.bf16.msra.mxu0 %v4929_v5  ;;  %v3271_v29 = vpop.f32.mrb[177].mxu0 }
 0x4aa   :  { %4931 = vmatprep.subr.bf16.mxu0 %v7950_v8  ;;  %v4628_v19 = vpop.f32.mrb[178].mxu0 }
 0x4ab   :  { %4683 = vmatmul.mubr.msk.f32.gmra.mrb[210].mxu1 %vm183_vm0, %v8177_v18  ;;  %v4932_v18 = vpack.c.bf16 %v4625_v30, %v3271_v29 }
 0x4ac   :  { %4685 = vmatprep.mubr.msk.f32.mxu1 %vm183_vm0, %v8178_v49  ;;  %v3281_v49 = vpop.f32.mrb[179].mxu0 }
 0x4ad   :  { %4933 = vmatpush1.bf16.msra.mxu0 %v4932_v18  ;;  %v4935_v2 = vpack.c.bf16 %v4628_v19, %v3281_v49  ;;  %v4631_v6 = vpop.f32.mrb[180].mxu0 }
 0x4ae   :  { %4934 = vmatprep.subr.bf16.mxu0 %v7950_v8 }
 0x4af   :  { %4686 = vmatmul.mubr.msk.f32.gmra.mrb[212].mxu1 %vm183_vm0, %v8179_v37  ;;  %v3291_v37 = vpop.f32.mrb[181].mxu0 }
 0x4b0   :  { %4688 = vmatprep.mubr.msk.f32.mxu1 %vm183_vm0, %v8180_v38  ;;  %v4938_v7 = vpack.c.bf16 %v4631_v6, %v3291_v37  ;;  %v4634_v38 = vpop.f32.mrb[182].mxu0  ;;  %v7425_v6 = vld [vmem:[#allocation8 + $0x8] sm:$0xff]  ;;  %v3137_v37 = vld [vmem:[#allocation8] sm:$0xff] }
 0x4b1   :  { %4936 = vmatpush1.bf16.msra.mxu0 %v4935_v2  ;;  %v3301_v34 = vpop.f32.mrb[183].mxu0  ;;  %4139 = vmatprep.mubr.msk.f32.mxu0 %vm441_vm1, %v7425_v6 }
 0x4b2   :  { %4937 = vmatprep.subr.bf16.mxu0 %v7950_v8  ;;  %v4941_v36 = vpack.c.bf16 %v4634_v38, %v3301_v34  ;;  %v3139_v38 = vld [vmem:[#allocation8 + $0x10] sm:$0xff]  ;;  %v3142_v34 = vld [vmem:[#allocation8 + $0x28] sm:$0xff] }
 0x4b3   :  { %4689 = vmatmul.mubr.msk.f32.gmra.mrb[214].mxu1 %vm183_vm0, %v8181_v9  ;;  %v4637_v9 = vpop.f32.mrb[184].mxu0 }
 0x4b4   :  { %v3311_v31 = vpop.f32.mrb[185].mxu0 }
 0x4b5   :  { %4939 = vmatpush1.bf16.msra.mxu0 %v4938_v7  ;;  %v4944_v56 = vpack.c.bf16 %v4637_v9, %v3311_v31  ;;  %v4640_v35 = vpop.f32.mrb[186].mxu0  ;;  %v3140_v7 = vld [vmem:[#allocation8 + $0x18] sm:$0xff]  ;;  %v3143_v31 = vld [vmem:[#allocation8 + $0x30] sm:$0xff] }
 0x4b6   :  { %4940 = vmatprep.subr.bf16.mxu0 %v7950_v8  ;;  %v3321_v54 = vpop.f32.mrb[187].mxu0  ;;  %v3144_v9 = vld [vmem:[#allocation8 + $0x38] sm:$0xff] }
 0x4b7   :  { %v4947_v5 = vpack.c.bf16 %v4640_v35, %v3321_v54  ;;  %v4643_v30 = vpop.f32.mrb[188].mxu0  ;;  %v3145_v35 = vld [vmem:[#allocation8 + $0x40] sm:$0xff]  ;;  %v3148_v54 = vld [vmem:[#allocation8 + $0x58] sm:$0xff] }
 0x4b8   :  { %v3331_v29 = vpop.f32.mrb[189].mxu0 }
 0x4b9   :  { %4942 = vmatpush1.bf16.msra.mxu0 %v4941_v36  ;;  %v4950_v18 = vpack.c.bf16 %v4643_v30, %v3331_v29  ;;  %v4646_v19 = vpop.f32.mrb[190].mxu0  ;;  %v3141_v36 = vld [vmem:[#allocation8 + $0x20] sm:$0xff]  ;;  %v3150_v30 = vld [vmem:[#allocation8 + $0x68] sm:$0xff] }
 0x4ba   :  { %4943 = vmatprep.subr.bf16.mxu0 %v7950_v8  ;;  %v3341_v49 = vpop.f32.mrb[191].mxu0  ;;  %v3149_v29 = vld [vmem:[#allocation8 + $0x60] sm:$0xff] }
 0x4bb   :  { %v4953_v2 = vpack.c.bf16 %v4646_v19, %v3341_v49  ;;  %v3151_v19 = vld [vmem:[#allocation8 + $0x70] sm:$0xff]  ;;  %v8182_v49 = vld [vmem:[#allocation15_spill] sm:$0xff] }
 0x4bd   :  { %4945 = vmatpush1.bf16.msra.mxu0 %v4944_v56  ;;  %v3146_v56 = vld [vmem:[#allocation8 + $0x48] sm:$0xff] }
 0x4be   :  { %4946 = vmatprep.subr.bf16.mxu0 %v7950_v8 }
 0x4c1   :  { %4948 = vmatpush1.bf16.msra.mxu0 %v4947_v5  ;;  %v3147_v5 = vld [vmem:[#allocation8 + $0x50] sm:$0xff] }
 0x4c2   :  { %4949 = vmatprep.subr.bf16.mxu0 %v7950_v8 }
 0x4c5   :  { %4951 = vmatpush1.bf16.msra.mxu0 %v4950_v18  ;;  %v3152_v18 = vld [vmem:[#allocation8 + $0x78] sm:$0xff] }
 0x4c6   :  { %4952 = vmatprep.subr.bf16.mxu0 %v7950_v8 }
 0x4c9   :  { %4954 = vmatpush1.bf16.msra.mxu0 %v4953_v2  ;;  %v2779_v2 = vmul.f32 2.0, %v8182_v49 }
 0x4ca   :  { %4963 = vmatprep.subr.bf16.mxu0 %v7950_v8 }
 0x4cb   :  { %v2803_v26 = vadd.f32 6.5025, %v2779_v2  ;;  %v2781_v2 = vmul.f32 2.0, %v8184_v47 }
 0x4cc   :  { %3451 = vmatmul.mubr.f32.vlgmr.msra.gmra.mrb[192].mxu0 %v3137_v37 }
 0x4cd   :  { %4140 = vmatprep.mubr.msk.f32.mxu0 %vm441_vm1, %v3140_v7  ;;  %v2805_v59 = vadd.f32 6.5025, %v2781_v2 }
 0x4d0   :  { %3456 = vmatmul.mubr.f32.gmra.mrb[194].mxu0 %v3139_v38 }
 0x4d1   :  { %4141 = vmatprep.mubr.msk.f32.mxu0 %vm441_vm1, %v3142_v34  ;;  %v3154_v34 = vld [vmem:[#allocation8 + $0x88] sm:$0xff] }
 0x4d4   :  { %3461 = vmatmul.mubr.f32.gmra.mrb[196].mxu0 %v3141_v36 }
 0x4d5   :  { %4142 = vmatprep.mubr.msk.f32.mxu0 %vm441_vm1, %v3144_v9 }
 0x4d8   :  { %3466 = vmatmul.mubr.f32.gmra.mrb[198].mxu0 %v3143_v31  ;;  %v8183_v31 = vld [vmem:[#allocation16_spill] sm:$0xff] }
 0x4d9   :  { %4143 = vmatprep.mubr.msk.f32.mxu0 %vm441_vm1, %v3146_v56  ;;  %v2780_v56 = vmul.f32 2.0, %v8183_v31 }
 0x4dc   :  { %3471 = vmatmul.mubr.f32.gmra.mrb[200].mxu0 %v3145_v35 }
 0x4dd   :  { %4144 = vmatprep.mubr.msk.f32.mxu0 %vm441_vm1, %v3148_v54 }
 0x4e0   :  { %3476 = vmatmul.mubr.f32.gmra.mrb[202].mxu0 %v3147_v5  ;;  %v3156_v5 = vld [vmem:[#allocation8 + $0x98] sm:$0xff] }
 0x4e1   :  { %4145 = vmatprep.mubr.msk.f32.mxu0 %vm441_vm1, %v3150_v30  ;;  %v5038_v30 = vpop.eup %5037  ;;  %5069 = vrcp.f32 %v7126_v44 }
 0x4e4   :  { %3481 = vmatmul.mubr.f32.gmra.mrb[204].mxu0 %v3149_v29 }
 0x4e5   :  { %4146 = vmatprep.mubr.msk.f32.mxu0 %vm441_vm1, %v3152_v18 }
 0x4e8   :  { %3486 = vmatmul.mubr.f32.gmra.mrb[206].mxu0 %v3151_v19 }
 0x4e9   :  { %4147 = vmatprep.mubr.msk.f32.mxu0 %vm441_vm1, %v3154_v34 }
 0x4ec   :  { %3491 = vmatmul.mubr.f32.gmra.mrb[208].mxu0 %v3153_v60 }
 0x4ed   :  { %4148 = vmatprep.mubr.msk.f32.mxu0 %vm441_vm1, %v3156_v5  ;;  %v8185_v5 = vld [vmem:[#allocation18_spill] sm:$0xff] }
 0x4f0   :  { %3496 = vmatmul.mubr.f32.gmra.mrb[210].mxu0 %v3155_v57 }
 0x4f1   :  { %4149 = vmatprep.mubr.msk.f32.mxu0 %vm441_vm1, %v3158_v1 }
 0x4fa   :  { %v2420_v37 = vpop.f32.mrb[144].mxu1 }
 0x4fb   :  { %v2659_v7 = vsub.f32 %v2420_v37, %v8182_v49  ;;  %v2422_v38 = vpop.f32.mrb[145].mxu1  ;;  %v5040_v49 = vpop.eup %5039 }
 0x4fd   :  { %v2683_v36 = vmul.f32 2.0, %v2659_v7  ;;  %v2804_v7 = vadd.f32 6.5025, %v2780_v56  ;;  %v2782_v56 = vmul.f32 2.0, %v8185_v5 }
 0x4fe   :  { %v2425_v9 = vpop.f32.mrb[146].mxu1 }
 0x4ff   :  { %v2707_v35 = vadd.f32 58.5225, %v2683_v36  ;;  %v2660_v50 = vsub.f32 %v2425_v9, %v8183_v31  ;;  %v2427_v54 = vpop.f32.mrb[147].mxu1  ;;  %v5042_v9 = vpop.eup %5041 }
 0x500   :  { %v5044_v54 = vpop.eup %5043 }
 0x501   :  { %v2827_v29 = vmul.f32 %v2803_v26, %v2707_v35  ;;  %v2972_v18 = vmul.f32 %v5038_v30, %v2707_v35  ;;  %v2684_v19 = vmul.f32 2.0, %v2660_v50  ;;  %v3157_v26 = vld [vmem:[#allocation8 + $0xa0] sm:$0xff] }
 0x502   :  { %v2430_v37 = vpop.f32.mrb[148].mxu1  ;;  %3501 = vmatmul.mubr.f32.gmra.mrb[212].mxu0 %v3157_v26  ;;  %v2806_v26 = vadd.f32 6.5025, %v2782_v56 }
 0x503   :  { %v2924_v38 = vmul.f32 %v5040_v49, %v2827_v29  ;;  %v2708_v34 = vadd.f32 58.5225, %v2684_v19  ;;  %v2661_v60 = vsub.f32 %v2430_v37, %v8184_v47  ;;  %v2432_v36 = vpop.f32.mrb[149].mxu1  ;;  %v3078_v30 = vsel %vm183_vm0, %v2972_v18, 0.0  ;;  %v3160_v37 = vld [vmem:[#allocation8 + $0xb8] sm:$0xff] }
 0x504   :  { %4150 = vmatprep.mubr.msk.f32.mxu0 %vm441_vm1, %v3160_v37  ;;  %4186 = vmatprep.mubr.msk.f32.mxu1 %vm441_vm1, %v3160_v37  ;;  %v8187_v37 = vld [vmem:[#allocation20_spill] sm:$0xff] }
 0x505   :  { %v2828_v31 = vmul.f32 %v2804_v7, %v2708_v34  ;;  %v2974_v35 = vmul.f32 %v5042_v9, %v2708_v34  ;;  %v2685_v50 = vmul.f32 2.0, %v2661_v60  ;;  %v5046_v7 = vpop.eup %5045  ;;  %v3019_v2 = vsel %vm183_vm0, %v2924_v38, 0.0 }
 0x506   :  { %v2435_v57 = vpop.f32.mrb[150].mxu1  ;;  %3506 = vmatmul.mubr.f32.gmra.mrb[214].mxu0 %v7462_v55  ;;  %v5048_v9 = vpop.eup %5047 }
 0x507   :  { %v2926_v29 = vmul.f32 %v5044_v54, %v2828_v31  ;;  %v3079_v19 = vsel %vm183_vm0, %v2974_v35, 0.0  ;;  %v2709_v48 = vadd.f32 58.5225, %v2685_v50  ;;  %v2662_v49 = vsub.f32 %v2435_v57, %v8185_v5  ;;  %v2437_v47 = vpop.f32.mrb[151].mxu1  ;;  %v8186_v31 = vld [vmem:[#allocation19_spill] sm:$0xff]  ;;  %4175 = vmatprep.mubr.msk.f32.mxu0 %vm441_vm1, %v7425_v6  ;;  %v5050_v57 = vpop.eup %5049 }
 0x508   :  { %v3080_v34 = vadd.f32 %v3079_v19, %v3078_v30  ;;  %v2783_v12 = vmul.f32 2.0, %v8186_v31  ;;  %v2784_v6 = vmul.f32 2.0, %v8187_v37 }
 0x509   :  { %v3020_v18 = vsel %vm183_vm0, %v2926_v29, 0.0  ;;  %v2829_v60 = vmul.f32 %v2805_v59, %v2709_v48  ;;  %v2976_v36 = vmul.f32 %v5046_v7, %v2709_v48  ;;  %v2686_v1 = vmul.f32 2.0, %v2662_v49  ;;  %v5052_v49 = vpop.eup %5051 }
 0x50a   :  { %v3021_v38 = vadd.f32 %v3020_v18, %v3019_v2  ;;  %v2440_v35 = vpop.f32.mrb[152].mxu1  ;;  %v2807_v47 = vadd.f32 6.5025, %v2783_v12  ;;  %v2808_v22 = vadd.f32 6.5025, %v2784_v6 }
 0x50b   :  { %v2928_v50 = vmul.f32 %v5048_v9, %v2829_v60  ;;  %v3081_v54 = vsel %vm183_vm0, %v2976_v36, 0.0  ;;  %v2710_v5 = vadd.f32 58.5225, %v2686_v1  ;;  %v2663_v59 = vsub.f32 %v2440_v35, %v8186_v31  ;;  %v2442_v30 = vpop.f32.mrb[153].mxu1  ;;  %v5054_v1 = vpop.eup %5053 }
 0x50c   :  { %v3082_v56 = vadd.f32 %v3081_v54, %v3080_v34 }
 0x50d   :  { %v3022_v29 = vsel %vm183_vm0, %v2928_v50, 0.0  ;;  %v2830_v19 = vmul.f32 %v2806_v26, %v2710_v5  ;;  %v2978_v61 = vmul.f32 %v5050_v57, %v2710_v5  ;;  %v2687_v48 = vmul.f32 2.0, %v2663_v59  ;;  %v5056_v50 = vpop.eup %5055 }
 0x50e   :  { %v3023_v7 = vadd.f32 %v3022_v29, %v3021_v38  ;;  %v2445_v2 = vpop.f32.mrb[154].mxu1  ;;  %v8188_v38 = vld [vmem:[#allocation23_spill] sm:$0xff] }
 0x50f   :  { %v2930_v18 = vmul.f32 %v5052_v49, %v2830_v19  ;;  %v3083_v60 = vsel %vm183_vm0, %v2978_v61, 0.0  ;;  %v2711_v36 = vadd.f32 58.5225, %v2687_v48  ;;  %v2664_v21 = vsub.f32 %v2445_v2, %v8187_v37  ;;  %v2447_v34 = vpop.f32.mrb[155].mxu1  ;;  %v5058_v19 = vpop.eup %5057 }
 0x510   :  { %v3084_v9 = vadd.f32 %v3083_v60, %v3082_v56  ;;  %v2785_v54 = vmul.f32 2.0, %v8188_v38  ;;  %v5060_v6 = vpop.eup %5059 }
 0x511   :  { %v3024_v26 = vsel %vm183_vm0, %v2930_v18, 0.0  ;;  %v2831_v31 = vmul.f32 %v2807_v47, %v2711_v36  ;;  %v2980_v12 = vmul.f32 %v5054_v1, %v2711_v36  ;;  %v2688_v35 = vmul.f32 2.0, %v2664_v21 }
 0x512   :  { %v3025_v5 = vadd.f32 %v3024_v26, %v3023_v7  ;;  %v2450_v59 = vpop.f32.mrb[156].mxu1  ;;  %v2809_v10 = vadd.f32 6.5025, %v2785_v54  ;;  %v8189_v7 = vld [vmem:[#allocation26_spill] sm:$0xff]  ;;  %v8190_v26 = vld [vmem:[#allocation137_spill] sm:$0xff] }
 0x513   :  { %v2932_v30 = vmul.f32 %v5056_v50, %v2831_v31  ;;  %v3085_v57 = vsel %vm183_vm0, %v2980_v12, 0.0  ;;  %v2712_v29 = vadd.f32 58.5225, %v2688_v35  ;;  %v2665_v23 = vsub.f32 %v2450_v59, %v8188_v38  ;;  %v2452_v56 = vpop.f32.mrb[157].mxu1  ;;  %v8191_v54 = vld [vmem:[#allocation29_spill] sm:$0xff]  ;;  %v8192_v59 = vld [vmem:[#allocation140_spill] sm:$0xff] }
 0x514   :  { %v3086_v61 = vadd.f32 %v3085_v57, %v3084_v9  ;;  %v2786_v2 = vmul.f32 2.0, %v8189_v7  ;;  %v5062_v9 = vpop.eup %5061  ;;  %5071 = vrcp.f32 %v8190_v26 }
 0x515   :  { %v3026_v48 = vsel %vm183_vm0, %v2932_v30, 0.0  ;;  %v2832_v49 = vmul.f32 %v2808_v22, %v2712_v29  ;;  %v2982_v47 = vmul.f32 %v5058_v19, %v2712_v29  ;;  %v2689_v37 = vmul.f32 2.0, %v2665_v23  ;;  %v5064_v38 = vpop.eup %5063 }
 0x516   :  { %v3027_v18 = vadd.f32 %v3026_v48, %v3025_v5  ;;  %v2455_v60 = vpop.f32.mrb[158].mxu1  ;;  %v2810_v44 = vadd.f32 6.5025, %v2786_v2  ;;  %v2787_v5 = vmul.f32 2.0, %v8191_v54  ;;  %5073 = vrcp.f32 %v8192_v59  ;;  %v5066_v48 = vpop.eup %5065 }
 0x517   :  { %v2934_v36 = vmul.f32 %v5060_v6, %v2832_v49  ;;  %v3087_v21 = vsel %vm183_vm0, %v2982_v47, 0.0  ;;  %v2713_v34 = vadd.f32 58.5225, %v2689_v37  ;;  %v2666_v16 = vsub.f32 %v2455_v60, %v8189_v7  ;;  %v2457_v1 = vpop.f32.mrb[159].mxu1  ;;  %v8193_v49 = vld [vmem:[#allocation21_spill] sm:$0xff]  ;;  %v5068_v2 = vpop.eup %5067 }
 0x518   :  { %v3088_v31 = vadd.f32 %v3087_v21, %v3086_v61  ;;  %5075 = vrcp.f32 %v8193_v49  ;;  %v2811_v60 = vadd.f32 6.5025, %v2787_v5  ;;  %v8195_v5 = vld [vmem:[#allocation35_spill] sm:$0xff] }
 0x519   :  { %v3028_v12 = vsel %vm183_vm0, %v2934_v36, 0.0  ;;  %v2833_v35 = vmul.f32 %v2809_v10, %v2713_v34  ;;  %v2984_v50 = vmul.f32 %v5062_v9, %v2713_v34  ;;  %v2690_v22 = vmul.f32 2.0, %v2666_v16 }
 0x51a   :  { %v3029_v30 = vadd.f32 %v3028_v12, %v3027_v18  ;;  %v2460_v57 = vpop.f32.mrb[160].mxu1  ;;  %v8194_v18 = vld [vmem:[#allocation32_spill] sm:$0xff]  ;;  %5077 = vrcp.f32 %v7154_v39  ;;  %v5070_v12 = vpop.eup %5069  ;;  %v2789_v59 = vmul.f32 2.0, %v8195_v5 }
 0x51b   :  { %v2936_v29 = vmul.f32 %v5064_v38, %v2833_v35  ;;  %v3089_v23 = vsel %vm183_vm0, %v2984_v50, 0.0  ;;  %v2714_v56 = vadd.f32 58.5225, %v2690_v22  ;;  %v2667_v19 = vsub.f32 %v2460_v57, %v8191_v54  ;;  %v2462_v61 = vpop.f32.mrb[161].mxu1 }
 0x51c   :  { %v3090_v47 = vadd.f32 %v3089_v23, %v3088_v31  ;;  %v2788_v36 = vmul.f32 2.0, %v8194_v18  ;;  %5079 = vrcp.f32 %v7160_v63 }
 0x51d   :  { %v3030_v37 = vsel %vm183_vm0, %v2936_v29, 0.0  ;;  %v2834_v6 = vmul.f32 %v2810_v44, %v2714_v56  ;;  %v2986_v10 = vmul.f32 %v5066_v48, %v2714_v56  ;;  %v2691_v7 = vmul.f32 2.0, %v2667_v19 }
 0x51e   :  { %v3031_v21 = vadd.f32 %v3030_v37, %v3029_v30  ;;  %v2465_v34 = vpop.f32.mrb[162].mxu1  ;;  %v5072_v54 = vpop.eup %5071  ;;  %v2812_v39 = vadd.f32 6.5025, %v2788_v36  ;;  %5081 = vrcp.f32 %v7166_v3  ;;  %v2813_v3 = vadd.f32 6.5025, %v2789_v59 }
 0x51f   :  { %v2938_v16 = vmul.f32 %v5068_v2, %v2834_v6  ;;  %v3091_v1 = vsel %vm183_vm0, %v2986_v10, 0.0  ;;  %v2715_v9 = vadd.f32 58.5225, %v2691_v7  ;;  %v2668_v26 = vsub.f32 %v2465_v34, %v8194_v18  ;;  %v2467_v31 = vpop.f32.mrb[163].mxu1  ;;  %v8196_v7 = vld [vmem:[#allocation38_spill] sm:$0xff] }
 0x520   :  { %v3092_v35 = vadd.f32 %v3091_v1, %v3090_v47  ;;  %v5074_v61 = vpop.eup %5073  ;;  %5083 = vrcp.f32 %v7170_v62  ;;  %v2790_v2 = vmul.f32 2.0, %v8196_v7 }
 0x521   :  { %v3032_v50 = vsel %vm183_vm0, %v2938_v16, 0.0  ;;  %v2835_v22 = vmul.f32 %v2811_v60, %v2715_v9  ;;  %v2988_v38 = vmul.f32 %v5070_v12, %v2715_v9  ;;  %v2692_v44 = vmul.f32 2.0, %v2668_v26 }
 0x522   :  { %v3033_v30 = vadd.f32 %v3032_v50, %v3031_v21  ;;  %v2470_v57 = vpop.f32.mrb[164].mxu1  ;;  %v5076_v10 = vpop.eup %5075  ;;  %5085 = vrcp.f32 %v7176_v0  ;;  %v2814_v0 = vadd.f32 6.5025, %v2790_v2 }
 0x523   :  { %v2940_v29 = vmul.f32 %v5072_v54, %v2835_v22  ;;  %v3093_v23 = vsel %vm183_vm0, %v2988_v38, 0.0  ;;  %v2716_v56 = vadd.f32 58.5225, %v2692_v44  ;;  %v2669_v63 = vsub.f32 %v2470_v57, %v8195_v5  ;;  %v2472_v19 = vpop.f32.mrb[165].mxu1  ;;  %v8197_v22 = vld [vmem:[#allocation41_spill] sm:$0xff] }
 0x524   :  { %v3094_v48 = vadd.f32 %v3093_v23, %v3092_v35  ;;  %v5078_v1 = vpop.eup %5077  ;;  %5087 = vrcp.f32 %v7181_v45  ;;  %v2791_v38 = vmul.f32 2.0, %v8197_v22 }
 0x525   :  { %v3034_v49 = vsel %vm183_vm0, %v2940_v29, 0.0  ;;  %v2836_v47 = vmul.f32 %v2812_v39, %v2716_v56  ;;  %v2990_v37 = vmul.f32 %v5074_v61, %v2716_v56  ;;  %v2693_v6 = vmul.f32 2.0, %v2669_v63 }
 0x526   :  { %v3035_v60 = vadd.f32 %v3034_v49, %v3033_v30  ;;  %v2475_v18 = vpop.f32.mrb[166].mxu1  ;;  %v5080_v50 = vpop.eup %5079  ;;  %5089 = vrcp.f32 %v7187_v28  ;;  %v2815_v28 = vadd.f32 6.5025, %v2791_v38 }
 0x527   :  { %v2942_v36 = vmul.f32 %v5076_v10, %v2836_v47  ;;  %v3095_v21 = vsel %vm183_vm0, %v2990_v37, 0.0  ;;  %v2717_v34 = vadd.f32 58.5225, %v2693_v6  ;;  %v2670_v62 = vsub.f32 %v2475_v18, %v8196_v7  ;;  %v2477_v16 = vpop.f32.mrb[167].mxu1 }
 0x528   :  { %v3096_v9 = vadd.f32 %v3095_v21, %v3094_v48  ;;  %v5082_v57 = vpop.eup %5081  ;;  %5091 = vrcp.f32 %v7192_v42  ;;  %v8198_v48 = vld [vmem:[#allocation44_spill] sm:$0xff]  ;;  %v8199_v16 = vld [vmem:[#allocation47_spill] sm:$0xff] }
 0x529   :  { %v3036_v26 = vsel %vm183_vm0, %v2942_v36, 0.0  ;;  %v2837_v31 = vmul.f32 %v2813_v3, %v2717_v34  ;;  %v2992_v12 = vmul.f32 %v5078_v1, %v2717_v34  ;;  %v2694_v35 = vmul.f32 2.0, %v2670_v62 }
 0x52a   :  { %v3037_v44 = vadd.f32 %v3036_v26, %v3035_v60  ;;  %v2480_v54 = vpop.f32.mrb[168].mxu1  ;;  %v5084_v61 = vpop.eup %5083  ;;  %v2792_v49 = vmul.f32 2.0, %v8198_v48  ;;  %5093 = vrcp.f32 %v7198_v24  ;;  %v2793_v1 = vmul.f32 2.0, %v8199_v16 }
 0x52b   :  { %v2944_v39 = vmul.f32 %v5080_v50, %v2837_v31  ;;  %v3097_v5 = vsel %vm183_vm0, %v2992_v12, 0.0  ;;  %v2718_v59 = vadd.f32 58.5225, %v2694_v35  ;;  %v2671_v45 = vsub.f32 %v2480_v54, %v8197_v22  ;;  %v2482_v30 = vpop.f32.mrb[169].mxu1 }
 0x52c   :  { %v3098_v29 = vadd.f32 %v3097_v5, %v3096_v9  ;;  %v5086_v2 = vpop.eup %5085  ;;  %5095 = vrcp.f32 %v7203_v15  ;;  %v2816_v24 = vadd.f32 6.5025, %v2792_v49 }
 0x52d   :  { %v3038_v23 = vsel %vm183_vm0, %v2944_v39, 0.0  ;;  %v2838_v56 = vmul.f32 %v2814_v0, %v2718_v59  ;;  %v2994_v63 = vmul.f32 %v5082_v57, %v2718_v59  ;;  %v2695_v19 = vmul.f32 2.0, %v2671_v45  ;;  %v8200_v59 = vld [vmem:[#allocation50_spill] sm:$0xff] }
 0x52e   :  { %v3039_v47 = vadd.f32 %v3038_v23, %v3037_v44  ;;  %v2485_v37 = vpop.f32.mrb[170].mxu1  ;;  %v5088_v62 = vpop.eup %5087  ;;  %5097 = vrcp.f32 %v7209_v27  ;;  %v2817_v27 = vadd.f32 6.5025, %v2793_v1  ;;  %v2794_v45 = vmul.f32 2.0, %v8200_v59 }
 0x52f   :  { %v2946_v6 = vmul.f32 %v5084_v61, %v2838_v56  ;;  %v3099_v10 = vsel %vm183_vm0, %v2994_v63, 0.0  ;;  %v2719_v3 = vadd.f32 58.5225, %v2695_v19  ;;  %v2672_v42 = vsub.f32 %v2485_v37, %v8198_v48  ;;  %v2487_v7 = vpop.f32.mrb[171].mxu1 }
 0x530   :  { %v3100_v60 = vadd.f32 %v3099_v10, %v3098_v29  ;;  %v5090_v0 = vpop.eup %5089  ;;  %5099 = vrcp.f32 %v7214_v51 }
 0x531   :  { %v3040_v18 = vsel %vm183_vm0, %v2946_v6, 0.0  ;;  %v2839_v36 = vmul.f32 %v2815_v28, %v2719_v3  ;;  %v2996_v21 = vmul.f32 %v5086_v2, %v2719_v3  ;;  %v2696_v34 = vmul.f32 2.0, %v2672_v42  ;;  %v8201_v6 = vld [vmem:[#allocation53_spill] sm:$0xff] }
 0x532   :  { %v3041_v9 = vadd.f32 %v3040_v18, %v3039_v47  ;;  %v2490_v26 = vpop.f32.mrb[172].mxu1  ;;  %v5092_v5 = vpop.eup %5091  ;;  %5101 = vrcp.f32 %v7220_v32  ;;  %v2818_v32 = vadd.f32 6.5025, %v2794_v45  ;;  %v2795_v10 = vmul.f32 2.0, %v8201_v6 }
 0x533   :  { %v2948_v31 = vmul.f32 %v5088_v62, %v2839_v36  ;;  %v3101_v12 = vsel %vm183_vm0, %v2996_v21, 0.0  ;;  %v2720_v35 = vadd.f32 58.5225, %v2696_v34  ;;  %v2673_v15 = vsub.f32 %v2490_v26, %v8199_v16  ;;  %v2492_v50 = vpop.f32.mrb[173].mxu1 }
 0x534   :  { %v3102_v22 = vadd.f32 %v3101_v12, %v3100_v60  ;;  %v5094_v19 = vpop.eup %5093  ;;  %5103 = vrcp.f32 %v7225_v52 }
 0x535   :  { %v3042_v38 = vsel %vm183_vm0, %v2948_v31, 0.0  ;;  %v2840_v44 = vmul.f32 %v2816_v24, %v2720_v35  ;;  %v2998_v54 = vmul.f32 %v5090_v0, %v2720_v35  ;;  %v2697_v39 = vmul.f32 2.0, %v2673_v15 }
 0x536   :  { %v3043_v30 = vadd.f32 %v3042_v38, %v3041_v9  ;;  %v2495_v57 = vpop.f32.mrb[174].mxu1  ;;  %v5096_v37 = vpop.eup %5095  ;;  %5105 = vrcp.f32 %v7231_v14  ;;  %v2819_v14 = vadd.f32 6.5025, %v2795_v10  ;;  %v8202_v9 = vld [vmem:[#allocation56_spill] sm:$0xff] }
 0x537   :  { %v2950_v29 = vmul.f32 %v5092_v5, %v2840_v44  ;;  %v3103_v23 = vsel %vm183_vm0, %v2998_v54, 0.0  ;;  %v2721_v56 = vadd.f32 58.5225, %v2697_v39  ;;  %v2674_v51 = vsub.f32 %v2495_v57, %v8200_v59  ;;  %v2497_v63 = vpop.f32.mrb[175].mxu1  ;;  %v8203_v59 = vld [vmem:[#allocation60_spill] sm:$0xff] }
 0x538   :  { %v3104_v61 = vadd.f32 %v3103_v23, %v3102_v22  ;;  %v5098_v36 = vpop.eup %5097  ;;  %5107 = vrcp.f32 %v7236_v4  ;;  %v2796_v26 = vmul.f32 2.0, %v8202_v9  ;;  %v2797_v45 = vmul.f32 2.0, %v8203_v59 }
 0x539   :  { %v3044_v28 = vsel %vm183_vm0, %v2950_v29, 0.0  ;;  %v2841_v48 = vmul.f32 %v2817_v27, %v2721_v56  ;;  %v3000_v49 = vmul.f32 %v5094_v19, %v2721_v56  ;;  %v2698_v47 = vmul.f32 2.0, %v2674_v51 }
 0x53a   :  { %v3045_v3 = vadd.f32 %v3044_v28, %v3043_v30  ;;  %v2500_v42 = vpop.f32.mrb[176].mxu1  ;;  %v5100_v1 = vpop.eup %5099  ;;  %5109 = vrcp.f32 %v7242_v40  ;;  %v2820_v40 = vadd.f32 6.5025, %v2796_v26 }
 0x53b   :  { %v2952_v7 = vmul.f32 %v5096_v37, %v2841_v48  ;;  %v3105_v2 = vsel %vm183_vm0, %v3000_v49, 0.0  ;;  %v2722_v60 = vadd.f32 58.5225, %v2698_v47  ;;  %v2675_v52 = vsub.f32 %v2500_v42, %v8201_v6  ;;  %v2502_v18 = vpop.f32.mrb[177].mxu1  ;;  %v8204_v37 = vld [vmem:[#allocation64_spill] sm:$0xff] }
 0x53c   :  { %v3106_v21 = vadd.f32 %v3105_v2, %v3104_v61  ;;  %v5102_v22 = vpop.eup %5101  ;;  %5111 = vrcp.f32 %v7247_v41 }
 0x53d   :  { %v3046_v34 = vsel %vm183_vm0, %v2952_v7, 0.0  ;;  %v2842_v62 = vmul.f32 %v2818_v32, %v2722_v60  ;;  %v3002_v24 = vmul.f32 %v5098_v36, %v2722_v60  ;;  %v2699_v16 = vmul.f32 2.0, %v2675_v52 }
 0x53e   :  { %v3047_v31 = vadd.f32 %v3046_v34, %v3045_v3  ;;  %v2505_v12 = vpop.f32.mrb[178].mxu1  ;;  %v5104_v27 = vpop.eup %5103  ;;  %5113 = vrcp.f32 %v7253_v46  ;;  %v2821_v46 = vadd.f32 6.5025, %v2797_v45  ;;  %v2798_v32 = vmul.f32 2.0, %v8204_v37 }
 0x53f   :  { %v2954_v35 = vmul.f32 %v5100_v1, %v2842_v62  ;;  %v3107_v15 = vsel %vm183_vm0, %v3002_v24, 0.0  ;;  %v2723_v50 = vadd.f32 58.5225, %v2699_v16  ;;  %v2676_v4 = vsub.f32 %v2505_v12, %v8202_v9  ;;  %v2507_v0 = vpop.f32.mrb[179].mxu1  ;;  %v8205_v24 = vld [vmem:[#allocation68_spill] sm:$0xff] }
 0x540   :  { %v3108_v38 = vadd.f32 %v3107_v15, %v3106_v21  ;;  %v5106_v63 = vpop.eup %5105  ;;  %5115 = vrcp.f32 %v7258_v58  ;;  %v2799_v16 = vmul.f32 2.0, %v8205_v24 }
 0x541   :  { %v3048_v44 = vsel %vm183_vm0, %v2954_v35, 0.0  ;;  %v2843_v54 = vmul.f32 %v2819_v14, %v2723_v50  ;;  %v3004_v39 = vmul.f32 %v5102_v22, %v2723_v50  ;;  %v2700_v5 = vmul.f32 2.0, %v2676_v4 }
 0x542   :  { %v3049_v30 = vadd.f32 %v3048_v44, %v3047_v31  ;;  %v2510_v57 = vpop.f32.mrb[180].mxu1  ;;  %v5108_v47 = vpop.eup %5107  ;;  %5117 = vrcp.f32 %v7264_v17  ;;  %v2822_v17 = vadd.f32 6.5025, %v2798_v32  ;;  %v8206_v44 = vld [vmem:[#allocation72_spill] sm:$0xff] }
 0x543   :  { %v2956_v29 = vmul.f32 %v5104_v27, %v2843_v54  ;;  %v3109_v23 = vsel %vm183_vm0, %v3004_v39, 0.0  ;;  %v2724_v56 = vadd.f32 58.5225, %v2700_v5  ;;  %v2677_v41 = vsub.f32 %v2510_v57, %v8203_v59  ;;  %v2512_v51 = vpop.f32.mrb[181].mxu1 }
 0x544   :  { %v3110_v19 = vadd.f32 %v3109_v23, %v3108_v38  ;;  %v5110_v60 = vpop.eup %5109  ;;  %5119 = vrcp.f32 %v7269_v20  ;;  %v2800_v54 = vmul.f32 2.0, %v8206_v44 }
 0x545   :  { %v3050_v61 = vsel %vm183_vm0, %v2956_v29, 0.0  ;;  %v2844_v28 = vmul.f32 %v2820_v40, %v2724_v56  ;;  %v3006_v48 = vmul.f32 %v5106_v63, %v2724_v56  ;;  %v2701_v49 = vmul.f32 2.0, %v2677_v41  ;;  %v8207_v63 = vld [vmem:[#allocation76_spill] sm:$0xff] }
 0x546   :  { %v3051_v6 = vadd.f32 %v3050_v61, %v3049_v30  ;;  %v2515_v10 = vpop.f32.mrb[182].mxu1  ;;  %v5112_v62 = vpop.eup %5111  ;;  %5121 = vrcp.f32 %v7275_v13  ;;  %v2823_v13 = vadd.f32 6.5025, %v2799_v16 }
 0x547   :  { %v2958_v3 = vmul.f32 %v5108_v47, %v2844_v28  ;;  %v3111_v42 = vsel %vm183_vm0, %v3006_v48, 0.0  ;;  %v2725_v7 = vadd.f32 58.5225, %v2701_v49  ;;  %v2678_v58 = vsub.f32 %v2515_v10, %v8204_v37  ;;  %v2517_v2 = vpop.f32.mrb[183].mxu1 }
 0x548   :  { %v3112_v52 = vadd.f32 %v3111_v42, %v3110_v19  ;;  %v5114_v35 = vpop.eup %5113  ;;  %5123 = vrcp.f32 %v7280_v33  ;;  %v2801_v19 = vmul.f32 2.0, %v8207_v63 }
 0x549   :  { %v3052_v18 = vsel %vm183_vm0, %v2958_v3, 0.0  ;;  %v2845_v36 = vmul.f32 %v2821_v46, %v2725_v7  ;;  %v3008_v21 = vmul.f32 %v5110_v60, %v2725_v7  ;;  %v2702_v34 = vmul.f32 2.0, %v2678_v58  ;;  %v8208_v58 = vld [vmem:[#allocation80_spill] sm:$0xff] }
 0x54a   :  { %v3053_v1 = vadd.f32 %v3052_v18, %v3051_v6  ;;  %v2520_v14 = vpop.f32.mrb[184].mxu1  ;;  %v5116_v38 = vpop.eup %5115  ;;  %5125 = vrcp.f32 %v7286_v11  ;;  %v2824_v11 = vadd.f32 6.5025, %v2800_v54  ;;  %v2802_v2 = vmul.f32 2.0, %v8208_v58 }
 0x54b   :  { %v2960_v9 = vmul.f32 %v5112_v62, %v2845_v36  ;;  %v3113_v26 = vsel %vm183_vm0, %v3008_v21, 0.0  ;;  %v2726_v31 = vadd.f32 58.5225, %v2702_v34  ;;  %v2679_v20 = vsub.f32 %v2520_v14, %v8205_v24  ;;  %v2522_v12 = vpop.f32.mrb[185].mxu1 }
 0x54c   :  { %v3114_v15 = vadd.f32 %v3113_v26, %v3112_v52  ;;  %v5118_v30 = vpop.eup %5117  ;;  %5127 = vrcp.f32 %v7291_v53 }
 0x54d   :  { %v3054_v50 = vsel %vm183_vm0, %v2960_v9, 0.0  ;;  %v2846_v4 = vmul.f32 %v2822_v17, %v2726_v31  ;;  %v3010_v0 = vmul.f32 %v5114_v35, %v2726_v31  ;;  %v2703_v22 = vmul.f32 2.0, %v2679_v20 }
 0x54e   :  { %v3055_v39 = vadd.f32 %v3054_v50, %v3053_v1  ;;  %v2525_v5 = vpop.f32.mrb[186].mxu1  ;;  %v5120_v51 = vpop.eup %5119  ;;  %5129 = vrcp.f32 %v7297_v43  ;;  %v2825_v43 = vadd.f32 6.5025, %v2801_v19  ;;  %v2826_v20 = vadd.f32 6.5025, %v2802_v2 }
 0x54f   :  { %v2962_v27 = vmul.f32 %v5116_v38, %v2846_v4  ;;  %v3115_v40 = vsel %vm183_vm0, %v3010_v0, 0.0  ;;  %v2727_v59 = vadd.f32 58.5225, %v2703_v22  ;;  %v2680_v33 = vsub.f32 %v2525_v5, %v8206_v44  ;;  %v2527_v45 = vpop.f32.mrb[187].mxu1 }
 0x550   :  { %v3116_v57 = vadd.f32 %v3115_v40, %v3114_v15  ;;  %v5122_v37 = vpop.eup %5121  ;;  %5131 = vrcp.f32 %v7301_v25 }
 0x551   :  { %v3056_v29 = vsel %vm183_vm0, %v2962_v27, 0.0  ;;  %v2847_v23 = vmul.f32 %v2823_v13, %v2727_v59  ;;  %v3012_v56 = vmul.f32 %v5118_v30, %v2727_v59  ;;  %v2704_v41 = vmul.f32 2.0, %v2680_v33 }
 0x552   :  { %v2530_v61 = vpop.f32.mrb[188].mxu1  ;;  %v3057_v28 = vadd.f32 %v3056_v29, %v3055_v39  ;;  %v5124_v7 = vpop.eup %5123 }
 0x553   :  { %v2964_v48 = vmul.f32 %v5120_v51, %v2847_v23  ;;  %v3117_v49 = vsel %vm183_vm0, %v3012_v56, 0.0  ;;  %v2728_v47 = vadd.f32 58.5225, %v2704_v41  ;;  %v2681_v53 = vsub.f32 %v2530_v61, %v8207_v63  ;;  %v2532_v46 = vpop.f32.mrb[189].mxu1 }
 0x554   :  { %v3118_v32 = vadd.f32 %v3117_v49, %v3116_v57  ;;  %v5126_v25 = vpop.eup %5125 }
 0x555   :  { %v2848_v6 = vmul.f32 %v2824_v11, %v2728_v47  ;;  %v3014_v10 = vmul.f32 %v5122_v37, %v2728_v47  ;;  %v2705_v3 = vmul.f32 2.0, %v2681_v53  ;;  %v3058_v42 = vsel %vm183_vm0, %v2964_v48, 0.0 }
 0x556   :  { %v2535_v60 = vpop.f32.mrb[190].mxu1  ;;  %v3059_v52 = vadd.f32 %v3058_v42, %v3057_v28  ;;  %v5128_v9 = vpop.eup %5127 }
 0x557   :  { %v2966_v18 = vmul.f32 %v5124_v7, %v2848_v6  ;;  %v3119_v36 = vsel %vm183_vm0, %v3014_v10, 0.0  ;;  %v2729_v21 = vadd.f32 58.5225, %v2705_v3  ;;  %v2682_v34 = vsub.f32 %v2535_v60, %v8208_v58  ;;  %v2537_v62 = vpop.f32.mrb[191].mxu1 }
 0x558   :  { %v3120_v17 = vadd.f32 %v3119_v36, %v3118_v32  ;;  %v5130_v4 = vpop.eup %5129  ;;  %v5241_v62 = vld [vmem:[#allocation8 + $0x18] sm:$0xff] }
 0x559   :  { %v2849_v24 = vmul.f32 %v2825_v43, %v2729_v21  ;;  %v3016_v16 = vmul.f32 %v5126_v25, %v2729_v21  ;;  %v2706_v1 = vmul.f32 2.0, %v2682_v34  ;;  %v3060_v14 = vsel %vm183_vm0, %v2966_v18, 0.0  ;;  %v5240_v34 = vld [vmem:[#allocation8] sm:$0xff]  ;;  %v5242_v25 = vld [vmem:[#allocation8 + $0x10] sm:$0xff] }
 0x55a   :  { %v4657_v26 = vpop.f32.mrb[192].mxu1  ;;  %v3061_v31 = vadd.f32 %v3060_v14, %v3059_v52  ;;  %v5132_v54 = vpop.eup %5131  ;;  %v5248_v14 = vld [vmem:[#allocation8 + $0x40] sm:$0xff] }
 0x55b   :  { %v2730_v12 = vadd.f32 58.5225, %v2706_v1  ;;  %v3590_v35 = vpop.f32.mrb[193].mxu1  ;;  %v2968_v15 = vmul.f32 %v5128_v9, %v2849_v24  ;;  %v3121_v50 = vsel %vm183_vm0, %v3016_v16, 0.0  ;;  %v5244_v24 = vld [vmem:[#allocation8 + $0x20] sm:$0xff]  ;;  %v5245_v16 = vld [vmem:[#allocation8 + $0x38] sm:$0xff] }
 0x55c   :  { %v4964_v0 = vpack.c.bf16 %v4657_v26, %v3590_v35  ;;  %v3122_v22 = vadd.f32 %v3121_v50, %v3120_v17  ;;  %v5243_v17 = vld [vmem:[#allocation8 + $0x28] sm:$0xff]  ;;  %v5250_v9 = vld [vmem:[#allocation8 + $0x50] sm:$0xff]  ;;  %v5257_v50 = vld [vmem:[#allocation8 + $0x98] sm:$0xff] }
 0x55d   :  { %v2850_v38 = vmul.f32 %v2826_v20, %v2730_v12  ;;  %v3018_v13 = vmul.f32 %v5130_v4, %v2730_v12  ;;  %v3062_v44 = vsel %vm183_vm0, %v2968_v15, 0.0  ;;  %v5247_v1 = vld [vmem:[#allocation8 + $0x48] sm:$0xff]  ;;  %v5253_v20 = vld [vmem:[#allocation8 + $0x78] sm:$0xff]  ;;  %v5254_v12 = vld [vmem:[#allocation8 + $0x70] sm:$0xff] }
 0x55e   :  { %v4660_v39 = vpop.f32.mrb[194].mxu1  ;;  %4965 = vmatpush1.bf16.msra.mxu0 %v4964_v0  ;;  %5011 = vmatpush1.bf16.msra.mxu1 %v4964_v0  ;;  %v3063_v5 = vadd.f32 %v3062_v44, %v3061_v31  ;;  %v5251_v26 = vld [vmem:[#allocation8 + $0x68] sm:$0xff]  ;;  %v5252_v31 = vld [vmem:[#allocation8 + $0x60] sm:$0xff]  ;;  %v5258_v0 = vld [vmem:[#allocation8 + $0x90] sm:$0xff] }
 0x55f   :  { %v3600_v27 = vpop.f32.mrb[195].mxu1  ;;  %4966 = vmatprep.subr.bf16.mxu0 %v7950_v8  ;;  %5000 = vmatprep.subr.bf16.mxu1 %v7950_v8  ;;  %v2970_v40 = vmul.f32 %v5132_v54, %v2850_v38  ;;  %v3123_v59 = vsel %vm183_vm0, %v3018_v13, 0.0  ;;  %v5255_v35 = vld [vmem:[#allocation8 + $0x88] sm:$0xff]  ;;  %v5256_v15 = vld [vmem:[#allocation8 + $0x80] sm:$0xff] }
 0x560   :  { %v4967_v33 = vpack.c.bf16 %v4660_v39, %v3600_v27  ;;  %v3124_v45 = vadd.f32 %v3123_v59, %v3122_v22  ;;  %v5259_v38 = vld [vmem:[#allocation8 + $0xa8] sm:$0xff]  ;;  %v5260_v44 = vld [vmem:[#allocation8 + $0xa0] sm:$0xff] }
 0x561   :  { %v3064_v30 = vsel %vm183_vm0, %v2970_v40, 0.0 }
 0x562   :  { %v4663_v57 = vpop.f32.mrb[196].mxu1  ;;  %4968 = vmatpush1.bf16.msra.mxu0 %v4967_v33  ;;  %5012 = vmatpush1.bf16.msra.mxu1 %v4967_v33  ;;  %v3065_v29 = vadd.f32 %v3064_v30, %v3063_v5 }
 0x563   :  { %v3610_v23 = vpop.f32.mrb[197].mxu1  ;;  %4969 = vmatprep.subr.bf16.mxu0 %v7950_v8  ;;  %5001 = vmatprep.subr.bf16.mxu1 %v7950_v8 }
 0x564   :  { %v4970_v56 = vpack.c.bf16 %v4663_v57, %v3610_v23  ;;  %3066 = vadd.xlane.f32.xlu0 %v3065_v29 }
 0x566   :  { %v4666_v41 = vpop.f32.mrb[198].mxu1  ;;  %4971 = vmatpush1.bf16.msra.mxu0 %v4970_v56  ;;  %5013 = vmatpush1.bf16.msra.mxu1 %v4970_v56 }
 0x567   :  { %v3620_v51 = vpop.f32.mrb[199].mxu1  ;;  %4972 = vmatprep.subr.bf16.mxu0 %v7950_v8  ;;  %5002 = vmatprep.subr.bf16.mxu1 %v7950_v8 }
 0x568   :  { %v4973_v11 = vpack.c.bf16 %v4666_v41, %v3620_v51  ;;  %3125 = vadd.xlane.f32.xlu0 %v3124_v45 }
 0x56a   :  { %v4669_v63 = vpop.f32.mrb[200].mxu1  ;;  %4974 = vmatpush1.bf16.msra.mxu0 %v4973_v11  ;;  %5014 = vmatpush1.bf16.msra.mxu1 %v4973_v11 }
 0x56b   :  { %v3630_v19 = vpop.f32.mrb[201].mxu1  ;;  %4975 = vmatprep.subr.bf16.mxu0 %v7950_v8  ;;  %5003 = vmatprep.subr.bf16.mxu1 %v7950_v8 }
 0x56c   :  { %v4976_v61 = vpack.c.bf16 %v4669_v63, %v3630_v19 }
 0x56e   :  { %v4672_v28 = vpop.f32.mrb[202].mxu1  ;;  %4977 = vmatpush1.bf16.msra.mxu0 %v4976_v61  ;;  %5015 = vmatpush1.bf16.msra.mxu1 %v4976_v61 }
 0x56f   :  { %v3640_v48 = vpop.f32.mrb[203].mxu1  ;;  %4978 = vmatprep.subr.bf16.mxu0 %v7950_v8  ;;  %5004 = vmatprep.subr.bf16.mxu1 %v7950_v8 }
 0x570   :  { %v4979_v49 = vpack.c.bf16 %v4672_v28, %v3640_v48 }
 0x572   :  { %v4675_v47 = vpop.f32.mrb[204].mxu1  ;;  %4980 = vmatpush1.bf16.msra.mxu0 %v4979_v49  ;;  %5016 = vmatpush1.bf16.msra.mxu1 %v4979_v49 }
 0x573   :  { %v3650_v53 = vpop.f32.mrb[205].mxu1  ;;  %4981 = vmatprep.subr.bf16.mxu0 %v7950_v8  ;;  %5005 = vmatprep.subr.bf16.mxu1 %v7950_v8 }
 0x574   :  { %v4982_v46 = vpack.c.bf16 %v4675_v47, %v3650_v53 }
 0x576   :  { %v4678_v37 = vpop.f32.mrb[206].mxu1  ;;  %4983 = vmatpush1.bf16.msra.mxu0 %v4982_v46  ;;  %5017 = vmatpush1.bf16.msra.mxu1 %v4982_v46 }
 0x577   :  { %v3660_v32 = vpop.f32.mrb[207].mxu1  ;;  %4984 = vmatprep.subr.bf16.mxu0 %v7950_v8  ;;  %5006 = vmatprep.subr.bf16.mxu1 %v7950_v8 }
 0x578   :  { %v4985_v6 = vpack.c.bf16 %v4678_v37, %v3660_v32 }
 0x57a   :  { %v4681_v10 = vpop.f32.mrb[208].mxu1  ;;  %4986 = vmatpush1.bf16.msra.mxu0 %v4985_v6  ;;  %5018 = vmatpush1.bf16.msra.mxu1 %v4985_v6 }
 0x57b   :  { %v3670_v3 = vpop.f32.mrb[209].mxu1  ;;  %4987 = vmatprep.subr.bf16.mxu0 %v7950_v8  ;;  %5007 = vmatprep.subr.bf16.mxu1 %v7950_v8 }
 0x57c   :  { %v4988_v42 = vpack.c.bf16 %v4681_v10, %v3670_v3 }
 0x57e   :  { %v4684_v7 = vpop.f32.mrb[210].mxu1  ;;  %4989 = vmatpush1.bf16.msra.mxu0 %v4988_v42  ;;  %5019 = vmatpush1.bf16.msra.mxu1 %v4988_v42 }
 0x57f   :  { %v3680_v43 = vpop.f32.mrb[211].mxu1  ;;  %4990 = vmatprep.subr.bf16.mxu0 %v7950_v8  ;;  %5008 = vmatprep.subr.bf16.mxu1 %v7950_v8 }
 0x580   :  { %v4991_v58 = vpack.c.bf16 %v4684_v7, %v3680_v43 }
 0x582   :  { %v4687_v2 = vpop.f32.mrb[212].mxu1  ;;  %4992 = vmatpush1.bf16.msra.mxu0 %v4991_v58  ;;  %5020 = vmatpush1.bf16.msra.mxu1 %v4991_v58 }
 0x583   :  { %v3690_v60 = vpop.f32.mrb[213].mxu1  ;;  %4993 = vmatprep.subr.bf16.mxu0 %v7950_v8  ;;  %5009 = vmatprep.subr.bf16.mxu1 %v7950_v8 }
 0x584   :  { %v4994_v52 = vpack.c.bf16 %v4687_v2, %v3690_v60 }
 0x586   :  { %v4690_v18 = vpop.f32.mrb[214].mxu1  ;;  %4995 = vmatpush1.bf16.msra.mxu0 %v4994_v52  ;;  %5021 = vmatpush1.bf16.msra.mxu1 %v4994_v52 }
 0x587   :  { %v3700_v36 = vpop.f32.mrb[215].mxu1  ;;  %4996 = vmatprep.subr.bf16.mxu0 %v7950_v8  ;;  %5010 = vmatprep.subr.bf16.mxu1 %v7950_v8  ;;  %v5246_v8 = vld [vmem:[#allocation8 + $0x30] sm:$0xff] }
 0x588   :  { %v4997_v21 = vpack.c.bf16 %v4690_v18, %v3700_v36 }
 0x58a   :  { %4998 = vmatpush1.bf16.msra.mxu0 %v4997_v21  ;;  %5022 = vmatpush1.bf16.msra.mxu1 %v4997_v21 }
 0x58d   :  { %3774 = vmatmul.mubr.f32.vlgmr.msra.gmra.mrb[216].mxu0 %v5240_v34  ;;  %3829 = vmatmul.mubr.f32.vlgmr.msra.gmra.mrb[216].mxu1 %v7462_v55  ;;  %v5249_v55 = vld [vmem:[#allocation8 + $0x58] sm:$0xff] }
 0x58e   :  { %4176 = vmatprep.mubr.msk.f32.mxu0 %vm441_vm1, %v5241_v62 }
 0x591   :  { %3779 = vmatmul.mubr.f32.gmra.mrb[218].mxu0 %v5242_v25 }
 0x592   :  { %4177 = vmatprep.mubr.msk.f32.mxu0 %vm441_vm1, %v5243_v17 }
 0x595   :  { %3784 = vmatmul.mubr.f32.gmra.mrb[220].mxu0 %v5244_v24 }
 0x596   :  { %4178 = vmatprep.mubr.msk.f32.mxu0 %vm441_vm1, %v5245_v16 }
 0x599   :  { %3789 = vmatmul.mubr.f32.gmra.mrb[222].mxu0 %v5246_v8 }
 0x59a   :  { %4179 = vmatprep.mubr.msk.f32.mxu0 %vm441_vm1, %v5247_v1 }
 0x59d   :  { %3794 = vmatmul.mubr.f32.gmra.mrb[224].mxu0 %v5248_v14 }
 0x59e   :  { %4180 = vmatprep.mubr.msk.f32.mxu0 %vm441_vm1, %v5249_v55 }
 0x59f   :  { %v3452_v4 = vpop.f32.mrb[192].mxu0 }
 0x5a0   :  { %v3454_v22 = vpop.f32.mrb[193].mxu0  ;;  %3512 = vst.msk [vmem:[%s7743_s8] sm:$0xff] %vm3511_vm2, %v3452_v4 }
 0x5a1   :  { %3799 = vmatmul.mubr.f32.gmra.mrb[226].mxu0 %v5250_v9 }
 0x5a2   :  { %4181 = vmatprep.mubr.msk.f32.mxu0 %vm441_vm1, %v5251_v26 }
 0x5a3   :  { %v3457_v13 = vpop.f32.mrb[194].mxu0 }
 0x5a4   :  { %3513 = vst.msk [vmem:[%s7743_s8 + $0x8] sm:$0xff] %vm3511_vm2, %v3457_v13  ;;  %v3459_v54 = vpop.f32.mrb[195].mxu0 }
 0x5a5   :  { %3804 = vmatmul.mubr.f32.gmra.mrb[228].mxu0 %v5252_v31 }
 0x5a6   :  { %4182 = vmatprep.mubr.msk.f32.mxu0 %vm441_vm1, %v5253_v20 }
 0x5a7   :  { %v3462_v39 = vpop.f32.mrb[196].mxu0 }
 0x5a8   :  { %3514 = vst.msk [vmem:[%s7743_s8 + $0x10] sm:$0xff] %vm3511_vm2, %v3462_v39  ;;  %v3464_v5 = vpop.f32.mrb[197].mxu0 }
 0x5a9   :  { %3809 = vmatmul.mubr.f32.gmra.mrb[230].mxu0 %v5254_v12 }
 0x5aa   :  { %4183 = vmatprep.mubr.msk.f32.mxu0 %vm441_vm1, %v5255_v35 }
 0x5ab   :  { %v3467_v27 = vpop.f32.mrb[198].mxu0 }
 0x5ac   :  { %3515 = vst.msk [vmem:[%s7743_s8 + $0x18] sm:$0xff] %vm3511_vm2, %v3467_v27  ;;  %v3469_v40 = vpop.f32.mrb[199].mxu0 }
 0x5ad   :  { %3814 = vmatmul.mubr.f32.gmra.mrb[232].mxu0 %v5256_v15 }
 0x5ae   :  { %4184 = vmatprep.mubr.msk.f32.mxu0 %vm441_vm1, %v5257_v50 }
 0x5af   :  { %v3472_v59 = vpop.f32.mrb[200].mxu0 }
 0x5b0   :  { %3516 = vst.msk [vmem:[%s7743_s8 + $0x20] sm:$0xff] %vm3511_vm2, %v3472_v59  ;;  %v3474_v33 = vpop.f32.mrb[201].mxu0 }
 0x5b1   :  { %3819 = vmatmul.mubr.f32.gmra.mrb[234].mxu0 %v5258_v0 }
 0x5b2   :  { %4185 = vmatprep.mubr.msk.f32.mxu0 %vm441_vm1, %v5259_v38 }
 0x5b3   :  { %v3477_v45 = vpop.f32.mrb[202].mxu0 }
 0x5b4   :  { %3517 = vst.msk [vmem:[%s7743_s8 + $0x28] sm:$0xff] %vm3511_vm2, %v3477_v45  ;;  %v3479_v30 = vpop.f32.mrb[203].mxu0 }
 0x5b5   :  { %3824 = vmatmul.mubr.f32.gmra.mrb[236].mxu0 %v5260_v44 }
 0x5b7   :  { %v3482_v57 = vpop.f32.mrb[204].mxu0 }
 0x5b8   :  { %3518 = vst.msk [vmem:[%s7743_s8 + $0x30] sm:$0xff] %vm3511_vm2, %v3482_v57  ;;  %v3484_v29 = vpop.f32.mrb[205].mxu0 }
 0x5bb   :  { %v3487_v23 = vpop.f32.mrb[206].mxu0 }
 0x5bc   :  { %3519 = vst.msk [vmem:[%s7743_s8 + $0x38] sm:$0xff] %vm3511_vm2, %v3487_v23  ;;  %v3489_v56 = vpop.f32.mrb[207].mxu0 }
 0x5bf   :  { %v3492_v41 = vpop.f32.mrb[208].mxu0 }
 0x5c0   :  { %3520 = vst.msk [vmem:[%s7743_s8 + $0x40] sm:$0xff] %vm3511_vm2, %v3492_v41  ;;  %v3494_v51 = vpop.f32.mrb[209].mxu0 }
 0x5c3   :  { %v3497_v11 = vpop.f32.mrb[210].mxu0 }
 0x5c4   :  { %3521 = vst.msk [vmem:[%s7743_s8 + $0x48] sm:$0xff] %vm3511_vm2, %v3497_v11  ;;  %v3499_v63 = vpop.f32.mrb[211].mxu0 }
 0x5d5   :  { %v3502_v19 = vpop.f32.mrb[212].mxu0 }
 0x5d6   :  { %3522 = vst.msk [vmem:[%s7743_s8 + $0x50] sm:$0xff] %vm3511_vm2, %v3502_v19  ;;  %v3504_v61 = vpop.f32.mrb[213].mxu0 }
 0x5d9   :  { %v3507_v28 = vpop.f32.mrb[214].mxu0 }
 0x5da   :  { %3523 = vst.msk [vmem:[%s7743_s8 + $0x58] sm:$0xff] %vm3511_vm2, %v3507_v28  ;;  %v3509_v48 = vpop.f32.mrb[215].mxu0 }
 0x5f1   :  { %v3067_v49 = vpop.xlane.xlu0 %3066 }
 0x5f2   :  { %v3068_v47 = vrot.slane %v3067_v49, 4 }
 0x5f4   :  { %v3069_v53 = vadd.f32 %v3068_v47, %v3067_v49 }
 0x5f5   :  { %v3126_v46 = vpop.xlane.xlu0 %3125 }
 0x5f6   :  { %v3070_v37 = vrot.slane %v3069_v53, 2  ;;  %v3127_v32 = vrot.slane %v3126_v46, 4 }
 0x5f8   :  { %v3128_v6 = vadd.f32 %v3127_v32, %v3126_v46  ;;  %v3071_v10 = vadd.f32 %v3070_v37, %v3069_v53 }
 0x5fa   :  { %v3129_v3 = vrot.slane %v3128_v6, 2  ;;  %v3072_v42 = vrot.slane %v3071_v10, 1 }
 0x5fc   :  { %v3130_v7 = vadd.f32 %v3129_v3, %v3128_v6  ;;  %v3073_v43 = vadd.f32 %v3072_v42, %v3071_v10 }
 0x5fe   :  { %5023 = vpush %v3073_v43  ;;  %v3131_v58 = vrot.slane %v3130_v7, 1 }
 0x600   :  { %v3132_v2 = vadd.f32 %v3131_v58, %v3130_v7 }
 0x602   :  { %5025 = vpush %v3132_v2 }
 0x62f   :  { %s5024_s8 = spop %5023 }
 0x630   :  { %v3075_v60 = vstv %s5024_s8 }
 0x631   :  { %3077 = vst [vmem:[#allocation10] sm:$0x1] %v3075_v60 }
 0x632   :  { %5360 = shalt.err (!%p5357_p8)
}
 0x633   :  { %s5361_s30 = scalar_lea.hbm %s7741_s6, 16 }
 0x634   :  { %p5362_p9 = scmp.ne.s32.totalorder %s7741_s6, %s5361_s30  ;;  %p5365_p10 = scmp.lt.u32.totalorder %s5361_s30, %s7741_s6 }
 0x636   :  { %p5367_p11 = pnand %p5365_p10, %p5362_p9 }
 0x638   :  { %5370 = shalt.err (!%p5367_p11)
}
 0x639   :  { %3855 = dma.vmem_to_hbm [thread:$0]  %s3853_s26, 16, %s7741_s6, [#allocation4]  }
 0x63a   :  { %s5026_s15 = spop %5025 }
 0x63b   :  { %v3134_v52 = vstv %s5026_s15 }
 0x63c   :  { %3136 = vst [vmem:[%s7742_s7] sm:$0x1] %v3134_v52 }
 0x660   :  { %v3775_v18 = vpop.f32.mrb[216].mxu0  ;;  %v3830_v36 = vpop.f32.mrb[216].mxu1 }
 0x661   :  { %3834 = vst.msk [vmem:[%s7744_s9] sm:$0xff] %vm3511_vm2, %v3775_v18  ;;  %v3777_v21 = vpop.f32.mrb[217].mxu0  ;;  %3845 = vst.msk [vmem:[%s7744_s9 + $0x58] sm:$0xff] %vm3511_vm2, %v3830_v36  ;;  %v3832_v34 = vpop.f32.mrb[217].mxu1 }
 0x664   :  { %v3780_v62 = vpop.f32.mrb[218].mxu0 }
 0x665   :  { %3835 = vst.msk [vmem:[%s7744_s9 + $0x8] sm:$0xff] %vm3511_vm2, %v3780_v62  ;;  %v3782_v25 = vpop.f32.mrb[219].mxu0 }
 0x668   :  { %v3785_v17 = vpop.f32.mrb[220].mxu0 }
 0x669   :  { %3836 = vst.msk [vmem:[%s7744_s9 + $0x10] sm:$0xff] %vm3511_vm2, %v3785_v17  ;;  %v3787_v24 = vpop.f32.mrb[221].mxu0 }
 0x66c   :  { %v3790_v16 = vpop.f32.mrb[222].mxu0 }
 0x66d   :  { %3837 = vst.msk [vmem:[%s7744_s9 + $0x18] sm:$0xff] %vm3511_vm2, %v3790_v16  ;;  %v3792_v8 = vpop.f32.mrb[223].mxu0 }
 0x670   :  { %v3795_v1 = vpop.f32.mrb[224].mxu0 }
 0x671   :  { %3838 = vst.msk [vmem:[%s7744_s9 + $0x20] sm:$0xff] %vm3511_vm2, %v3795_v1  ;;  %v3797_v14 = vpop.f32.mrb[225].mxu0 }
 0x674   :  { %v3800_v55 = vpop.f32.mrb[226].mxu0 }
 0x675   :  { %3839 = vst.msk [vmem:[%s7744_s9 + $0x28] sm:$0xff] %vm3511_vm2, %v3800_v55  ;;  %v3802_v9 = vpop.f32.mrb[227].mxu0 }
 0x678   :  { %v3805_v26 = vpop.f32.mrb[228].mxu0 }
 0x679   :  { %3840 = vst.msk [vmem:[%s7744_s9 + $0x30] sm:$0xff] %vm3511_vm2, %v3805_v26  ;;  %v3807_v31 = vpop.f32.mrb[229].mxu0 }
 0x67c   :  { %v3810_v20 = vpop.f32.mrb[230].mxu0 }
 0x67d   :  { %3841 = vst.msk [vmem:[%s7744_s9 + $0x38] sm:$0xff] %vm3511_vm2, %v3810_v20  ;;  %v3812_v12 = vpop.f32.mrb[231].mxu0 }
 0x680   :  { %v3815_v35 = vpop.f32.mrb[232].mxu0 }
 0x681   :  { %3842 = vst.msk [vmem:[%s7744_s9 + $0x40] sm:$0xff] %vm3511_vm2, %v3815_v35  ;;  %v3817_v15 = vpop.f32.mrb[233].mxu0 }
 0x684   :  { %v3820_v50 = vpop.f32.mrb[234].mxu0 }
 0x685   :  { %3843 = vst.msk [vmem:[%s7744_s9 + $0x48] sm:$0xff] %vm3511_vm2, %v3820_v50  ;;  %v3822_v4 = vpop.f32.mrb[235].mxu0 }
 0x688   :  { %v3825_v0 = vpop.f32.mrb[236].mxu0 }
 0x689   :  { %3844 = vst.msk [vmem:[%s7744_s9 + $0x50] sm:$0xff] %vm3511_vm2, %v3825_v0  ;;  %v3827_v22 = vpop.f32.mrb[237].mxu0 }
 0x68a   :  { %5377 = dma.done.wait [#allocation4], 16  }
 0x68b   :  { %5378 = vsyncadd [#allocation4], 4294967280 }
 0x68c   :  { %3871 = vsyncpa [#allocation3], 1 }
 0x68d   :  { %3872 = vsyncpa [#allocation6], 1 }
 0x68e   :  { %3873 = vsyncpa [#allocation9], 1 }
 0x68f   :  { %3874 = vsyncpa [#allocation4], 1 }

// kernel: ms_ssim.9
= control target key start
LH: loop header
LB: loop body
LE: loop exit
PB: predicated region body
PF: predicated region fallthrough
CT: control target
= control target key end

     0   :  { %vm35_vm0 = vcmask 1041408   ;;  %vm28_vm1 = vcmask 15360   ;;  %s1430_s0 = inlined_call_operand.vmem [shape: f32[12,2], index: 0, kind: input, shape index: {}]   ;;  %s1431_s1 = inlined_call_operand.vmem [shape: f32[12,2], index: 1, kind: input, shape index: {}]   ;;  %s1432_s2 = inlined_call_operand.vmem [shape: f32[18,12], index: 2, kind: input, shape index: {}]   ;;  %s1433_s3 = inlined_call_operand.vmem [shape: f32[2,3], index: 3, kind: input, shape index: {}]   ;;  %s1434_s4 = inlined_call_operand.vmem [shape: f32[1,1,128], index: 4, kind: output, shape index: {0}]   ;;  %s1435_s5 = inlined_call_operand.hbm [shape: f32[1,1,128], index: 5, kind: output, shape index: {1}]  }
   0x1   :  { %v1254_v0 = vld [vmem:[%s1433_s3] sm:$0x3]  ;;  %v1268_v2 = vld [vmem:[%s1430_s0 + $0x8] sm:$0xf] }
   0x2   :  { %v1259_v1 = vld [vmem:[%s1430_s0] sm:$0xff]  ;;  %1059 = vmatprep.subr.msk.mxu0 %vm35_vm0, %v1254_v0 }
   0x3   :  { %1061 = vmatprep.mubr.msk.f32.mxu0 %vm28_vm1, %v1259_v1 }
   0x4   :  { %11 = vsyncpa [#allocation3], 0  ;;  %1060 = vmatpush3.msk.msra.mxu0 %vm35_vm0, %v1254_v0  ;;  %v1216_v3 = vmov 0.0|0.0   ;;  %vm1217_vm2 = vmmov 0   ;;  %v1218_v4 = vmov 0.0   ;;  %vm124_vm3 = vcmask 1043456  }
   0x5   :  { %1062 = vmatmul.mubr.msk.f32.vlgmr.msra.gmra.mrb[0].mxu0 %vm28_vm1, %v1268_v2  ;;  %1149 = vmatprep.subr.bf16.mxu0 %v1216_v3  ;;  %vm1219_vm4 = vmmov 1   ;;  %v1291_v9 = vld [vmem:[%s1432_s2] sm:$0xff]  ;;  %vm114_vm6 = vcmask 97280   ;;  %v1296_v10 = vld [vmem:[%s1432_s2 + $0x8] sm:$0xff]  ;;  %v372_v12 = vmul.f32 %v1259_v1, %v1259_v1  ;;  %v1321_v14 = vld [vmem:[%s1432_s2 + $0x10] sm:$0x3]  ;;  %v373_v15 = vmul.f32 %v1268_v2, %v1268_v2 }
   0x6   :  { %1169 = vmatprep.subr.bf16.mxu1 %v1216_v3  ;;  %1068 = vmatprep.mubr.msk.f32.mxu0 %vm1217_vm2, %v1218_v4  ;;  %vm1280_vm5 = vmpackc.low %vm124_vm3, %vm1219_vm4  ;;  %v22_v11 = vld [vmem:[%s1431_s1] sm:$0xff]  ;;  %v23_v13 = vld [vmem:[%s1431_s1 + $0x8] sm:$0xf]  ;;  %vm930_vm7 = vcmask 23552   ;;  %vm934_vm8 = vcmask 17408   ;;  %s1220_s2 = smov [#allocation2]  }
   0x7   :  { %1071 = vmatprep.mubr.msk.f32.mxu1 %vm1217_vm2, %v1218_v4  ;;  %v538_v28 = vmul.f32 %v22_v11, %v22_v11  ;;  %v539_v29 = vmul.f32 %v23_v13, %v23_v13  ;;  %v704_v30 = vmul.f32 %v22_v11, %v1259_v1  ;;  %v705_v31 = vmul.f32 %v23_v13, %v1268_v2  ;;  %s974_s7 = sshll.u32 %s1220_s2, 4  ;;  %s975_s7 = int_to_ptr.vmem [resolvable:$true] %s974_s7 }
   0x8   :  { %s1192_s11 = scalar_lea.vmem %s975_s7, 16  ;;  %s1196_s12 = scalar_lea.vmem %s975_s7, 32 }
   0x9   :  { %p1193_p0 = scmp.ne.s32.totalorder %s975_s7, %s1192_s11  ;;  %p1197_p1 = scmp.lt.s32.totalorder %s975_s7, %s975_s7 }
   0xa   :  { %p1198_p2 = scmp.lt.s32.totalorder %s1196_s12, %s1192_s11 }
   0xc   :  { %p1199_p3 = por %p1198_p2, %p1197_p1 }
   0xe   :  { %p1200_p4 = pnand %p1199_p3, %p1193_p0 }
  0xd8   :  { %v1063_v5 = vpop.f32.mrb[0].mxu0 }
  0xd9   :  { %v105_v6 = vpop.f32.mrb[1].mxu0 }
  0xda   :  { %v1150_v8 = vpack.c.bf16 %v1063_v5, %v105_v6 }
  0xdc   :  { %1152 = vmatpush3.bf16.msk.msra.mxu0 %vm1280_vm5, %v1150_v8  ;;  %1170 = vmatpush3.bf16.msk.msra.mxu1 %vm1280_vm5, %v1150_v8 }
  0xdd   :  { %1077 = vmatprep.subr.msk.mxu0 %vm35_vm0, %v1254_v0  ;;  %1095 = vmatprep.subr.msk.mxu1 %vm35_vm0, %v1254_v0 }
  0xdf   :  { %1069 = vmatmul.mubr.msk.f32.vlgmr.msra.gmra.mrb[2].mxu0 %vm114_vm6, %v1291_v9  ;;  %1072 = vmatmul.mubr.msk.f32.vlgmr.msra.gmra.mrb[0].mxu1 %vm114_vm6, %v1296_v10 }
  0xe0   :  { %1078 = vmatpush3.msk.msra.mxu0 %vm35_vm0, %v1254_v0  ;;  %1074 = vmatprep.mubr.msk.f32.mxu1 %vm1217_vm2, %v1218_v4 }
  0xe1   :  { %1079 = vmatprep.mubr.msk.f32.mxu0 %vm28_vm1, %v22_v11  ;;  %1096 = vmatpush3.msk.msra.mxu1 %vm35_vm0, %v1254_v0 }
  0xe2   :  { %1153 = vmatprep.subr.bf16.mxu0 %v1216_v3  ;;  %1157 = vmatprep.subr.bf16.mxu1 %v1216_v3 }
  0xe3   :  { %1075 = vmatmul.mubr.msk.f32.gmra.mrb[2].mxu1 %vm114_vm6, %v1321_v14  ;;  %1080 = vmatmul.mubr.msk.f32.vlgmr.msra.gmra.mrb[4].mxu0 %vm28_vm1, %v23_v13 }
  0xe4   :  { %1097 = vmatprep.mubr.msk.f32.mxu1 %vm28_vm1, %v372_v12  ;;  %1086 = vmatprep.mubr.msk.f32.mxu0 %vm1217_vm2, %v1218_v4 }
  0xe7   :  { %1098 = vmatmul.mubr.msk.f32.vlgmr.msra.gmra.mrb[4].mxu1 %vm28_vm1, %v373_v15 }
  0xe8   :  { %1104 = vmatprep.mubr.msk.f32.mxu1 %vm1217_vm2, %v1218_v4 }
 0x1b2   :  { %v194_v16 = vpop.f32.mrb[2].mxu0  ;;  %v199_v17 = vpop.f32.mrb[0].mxu1 }
 0x1b3   :  { %v1070_v18 = vpop.f32.mrb[3].mxu0  ;;  %v1073_v19 = vpop.f32.mrb[1].mxu1  ;;  %v870_v33 = vmul.f32 %v194_v16, %v194_v16  ;;  %v871_v40 = vmul.f32 %v199_v17, %v199_v17 }
 0x1b6   :  { %v1081_v20 = vpop.f32.mrb[4].mxu0  ;;  %v204_v21 = vpop.f32.mrb[2].mxu1 }
 0x1b7   :  { %v280_v22 = vpop.f32.mrb[5].mxu0  ;;  %v1076_v23 = vpop.f32.mrb[3].mxu1  ;;  %v872_v49 = vmul.f32 %v204_v21, %v204_v21 }
 0x1b8   :  { %v1154_v24 = vpack.c.bf16 %v1081_v20, %v280_v22 }
 0x1ba   :  { %1156 = vmatpush3.bf16.msk.msra.mxu0 %vm1280_vm5, %v1154_v24  ;;  %v1099_v25 = vpop.f32.mrb[4].mxu1 }
 0x1bb   :  { %v446_v26 = vpop.f32.mrb[5].mxu1  ;;  %1113 = vmatprep.subr.msk.mxu0 %vm35_vm0, %v1254_v0 }
 0x1bc   :  { %v1158_v27 = vpack.c.bf16 %v1099_v25, %v446_v26 }
 0x1bd   :  { %1087 = vmatmul.mubr.msk.f32.vlgmr.msra.gmra.mrb[6].mxu0 %vm114_vm6, %v1291_v9 }
 0x1be   :  { %1160 = vmatpush3.bf16.msk.msra.mxu1 %vm1280_vm5, %v1158_v27  ;;  %1114 = vmatpush3.msk.msra.mxu0 %vm35_vm0, %v1254_v0 }
 0x1bf   :  { %1089 = vmatprep.mubr.msk.f32.mxu0 %vm1217_vm2, %v1218_v4  ;;  %1131 = vmatprep.subr.msk.mxu1 %vm35_vm0, %v1254_v0 }
 0x1c0   :  { %1161 = vmatprep.subr.bf16.mxu0 %v1216_v3 }
 0x1c1   :  { %1090 = vmatmul.mubr.msk.f32.gmra.mrb[8].mxu0 %vm114_vm6, %v1296_v10  ;;  %1105 = vmatmul.mubr.msk.f32.vlgmr.msra.gmra.mrb[6].mxu1 %vm114_vm6, %v1291_v9 }
 0x1c2   :  { %1092 = vmatprep.mubr.msk.f32.mxu0 %vm1217_vm2, %v1218_v4  ;;  %1107 = vmatprep.mubr.msk.f32.mxu1 %vm1217_vm2, %v1218_v4 }
 0x1c3   :  { %1132 = vmatpush3.msk.msra.mxu1 %vm35_vm0, %v1254_v0 }
 0x1c4   :  { %1165 = vmatprep.subr.bf16.mxu1 %v1216_v3 }
 0x1c5   :  { %1093 = vmatmul.mubr.msk.f32.gmra.mrb[10].mxu0 %vm114_vm6, %v1321_v14  ;;  %1108 = vmatmul.mubr.msk.f32.gmra.mrb[8].mxu1 %vm114_vm6, %v1296_v10 }
 0x1c6   :  { %1110 = vmatprep.mubr.msk.f32.mxu1 %vm1217_vm2, %v1218_v4  ;;  %1115 = vmatprep.mubr.msk.f32.mxu0 %vm28_vm1, %v538_v28 }
 0x1c9   :  { %1111 = vmatmul.mubr.msk.f32.gmra.mrb[10].mxu1 %vm114_vm6, %v1321_v14  ;;  %1116 = vmatmul.mubr.msk.f32.vlgmr.msra.gmra.mrb[12].mxu0 %vm28_vm1, %v539_v29 }
 0x1ca   :  { %1133 = vmatprep.mubr.msk.f32.mxu1 %vm28_vm1, %v704_v30  ;;  %1122 = vmatprep.mubr.msk.f32.mxu0 %vm1217_vm2, %v1218_v4 }
 0x1cd   :  { %1134 = vmatmul.mubr.msk.f32.vlgmr.msra.gmra.mrb[12].mxu1 %vm28_vm1, %v705_v31 }
 0x1ce   :  { %1140 = vmatprep.mubr.msk.f32.mxu1 %vm1217_vm2, %v1218_v4 }
 0x290   :  { %v358_v32 = vpop.f32.mrb[6].mxu0 }
 0x291   :  { %v873_v34 = vmul.f32 %v358_v32, %v358_v32  ;;  %v876_v35 = vmul.f32 %v358_v32, %v194_v16  ;;  %v1088_v36 = vpop.f32.mrb[7].mxu0 }
 0x293   :  { %v909_v37 = vadd.f32 %v873_v34, %v870_v33  ;;  %v900_v6 = vmul.f32 2.0, %v876_v35 }
 0x294   :  { %v363_v38 = vpop.f32.mrb[8].mxu0  ;;  %v524_v39 = vpop.f32.mrb[6].mxu1 }
 0x295   :  { %v874_v41 = vmul.f32 %v363_v38, %v363_v38  ;;  %v1383_v42 = vmul.f32 %v363_v38, %v199_v17  ;;  %v1091_v43 = vpop.f32.mrb[9].mxu0  ;;  %v1106_v44 = vpop.f32.mrb[7].mxu1  ;;  %v879_v45 = vsub.f32 %v524_v39, %v870_v33  ;;  %v903_v18 = vadd.f32 6.5025, %v900_v6 }
 0x297   :  { %v910_v46 = vadd.f32 %v874_v41, %v871_v40  ;;  %v901_v26 = vmul.f32 2.0, %v1383_v42 }
 0x298   :  { %v368_v47 = vpop.f32.mrb[10].mxu0  ;;  %v529_v48 = vpop.f32.mrb[8].mxu1 }
 0x299   :  { %v875_v50 = vmul.f32 %v368_v47, %v368_v47  ;;  %v1385_v51 = vmul.f32 %v368_v47, %v204_v21  ;;  %v1094_v52 = vpop.f32.mrb[11].mxu0  ;;  %v1109_v53 = vpop.f32.mrb[9].mxu1  ;;  %v880_v54 = vsub.f32 %v529_v48, %v871_v40  ;;  %v913_v19 = vadd.f32 6.5025, %v910_v46 }
 0x29a   :  { %v904_v38 = vadd.f32 6.5025, %v901_v26 }
 0x29b   :  { %v911_v55 = vadd.f32 %v875_v50, %v872_v49  ;;  %v902_v31 = vmul.f32 2.0, %v1385_v51 }
 0x29c   :  { %v534_v56 = vpop.f32.mrb[10].mxu1  ;;  %v1117_v57 = vpop.f32.mrb[12].mxu0 }
 0x29d   :  { %v881_v58 = vsub.f32 %v534_v56, %v872_v49  ;;  %v612_v59 = vpop.f32.mrb[13].mxu0  ;;  %v1112_v60 = vpop.f32.mrb[11].mxu1  ;;  %v905_v44 = vadd.f32 6.5025, %v902_v31 }
 0x29e   :  { %v1162_v61 = vpack.c.bf16 %v1117_v57, %v612_v59 }
 0x2a0   :  { %1164 = vmatpush3.bf16.msk.msra.mxu0 %vm1280_vm5, %v1162_v61  ;;  %v1135_v62 = vpop.f32.mrb[12].mxu1 }
 0x2a1   :  { %v778_v63 = vpop.f32.mrb[13].mxu1 }
 0x2a2   :  { %v1166_v0 = vpack.c.bf16 %v1135_v62, %v778_v63 }
 0x2a3   :  { %1123 = vmatmul.mubr.msk.f32.vlgmr.msra.gmra.mrb[14].mxu0 %vm114_vm6, %v1291_v9 }
 0x2a4   :  { %1168 = vmatpush3.bf16.msk.msra.mxu1 %vm1280_vm5, %v1166_v0  ;;  %1125 = vmatprep.mubr.msk.f32.mxu0 %vm1217_vm2, %v1218_v4 }
 0x2a7   :  { %1126 = vmatmul.mubr.msk.f32.gmra.mrb[16].mxu0 %vm114_vm6, %v1296_v10  ;;  %1141 = vmatmul.mubr.msk.f32.vlgmr.msra.gmra.mrb[14].mxu1 %vm114_vm6, %v1291_v9  ;;  %v912_v9 = vadd.f32 6.5025, %v909_v37 }
 0x2a8   :  { %1128 = vmatprep.mubr.msk.f32.mxu0 %vm1217_vm2, %v1218_v4  ;;  %1143 = vmatprep.mubr.msk.f32.mxu1 %vm1217_vm2, %v1218_v4 }
 0x2ab   :  { %1129 = vmatmul.mubr.msk.f32.gmra.mrb[18].mxu0 %vm114_vm6, %v1321_v14  ;;  %1144 = vmatmul.mubr.msk.f32.gmra.mrb[16].mxu1 %vm114_vm6, %v1296_v10 }
 0x2ac   :  { %1146 = vmatprep.mubr.msk.f32.mxu1 %vm1217_vm2, %v1218_v4 }
 0x2af   :  { %1147 = vmatmul.mubr.msk.f32.gmra.mrb[18].mxu1 %vm114_vm6, %v1321_v14 }
 0x376   :  { %v690_v1 = vpop.f32.mrb[14].mxu0 }
 0x377   :  { %v882_v2 = vsub.f32 %v690_v1, %v873_v34  ;;  %v1124_v3 = vpop.f32.mrb[15].mxu0  ;;  %v914_v34 = vadd.f32 6.5025, %v911_v55 }
 0x379   :  { %v894_v5 = vadd.f32 %v882_v2, %v879_v45 }
 0x37a   :  { %v695_v7 = vpop.f32.mrb[16].mxu0  ;;  %v856_v8 = vpop.f32.mrb[14].mxu1 }
 0x37b   :  { %v897_v11 = vadd.f32 58.5225, %v894_v5  ;;  %v883_v12 = vsub.f32 %v695_v7, %v874_v41  ;;  %v885_v13 = vsub.f32 %v856_v8, %v876_v35  ;;  %v1127_v15 = vpop.f32.mrb[17].mxu0  ;;  %v1142_v16 = vpop.f32.mrb[15].mxu1 }
 0x37d   :  { %v915_v10 = vmul.f32 %v912_v9, %v897_v11  ;;  %1180 = vrcp.f32 %v897_v11  ;;  %v895_v17 = vadd.f32 %v883_v12, %v880_v54  ;;  %v888_v4 = vmul.f32 2.0, %v885_v13 }
 0x37e   :  { %v700_v14 = vpop.f32.mrb[18].mxu0  ;;  %v861_v20 = vpop.f32.mrb[16].mxu1 }
 0x37f   :  { %1182 = vrcp.f32 %v915_v10  ;;  %v898_v21 = vadd.f32 58.5225, %v895_v17  ;;  %v891_v22 = vadd.f32 58.5225, %v888_v4  ;;  %v884_v23 = vsub.f32 %v700_v14, %v875_v50  ;;  %v1130_v24 = vpop.f32.mrb[19].mxu0  ;;  %v1145_v25 = vpop.f32.mrb[17].mxu1 }
 0x380   :  { %v886_v27 = vsub.f32 %v861_v20, %v1383_v42 }
 0x381   :  { %v916_v28 = vmul.f32 %v913_v19, %v898_v21  ;;  %1184 = vrcp.f32 %v898_v21  ;;  %v906_v29 = vmul.f32 %v903_v18, %v891_v22  ;;  %v896_v30 = vadd.f32 %v884_v23, %v881_v58 }
 0x382   :  { %v889_v32 = vmul.f32 2.0, %v886_v27  ;;  %v866_v33 = vpop.f32.mrb[18].mxu1 }
 0x383   :  { %1186 = vrcp.f32 %v916_v28  ;;  %v899_v35 = vadd.f32 58.5225, %v896_v30  ;;  %v887_v36 = vsub.f32 %v866_v33, %v1385_v51  ;;  %v1148_v37 = vpop.f32.mrb[19].mxu1 }
 0x384   :  { %v892_v39 = vadd.f32 58.5225, %v889_v32 }
 0x385   :  { %v917_v40 = vmul.f32 %v914_v34, %v899_v35  ;;  %1188 = vrcp.f32 %v899_v35  ;;  %v890_v41 = vmul.f32 2.0, %v887_v36 }
 0x386   :  { %v907_v42 = vmul.f32 %v904_v38, %v892_v39 }
 0x387   :  { %v1181_v43 = vpop.eup %1180  ;;  %1190 = vrcp.f32 %v917_v40  ;;  %v893_v45 = vadd.f32 58.5225, %v890_v41 }
 0x388   :  { %v925_v46 = vmul.f32 %v1181_v43, %v891_v22 }
 0x389   :  { %v1183_v47 = vpop.eup %1182  ;;  %v908_v48 = vmul.f32 %v905_v44, %v893_v45 }
 0x38a   :  { %v919_v49 = vmul.f32 %v1183_v47, %v906_v29  ;;  %v949_v54 = vsel %vm930_vm7, %v925_v46, 0.0 }
 0x38b   :  { %v1185_v50 = vpop.eup %1184 }
 0x38c   :  { %v927_v52 = vmul.f32 %v1185_v50, %v892_v39  ;;  %v931_v59 = vsel %vm930_vm7, %v919_v49, 0.0 }
 0x38d   :  { %v1187_v53 = vpop.eup %1186 }
 0x38e   :  { %v921_v51 = vmul.f32 %v1187_v53, %v907_v42  ;;  %v950_v55 = vsel %vm930_vm7, %v927_v52, 0.0 }
 0x38f   :  { %v1189_v56 = vpop.eup %1188  ;;  %v951_v57 = vadd.f32 %v950_v55, %v949_v54 }
 0x390   :  { %v929_v58 = vmul.f32 %v1189_v56, %v893_v45  ;;  %v932_v60 = vsel %vm930_vm7, %v921_v51, 0.0 }
 0x391   :  { %v1191_v61 = vpop.eup %1190  ;;  %v933_v62 = vadd.f32 %v932_v60, %v931_v59 }
 0x392   :  { %v923_v63 = vmul.f32 %v1191_v61, %v908_v48  ;;  %v952_v0 = vsel %vm934_vm8, %v929_v58, 0.0 }
 0x393   :  { %v953_v1 = vadd.f32 %v952_v0, %v951_v57 }
 0x394   :  { %v935_v2 = vsel %vm934_vm8, %v923_v63, 0.0 }
 0x395   :  { %v936_v3 = vadd.f32 %v935_v2, %v933_v62 }
 0x397   :  { %937 = vadd.xlane.f32.xlu0 %v936_v3 }
 0x39b   :  { %954 = vadd.xlane.f32.xlu0 %v953_v1 }
 0x424   :  { %v938_v5 = vpop.xlane.xlu0 %937 }
 0x425   :  { %v939_v6 = vrot.slane %v938_v5, 4 }
 0x427   :  { %v940_v7 = vadd.f32 %v939_v6, %v938_v5 }
 0x428   :  { %v955_v8 = vpop.xlane.xlu0 %954 }
 0x429   :  { %v941_v9 = vrot.slane %v940_v7, 2  ;;  %v956_v11 = vrot.slane %v955_v8, 4 }
 0x42b   :  { %v957_v12 = vadd.f32 %v956_v11, %v955_v8  ;;  %v942_v13 = vadd.f32 %v941_v9, %v940_v7 }
 0x42d   :  { %v958_v15 = vrot.slane %v957_v12, 2  ;;  %v943_v16 = vrot.slane %v942_v13, 1 }
 0x42f   :  { %v959_v10 = vadd.f32 %v958_v15, %v957_v12  ;;  %v944_v17 = vadd.f32 %v943_v16, %v942_v13 }
 0x431   :  { %1171 = vpush %v944_v17  ;;  %v960_v4 = vrot.slane %v959_v10, 1 }
 0x433   :  { %v961_v18 = vadd.f32 %v960_v4, %v959_v10 }
 0x435   :  { %1173 = vpush %v961_v18 }
 0x462   :  { %s1172_s1 = spop %1171 }
 0x463   :  { %v946_v19 = vstv %s1172_s1 }
 0x464   :  { %948 = vst [vmem:[%s1434_s4] sm:$0x1] %v946_v19 }
 0x466   :  { %s1174_s10 = spop %1173 }
 0x467   :  { %v963_v14 = vstv %s1174_s10 }
 0x468   :  { %965 = vst [vmem:[#allocation2] sm:$0x1] %v963_v14 }
 0x469   :  { %1203 = shalt.err (!%p1200_p4)
}
 0x46a   :  { %s1204_s15 = scalar_lea.hbm %s1435_s5, 16 }
 0x46b   :  { %p1205_p5 = scmp.ne.s32.totalorder %s1435_s5, %s1204_s15  ;;  %p1208_p6 = scmp.lt.u32.totalorder %s1204_s15, %s1435_s5 }
 0x46d   :  { %p1210_p7 = pnand %p1208_p6, %p1205_p5 }
 0x46f   :  { %1213 = shalt.err (!%p1210_p7)
}
 0x470   :  { %977 = dma.vmem_to_hbm [thread:$0]  %s975_s7, 16, %s1435_s5, [#allocation3]  }
 0x471   :  { %1214 = dma.done.wait [#allocation3], 16  }
 0x472   :  { %1215 = vsyncadd [#allocation3], 4294967280 }
 0x473   :  { %983 = vsyncpa [#allocation3], 1 }

</bundles_post_ra>
